<compile_context>
chip_gen: v7x
topology: tpu7x:2x2x1
jax: 0.10.0
libtpu: 0.0.40
codegen_flags: <defaults>
</compile_context>

<pallas_src>
import functools

import jax
import jax.numpy as jnp
from jax import lax
from jax.experimental import pallas as pl
from jax.experimental.pallas import tpu as pltpu

_BN_EPS = 1e-5


# --------------------------- fused encoder kernel ---------------------------

def _encoder_kernel(x_ref, m_ref,
                    g1_ref, b1_ref, w1_ref, c1_ref,
                    g2_ref, b2_ref, w2_ref, c2_ref,
                    lg_ref, lb_ref, lw_ref, lc_ref,
                    dg_ref, db_ref, dw_ref, dc_ref, pw_ref, pc_ref,
                    xl_ref, xd_ref,
                    *, n_layers, dilations, ksize):
    f32 = jnp.float32
    bf16 = jnp.bfloat16

    x = x_ref[...].astype(f32)          # (C, N): channels on sublanes, batch*time on lanes
    m = m_ref[...].astype(f32)          # (1, N)
    N = x.shape[1]                      # static
    inv_cnt = 1.0 / jnp.maximum(jnp.sum(m), 1.0)   # 1 / (# valid (b,t) positions)

    def masked_bn(h, gamma, beta):
        # Masked batch-norm: per-channel stats over valid (batch, time) positions.
        mean = jnp.sum(h * m, axis=1, keepdims=True) * inv_cnt                  # (C,1)
        var = jnp.sum(jnp.square(h - mean) * m, axis=1, keepdims=True) * inv_cnt
        return (h - mean) * lax.rsqrt(var + _BN_EPS) * gamma + beta

    def act(h):
        # TODO(synk): F.gelu defaults to the exact erf form; using the tanh
        # approximation (EUP tanh) for a TPU-safe Pallas lowering.
        return jax.nn.gelu(h, approximate=True)

    pad = (ksize - 1) // 2  # odd kernel assumed (reference uses kernel_size=3)

    def conv(h, w_flat, bias, dilation):
        # h: (Cin, N) f32 masked input; w_flat: (Cout, K*Cin) bf16; bias: (Cout, 1) f32.
        # im2col via XLU rolls, then a single MXU matmul (f32 accumulation).
        taps = []
        for k in range(ksize):
            off = (k - pad) * dilation          # static per-tap time offset
            if off == 0:
                taps.append(h)
            else:
                taps.append(pltpu.roll(h, shift=(-off) % N, axis=1))
        xs = jnp.concatenate(taps, axis=0).astype(bf16)          # (K*Cin, N)
        return jnp.dot(w_flat, xs, preferred_element_type=f32) + bias

    # ---- dilated residual blocks (weights indexed out of stacked slabs) ----
    n_dil = len(dilations)
    for l in range(n_layers * n_dil):
        dil = dilations[l % n_dil]
        h = act(masked_bn(x, g1_ref[l], b1_ref[l])) * m
        h = conv(h, w1_ref[l], c1_ref[l], dil)
        h = act(masked_bn(h, g2_ref[l], b2_ref[l])) * m
        h = conv(h, w2_ref[l], c2_ref[l], dil)
        x = x + h

    # ---- latent head: norm_l -> gelu -> 1x1 conv on masked input -> * mask ----
    xl = act(masked_bn(x, lg_ref[...], lb_ref[...])) * m
    xl = jnp.dot(lw_ref[...], xl.astype(bf16), preferred_element_type=f32) + lc_ref[...]
    xl_ref[...] = (xl * m).astype(xl_ref.dtype)

    # ---- duration predictor head ----
    d = act(masked_bn(x, dg_ref[0], db_ref[0])) * m
    d = conv(d, dw_ref[0], dc_ref[0], 1)
    d = act(masked_bn(d, dg_ref[1], db_ref[1])) * m
    d = conv(d, dw_ref[1], dc_ref[1], 1)
    d = d * m
    xd = jnp.dot(pw_ref[...], d.astype(bf16), preferred_element_type=f32) + pc_ref[...]
    xd_ref[...] = (jnp.exp(xd) * m).astype(xd_ref.dtype)


# ---------------- parameters (deterministic, in-script, pre-packed) ----------------

def init_params(key, n_vocab, n_layers, hidden, out_channels, kernel_size,
                dilations=(1, 4, 16)):
    L = n_layers * len(dilations)
    keys = iter(jax.random.split(key, 64))
    C = hidden

    def conv_w(cout, cin, k):
        # PyTorch Conv1d layout (cout, cin, k), flattened tap-major -> (cout, k*cin).
        # Stored bf16: MXU-native operand dtype on v5e/v6e/v7x (accumulation stays f32).
        w = jax.random.normal(next(keys), (cout, cin, k), jnp.float32) * (cin * k) ** -0.5
        return jnp.transpose(w, (0, 2, 1)).reshape(cout, k * cin).astype(jnp.bfloat16)

    emb = jax.random.normal(next(keys), (n_vocab, C), jnp.float32) * C ** -0.5

    blk = {
        "g1": jnp.ones((L, C, 1), jnp.float32),
        "b1": jnp.zeros((L, C, 1), jnp.float32),
        "w1": jnp.stack([conv_w(C, C, kernel_size) for _ in range(L)]),
        "c1": jnp.zeros((L, C, 1), jnp.float32),
        "g2": jnp.ones((L, C, 1), jnp.float32),
        "b2": jnp.zeros((L, C, 1), jnp.float32),
        "w2": jnp.stack([conv_w(C, C, kernel_size) for _ in range(L)]),
        "c2": jnp.zeros((L, C, 1), jnp.float32),
    }
    lat = {
        "g": jnp.ones((C, 1), jnp.float32),
        "b": jnp.zeros((C, 1), jnp.float32),
        "w": conv_w(out_channels, C, 1),
        "c": jnp.zeros((out_channels, 1), jnp.float32),
    }
    dp = {
        "g": jnp.ones((2, C, 1), jnp.float32),
        "b": jnp.zeros((2, C, 1), jnp.float32),
        "w": jnp.stack([conv_w(C, C, kernel_size) for _ in range(2)]),
        "c": jnp.zeros((2, C, 1), jnp.float32),
        "pw": conv_w(1, C, 1),
        "pc": jnp.zeros((1, 1), jnp.float32),
    }
    return {"emb": emb, "blk": blk, "lat": lat, "dp": dp}


# ---------------- forward pass ----------------

def encoder_forward(params, tokens, x_len, *, n_layers, kernel_size,
                    dilations=(1, 4, 16)):
    emb = params["emb"]
    B, T = tokens.shape
    C = emb.shape[1]
    out_ch = params["lat"]["w"].shape[0]

    # Plain-JAX glue: embedding lookup + permute(0, 2, 1) + sequence mask.
    x = jnp.transpose(jnp.take(emb, tokens, axis=0), (0, 2, 1))            # (B, C, T)
    mask_bt = (jnp.arange(T)[None, :] < x_len[:, None]).astype(x.dtype)    # (B, T)

    # Lane-dense layout: pad T so each batch occupies a full multiple of 128 lanes and
    # dilated-conv shifts never reach valid positions of a neighbouring batch slab.
    max_shift = max(dilations) * ((kernel_size - 1) // 2)
    t_pad = max(128, -(-(T + max_shift) // 128) * 128)
    assert t_pad - T >= max_shift
    N = B * t_pad

    xp = jnp.pad(x, ((0, 0), (0, 0), (0, t_pad - T)))                      # (B, C, T_pad)
    mp = jnp.pad(mask_bt, ((0, 0), (0, t_pad - T)))                        # (B, T_pad)
    x2 = jnp.transpose(xp, (1, 0, 2)).reshape(C, N)                        # (C, N)
    m2 = mp.reshape(1, N)                                                  # (1, N)

    blk, lat, dp = params["blk"], params["lat"], params["dp"]
    kernel = functools.partial(_encoder_kernel, n_layers=n_layers,
                               dilations=tuple(dilations), ksize=kernel_size)
    vspec = lambda: pl.BlockSpec(memory_space=pltpu.MemorySpace.VMEM)

    xl2, xd2 = pl.pallas_call(
        kernel,
        out_shape=(jax.ShapeDtypeStruct((out_ch, N), x.dtype),
                   jax.ShapeDtypeStruct((1, N), x.dtype)),
        in_specs=[vspec() for _ in range(20)],
        out_specs=(vspec(), vspec()),
    )(x2, m2,
      blk["g1"], blk["b1"], blk["w1"], blk["c1"],
      blk["g2"], blk["b2"], blk["w2"], blk["c2"],
      lat["g"], lat["b"], lat["w"], lat["c"],
      dp["g"], dp["b"], dp["w"], dp["c"], dp["pw"], dp["pc"])

    # Back to the reference layout.
    x_l = jnp.transpose(xl2.reshape(out_ch, B, t_pad), (1, 0, 2))[:, :, :T]  # (B, out_ch, T)
    x_d = xd2.reshape(B, t_pad)[:, :T]                                        # (B, T)
    mask = mask_bt[:, None, :]                                                # (B, 1, T)
    return x_l, x_d, mask


if __name__ == "__main__":
    n_vocab, n_layers, hidden, out_ch, ksize = 50, 2, 32, 32, 3
    B, T = 2, 16

    key = jax.random.PRNGKey(0)
    kp, kt = jax.random.split(key)
    params = init_params(kp, n_vocab, n_layers, hidden, out_ch, ksize)
    tokens = jax.random.randint(kt, (B, T), 0, n_vocab, dtype=jnp.int32)
    x_len = jnp.array([T, 11], dtype=jnp.int32)

    fwd = jax.jit(functools.partial(encoder_forward, n_layers=n_layers,
                                    kernel_size=ksize))
    x_l, x_d, mask = fwd(params, tokens, x_len)
    jax.block_until_ready((x_l, x_d, mask))

    assert x_l.shape == (B, out_ch, T)
    assert x_d.shape == (B, T)
    assert mask.shape == (B, 1, T)
    assert bool(jnp.all(jnp.isfinite(x_l))) and bool(jnp.all(jnp.isfinite(x_d)))
    print("KERNEL_OK")
</pallas_src>

<mosaic_0001>
module attributes {stable_mosaic.version = 11 : i64} {
  func.func @_encoder_kernel(%arg0: memref<32x256xf32, #tpu.memory_space<vmem>>, %arg1: memref<1x256xf32, #tpu.memory_space<vmem>>, %arg2: memref<6x32x1xf32, #tpu.memory_space<vmem>>, %arg3: memref<6x32x1xf32, #tpu.memory_space<vmem>>, %arg4: memref<6x32x96xbf16, #tpu.memory_space<vmem>>, %arg5: memref<6x32x1xf32, #tpu.memory_space<vmem>>, %arg6: memref<6x32x1xf32, #tpu.memory_space<vmem>>, %arg7: memref<6x32x1xf32, #tpu.memory_space<vmem>>, %arg8: memref<6x32x96xbf16, #tpu.memory_space<vmem>>, %arg9: memref<6x32x1xf32, #tpu.memory_space<vmem>>, %arg10: memref<32x1xf32, #tpu.memory_space<vmem>>, %arg11: memref<32x1xf32, #tpu.memory_space<vmem>>, %arg12: memref<32x32xbf16, #tpu.memory_space<vmem>>, %arg13: memref<32x1xf32, #tpu.memory_space<vmem>>, %arg14: memref<2x32x1xf32, #tpu.memory_space<vmem>>, %arg15: memref<2x32x1xf32, #tpu.memory_space<vmem>>, %arg16: memref<2x32x96xbf16, #tpu.memory_space<vmem>>, %arg17: memref<2x32x1xf32, #tpu.memory_space<vmem>>, %arg18: memref<1x32xbf16, #tpu.memory_space<vmem>>, %arg19: memref<1x1xf32, #tpu.memory_space<vmem>>, %arg20: memref<32x256xf32, #tpu.memory_space<vmem>>, %arg21: memref<1x256xf32, #tpu.memory_space<vmem>>) attributes {dimension_semantics = [], scalar_prefetch = 0 : i64, scratch_operands = 0 : i64, tpu.core_type = #tpu.core_type<tc>} {
    %c0 = arith.constant 0 : index
    %c0_0 = arith.constant 0 : index
    %0 = vector.load %arg0[%c0, %c0_0] : memref<32x256xf32, #tpu.memory_space<vmem>>, vector<32x256xf32>
    %c0_1 = arith.constant 0 : index
    %c0_2 = arith.constant 0 : index
    %1 = vector.load %arg1[%c0_1, %c0_2] : memref<1x256xf32, #tpu.memory_space<vmem>>, vector<1x256xf32>
    %2 = vector.shape_cast %1 : vector<1x256xf32> to vector<1x1x256xf32>
    %cst = arith.constant dense<0.000000e+00> : vector<1xf32>
    %3 = vector.multi_reduction <add>, %2, %cst [1, 2] : vector<1x1x256xf32> to vector<1xf32>
    %4 = vector.shape_cast %3 : vector<1xf32> to vector<1x1x1xf32>
    %5 = vector.extract %4[0, 0, 0] : f32 from vector<1x1x1xf32>
    %cst_3 = arith.constant 1.000000e+00 : f32
    %6 = arith.maximumf %5, %cst_3 : f32
    %cst_4 = arith.constant 1.000000e+00 : f32
    %7 = arith.divf %cst_4, %6 : f32
    %c0_5 = arith.constant 0 : index
    %c0_6 = arith.constant 0 : index
    %c0_7 = arith.constant 0 : index
    %8 = vector.load %arg2[%c0_5, %c0_6, %c0_7] : memref<6x32x1xf32, #tpu.memory_space<vmem>>, vector<1x32x1xf32>
    %9 = vector.shape_cast %8 : vector<1x32x1xf32> to vector<32x1xf32>
    %c0_8 = arith.constant 0 : index
    %c0_9 = arith.constant 0 : index
    %c0_10 = arith.constant 0 : index
    %10 = vector.load %arg3[%c0_8, %c0_9, %c0_10] : memref<6x32x1xf32, #tpu.memory_space<vmem>>, vector<1x32x1xf32>
    %11 = vector.shape_cast %10 : vector<1x32x1xf32> to vector<32x1xf32>
    %12 = vector.broadcast %1 : vector<1x256xf32> to vector<32x256xf32>
    %13 = arith.mulf %0, %12 : vector<32x256xf32>
    %cst_11 = arith.constant dense<0.000000e+00> : vector<32xf32>
    %14 = vector.multi_reduction <add>, %13, %cst_11 [1] : vector<32x256xf32> to vector<32xf32>
    %15 = vector.shape_cast %14 : vector<32xf32> to vector<32x1xf32>
    %16 = vector.broadcast %7 : f32 to vector<32x1xf32>
    %17 = arith.mulf %15, %16 : vector<32x1xf32>
    %18 = vector.broadcast %17 : vector<32x1xf32> to vector<32x256xf32>
    %19 = arith.subf %0, %18 : vector<32x256xf32>
    %20 = arith.mulf %19, %19 : vector<32x256xf32>
    %21 = vector.broadcast %1 : vector<1x256xf32> to vector<32x256xf32>
    %22 = arith.mulf %20, %21 : vector<32x256xf32>
    %cst_12 = arith.constant dense<0.000000e+00> : vector<32xf32>
    %23 = vector.multi_reduction <add>, %22, %cst_12 [1] : vector<32x256xf32> to vector<32xf32>
    %24 = vector.shape_cast %23 : vector<32xf32> to vector<32x1xf32>
    %25 = vector.broadcast %7 : f32 to vector<32x1xf32>
    %26 = arith.mulf %24, %25 : vector<32x1xf32>
    %27 = vector.broadcast %17 : vector<32x1xf32> to vector<32x256xf32>
    %28 = arith.subf %0, %27 : vector<32x256xf32>
    %cst_13 = arith.constant 9.99999974E-6 : f32
    %29 = vector.broadcast %cst_13 : f32 to vector<32x1xf32>
    %30 = arith.addf %26, %29 : vector<32x1xf32>
    %31 = math.rsqrt %30 : vector<32x1xf32>
    %32 = vector.broadcast %31 : vector<32x1xf32> to vector<32x256xf32>
    %33 = arith.mulf %28, %32 : vector<32x256xf32>
    %34 = vector.broadcast %9 : vector<32x1xf32> to vector<32x256xf32>
    %35 = arith.mulf %33, %34 : vector<32x256xf32>
    %36 = vector.broadcast %11 : vector<32x1xf32> to vector<32x256xf32>
    %37 = arith.addf %35, %36 : vector<32x256xf32>
    %38 = arith.mulf %37, %37 : vector<32x256xf32>
    %39 = arith.mulf %37, %38 : vector<32x256xf32>
    %cst_14 = arith.constant 4.471500e-02 : f32
    %40 = vector.broadcast %cst_14 : f32 to vector<32x256xf32>
    %41 = arith.mulf %40, %39 : vector<32x256xf32>
    %42 = arith.addf %37, %41 : vector<32x256xf32>
    %cst_15 = arith.constant 0.797884583 : f32
    %43 = vector.broadcast %cst_15 : f32 to vector<32x256xf32>
    %44 = arith.mulf %43, %42 : vector<32x256xf32>
    %45 = math.tanh %44 : vector<32x256xf32>
    %cst_16 = arith.constant 1.000000e+00 : f32
    %46 = vector.broadcast %cst_16 : f32 to vector<32x256xf32>
    %47 = arith.addf %46, %45 : vector<32x256xf32>
    %cst_17 = arith.constant 5.000000e-01 : f32
    %48 = vector.broadcast %cst_17 : f32 to vector<32x256xf32>
    %49 = arith.mulf %48, %47 : vector<32x256xf32>
    %50 = arith.mulf %37, %49 : vector<32x256xf32>
    %51 = vector.broadcast %1 : vector<1x256xf32> to vector<32x256xf32>
    %52 = arith.mulf %50, %51 : vector<32x256xf32>
    %c0_18 = arith.constant 0 : index
    %c0_19 = arith.constant 0 : index
    %c0_20 = arith.constant 0 : index
    %53 = vector.load %arg4[%c0_18, %c0_19, %c0_20] : memref<6x32x96xbf16, #tpu.memory_space<vmem>>, vector<1x32x96xbf16>
    %54 = vector.shape_cast %53 : vector<1x32x96xbf16> to vector<32x96xbf16>
    %c0_21 = arith.constant 0 : index
    %c0_22 = arith.constant 0 : index
    %c0_23 = arith.constant 0 : index
    %55 = vector.load %arg5[%c0_21, %c0_22, %c0_23] : memref<6x32x1xf32, #tpu.memory_space<vmem>>, vector<1x32x1xf32>
    %56 = vector.shape_cast %55 : vector<1x32x1xf32> to vector<32x1xf32>
    %c1_i32 = arith.constant 1 : i32
    %57 = tpu.dynamic_rotate %52 by %c1_i32 dim 1 : vector<32x256xf32>, i32 -> vector<32x256xf32>
    %c255_i32 = arith.constant 255 : i32
    %58 = tpu.dynamic_rotate %52 by %c255_i32 dim 1 : vector<32x256xf32>, i32 -> vector<32x256xf32>
    %59 = tpu.concatenate %57, %52, %58 in 0 : vector<32x256xf32>, vector<32x256xf32>, vector<32x256xf32> -> vector<96x256xf32>
    %60 = arith.truncf %59 : vector<96x256xf32> to vector<96x256xbf16>
    %cst_24 = arith.constant dense<0.000000e+00> : vector<32x256xf32>
    %61 = tpu.matmul %54, %60, %cst_24 {dimension_numbers = #tpu.dot_dimension_numbers<[1], [0], [0], [1], [0, 0, 1, 1], [], []>} : vector<32x96xbf16>, vector<96x256xbf16>, vector<32x256xf32> -> vector<32x256xf32>
    %62 = vector.broadcast %56 : vector<32x1xf32> to vector<32x256xf32>
    %63 = arith.addf %61, %62 : vector<32x256xf32>
    %c0_25 = arith.constant 0 : index
    %c0_26 = arith.constant 0 : index
    %c0_27 = arith.constant 0 : index
    %64 = vector.load %arg6[%c0_25, %c0_26, %c0_27] : memref<6x32x1xf32, #tpu.memory_space<vmem>>, vector<1x32x1xf32>
    %65 = vector.shape_cast %64 : vector<1x32x1xf32> to vector<32x1xf32>
    %c0_28 = arith.constant 0 : index
    %c0_29 = arith.constant 0 : index
    %c0_30 = arith.constant 0 : index
    %66 = vector.load %arg7[%c0_28, %c0_29, %c0_30] : memref<6x32x1xf32, #tpu.memory_space<vmem>>, vector<1x32x1xf32>
    %67 = vector.shape_cast %66 : vector<1x32x1xf32> to vector<32x1xf32>
    %68 = vector.broadcast %1 : vector<1x256xf32> to vector<32x256xf32>
    %69 = arith.mulf %63, %68 : vector<32x256xf32>
    %cst_31 = arith.constant dense<0.000000e+00> : vector<32xf32>
    %70 = vector.multi_reduction <add>, %69, %cst_31 [1] : vector<32x256xf32> to vector<32xf32>
    %71 = vector.shape_cast %70 : vector<32xf32> to vector<32x1xf32>
    %72 = vector.broadcast %7 : f32 to vector<32x1xf32>
    %73 = arith.mulf %71, %72 : vector<32x1xf32>
    %74 = vector.broadcast %73 : vector<32x1xf32> to vector<32x256xf32>
    %75 = arith.subf %63, %74 : vector<32x256xf32>
    %76 = arith.mulf %75, %75 : vector<32x256xf32>
    %77 = vector.broadcast %1 : vector<1x256xf32> to vector<32x256xf32>
    %78 = arith.mulf %76, %77 : vector<32x256xf32>
    %cst_32 = arith.constant dense<0.000000e+00> : vector<32xf32>
    %79 = vector.multi_reduction <add>, %78, %cst_32 [1] : vector<32x256xf32> to vector<32xf32>
    %80 = vector.shape_cast %79 : vector<32xf32> to vector<32x1xf32>
    %81 = vector.broadcast %7 : f32 to vector<32x1xf32>
    %82 = arith.mulf %80, %81 : vector<32x1xf32>
    %83 = vector.broadcast %73 : vector<32x1xf32> to vector<32x256xf32>
    %84 = arith.subf %63, %83 : vector<32x256xf32>
    %cst_33 = arith.constant 9.99999974E-6 : f32
    %85 = vector.broadcast %cst_33 : f32 to vector<32x1xf32>
    %86 = arith.addf %82, %85 : vector<32x1xf32>
    %87 = math.rsqrt %86 : vector<32x1xf32>
    %88 = vector.broadcast %87 : vector<32x1xf32> to vector<32x256xf32>
    %89 = arith.mulf %84, %88 : vector<32x256xf32>
    %90 = vector.broadcast %65 : vector<32x1xf32> to vector<32x256xf32>
    %91 = arith.mulf %89, %90 : vector<32x256xf32>
    %92 = vector.broadcast %67 : vector<32x1xf32> to vector<32x256xf32>
    %93 = arith.addf %91, %92 : vector<32x256xf32>
    %94 = arith.mulf %93, %93 : vector<32x256xf32>
    %95 = arith.mulf %93, %94 : vector<32x256xf32>
    %cst_34 = arith.constant 4.471500e-02 : f32
    %96 = vector.broadcast %cst_34 : f32 to vector<32x256xf32>
    %97 = arith.mulf %96, %95 : vector<32x256xf32>
    %98 = arith.addf %93, %97 : vector<32x256xf32>
    %cst_35 = arith.constant 0.797884583 : f32
    %99 = vector.broadcast %cst_35 : f32 to vector<32x256xf32>
    %100 = arith.mulf %99, %98 : vector<32x256xf32>
    %101 = math.tanh %100 : vector<32x256xf32>
    %cst_36 = arith.constant 1.000000e+00 : f32
    %102 = vector.broadcast %cst_36 : f32 to vector<32x256xf32>
    %103 = arith.addf %102, %101 : vector<32x256xf32>
    %cst_37 = arith.constant 5.000000e-01 : f32
    %104 = vector.broadcast %cst_37 : f32 to vector<32x256xf32>
    %105 = arith.mulf %104, %103 : vector<32x256xf32>
    %106 = arith.mulf %93, %105 : vector<32x256xf32>
    %107 = vector.broadcast %1 : vector<1x256xf32> to vector<32x256xf32>
    %108 = arith.mulf %106, %107 : vector<32x256xf32>
    %c0_38 = arith.constant 0 : index
    %c0_39 = arith.constant 0 : index
    %c0_40 = arith.constant 0 : index
    %109 = vector.load %arg8[%c0_38, %c0_39, %c0_40] : memref<6x32x96xbf16, #tpu.memory_space<vmem>>, vector<1x32x96xbf16>
    %110 = vector.shape_cast %109 : vector<1x32x96xbf16> to vector<32x96xbf16>
    %c0_41 = arith.constant 0 : index
    %c0_42 = arith.constant 0 : index
    %c0_43 = arith.constant 0 : index
    %111 = vector.load %arg9[%c0_41, %c0_42, %c0_43] : memref<6x32x1xf32, #tpu.memory_space<vmem>>, vector<1x32x1xf32>
    %112 = vector.shape_cast %111 : vector<1x32x1xf32> to vector<32x1xf32>
    %c1_i32_44 = arith.constant 1 : i32
    %113 = tpu.dynamic_rotate %108 by %c1_i32_44 dim 1 : vector<32x256xf32>, i32 -> vector<32x256xf32>
    %c255_i32_45 = arith.constant 255 : i32
    %114 = tpu.dynamic_rotate %108 by %c255_i32_45 dim 1 : vector<32x256xf32>, i32 -> vector<32x256xf32>
    %115 = tpu.concatenate %113, %108, %114 in 0 : vector<32x256xf32>, vector<32x256xf32>, vector<32x256xf32> -> vector<96x256xf32>
    %116 = arith.truncf %115 : vector<96x256xf32> to vector<96x256xbf16>
    %cst_46 = arith.constant dense<0.000000e+00> : vector<32x256xf32>
    %117 = tpu.matmul %110, %116, %cst_46 {dimension_numbers = #tpu.dot_dimension_numbers<[1], [0], [0], [1], [0, 0, 1, 1], [], []>} : vector<32x96xbf16>, vector<96x256xbf16>, vector<32x256xf32> -> vector<32x256xf32>
    %118 = vector.broadcast %112 : vector<32x1xf32> to vector<32x256xf32>
    %119 = arith.addf %117, %118 : vector<32x256xf32>
    %120 = arith.addf %0, %119 : vector<32x256xf32>
    %c1 = arith.constant 1 : index
    %c0_47 = arith.constant 0 : index
    %c0_48 = arith.constant 0 : index
    %121 = vector.load %arg2[%c1, %c0_47, %c0_48] : memref<6x32x1xf32, #tpu.memory_space<vmem>>, vector<1x32x1xf32>
    %122 = vector.shape_cast %121 : vector<1x32x1xf32> to vector<32x1xf32>
    %c1_49 = arith.constant 1 : index
    %c0_50 = arith.constant 0 : index
    %c0_51 = arith.constant 0 : index
    %123 = vector.load %arg3[%c1_49, %c0_50, %c0_51] : memref<6x32x1xf32, #tpu.memory_space<vmem>>, vector<1x32x1xf32>
    %124 = vector.shape_cast %123 : vector<1x32x1xf32> to vector<32x1xf32>
    %125 = vector.broadcast %1 : vector<1x256xf32> to vector<32x256xf32>
    %126 = arith.mulf %120, %125 : vector<32x256xf32>
    %cst_52 = arith.constant dense<0.000000e+00> : vector<32xf32>
    %127 = vector.multi_reduction <add>, %126, %cst_52 [1] : vector<32x256xf32> to vector<32xf32>
    %128 = vector.shape_cast %127 : vector<32xf32> to vector<32x1xf32>
    %129 = vector.broadcast %7 : f32 to vector<32x1xf32>
    %130 = arith.mulf %128, %129 : vector<32x1xf32>
    %131 = vector.broadcast %130 : vector<32x1xf32> to vector<32x256xf32>
    %132 = arith.subf %120, %131 : vector<32x256xf32>
    %133 = arith.mulf %132, %132 : vector<32x256xf32>
    %134 = vector.broadcast %1 : vector<1x256xf32> to vector<32x256xf32>
    %135 = arith.mulf %133, %134 : vector<32x256xf32>
    %cst_53 = arith.constant dense<0.000000e+00> : vector<32xf32>
    %136 = vector.multi_reduction <add>, %135, %cst_53 [1] : vector<32x256xf32> to vector<32xf32>
    %137 = vector.shape_cast %136 : vector<32xf32> to vector<32x1xf32>
    %138 = vector.broadcast %7 : f32 to vector<32x1xf32>
    %139 = arith.mulf %137, %138 : vector<32x1xf32>
    %140 = vector.broadcast %130 : vector<32x1xf32> to vector<32x256xf32>
    %141 = arith.subf %120, %140 : vector<32x256xf32>
    %cst_54 = arith.constant 9.99999974E-6 : f32
    %142 = vector.broadcast %cst_54 : f32 to vector<32x1xf32>
    %143 = arith.addf %139, %142 : vector<32x1xf32>
    %144 = math.rsqrt %143 : vector<32x1xf32>
    %145 = vector.broadcast %144 : vector<32x1xf32> to vector<32x256xf32>
    %146 = arith.mulf %141, %145 : vector<32x256xf32>
    %147 = vector.broadcast %122 : vector<32x1xf32> to vector<32x256xf32>
    %148 = arith.mulf %146, %147 : vector<32x256xf32>
    %149 = vector.broadcast %124 : vector<32x1xf32> to vector<32x256xf32>
    %150 = arith.addf %148, %149 : vector<32x256xf32>
    %151 = arith.mulf %150, %150 : vector<32x256xf32>
    %152 = arith.mulf %150, %151 : vector<32x256xf32>
    %cst_55 = arith.constant 4.471500e-02 : f32
    %153 = vector.broadcast %cst_55 : f32 to vector<32x256xf32>
    %154 = arith.mulf %153, %152 : vector<32x256xf32>
    %155 = arith.addf %150, %154 : vector<32x256xf32>
    %cst_56 = arith.constant 0.797884583 : f32
    %156 = vector.broadcast %cst_56 : f32 to vector<32x256xf32>
    %157 = arith.mulf %156, %155 : vector<32x256xf32>
    %158 = math.tanh %157 : vector<32x256xf32>
    %cst_57 = arith.constant 1.000000e+00 : f32
    %159 = vector.broadcast %cst_57 : f32 to vector<32x256xf32>
    %160 = arith.addf %159, %158 : vector<32x256xf32>
    %cst_58 = arith.constant 5.000000e-01 : f32
    %161 = vector.broadcast %cst_58 : f32 to vector<32x256xf32>
    %162 = arith.mulf %161, %160 : vector<32x256xf32>
    %163 = arith.mulf %150, %162 : vector<32x256xf32>
    %164 = vector.broadcast %1 : vector<1x256xf32> to vector<32x256xf32>
    %165 = arith.mulf %163, %164 : vector<32x256xf32>
    %c1_59 = arith.constant 1 : index
    %c0_60 = arith.constant 0 : index
    %c0_61 = arith.constant 0 : index
    %166 = vector.load %arg4[%c1_59, %c0_60, %c0_61] : memref<6x32x96xbf16, #tpu.memory_space<vmem>>, vector<1x32x96xbf16>
    %167 = vector.shape_cast %166 : vector<1x32x96xbf16> to vector<32x96xbf16>
    %c1_62 = arith.constant 1 : index
    %c0_63 = arith.constant 0 : index
    %c0_64 = arith.constant 0 : index
    %168 = vector.load %arg5[%c1_62, %c0_63, %c0_64] : memref<6x32x1xf32, #tpu.memory_space<vmem>>, vector<1x32x1xf32>
    %169 = vector.shape_cast %168 : vector<1x32x1xf32> to vector<32x1xf32>
    %c4_i32 = arith.constant 4 : i32
    %170 = tpu.dynamic_rotate %165 by %c4_i32 dim 1 : vector<32x256xf32>, i32 -> vector<32x256xf32>
    %c252_i32 = arith.constant 252 : i32
    %171 = tpu.dynamic_rotate %165 by %c252_i32 dim 1 : vector<32x256xf32>, i32 -> vector<32x256xf32>
    %172 = tpu.concatenate %170, %165, %171 in 0 : vector<32x256xf32>, vector<32x256xf32>, vector<32x256xf32> -> vector<96x256xf32>
    %173 = arith.truncf %172 : vector<96x256xf32> to vector<96x256xbf16>
    %cst_65 = arith.constant dense<0.000000e+00> : vector<32x256xf32>
    %174 = tpu.matmul %167, %173, %cst_65 {dimension_numbers = #tpu.dot_dimension_numbers<[1], [0], [0], [1], [0, 0, 1, 1], [], []>} : vector<32x96xbf16>, vector<96x256xbf16>, vector<32x256xf32> -> vector<32x256xf32>
    %175 = vector.broadcast %169 : vector<32x1xf32> to vector<32x256xf32>
    %176 = arith.addf %174, %175 : vector<32x256xf32>
    %c1_66 = arith.constant 1 : index
    %c0_67 = arith.constant 0 : index
    %c0_68 = arith.constant 0 : index
    %177 = vector.load %arg6[%c1_66, %c0_67, %c0_68] : memref<6x32x1xf32, #tpu.memory_space<vmem>>, vector<1x32x1xf32>
    %178 = vector.shape_cast %177 : vector<1x32x1xf32> to vector<32x1xf32>
    %c1_69 = arith.constant 1 : index
    %c0_70 = arith.constant 0 : index
    %c0_71 = arith.constant 0 : index
    %179 = vector.load %arg7[%c1_69, %c0_70, %c0_71] : memref<6x32x1xf32, #tpu.memory_space<vmem>>, vector<1x32x1xf32>
    %180 = vector.shape_cast %179 : vector<1x32x1xf32> to vector<32x1xf32>
    %181 = vector.broadcast %1 : vector<1x256xf32> to vector<32x256xf32>
    %182 = arith.mulf %176, %181 : vector<32x256xf32>
    %cst_72 = arith.constant dense<0.000000e+00> : vector<32xf32>
    %183 = vector.multi_reduction <add>, %182, %cst_72 [1] : vector<32x256xf32> to vector<32xf32>
    %184 = vector.shape_cast %183 : vector<32xf32> to vector<32x1xf32>
    %185 = vector.broadcast %7 : f32 to vector<32x1xf32>
    %186 = arith.mulf %184, %185 : vector<32x1xf32>
    %187 = vector.broadcast %186 : vector<32x1xf32> to vector<32x256xf32>
    %188 = arith.subf %176, %187 : vector<32x256xf32>
    %189 = arith.mulf %188, %188 : vector<32x256xf32>
    %190 = vector.broadcast %1 : vector<1x256xf32> to vector<32x256xf32>
    %191 = arith.mulf %189, %190 : vector<32x256xf32>
    %cst_73 = arith.constant dense<0.000000e+00> : vector<32xf32>
    %192 = vector.multi_reduction <add>, %191, %cst_73 [1] : vector<32x256xf32> to vector<32xf32>
    %193 = vector.shape_cast %192 : vector<32xf32> to vector<32x1xf32>
    %194 = vector.broadcast %7 : f32 to vector<32x1xf32>
    %195 = arith.mulf %193, %194 : vector<32x1xf32>
    %196 = vector.broadcast %186 : vector<32x1xf32> to vector<32x256xf32>
    %197 = arith.subf %176, %196 : vector<32x256xf32>
    %cst_74 = arith.constant 9.99999974E-6 : f32
    %198 = vector.broadcast %cst_74 : f32 to vector<32x1xf32>
    %199 = arith.addf %195, %198 : vector<32x1xf32>
    %200 = math.rsqrt %199 : vector<32x1xf32>
    %201 = vector.broadcast %200 : vector<32x1xf32> to vector<32x256xf32>
    %202 = arith.mulf %197, %201 : vector<32x256xf32>
    %203 = vector.broadcast %178 : vector<32x1xf32> to vector<32x256xf32>
    %204 = arith.mulf %202, %203 : vector<32x256xf32>
    %205 = vector.broadcast %180 : vector<32x1xf32> to vector<32x256xf32>
    %206 = arith.addf %204, %205 : vector<32x256xf32>
    %207 = arith.mulf %206, %206 : vector<32x256xf32>
    %208 = arith.mulf %206, %207 : vector<32x256xf32>
    %cst_75 = arith.constant 4.471500e-02 : f32
    %209 = vector.broadcast %cst_75 : f32 to vector<32x256xf32>
    %210 = arith.mulf %209, %208 : vector<32x256xf32>
    %211 = arith.addf %206, %210 : vector<32x256xf32>
    %cst_76 = arith.constant 0.797884583 : f32
    %212 = vector.broadcast %cst_76 : f32 to vector<32x256xf32>
    %213 = arith.mulf %212, %211 : vector<32x256xf32>
    %214 = math.tanh %213 : vector<32x256xf32>
    %cst_77 = arith.constant 1.000000e+00 : f32
    %215 = vector.broadcast %cst_77 : f32 to vector<32x256xf32>
    %216 = arith.addf %215, %214 : vector<32x256xf32>
    %cst_78 = arith.constant 5.000000e-01 : f32
    %217 = vector.broadcast %cst_78 : f32 to vector<32x256xf32>
    %218 = arith.mulf %217, %216 : vector<32x256xf32>
    %219 = arith.mulf %206, %218 : vector<32x256xf32>
    %220 = vector.broadcast %1 : vector<1x256xf32> to vector<32x256xf32>
    %221 = arith.mulf %219, %220 : vector<32x256xf32>
    %c1_79 = arith.constant 1 : index
    %c0_80 = arith.constant 0 : index
    %c0_81 = arith.constant 0 : index
    %222 = vector.load %arg8[%c1_79, %c0_80, %c0_81] : memref<6x32x96xbf16, #tpu.memory_space<vmem>>, vector<1x32x96xbf16>
    %223 = vector.shape_cast %222 : vector<1x32x96xbf16> to vector<32x96xbf16>
    %c1_82 = arith.constant 1 : index
    %c0_83 = arith.constant 0 : index
    %c0_84 = arith.constant 0 : index
    %224 = vector.load %arg9[%c1_82, %c0_83, %c0_84] : memref<6x32x1xf32, #tpu.memory_space<vmem>>, vector<1x32x1xf32>
    %225 = vector.shape_cast %224 : vector<1x32x1xf32> to vector<32x1xf32>
    %c4_i32_85 = arith.constant 4 : i32
    %226 = tpu.dynamic_rotate %221 by %c4_i32_85 dim 1 : vector<32x256xf32>, i32 -> vector<32x256xf32>
    %c252_i32_86 = arith.constant 252 : i32
    %227 = tpu.dynamic_rotate %221 by %c252_i32_86 dim 1 : vector<32x256xf32>, i32 -> vector<32x256xf32>
    %228 = tpu.concatenate %226, %221, %227 in 0 : vector<32x256xf32>, vector<32x256xf32>, vector<32x256xf32> -> vector<96x256xf32>
    %229 = arith.truncf %228 : vector<96x256xf32> to vector<96x256xbf16>
    %cst_87 = arith.constant dense<0.000000e+00> : vector<32x256xf32>
    %230 = tpu.matmul %223, %229, %cst_87 {dimension_numbers = #tpu.dot_dimension_numbers<[1], [0], [0], [1], [0, 0, 1, 1], [], []>} : vector<32x96xbf16>, vector<96x256xbf16>, vector<32x256xf32> -> vector<32x256xf32>
    %231 = vector.broadcast %225 : vector<32x1xf32> to vector<32x256xf32>
    %232 = arith.addf %230, %231 : vector<32x256xf32>
    %233 = arith.addf %120, %232 : vector<32x256xf32>
    %c2 = arith.constant 2 : index
    %c0_88 = arith.constant 0 : index
    %c0_89 = arith.constant 0 : index
    %234 = vector.load %arg2[%c2, %c0_88, %c0_89] : memref<6x32x1xf32, #tpu.memory_space<vmem>>, vector<1x32x1xf32>
    %235 = vector.shape_cast %234 : vector<1x32x1xf32> to vector<32x1xf32>
    %c2_90 = arith.constant 2 : index
    %c0_91 = arith.constant 0 : index
    %c0_92 = arith.constant 0 : index
    %236 = vector.load %arg3[%c2_90, %c0_91, %c0_92] : memref<6x32x1xf32, #tpu.memory_space<vmem>>, vector<1x32x1xf32>
    %237 = vector.shape_cast %236 : vector<1x32x1xf32> to vector<32x1xf32>
    %238 = vector.broadcast %1 : vector<1x256xf32> to vector<32x256xf32>
    %239 = arith.mulf %233, %238 : vector<32x256xf32>
    %cst_93 = arith.constant dense<0.000000e+00> : vector<32xf32>
    %240 = vector.multi_reduction <add>, %239, %cst_93 [1] : vector<32x256xf32> to vector<32xf32>
    %241 = vector.shape_cast %240 : vector<32xf32> to vector<32x1xf32>
    %242 = vector.broadcast %7 : f32 to vector<32x1xf32>
    %243 = arith.mulf %241, %242 : vector<32x1xf32>
    %244 = vector.broadcast %243 : vector<32x1xf32> to vector<32x256xf32>
    %245 = arith.subf %233, %244 : vector<32x256xf32>
    %246 = arith.mulf %245, %245 : vector<32x256xf32>
    %247 = vector.broadcast %1 : vector<1x256xf32> to vector<32x256xf32>
    %248 = arith.mulf %246, %247 : vector<32x256xf32>
    %cst_94 = arith.constant dense<0.000000e+00> : vector<32xf32>
    %249 = vector.multi_reduction <add>, %248, %cst_94 [1] : vector<32x256xf32> to vector<32xf32>
    %250 = vector.shape_cast %249 : vector<32xf32> to vector<32x1xf32>
    %251 = vector.broadcast %7 : f32 to vector<32x1xf32>
    %252 = arith.mulf %250, %251 : vector<32x1xf32>
    %253 = vector.broadcast %243 : vector<32x1xf32> to vector<32x256xf32>
    %254 = arith.subf %233, %253 : vector<32x256xf32>
    %cst_95 = arith.constant 9.99999974E-6 : f32
    %255 = vector.broadcast %cst_95 : f32 to vector<32x1xf32>
    %256 = arith.addf %252, %255 : vector<32x1xf32>
    %257 = math.rsqrt %256 : vector<32x1xf32>
    %258 = vector.broadcast %257 : vector<32x1xf32> to vector<32x256xf32>
    %259 = arith.mulf %254, %258 : vector<32x256xf32>
    %260 = vector.broadcast %235 : vector<32x1xf32> to vector<32x256xf32>
    %261 = arith.mulf %259, %260 : vector<32x256xf32>
    %262 = vector.broadcast %237 : vector<32x1xf32> to vector<32x256xf32>
    %263 = arith.addf %261, %262 : vector<32x256xf32>
    %264 = arith.mulf %263, %263 : vector<32x256xf32>
    %265 = arith.mulf %263, %264 : vector<32x256xf32>
    %cst_96 = arith.constant 4.471500e-02 : f32
    %266 = vector.broadcast %cst_96 : f32 to vector<32x256xf32>
    %267 = arith.mulf %266, %265 : vector<32x256xf32>
    %268 = arith.addf %263, %267 : vector<32x256xf32>
    %cst_97 = arith.constant 0.797884583 : f32
    %269 = vector.broadcast %cst_97 : f32 to vector<32x256xf32>
    %270 = arith.mulf %269, %268 : vector<32x256xf32>
    %271 = math.tanh %270 : vector<32x256xf32>
    %cst_98 = arith.constant 1.000000e+00 : f32
    %272 = vector.broadcast %cst_98 : f32 to vector<32x256xf32>
    %273 = arith.addf %272, %271 : vector<32x256xf32>
    %cst_99 = arith.constant 5.000000e-01 : f32
    %274 = vector.broadcast %cst_99 : f32 to vector<32x256xf32>
    %275 = arith.mulf %274, %273 : vector<32x256xf32>
    %276 = arith.mulf %263, %275 : vector<32x256xf32>
    %277 = vector.broadcast %1 : vector<1x256xf32> to vector<32x256xf32>
    %278 = arith.mulf %276, %277 : vector<32x256xf32>
    %c2_100 = arith.constant 2 : index
    %c0_101 = arith.constant 0 : index
    %c0_102 = arith.constant 0 : index
    %279 = vector.load %arg4[%c2_100, %c0_101, %c0_102] : memref<6x32x96xbf16, #tpu.memory_space<vmem>>, vector<1x32x96xbf16>
    %280 = vector.shape_cast %279 : vector<1x32x96xbf16> to vector<32x96xbf16>
    %c2_103 = arith.constant 2 : index
    %c0_104 = arith.constant 0 : index
    %c0_105 = arith.constant 0 : index
    %281 = vector.load %arg5[%c2_103, %c0_104, %c0_105] : memref<6x32x1xf32, #tpu.memory_space<vmem>>, vector<1x32x1xf32>
    %282 = vector.shape_cast %281 : vector<1x32x1xf32> to vector<32x1xf32>
    %c16_i32 = arith.constant 16 : i32
    %283 = tpu.dynamic_rotate %278 by %c16_i32 dim 1 : vector<32x256xf32>, i32 -> vector<32x256xf32>
    %c240_i32 = arith.constant 240 : i32
    %284 = tpu.dynamic_rotate %278 by %c240_i32 dim 1 : vector<32x256xf32>, i32 -> vector<32x256xf32>
    %285 = tpu.concatenate %283, %278, %284 in 0 : vector<32x256xf32>, vector<32x256xf32>, vector<32x256xf32> -> vector<96x256xf32>
    %286 = arith.truncf %285 : vector<96x256xf32> to vector<96x256xbf16>
    %cst_106 = arith.constant dense<0.000000e+00> : vector<32x256xf32>
    %287 = tpu.matmul %280, %286, %cst_106 {dimension_numbers = #tpu.dot_dimension_numbers<[1], [0], [0], [1], [0, 0, 1, 1], [], []>} : vector<32x96xbf16>, vector<96x256xbf16>, vector<32x256xf32> -> vector<32x256xf32>
    %288 = vector.broadcast %282 : vector<32x1xf32> to vector<32x256xf32>
    %289 = arith.addf %287, %288 : vector<32x256xf32>
    %c2_107 = arith.constant 2 : index
    %c0_108 = arith.constant 0 : index
    %c0_109 = arith.constant 0 : index
    %290 = vector.load %arg6[%c2_107, %c0_108, %c0_109] : memref<6x32x1xf32, #tpu.memory_space<vmem>>, vector<1x32x1xf32>
    %291 = vector.shape_cast %290 : vector<1x32x1xf32> to vector<32x1xf32>
    %c2_110 = arith.constant 2 : index
    %c0_111 = arith.constant 0 : index
    %c0_112 = arith.constant 0 : index
    %292 = vector.load %arg7[%c2_110, %c0_111, %c0_112] : memref<6x32x1xf32, #tpu.memory_space<vmem>>, vector<1x32x1xf32>
    %293 = vector.shape_cast %292 : vector<1x32x1xf32> to vector<32x1xf32>
    %294 = vector.broadcast %1 : vector<1x256xf32> to vector<32x256xf32>
    %295 = arith.mulf %289, %294 : vector<32x256xf32>
    %cst_113 = arith.constant dense<0.000000e+00> : vector<32xf32>
    %296 = vector.multi_reduction <add>, %295, %cst_113 [1] : vector<32x256xf32> to vector<32xf32>
    %297 = vector.shape_cast %296 : vector<32xf32> to vector<32x1xf32>
    %298 = vector.broadcast %7 : f32 to vector<32x1xf32>
    %299 = arith.mulf %297, %298 : vector<32x1xf32>
    %300 = vector.broadcast %299 : vector<32x1xf32> to vector<32x256xf32>
    %301 = arith.subf %289, %300 : vector<32x256xf32>
    %302 = arith.mulf %301, %301 : vector<32x256xf32>
    %303 = vector.broadcast %1 : vector<1x256xf32> to vector<32x256xf32>
    %304 = arith.mulf %302, %303 : vector<32x256xf32>
    %cst_114 = arith.constant dense<0.000000e+00> : vector<32xf32>
    %305 = vector.multi_reduction <add>, %304, %cst_114 [1] : vector<32x256xf32> to vector<32xf32>
    %306 = vector.shape_cast %305 : vector<32xf32> to vector<32x1xf32>
    %307 = vector.broadcast %7 : f32 to vector<32x1xf32>
    %308 = arith.mulf %306, %307 : vector<32x1xf32>
    %309 = vector.broadcast %299 : vector<32x1xf32> to vector<32x256xf32>
    %310 = arith.subf %289, %309 : vector<32x256xf32>
    %cst_115 = arith.constant 9.99999974E-6 : f32
    %311 = vector.broadcast %cst_115 : f32 to vector<32x1xf32>
    %312 = arith.addf %308, %311 : vector<32x1xf32>
    %313 = math.rsqrt %312 : vector<32x1xf32>
    %314 = vector.broadcast %313 : vector<32x1xf32> to vector<32x256xf32>
    %315 = arith.mulf %310, %314 : vector<32x256xf32>
    %316 = vector.broadcast %291 : vector<32x1xf32> to vector<32x256xf32>
    %317 = arith.mulf %315, %316 : vector<32x256xf32>
    %318 = vector.broadcast %293 : vector<32x1xf32> to vector<32x256xf32>
    %319 = arith.addf %317, %318 : vector<32x256xf32>
    %320 = arith.mulf %319, %319 : vector<32x256xf32>
    %321 = arith.mulf %319, %320 : vector<32x256xf32>
    %cst_116 = arith.constant 4.471500e-02 : f32
    %322 = vector.broadcast %cst_116 : f32 to vector<32x256xf32>
    %323 = arith.mulf %322, %321 : vector<32x256xf32>
    %324 = arith.addf %319, %323 : vector<32x256xf32>
    %cst_117 = arith.constant 0.797884583 : f32
    %325 = vector.broadcast %cst_117 : f32 to vector<32x256xf32>
    %326 = arith.mulf %325, %324 : vector<32x256xf32>
    %327 = math.tanh %326 : vector<32x256xf32>
    %cst_118 = arith.constant 1.000000e+00 : f32
    %328 = vector.broadcast %cst_118 : f32 to vector<32x256xf32>
    %329 = arith.addf %328, %327 : vector<32x256xf32>
    %cst_119 = arith.constant 5.000000e-01 : f32
    %330 = vector.broadcast %cst_119 : f32 to vector<32x256xf32>
    %331 = arith.mulf %330, %329 : vector<32x256xf32>
    %332 = arith.mulf %319, %331 : vector<32x256xf32>
    %333 = vector.broadcast %1 : vector<1x256xf32> to vector<32x256xf32>
    %334 = arith.mulf %332, %333 : vector<32x256xf32>
    %c2_120 = arith.constant 2 : index
    %c0_121 = arith.constant 0 : index
    %c0_122 = arith.constant 0 : index
    %335 = vector.load %arg8[%c2_120, %c0_121, %c0_122] : memref<6x32x96xbf16, #tpu.memory_space<vmem>>, vector<1x32x96xbf16>
    %336 = vector.shape_cast %335 : vector<1x32x96xbf16> to vector<32x96xbf16>
    %c2_123 = arith.constant 2 : index
    %c0_124 = arith.constant 0 : index
    %c0_125 = arith.constant 0 : index
    %337 = vector.load %arg9[%c2_123, %c0_124, %c0_125] : memref<6x32x1xf32, #tpu.memory_space<vmem>>, vector<1x32x1xf32>
    %338 = vector.shape_cast %337 : vector<1x32x1xf32> to vector<32x1xf32>
    %c16_i32_126 = arith.constant 16 : i32
    %339 = tpu.dynamic_rotate %334 by %c16_i32_126 dim 1 : vector<32x256xf32>, i32 -> vector<32x256xf32>
    %c240_i32_127 = arith.constant 240 : i32
    %340 = tpu.dynamic_rotate %334 by %c240_i32_127 dim 1 : vector<32x256xf32>, i32 -> vector<32x256xf32>
    %341 = tpu.concatenate %339, %334, %340 in 0 : vector<32x256xf32>, vector<32x256xf32>, vector<32x256xf32> -> vector<96x256xf32>
    %342 = arith.truncf %341 : vector<96x256xf32> to vector<96x256xbf16>
    %cst_128 = arith.constant dense<0.000000e+00> : vector<32x256xf32>
    %343 = tpu.matmul %336, %342, %cst_128 {dimension_numbers = #tpu.dot_dimension_numbers<[1], [0], [0], [1], [0, 0, 1, 1], [], []>} : vector<32x96xbf16>, vector<96x256xbf16>, vector<32x256xf32> -> vector<32x256xf32>
    %344 = vector.broadcast %338 : vector<32x1xf32> to vector<32x256xf32>
    %345 = arith.addf %343, %344 : vector<32x256xf32>
    %346 = arith.addf %233, %345 : vector<32x256xf32>
    %c3 = arith.constant 3 : index
    %c0_129 = arith.constant 0 : index
    %c0_130 = arith.constant 0 : index
    %347 = vector.load %arg2[%c3, %c0_129, %c0_130] : memref<6x32x1xf32, #tpu.memory_space<vmem>>, vector<1x32x1xf32>
    %348 = vector.shape_cast %347 : vector<1x32x1xf32> to vector<32x1xf32>
    %c3_131 = arith.constant 3 : index
    %c0_132 = arith.constant 0 : index
    %c0_133 = arith.constant 0 : index
    %349 = vector.load %arg3[%c3_131, %c0_132, %c0_133] : memref<6x32x1xf32, #tpu.memory_space<vmem>>, vector<1x32x1xf32>
    %350 = vector.shape_cast %349 : vector<1x32x1xf32> to vector<32x1xf32>
    %351 = vector.broadcast %1 : vector<1x256xf32> to vector<32x256xf32>
    %352 = arith.mulf %346, %351 : vector<32x256xf32>
    %cst_134 = arith.constant dense<0.000000e+00> : vector<32xf32>
    %353 = vector.multi_reduction <add>, %352, %cst_134 [1] : vector<32x256xf32> to vector<32xf32>
    %354 = vector.shape_cast %353 : vector<32xf32> to vector<32x1xf32>
    %355 = vector.broadcast %7 : f32 to vector<32x1xf32>
    %356 = arith.mulf %354, %355 : vector<32x1xf32>
    %357 = vector.broadcast %356 : vector<32x1xf32> to vector<32x256xf32>
    %358 = arith.subf %346, %357 : vector<32x256xf32>
    %359 = arith.mulf %358, %358 : vector<32x256xf32>
    %360 = vector.broadcast %1 : vector<1x256xf32> to vector<32x256xf32>
    %361 = arith.mulf %359, %360 : vector<32x256xf32>
    %cst_135 = arith.constant dense<0.000000e+00> : vector<32xf32>
    %362 = vector.multi_reduction <add>, %361, %cst_135 [1] : vector<32x256xf32> to vector<32xf32>
    %363 = vector.shape_cast %362 : vector<32xf32> to vector<32x1xf32>
    %364 = vector.broadcast %7 : f32 to vector<32x1xf32>
    %365 = arith.mulf %363, %364 : vector<32x1xf32>
    %366 = vector.broadcast %356 : vector<32x1xf32> to vector<32x256xf32>
    %367 = arith.subf %346, %366 : vector<32x256xf32>
    %cst_136 = arith.constant 9.99999974E-6 : f32
    %368 = vector.broadcast %cst_136 : f32 to vector<32x1xf32>
    %369 = arith.addf %365, %368 : vector<32x1xf32>
    %370 = math.rsqrt %369 : vector<32x1xf32>
    %371 = vector.broadcast %370 : vector<32x1xf32> to vector<32x256xf32>
    %372 = arith.mulf %367, %371 : vector<32x256xf32>
    %373 = vector.broadcast %348 : vector<32x1xf32> to vector<32x256xf32>
    %374 = arith.mulf %372, %373 : vector<32x256xf32>
    %375 = vector.broadcast %350 : vector<32x1xf32> to vector<32x256xf32>
    %376 = arith.addf %374, %375 : vector<32x256xf32>
    %377 = arith.mulf %376, %376 : vector<32x256xf32>
    %378 = arith.mulf %376, %377 : vector<32x256xf32>
    %cst_137 = arith.constant 4.471500e-02 : f32
    %379 = vector.broadcast %cst_137 : f32 to vector<32x256xf32>
    %380 = arith.mulf %379, %378 : vector<32x256xf32>
    %381 = arith.addf %376, %380 : vector<32x256xf32>
    %cst_138 = arith.constant 0.797884583 : f32
    %382 = vector.broadcast %cst_138 : f32 to vector<32x256xf32>
    %383 = arith.mulf %382, %381 : vector<32x256xf32>
    %384 = math.tanh %383 : vector<32x256xf32>
    %cst_139 = arith.constant 1.000000e+00 : f32
    %385 = vector.broadcast %cst_139 : f32 to vector<32x256xf32>
    %386 = arith.addf %385, %384 : vector<32x256xf32>
    %cst_140 = arith.constant 5.000000e-01 : f32
    %387 = vector.broadcast %cst_140 : f32 to vector<32x256xf32>
    %388 = arith.mulf %387, %386 : vector<32x256xf32>
    %389 = arith.mulf %376, %388 : vector<32x256xf32>
    %390 = vector.broadcast %1 : vector<1x256xf32> to vector<32x256xf32>
    %391 = arith.mulf %389, %390 : vector<32x256xf32>
    %c3_141 = arith.constant 3 : index
    %c0_142 = arith.constant 0 : index
    %c0_143 = arith.constant 0 : index
    %392 = vector.load %arg4[%c3_141, %c0_142, %c0_143] : memref<6x32x96xbf16, #tpu.memory_space<vmem>>, vector<1x32x96xbf16>
    %393 = vector.shape_cast %392 : vector<1x32x96xbf16> to vector<32x96xbf16>
    %c3_144 = arith.constant 3 : index
    %c0_145 = arith.constant 0 : index
    %c0_146 = arith.constant 0 : index
    %394 = vector.load %arg5[%c3_144, %c0_145, %c0_146] : memref<6x32x1xf32, #tpu.memory_space<vmem>>, vector<1x32x1xf32>
    %395 = vector.shape_cast %394 : vector<1x32x1xf32> to vector<32x1xf32>
    %c1_i32_147 = arith.constant 1 : i32
    %396 = tpu.dynamic_rotate %391 by %c1_i32_147 dim 1 : vector<32x256xf32>, i32 -> vector<32x256xf32>
    %c255_i32_148 = arith.constant 255 : i32
    %397 = tpu.dynamic_rotate %391 by %c255_i32_148 dim 1 : vector<32x256xf32>, i32 -> vector<32x256xf32>
    %398 = tpu.concatenate %396, %391, %397 in 0 : vector<32x256xf32>, vector<32x256xf32>, vector<32x256xf32> -> vector<96x256xf32>
    %399 = arith.truncf %398 : vector<96x256xf32> to vector<96x256xbf16>
    %cst_149 = arith.constant dense<0.000000e+00> : vector<32x256xf32>
    %400 = tpu.matmul %393, %399, %cst_149 {dimension_numbers = #tpu.dot_dimension_numbers<[1], [0], [0], [1], [0, 0, 1, 1], [], []>} : vector<32x96xbf16>, vector<96x256xbf16>, vector<32x256xf32> -> vector<32x256xf32>
    %401 = vector.broadcast %395 : vector<32x1xf32> to vector<32x256xf32>
    %402 = arith.addf %400, %401 : vector<32x256xf32>
    %c3_150 = arith.constant 3 : index
    %c0_151 = arith.constant 0 : index
    %c0_152 = arith.constant 0 : index
    %403 = vector.load %arg6[%c3_150, %c0_151, %c0_152] : memref<6x32x1xf32, #tpu.memory_space<vmem>>, vector<1x32x1xf32>
    %404 = vector.shape_cast %403 : vector<1x32x1xf32> to vector<32x1xf32>
    %c3_153 = arith.constant 3 : index
    %c0_154 = arith.constant 0 : index
    %c0_155 = arith.constant 0 : index
    %405 = vector.load %arg7[%c3_153, %c0_154, %c0_155] : memref<6x32x1xf32, #tpu.memory_space<vmem>>, vector<1x32x1xf32>
    %406 = vector.shape_cast %405 : vector<1x32x1xf32> to vector<32x1xf32>
    %407 = vector.broadcast %1 : vector<1x256xf32> to vector<32x256xf32>
    %408 = arith.mulf %402, %407 : vector<32x256xf32>
    %cst_156 = arith.constant dense<0.000000e+00> : vector<32xf32>
    %409 = vector.multi_reduction <add>, %408, %cst_156 [1] : vector<32x256xf32> to vector<32xf32>
    %410 = vector.shape_cast %409 : vector<32xf32> to vector<32x1xf32>
    %411 = vector.broadcast %7 : f32 to vector<32x1xf32>
    %412 = arith.mulf %410, %411 : vector<32x1xf32>
    %413 = vector.broadcast %412 : vector<32x1xf32> to vector<32x256xf32>
    %414 = arith.subf %402, %413 : vector<32x256xf32>
    %415 = arith.mulf %414, %414 : vector<32x256xf32>
    %416 = vector.broadcast %1 : vector<1x256xf32> to vector<32x256xf32>
    %417 = arith.mulf %415, %416 : vector<32x256xf32>
    %cst_157 = arith.constant dense<0.000000e+00> : vector<32xf32>
    %418 = vector.multi_reduction <add>, %417, %cst_157 [1] : vector<32x256xf32> to vector<32xf32>
    %419 = vector.shape_cast %418 : vector<32xf32> to vector<32x1xf32>
    %420 = vector.broadcast %7 : f32 to vector<32x1xf32>
    %421 = arith.mulf %419, %420 : vector<32x1xf32>
    %422 = vector.broadcast %412 : vector<32x1xf32> to vector<32x256xf32>
    %423 = arith.subf %402, %422 : vector<32x256xf32>
    %cst_158 = arith.constant 9.99999974E-6 : f32
    %424 = vector.broadcast %cst_158 : f32 to vector<32x1xf32>
    %425 = arith.addf %421, %424 : vector<32x1xf32>
    %426 = math.rsqrt %425 : vector<32x1xf32>
    %427 = vector.broadcast %426 : vector<32x1xf32> to vector<32x256xf32>
    %428 = arith.mulf %423, %427 : vector<32x256xf32>
    %429 = vector.broadcast %404 : vector<32x1xf32> to vector<32x256xf32>
    %430 = arith.mulf %428, %429 : vector<32x256xf32>
    %431 = vector.broadcast %406 : vector<32x1xf32> to vector<32x256xf32>
    %432 = arith.addf %430, %431 : vector<32x256xf32>
    %433 = arith.mulf %432, %432 : vector<32x256xf32>
    %434 = arith.mulf %432, %433 : vector<32x256xf32>
    %cst_159 = arith.constant 4.471500e-02 : f32
    %435 = vector.broadcast %cst_159 : f32 to vector<32x256xf32>
    %436 = arith.mulf %435, %434 : vector<32x256xf32>
    %437 = arith.addf %432, %436 : vector<32x256xf32>
    %cst_160 = arith.constant 0.797884583 : f32
    %438 = vector.broadcast %cst_160 : f32 to vector<32x256xf32>
    %439 = arith.mulf %438, %437 : vector<32x256xf32>
    %440 = math.tanh %439 : vector<32x256xf32>
    %cst_161 = arith.constant 1.000000e+00 : f32
    %441 = vector.broadcast %cst_161 : f32 to vector<32x256xf32>
    %442 = arith.addf %441, %440 : vector<32x256xf32>
    %cst_162 = arith.constant 5.000000e-01 : f32
    %443 = vector.broadcast %cst_162 : f32 to vector<32x256xf32>
    %444 = arith.mulf %443, %442 : vector<32x256xf32>
    %445 = arith.mulf %432, %444 : vector<32x256xf32>
    %446 = vector.broadcast %1 : vector<1x256xf32> to vector<32x256xf32>
    %447 = arith.mulf %445, %446 : vector<32x256xf32>
    %c3_163 = arith.constant 3 : index
    %c0_164 = arith.constant 0 : index
    %c0_165 = arith.constant 0 : index
    %448 = vector.load %arg8[%c3_163, %c0_164, %c0_165] : memref<6x32x96xbf16, #tpu.memory_space<vmem>>, vector<1x32x96xbf16>
    %449 = vector.shape_cast %448 : vector<1x32x96xbf16> to vector<32x96xbf16>
    %c3_166 = arith.constant 3 : index
    %c0_167 = arith.constant 0 : index
    %c0_168 = arith.constant 0 : index
    %450 = vector.load %arg9[%c3_166, %c0_167, %c0_168] : memref<6x32x1xf32, #tpu.memory_space<vmem>>, vector<1x32x1xf32>
    %451 = vector.shape_cast %450 : vector<1x32x1xf32> to vector<32x1xf32>
    %c1_i32_169 = arith.constant 1 : i32
    %452 = tpu.dynamic_rotate %447 by %c1_i32_169 dim 1 : vector<32x256xf32>, i32 -> vector<32x256xf32>
    %c255_i32_170 = arith.constant 255 : i32
    %453 = tpu.dynamic_rotate %447 by %c255_i32_170 dim 1 : vector<32x256xf32>, i32 -> vector<32x256xf32>
    %454 = tpu.concatenate %452, %447, %453 in 0 : vector<32x256xf32>, vector<32x256xf32>, vector<32x256xf32> -> vector<96x256xf32>
    %455 = arith.truncf %454 : vector<96x256xf32> to vector<96x256xbf16>
    %cst_171 = arith.constant dense<0.000000e+00> : vector<32x256xf32>
    %456 = tpu.matmul %449, %455, %cst_171 {dimension_numbers = #tpu.dot_dimension_numbers<[1], [0], [0], [1], [0, 0, 1, 1], [], []>} : vector<32x96xbf16>, vector<96x256xbf16>, vector<32x256xf32> -> vector<32x256xf32>
    %457 = vector.broadcast %451 : vector<32x1xf32> to vector<32x256xf32>
    %458 = arith.addf %456, %457 : vector<32x256xf32>
    %459 = arith.addf %346, %458 : vector<32x256xf32>
    %c4 = arith.constant 4 : index
    %c0_172 = arith.constant 0 : index
    %c0_173 = arith.constant 0 : index
    %460 = vector.load %arg2[%c4, %c0_172, %c0_173] : memref<6x32x1xf32, #tpu.memory_space<vmem>>, vector<1x32x1xf32>
    %461 = vector.shape_cast %460 : vector<1x32x1xf32> to vector<32x1xf32>
    %c4_174 = arith.constant 4 : index
    %c0_175 = arith.constant 0 : index
    %c0_176 = arith.constant 0 : index
    %462 = vector.load %arg3[%c4_174, %c0_175, %c0_176] : memref<6x32x1xf32, #tpu.memory_space<vmem>>, vector<1x32x1xf32>
    %463 = vector.shape_cast %462 : vector<1x32x1xf32> to vector<32x1xf32>
    %464 = vector.broadcast %1 : vector<1x256xf32> to vector<32x256xf32>
    %465 = arith.mulf %459, %464 : vector<32x256xf32>
    %cst_177 = arith.constant dense<0.000000e+00> : vector<32xf32>
    %466 = vector.multi_reduction <add>, %465, %cst_177 [1] : vector<32x256xf32> to vector<32xf32>
    %467 = vector.shape_cast %466 : vector<32xf32> to vector<32x1xf32>
    %468 = vector.broadcast %7 : f32 to vector<32x1xf32>
    %469 = arith.mulf %467, %468 : vector<32x1xf32>
    %470 = vector.broadcast %469 : vector<32x1xf32> to vector<32x256xf32>
    %471 = arith.subf %459, %470 : vector<32x256xf32>
    %472 = arith.mulf %471, %471 : vector<32x256xf32>
    %473 = vector.broadcast %1 : vector<1x256xf32> to vector<32x256xf32>
    %474 = arith.mulf %472, %473 : vector<32x256xf32>
    %cst_178 = arith.constant dense<0.000000e+00> : vector<32xf32>
    %475 = vector.multi_reduction <add>, %474, %cst_178 [1] : vector<32x256xf32> to vector<32xf32>
    %476 = vector.shape_cast %475 : vector<32xf32> to vector<32x1xf32>
    %477 = vector.broadcast %7 : f32 to vector<32x1xf32>
    %478 = arith.mulf %476, %477 : vector<32x1xf32>
    %479 = vector.broadcast %469 : vector<32x1xf32> to vector<32x256xf32>
    %480 = arith.subf %459, %479 : vector<32x256xf32>
    %cst_179 = arith.constant 9.99999974E-6 : f32
    %481 = vector.broadcast %cst_179 : f32 to vector<32x1xf32>
    %482 = arith.addf %478, %481 : vector<32x1xf32>
    %483 = math.rsqrt %482 : vector<32x1xf32>
    %484 = vector.broadcast %483 : vector<32x1xf32> to vector<32x256xf32>
    %485 = arith.mulf %480, %484 : vector<32x256xf32>
    %486 = vector.broadcast %461 : vector<32x1xf32> to vector<32x256xf32>
    %487 = arith.mulf %485, %486 : vector<32x256xf32>
    %488 = vector.broadcast %463 : vector<32x1xf32> to vector<32x256xf32>
    %489 = arith.addf %487, %488 : vector<32x256xf32>
    %490 = arith.mulf %489, %489 : vector<32x256xf32>
    %491 = arith.mulf %489, %490 : vector<32x256xf32>
    %cst_180 = arith.constant 4.471500e-02 : f32
    %492 = vector.broadcast %cst_180 : f32 to vector<32x256xf32>
    %493 = arith.mulf %492, %491 : vector<32x256xf32>
    %494 = arith.addf %489, %493 : vector<32x256xf32>
    %cst_181 = arith.constant 0.797884583 : f32
    %495 = vector.broadcast %cst_181 : f32 to vector<32x256xf32>
    %496 = arith.mulf %495, %494 : vector<32x256xf32>
    %497 = math.tanh %496 : vector<32x256xf32>
    %cst_182 = arith.constant 1.000000e+00 : f32
    %498 = vector.broadcast %cst_182 : f32 to vector<32x256xf32>
    %499 = arith.addf %498, %497 : vector<32x256xf32>
    %cst_183 = arith.constant 5.000000e-01 : f32
    %500 = vector.broadcast %cst_183 : f32 to vector<32x256xf32>
    %501 = arith.mulf %500, %499 : vector<32x256xf32>
    %502 = arith.mulf %489, %501 : vector<32x256xf32>
    %503 = vector.broadcast %1 : vector<1x256xf32> to vector<32x256xf32>
    %504 = arith.mulf %502, %503 : vector<32x256xf32>
    %c4_184 = arith.constant 4 : index
    %c0_185 = arith.constant 0 : index
    %c0_186 = arith.constant 0 : index
    %505 = vector.load %arg4[%c4_184, %c0_185, %c0_186] : memref<6x32x96xbf16, #tpu.memory_space<vmem>>, vector<1x32x96xbf16>
    %506 = vector.shape_cast %505 : vector<1x32x96xbf16> to vector<32x96xbf16>
    %c4_187 = arith.constant 4 : index
    %c0_188 = arith.constant 0 : index
    %c0_189 = arith.constant 0 : index
    %507 = vector.load %arg5[%c4_187, %c0_188, %c0_189] : memref<6x32x1xf32, #tpu.memory_space<vmem>>, vector<1x32x1xf32>
    %508 = vector.shape_cast %507 : vector<1x32x1xf32> to vector<32x1xf32>
    %c4_i32_190 = arith.constant 4 : i32
    %509 = tpu.dynamic_rotate %504 by %c4_i32_190 dim 1 : vector<32x256xf32>, i32 -> vector<32x256xf32>
    %c252_i32_191 = arith.constant 252 : i32
    %510 = tpu.dynamic_rotate %504 by %c252_i32_191 dim 1 : vector<32x256xf32>, i32 -> vector<32x256xf32>
    %511 = tpu.concatenate %509, %504, %510 in 0 : vector<32x256xf32>, vector<32x256xf32>, vector<32x256xf32> -> vector<96x256xf32>
    %512 = arith.truncf %511 : vector<96x256xf32> to vector<96x256xbf16>
    %cst_192 = arith.constant dense<0.000000e+00> : vector<32x256xf32>
    %513 = tpu.matmul %506, %512, %cst_192 {dimension_numbers = #tpu.dot_dimension_numbers<[1], [0], [0], [1], [0, 0, 1, 1], [], []>} : vector<32x96xbf16>, vector<96x256xbf16>, vector<32x256xf32> -> vector<32x256xf32>
    %514 = vector.broadcast %508 : vector<32x1xf32> to vector<32x256xf32>
    %515 = arith.addf %513, %514 : vector<32x256xf32>
    %c4_193 = arith.constant 4 : index
    %c0_194 = arith.constant 0 : index
    %c0_195 = arith.constant 0 : index
    %516 = vector.load %arg6[%c4_193, %c0_194, %c0_195] : memref<6x32x1xf32, #tpu.memory_space<vmem>>, vector<1x32x1xf32>
    %517 = vector.shape_cast %516 : vector<1x32x1xf32> to vector<32x1xf32>
    %c4_196 = arith.constant 4 : index
    %c0_197 = arith.constant 0 : index
    %c0_198 = arith.constant 0 : index
    %518 = vector.load %arg7[%c4_196, %c0_197, %c0_198] : memref<6x32x1xf32, #tpu.memory_space<vmem>>, vector<1x32x1xf32>
    %519 = vector.shape_cast %518 : vector<1x32x1xf32> to vector<32x1xf32>
    %520 = vector.broadcast %1 : vector<1x256xf32> to vector<32x256xf32>
    %521 = arith.mulf %515, %520 : vector<32x256xf32>
    %cst_199 = arith.constant dense<0.000000e+00> : vector<32xf32>
    %522 = vector.multi_reduction <add>, %521, %cst_199 [1] : vector<32x256xf32> to vector<32xf32>
    %523 = vector.shape_cast %522 : vector<32xf32> to vector<32x1xf32>
    %524 = vector.broadcast %7 : f32 to vector<32x1xf32>
    %525 = arith.mulf %523, %524 : vector<32x1xf32>
    %526 = vector.broadcast %525 : vector<32x1xf32> to vector<32x256xf32>
    %527 = arith.subf %515, %526 : vector<32x256xf32>
    %528 = arith.mulf %527, %527 : vector<32x256xf32>
    %529 = vector.broadcast %1 : vector<1x256xf32> to vector<32x256xf32>
    %530 = arith.mulf %528, %529 : vector<32x256xf32>
    %cst_200 = arith.constant dense<0.000000e+00> : vector<32xf32>
    %531 = vector.multi_reduction <add>, %530, %cst_200 [1] : vector<32x256xf32> to vector<32xf32>
    %532 = vector.shape_cast %531 : vector<32xf32> to vector<32x1xf32>
    %533 = vector.broadcast %7 : f32 to vector<32x1xf32>
    %534 = arith.mulf %532, %533 : vector<32x1xf32>
    %535 = vector.broadcast %525 : vector<32x1xf32> to vector<32x256xf32>
    %536 = arith.subf %515, %535 : vector<32x256xf32>
    %cst_201 = arith.constant 9.99999974E-6 : f32
    %537 = vector.broadcast %cst_201 : f32 to vector<32x1xf32>
    %538 = arith.addf %534, %537 : vector<32x1xf32>
    %539 = math.rsqrt %538 : vector<32x1xf32>
    %540 = vector.broadcast %539 : vector<32x1xf32> to vector<32x256xf32>
    %541 = arith.mulf %536, %540 : vector<32x256xf32>
    %542 = vector.broadcast %517 : vector<32x1xf32> to vector<32x256xf32>
    %543 = arith.mulf %541, %542 : vector<32x256xf32>
    %544 = vector.broadcast %519 : vector<32x1xf32> to vector<32x256xf32>
    %545 = arith.addf %543, %544 : vector<32x256xf32>
    %546 = arith.mulf %545, %545 : vector<32x256xf32>
    %547 = arith.mulf %545, %546 : vector<32x256xf32>
    %cst_202 = arith.constant 4.471500e-02 : f32
    %548 = vector.broadcast %cst_202 : f32 to vector<32x256xf32>
    %549 = arith.mulf %548, %547 : vector<32x256xf32>
    %550 = arith.addf %545, %549 : vector<32x256xf32>
    %cst_203 = arith.constant 0.797884583 : f32
    %551 = vector.broadcast %cst_203 : f32 to vector<32x256xf32>
    %552 = arith.mulf %551, %550 : vector<32x256xf32>
    %553 = math.tanh %552 : vector<32x256xf32>
    %cst_204 = arith.constant 1.000000e+00 : f32
    %554 = vector.broadcast %cst_204 : f32 to vector<32x256xf32>
    %555 = arith.addf %554, %553 : vector<32x256xf32>
    %cst_205 = arith.constant 5.000000e-01 : f32
    %556 = vector.broadcast %cst_205 : f32 to vector<32x256xf32>
    %557 = arith.mulf %556, %555 : vector<32x256xf32>
    %558 = arith.mulf %545, %557 : vector<32x256xf32>
    %559 = vector.broadcast %1 : vector<1x256xf32> to vector<32x256xf32>
    %560 = arith.mulf %558, %559 : vector<32x256xf32>
    %c4_206 = arith.constant 4 : index
    %c0_207 = arith.constant 0 : index
    %c0_208 = arith.constant 0 : index
    %561 = vector.load %arg8[%c4_206, %c0_207, %c0_208] : memref<6x32x96xbf16, #tpu.memory_space<vmem>>, vector<1x32x96xbf16>
    %562 = vector.shape_cast %561 : vector<1x32x96xbf16> to vector<32x96xbf16>
    %c4_209 = arith.constant 4 : index
    %c0_210 = arith.constant 0 : index
    %c0_211 = arith.constant 0 : index
    %563 = vector.load %arg9[%c4_209, %c0_210, %c0_211] : memref<6x32x1xf32, #tpu.memory_space<vmem>>, vector<1x32x1xf32>
    %564 = vector.shape_cast %563 : vector<1x32x1xf32> to vector<32x1xf32>
    %c4_i32_212 = arith.constant 4 : i32
    %565 = tpu.dynamic_rotate %560 by %c4_i32_212 dim 1 : vector<32x256xf32>, i32 -> vector<32x256xf32>
    %c252_i32_213 = arith.constant 252 : i32
    %566 = tpu.dynamic_rotate %560 by %c252_i32_213 dim 1 : vector<32x256xf32>, i32 -> vector<32x256xf32>
    %567 = tpu.concatenate %565, %560, %566 in 0 : vector<32x256xf32>, vector<32x256xf32>, vector<32x256xf32> -> vector<96x256xf32>
    %568 = arith.truncf %567 : vector<96x256xf32> to vector<96x256xbf16>
    %cst_214 = arith.constant dense<0.000000e+00> : vector<32x256xf32>
    %569 = tpu.matmul %562, %568, %cst_214 {dimension_numbers = #tpu.dot_dimension_numbers<[1], [0], [0], [1], [0, 0, 1, 1], [], []>} : vector<32x96xbf16>, vector<96x256xbf16>, vector<32x256xf32> -> vector<32x256xf32>
    %570 = vector.broadcast %564 : vector<32x1xf32> to vector<32x256xf32>
    %571 = arith.addf %569, %570 : vector<32x256xf32>
    %572 = arith.addf %459, %571 : vector<32x256xf32>
    %c5 = arith.constant 5 : index
    %c0_215 = arith.constant 0 : index
    %c0_216 = arith.constant 0 : index
    %573 = vector.load %arg2[%c5, %c0_215, %c0_216] : memref<6x32x1xf32, #tpu.memory_space<vmem>>, vector<1x32x1xf32>
    %574 = vector.shape_cast %573 : vector<1x32x1xf32> to vector<32x1xf32>
    %c5_217 = arith.constant 5 : index
    %c0_218 = arith.constant 0 : index
    %c0_219 = arith.constant 0 : index
    %575 = vector.load %arg3[%c5_217, %c0_218, %c0_219] : memref<6x32x1xf32, #tpu.memory_space<vmem>>, vector<1x32x1xf32>
    %576 = vector.shape_cast %575 : vector<1x32x1xf32> to vector<32x1xf32>
    %577 = vector.broadcast %1 : vector<1x256xf32> to vector<32x256xf32>
    %578 = arith.mulf %572, %577 : vector<32x256xf32>
    %cst_220 = arith.constant dense<0.000000e+00> : vector<32xf32>
    %579 = vector.multi_reduction <add>, %578, %cst_220 [1] : vector<32x256xf32> to vector<32xf32>
    %580 = vector.shape_cast %579 : vector<32xf32> to vector<32x1xf32>
    %581 = vector.broadcast %7 : f32 to vector<32x1xf32>
    %582 = arith.mulf %580, %581 : vector<32x1xf32>
    %583 = vector.broadcast %582 : vector<32x1xf32> to vector<32x256xf32>
    %584 = arith.subf %572, %583 : vector<32x256xf32>
    %585 = arith.mulf %584, %584 : vector<32x256xf32>
    %586 = vector.broadcast %1 : vector<1x256xf32> to vector<32x256xf32>
    %587 = arith.mulf %585, %586 : vector<32x256xf32>
    %cst_221 = arith.constant dense<0.000000e+00> : vector<32xf32>
    %588 = vector.multi_reduction <add>, %587, %cst_221 [1] : vector<32x256xf32> to vector<32xf32>
    %589 = vector.shape_cast %588 : vector<32xf32> to vector<32x1xf32>
    %590 = vector.broadcast %7 : f32 to vector<32x1xf32>
    %591 = arith.mulf %589, %590 : vector<32x1xf32>
    %592 = vector.broadcast %582 : vector<32x1xf32> to vector<32x256xf32>
    %593 = arith.subf %572, %592 : vector<32x256xf32>
    %cst_222 = arith.constant 9.99999974E-6 : f32
    %594 = vector.broadcast %cst_222 : f32 to vector<32x1xf32>
    %595 = arith.addf %591, %594 : vector<32x1xf32>
    %596 = math.rsqrt %595 : vector<32x1xf32>
    %597 = vector.broadcast %596 : vector<32x1xf32> to vector<32x256xf32>
    %598 = arith.mulf %593, %597 : vector<32x256xf32>
    %599 = vector.broadcast %574 : vector<32x1xf32> to vector<32x256xf32>
    %600 = arith.mulf %598, %599 : vector<32x256xf32>
    %601 = vector.broadcast %576 : vector<32x1xf32> to vector<32x256xf32>
    %602 = arith.addf %600, %601 : vector<32x256xf32>
    %603 = arith.mulf %602, %602 : vector<32x256xf32>
    %604 = arith.mulf %602, %603 : vector<32x256xf32>
    %cst_223 = arith.constant 4.471500e-02 : f32
    %605 = vector.broadcast %cst_223 : f32 to vector<32x256xf32>
    %606 = arith.mulf %605, %604 : vector<32x256xf32>
    %607 = arith.addf %602, %606 : vector<32x256xf32>
    %cst_224 = arith.constant 0.797884583 : f32
    %608 = vector.broadcast %cst_224 : f32 to vector<32x256xf32>
    %609 = arith.mulf %608, %607 : vector<32x256xf32>
    %610 = math.tanh %609 : vector<32x256xf32>
    %cst_225 = arith.constant 1.000000e+00 : f32
    %611 = vector.broadcast %cst_225 : f32 to vector<32x256xf32>
    %612 = arith.addf %611, %610 : vector<32x256xf32>
    %cst_226 = arith.constant 5.000000e-01 : f32
    %613 = vector.broadcast %cst_226 : f32 to vector<32x256xf32>
    %614 = arith.mulf %613, %612 : vector<32x256xf32>
    %615 = arith.mulf %602, %614 : vector<32x256xf32>
    %616 = vector.broadcast %1 : vector<1x256xf32> to vector<32x256xf32>
    %617 = arith.mulf %615, %616 : vector<32x256xf32>
    %c5_227 = arith.constant 5 : index
    %c0_228 = arith.constant 0 : index
    %c0_229 = arith.constant 0 : index
    %618 = vector.load %arg4[%c5_227, %c0_228, %c0_229] : memref<6x32x96xbf16, #tpu.memory_space<vmem>>, vector<1x32x96xbf16>
    %619 = vector.shape_cast %618 : vector<1x32x96xbf16> to vector<32x96xbf16>
    %c5_230 = arith.constant 5 : index
    %c0_231 = arith.constant 0 : index
    %c0_232 = arith.constant 0 : index
    %620 = vector.load %arg5[%c5_230, %c0_231, %c0_232] : memref<6x32x1xf32, #tpu.memory_space<vmem>>, vector<1x32x1xf32>
    %621 = vector.shape_cast %620 : vector<1x32x1xf32> to vector<32x1xf32>
    %c16_i32_233 = arith.constant 16 : i32
    %622 = tpu.dynamic_rotate %617 by %c16_i32_233 dim 1 : vector<32x256xf32>, i32 -> vector<32x256xf32>
    %c240_i32_234 = arith.constant 240 : i32
    %623 = tpu.dynamic_rotate %617 by %c240_i32_234 dim 1 : vector<32x256xf32>, i32 -> vector<32x256xf32>
    %624 = tpu.concatenate %622, %617, %623 in 0 : vector<32x256xf32>, vector<32x256xf32>, vector<32x256xf32> -> vector<96x256xf32>
    %625 = arith.truncf %624 : vector<96x256xf32> to vector<96x256xbf16>
    %cst_235 = arith.constant dense<0.000000e+00> : vector<32x256xf32>
    %626 = tpu.matmul %619, %625, %cst_235 {dimension_numbers = #tpu.dot_dimension_numbers<[1], [0], [0], [1], [0, 0, 1, 1], [], []>} : vector<32x96xbf16>, vector<96x256xbf16>, vector<32x256xf32> -> vector<32x256xf32>
    %627 = vector.broadcast %621 : vector<32x1xf32> to vector<32x256xf32>
    %628 = arith.addf %626, %627 : vector<32x256xf32>
    %c5_236 = arith.constant 5 : index
    %c0_237 = arith.constant 0 : index
    %c0_238 = arith.constant 0 : index
    %629 = vector.load %arg6[%c5_236, %c0_237, %c0_238] : memref<6x32x1xf32, #tpu.memory_space<vmem>>, vector<1x32x1xf32>
    %630 = vector.shape_cast %629 : vector<1x32x1xf32> to vector<32x1xf32>
    %c5_239 = arith.constant 5 : index
    %c0_240 = arith.constant 0 : index
    %c0_241 = arith.constant 0 : index
    %631 = vector.load %arg7[%c5_239, %c0_240, %c0_241] : memref<6x32x1xf32, #tpu.memory_space<vmem>>, vector<1x32x1xf32>
    %632 = vector.shape_cast %631 : vector<1x32x1xf32> to vector<32x1xf32>
    %633 = vector.broadcast %1 : vector<1x256xf32> to vector<32x256xf32>
    %634 = arith.mulf %628, %633 : vector<32x256xf32>
    %cst_242 = arith.constant dense<0.000000e+00> : vector<32xf32>
    %635 = vector.multi_reduction <add>, %634, %cst_242 [1] : vector<32x256xf32> to vector<32xf32>
    %636 = vector.shape_cast %635 : vector<32xf32> to vector<32x1xf32>
    %637 = vector.broadcast %7 : f32 to vector<32x1xf32>
    %638 = arith.mulf %636, %637 : vector<32x1xf32>
    %639 = vector.broadcast %638 : vector<32x1xf32> to vector<32x256xf32>
    %640 = arith.subf %628, %639 : vector<32x256xf32>
    %641 = arith.mulf %640, %640 : vector<32x256xf32>
    %642 = vector.broadcast %1 : vector<1x256xf32> to vector<32x256xf32>
    %643 = arith.mulf %641, %642 : vector<32x256xf32>
    %cst_243 = arith.constant dense<0.000000e+00> : vector<32xf32>
    %644 = vector.multi_reduction <add>, %643, %cst_243 [1] : vector<32x256xf32> to vector<32xf32>
    %645 = vector.shape_cast %644 : vector<32xf32> to vector<32x1xf32>
    %646 = vector.broadcast %7 : f32 to vector<32x1xf32>
    %647 = arith.mulf %645, %646 : vector<32x1xf32>
    %648 = vector.broadcast %638 : vector<32x1xf32> to vector<32x256xf32>
    %649 = arith.subf %628, %648 : vector<32x256xf32>
    %cst_244 = arith.constant 9.99999974E-6 : f32
    %650 = vector.broadcast %cst_244 : f32 to vector<32x1xf32>
    %651 = arith.addf %647, %650 : vector<32x1xf32>
    %652 = math.rsqrt %651 : vector<32x1xf32>
    %653 = vector.broadcast %652 : vector<32x1xf32> to vector<32x256xf32>
    %654 = arith.mulf %649, %653 : vector<32x256xf32>
    %655 = vector.broadcast %630 : vector<32x1xf32> to vector<32x256xf32>
    %656 = arith.mulf %654, %655 : vector<32x256xf32>
    %657 = vector.broadcast %632 : vector<32x1xf32> to vector<32x256xf32>
    %658 = arith.addf %656, %657 : vector<32x256xf32>
    %659 = arith.mulf %658, %658 : vector<32x256xf32>
    %660 = arith.mulf %658, %659 : vector<32x256xf32>
    %cst_245 = arith.constant 4.471500e-02 : f32
    %661 = vector.broadcast %cst_245 : f32 to vector<32x256xf32>
    %662 = arith.mulf %661, %660 : vector<32x256xf32>
    %663 = arith.addf %658, %662 : vector<32x256xf32>
    %cst_246 = arith.constant 0.797884583 : f32
    %664 = vector.broadcast %cst_246 : f32 to vector<32x256xf32>
    %665 = arith.mulf %664, %663 : vector<32x256xf32>
    %666 = math.tanh %665 : vector<32x256xf32>
    %cst_247 = arith.constant 1.000000e+00 : f32
    %667 = vector.broadcast %cst_247 : f32 to vector<32x256xf32>
    %668 = arith.addf %667, %666 : vector<32x256xf32>
    %cst_248 = arith.constant 5.000000e-01 : f32
    %669 = vector.broadcast %cst_248 : f32 to vector<32x256xf32>
    %670 = arith.mulf %669, %668 : vector<32x256xf32>
    %671 = arith.mulf %658, %670 : vector<32x256xf32>
    %672 = vector.broadcast %1 : vector<1x256xf32> to vector<32x256xf32>
    %673 = arith.mulf %671, %672 : vector<32x256xf32>
    %c5_249 = arith.constant 5 : index
    %c0_250 = arith.constant 0 : index
    %c0_251 = arith.constant 0 : index
    %674 = vector.load %arg8[%c5_249, %c0_250, %c0_251] : memref<6x32x96xbf16, #tpu.memory_space<vmem>>, vector<1x32x96xbf16>
    %675 = vector.shape_cast %674 : vector<1x32x96xbf16> to vector<32x96xbf16>
    %c5_252 = arith.constant 5 : index
    %c0_253 = arith.constant 0 : index
    %c0_254 = arith.constant 0 : index
    %676 = vector.load %arg9[%c5_252, %c0_253, %c0_254] : memref<6x32x1xf32, #tpu.memory_space<vmem>>, vector<1x32x1xf32>
    %677 = vector.shape_cast %676 : vector<1x32x1xf32> to vector<32x1xf32>
    %c16_i32_255 = arith.constant 16 : i32
    %678 = tpu.dynamic_rotate %673 by %c16_i32_255 dim 1 : vector<32x256xf32>, i32 -> vector<32x256xf32>
    %c240_i32_256 = arith.constant 240 : i32
    %679 = tpu.dynamic_rotate %673 by %c240_i32_256 dim 1 : vector<32x256xf32>, i32 -> vector<32x256xf32>
    %680 = tpu.concatenate %678, %673, %679 in 0 : vector<32x256xf32>, vector<32x256xf32>, vector<32x256xf32> -> vector<96x256xf32>
    %681 = arith.truncf %680 : vector<96x256xf32> to vector<96x256xbf16>
    %cst_257 = arith.constant dense<0.000000e+00> : vector<32x256xf32>
    %682 = tpu.matmul %675, %681, %cst_257 {dimension_numbers = #tpu.dot_dimension_numbers<[1], [0], [0], [1], [0, 0, 1, 1], [], []>} : vector<32x96xbf16>, vector<96x256xbf16>, vector<32x256xf32> -> vector<32x256xf32>
    %683 = vector.broadcast %677 : vector<32x1xf32> to vector<32x256xf32>
    %684 = arith.addf %682, %683 : vector<32x256xf32>
    %685 = arith.addf %572, %684 : vector<32x256xf32>
    %c0_258 = arith.constant 0 : index
    %c0_259 = arith.constant 0 : index
    %686 = vector.load %arg10[%c0_258, %c0_259] : memref<32x1xf32, #tpu.memory_space<vmem>>, vector<32x1xf32>
    %c0_260 = arith.constant 0 : index
    %c0_261 = arith.constant 0 : index
    %687 = vector.load %arg11[%c0_260, %c0_261] : memref<32x1xf32, #tpu.memory_space<vmem>>, vector<32x1xf32>
    %688 = vector.broadcast %1 : vector<1x256xf32> to vector<32x256xf32>
    %689 = arith.mulf %685, %688 : vector<32x256xf32>
    %cst_262 = arith.constant dense<0.000000e+00> : vector<32xf32>
    %690 = vector.multi_reduction <add>, %689, %cst_262 [1] : vector<32x256xf32> to vector<32xf32>
    %691 = vector.shape_cast %690 : vector<32xf32> to vector<32x1xf32>
    %692 = vector.broadcast %7 : f32 to vector<32x1xf32>
    %693 = arith.mulf %691, %692 : vector<32x1xf32>
    %694 = vector.broadcast %693 : vector<32x1xf32> to vector<32x256xf32>
    %695 = arith.subf %685, %694 : vector<32x256xf32>
    %696 = arith.mulf %695, %695 : vector<32x256xf32>
    %697 = vector.broadcast %1 : vector<1x256xf32> to vector<32x256xf32>
    %698 = arith.mulf %696, %697 : vector<32x256xf32>
    %cst_263 = arith.constant dense<0.000000e+00> : vector<32xf32>
    %699 = vector.multi_reduction <add>, %698, %cst_263 [1] : vector<32x256xf32> to vector<32xf32>
    %700 = vector.shape_cast %699 : vector<32xf32> to vector<32x1xf32>
    %701 = vector.broadcast %7 : f32 to vector<32x1xf32>
    %702 = arith.mulf %700, %701 : vector<32x1xf32>
    %703 = vector.broadcast %693 : vector<32x1xf32> to vector<32x256xf32>
    %704 = arith.subf %685, %703 : vector<32x256xf32>
    %cst_264 = arith.constant 9.99999974E-6 : f32
    %705 = vector.broadcast %cst_264 : f32 to vector<32x1xf32>
    %706 = arith.addf %702, %705 : vector<32x1xf32>
    %707 = math.rsqrt %706 : vector<32x1xf32>
    %708 = vector.broadcast %707 : vector<32x1xf32> to vector<32x256xf32>
    %709 = arith.mulf %704, %708 : vector<32x256xf32>
    %710 = vector.broadcast %686 : vector<32x1xf32> to vector<32x256xf32>
    %711 = arith.mulf %709, %710 : vector<32x256xf32>
    %712 = vector.broadcast %687 : vector<32x1xf32> to vector<32x256xf32>
    %713 = arith.addf %711, %712 : vector<32x256xf32>
    %714 = arith.mulf %713, %713 : vector<32x256xf32>
    %715 = arith.mulf %713, %714 : vector<32x256xf32>
    %cst_265 = arith.constant 4.471500e-02 : f32
    %716 = vector.broadcast %cst_265 : f32 to vector<32x256xf32>
    %717 = arith.mulf %716, %715 : vector<32x256xf32>
    %718 = arith.addf %713, %717 : vector<32x256xf32>
    %cst_266 = arith.constant 0.797884583 : f32
    %719 = vector.broadcast %cst_266 : f32 to vector<32x256xf32>
    %720 = arith.mulf %719, %718 : vector<32x256xf32>
    %721 = math.tanh %720 : vector<32x256xf32>
    %cst_267 = arith.constant 1.000000e+00 : f32
    %722 = vector.broadcast %cst_267 : f32 to vector<32x256xf32>
    %723 = arith.addf %722, %721 : vector<32x256xf32>
    %cst_268 = arith.constant 5.000000e-01 : f32
    %724 = vector.broadcast %cst_268 : f32 to vector<32x256xf32>
    %725 = arith.mulf %724, %723 : vector<32x256xf32>
    %726 = arith.mulf %713, %725 : vector<32x256xf32>
    %727 = vector.broadcast %1 : vector<1x256xf32> to vector<32x256xf32>
    %728 = arith.mulf %726, %727 : vector<32x256xf32>
    %c0_269 = arith.constant 0 : index
    %c0_270 = arith.constant 0 : index
    %729 = vector.load %arg12[%c0_269, %c0_270] : memref<32x32xbf16, #tpu.memory_space<vmem>>, vector<32x32xbf16>
    %730 = arith.truncf %728 : vector<32x256xf32> to vector<32x256xbf16>
    %cst_271 = arith.constant dense<0.000000e+00> : vector<32x256xf32>
    %731 = tpu.matmul %729, %730, %cst_271 {dimension_numbers = #tpu.dot_dimension_numbers<[1], [0], [0], [1], [0, 0, 1, 1], [], []>} : vector<32x32xbf16>, vector<32x256xbf16>, vector<32x256xf32> -> vector<32x256xf32>
    %c0_272 = arith.constant 0 : index
    %c0_273 = arith.constant 0 : index
    %732 = vector.load %arg13[%c0_272, %c0_273] : memref<32x1xf32, #tpu.memory_space<vmem>>, vector<32x1xf32>
    %733 = vector.broadcast %732 : vector<32x1xf32> to vector<32x256xf32>
    %734 = arith.addf %731, %733 : vector<32x256xf32>
    %735 = vector.broadcast %1 : vector<1x256xf32> to vector<32x256xf32>
    %736 = arith.mulf %734, %735 : vector<32x256xf32>
    %c0_274 = arith.constant 0 : index
    %c0_275 = arith.constant 0 : index
    %737 = vector.load %arg20[%c0_274, %c0_275] : memref<32x256xf32, #tpu.memory_space<vmem>>, vector<32x256xf32>
    tpu.vector_store %arg20[%c0_274, %c0_275], %736 {strides = array<i32>} : memref<32x256xf32, #tpu.memory_space<vmem>>, vector<32x256xf32>,
    %c0_276 = arith.constant 0 : index
    %c0_277 = arith.constant 0 : index
    %c0_278 = arith.constant 0 : index
    %738 = vector.load %arg14[%c0_276, %c0_277, %c0_278] : memref<2x32x1xf32, #tpu.memory_space<vmem>>, vector<1x32x1xf32>
    %739 = vector.shape_cast %738 : vector<1x32x1xf32> to vector<32x1xf32>
    %c0_279 = arith.constant 0 : index
    %c0_280 = arith.constant 0 : index
    %c0_281 = arith.constant 0 : index
    %740 = vector.load %arg15[%c0_279, %c0_280, %c0_281] : memref<2x32x1xf32, #tpu.memory_space<vmem>>, vector<1x32x1xf32>
    %741 = vector.shape_cast %740 : vector<1x32x1xf32> to vector<32x1xf32>
    %742 = vector.broadcast %1 : vector<1x256xf32> to vector<32x256xf32>
    %743 = arith.mulf %685, %742 : vector<32x256xf32>
    %cst_282 = arith.constant dense<0.000000e+00> : vector<32xf32>
    %744 = vector.multi_reduction <add>, %743, %cst_282 [1] : vector<32x256xf32> to vector<32xf32>
    %745 = vector.shape_cast %744 : vector<32xf32> to vector<32x1xf32>
    %746 = vector.broadcast %7 : f32 to vector<32x1xf32>
    %747 = arith.mulf %745, %746 : vector<32x1xf32>
    %748 = vector.broadcast %747 : vector<32x1xf32> to vector<32x256xf32>
    %749 = arith.subf %685, %748 : vector<32x256xf32>
    %750 = arith.mulf %749, %749 : vector<32x256xf32>
    %751 = vector.broadcast %1 : vector<1x256xf32> to vector<32x256xf32>
    %752 = arith.mulf %750, %751 : vector<32x256xf32>
    %cst_283 = arith.constant dense<0.000000e+00> : vector<32xf32>
    %753 = vector.multi_reduction <add>, %752, %cst_283 [1] : vector<32x256xf32> to vector<32xf32>
    %754 = vector.shape_cast %753 : vector<32xf32> to vector<32x1xf32>
    %755 = vector.broadcast %7 : f32 to vector<32x1xf32>
    %756 = arith.mulf %754, %755 : vector<32x1xf32>
    %757 = vector.broadcast %747 : vector<32x1xf32> to vector<32x256xf32>
    %758 = arith.subf %685, %757 : vector<32x256xf32>
    %cst_284 = arith.constant 9.99999974E-6 : f32
    %759 = vector.broadcast %cst_284 : f32 to vector<32x1xf32>
    %760 = arith.addf %756, %759 : vector<32x1xf32>
    %761 = math.rsqrt %760 : vector<32x1xf32>
    %762 = vector.broadcast %761 : vector<32x1xf32> to vector<32x256xf32>
    %763 = arith.mulf %758, %762 : vector<32x256xf32>
    %764 = vector.broadcast %739 : vector<32x1xf32> to vector<32x256xf32>
    %765 = arith.mulf %763, %764 : vector<32x256xf32>
    %766 = vector.broadcast %741 : vector<32x1xf32> to vector<32x256xf32>
    %767 = arith.addf %765, %766 : vector<32x256xf32>
    %768 = arith.mulf %767, %767 : vector<32x256xf32>
    %769 = arith.mulf %767, %768 : vector<32x256xf32>
    %cst_285 = arith.constant 4.471500e-02 : f32
    %770 = vector.broadcast %cst_285 : f32 to vector<32x256xf32>
    %771 = arith.mulf %770, %769 : vector<32x256xf32>
    %772 = arith.addf %767, %771 : vector<32x256xf32>
    %cst_286 = arith.constant 0.797884583 : f32
    %773 = vector.broadcast %cst_286 : f32 to vector<32x256xf32>
    %774 = arith.mulf %773, %772 : vector<32x256xf32>
    %775 = math.tanh %774 : vector<32x256xf32>
    %cst_287 = arith.constant 1.000000e+00 : f32
    %776 = vector.broadcast %cst_287 : f32 to vector<32x256xf32>
    %777 = arith.addf %776, %775 : vector<32x256xf32>
    %cst_288 = arith.constant 5.000000e-01 : f32
    %778 = vector.broadcast %cst_288 : f32 to vector<32x256xf32>
    %779 = arith.mulf %778, %777 : vector<32x256xf32>
    %780 = arith.mulf %767, %779 : vector<32x256xf32>
    %781 = vector.broadcast %1 : vector<1x256xf32> to vector<32x256xf32>
    %782 = arith.mulf %780, %781 : vector<32x256xf32>
    %c0_289 = arith.constant 0 : index
    %c0_290 = arith.constant 0 : index
    %c0_291 = arith.constant 0 : index
    %783 = vector.load %arg16[%c0_289, %c0_290, %c0_291] : memref<2x32x96xbf16, #tpu.memory_space<vmem>>, vector<1x32x96xbf16>
    %784 = vector.shape_cast %783 : vector<1x32x96xbf16> to vector<32x96xbf16>
    %c0_292 = arith.constant 0 : index
    %c0_293 = arith.constant 0 : index
    %c0_294 = arith.constant 0 : index
    %785 = vector.load %arg17[%c0_292, %c0_293, %c0_294] : memref<2x32x1xf32, #tpu.memory_space<vmem>>, vector<1x32x1xf32>
    %786 = vector.shape_cast %785 : vector<1x32x1xf32> to vector<32x1xf32>
    %c1_i32_295 = arith.constant 1 : i32
    %787 = tpu.dynamic_rotate %782 by %c1_i32_295 dim 1 : vector<32x256xf32>, i32 -> vector<32x256xf32>
    %c255_i32_296 = arith.constant 255 : i32
    %788 = tpu.dynamic_rotate %782 by %c255_i32_296 dim 1 : vector<32x256xf32>, i32 -> vector<32x256xf32>
    %789 = tpu.concatenate %787, %782, %788 in 0 : vector<32x256xf32>, vector<32x256xf32>, vector<32x256xf32> -> vector<96x256xf32>
    %790 = arith.truncf %789 : vector<96x256xf32> to vector<96x256xbf16>
    %cst_297 = arith.constant dense<0.000000e+00> : vector<32x256xf32>
    %791 = tpu.matmul %784, %790, %cst_297 {dimension_numbers = #tpu.dot_dimension_numbers<[1], [0], [0], [1], [0, 0, 1, 1], [], []>} : vector<32x96xbf16>, vector<96x256xbf16>, vector<32x256xf32> -> vector<32x256xf32>
    %792 = vector.broadcast %786 : vector<32x1xf32> to vector<32x256xf32>
    %793 = arith.addf %791, %792 : vector<32x256xf32>
    %c1_298 = arith.constant 1 : index
    %c0_299 = arith.constant 0 : index
    %c0_300 = arith.constant 0 : index
    %794 = vector.load %arg14[%c1_298, %c0_299, %c0_300] : memref<2x32x1xf32, #tpu.memory_space<vmem>>, vector<1x32x1xf32>
    %795 = vector.shape_cast %794 : vector<1x32x1xf32> to vector<32x1xf32>
    %c1_301 = arith.constant 1 : index
    %c0_302 = arith.constant 0 : index
    %c0_303 = arith.constant 0 : index
    %796 = vector.load %arg15[%c1_301, %c0_302, %c0_303] : memref<2x32x1xf32, #tpu.memory_space<vmem>>, vector<1x32x1xf32>
    %797 = vector.shape_cast %796 : vector<1x32x1xf32> to vector<32x1xf32>
    %798 = vector.broadcast %1 : vector<1x256xf32> to vector<32x256xf32>
    %799 = arith.mulf %793, %798 : vector<32x256xf32>
    %cst_304 = arith.constant dense<0.000000e+00> : vector<32xf32>
    %800 = vector.multi_reduction <add>, %799, %cst_304 [1] : vector<32x256xf32> to vector<32xf32>
    %801 = vector.shape_cast %800 : vector<32xf32> to vector<32x1xf32>
    %802 = vector.broadcast %7 : f32 to vector<32x1xf32>
    %803 = arith.mulf %801, %802 : vector<32x1xf32>
    %804 = vector.broadcast %803 : vector<32x1xf32> to vector<32x256xf32>
    %805 = arith.subf %793, %804 : vector<32x256xf32>
    %806 = arith.mulf %805, %805 : vector<32x256xf32>
    %807 = vector.broadcast %1 : vector<1x256xf32> to vector<32x256xf32>
    %808 = arith.mulf %806, %807 : vector<32x256xf32>
    %cst_305 = arith.constant dense<0.000000e+00> : vector<32xf32>
    %809 = vector.multi_reduction <add>, %808, %cst_305 [1] : vector<32x256xf32> to vector<32xf32>
    %810 = vector.shape_cast %809 : vector<32xf32> to vector<32x1xf32>
    %811 = vector.broadcast %7 : f32 to vector<32x1xf32>
    %812 = arith.mulf %810, %811 : vector<32x1xf32>
    %813 = vector.broadcast %803 : vector<32x1xf32> to vector<32x256xf32>
    %814 = arith.subf %793, %813 : vector<32x256xf32>
    %cst_306 = arith.constant 9.99999974E-6 : f32
    %815 = vector.broadcast %cst_306 : f32 to vector<32x1xf32>
    %816 = arith.addf %812, %815 : vector<32x1xf32>
    %817 = math.rsqrt %816 : vector<32x1xf32>
    %818 = vector.broadcast %817 : vector<32x1xf32> to vector<32x256xf32>
    %819 = arith.mulf %814, %818 : vector<32x256xf32>
    %820 = vector.broadcast %795 : vector<32x1xf32> to vector<32x256xf32>
    %821 = arith.mulf %819, %820 : vector<32x256xf32>
    %822 = vector.broadcast %797 : vector<32x1xf32> to vector<32x256xf32>
    %823 = arith.addf %821, %822 : vector<32x256xf32>
    %824 = arith.mulf %823, %823 : vector<32x256xf32>
    %825 = arith.mulf %823, %824 : vector<32x256xf32>
    %cst_307 = arith.constant 4.471500e-02 : f32
    %826 = vector.broadcast %cst_307 : f32 to vector<32x256xf32>
    %827 = arith.mulf %826, %825 : vector<32x256xf32>
    %828 = arith.addf %823, %827 : vector<32x256xf32>
    %cst_308 = arith.constant 0.797884583 : f32
    %829 = vector.broadcast %cst_308 : f32 to vector<32x256xf32>
    %830 = arith.mulf %829, %828 : vector<32x256xf32>
    %831 = math.tanh %830 : vector<32x256xf32>
    %cst_309 = arith.constant 1.000000e+00 : f32
    %832 = vector.broadcast %cst_309 : f32 to vector<32x256xf32>
    %833 = arith.addf %832, %831 : vector<32x256xf32>
    %cst_310 = arith.constant 5.000000e-01 : f32
    %834 = vector.broadcast %cst_310 : f32 to vector<32x256xf32>
    %835 = arith.mulf %834, %833 : vector<32x256xf32>
    %836 = arith.mulf %823, %835 : vector<32x256xf32>
    %837 = vector.broadcast %1 : vector<1x256xf32> to vector<32x256xf32>
    %838 = arith.mulf %836, %837 : vector<32x256xf32>
    %c1_311 = arith.constant 1 : index
    %c0_312 = arith.constant 0 : index
    %c0_313 = arith.constant 0 : index
    %839 = vector.load %arg16[%c1_311, %c0_312, %c0_313] : memref<2x32x96xbf16, #tpu.memory_space<vmem>>, vector<1x32x96xbf16>
    %840 = vector.shape_cast %839 : vector<1x32x96xbf16> to vector<32x96xbf16>
    %c1_314 = arith.constant 1 : index
    %c0_315 = arith.constant 0 : index
    %c0_316 = arith.constant 0 : index
    %841 = vector.load %arg17[%c1_314, %c0_315, %c0_316] : memref<2x32x1xf32, #tpu.memory_space<vmem>>, vector<1x32x1xf32>
    %842 = vector.shape_cast %841 : vector<1x32x1xf32> to vector<32x1xf32>
    %c1_i32_317 = arith.constant 1 : i32
    %843 = tpu.dynamic_rotate %838 by %c1_i32_317 dim 1 : vector<32x256xf32>, i32 -> vector<32x256xf32>
    %c255_i32_318 = arith.constant 255 : i32
    %844 = tpu.dynamic_rotate %838 by %c255_i32_318 dim 1 : vector<32x256xf32>, i32 -> vector<32x256xf32>
    %845 = tpu.concatenate %843, %838, %844 in 0 : vector<32x256xf32>, vector<32x256xf32>, vector<32x256xf32> -> vector<96x256xf32>
    %846 = arith.truncf %845 : vector<96x256xf32> to vector<96x256xbf16>
    %cst_319 = arith.constant dense<0.000000e+00> : vector<32x256xf32>
    %847 = tpu.matmul %840, %846, %cst_319 {dimension_numbers = #tpu.dot_dimension_numbers<[1], [0], [0], [1], [0, 0, 1, 1], [], []>} : vector<32x96xbf16>, vector<96x256xbf16>, vector<32x256xf32> -> vector<32x256xf32>
    %848 = vector.broadcast %842 : vector<32x1xf32> to vector<32x256xf32>
    %849 = arith.addf %847, %848 : vector<32x256xf32>
    %850 = vector.broadcast %1 : vector<1x256xf32> to vector<32x256xf32>
    %851 = arith.mulf %849, %850 : vector<32x256xf32>
    %c0_320 = arith.constant 0 : index
    %c0_321 = arith.constant 0 : index
    %852 = vector.load %arg18[%c0_320, %c0_321] : memref<1x32xbf16, #tpu.memory_space<vmem>>, vector<1x32xbf16>
    %853 = arith.truncf %851 : vector<32x256xf32> to vector<32x256xbf16>
    %cst_322 = arith.constant dense<0.000000e+00> : vector<1x256xf32>
    %854 = tpu.matmul %852, %853, %cst_322 {dimension_numbers = #tpu.dot_dimension_numbers<[1], [0], [0], [1], [0, 0, 1, 1], [], []>} : vector<1x32xbf16>, vector<32x256xbf16>, vector<1x256xf32> -> vector<1x256xf32>
    %c0_323 = arith.constant 0 : index
    %c0_324 = arith.constant 0 : index
    %855 = vector.load %arg19[%c0_323, %c0_324] : memref<1x1xf32, #tpu.memory_space<vmem>>, vector<1x1xf32>
    %856 = vector.broadcast %855 : vector<1x1xf32> to vector<1x256xf32>
    %857 = arith.addf %854, %856 : vector<1x256xf32>
    %858 = math.exp %857 : vector<1x256xf32>
    %859 = arith.mulf %858, %1 : vector<1x256xf32>
    %c0_325 = arith.constant 0 : index
    %c0_326 = arith.constant 0 : index
    %860 = vector.load %arg21[%c0_325, %c0_326] : memref<1x256xf32, #tpu.memory_space<vmem>>, vector<1x256xf32>
    tpu.vector_store %arg21[%c0_325, %c0_326], %859 {strides = array<i32>} : memref<1x256xf32, #tpu.memory_space<vmem>>, vector<1x256xf32>,
    return
  }
}

</mosaic_0001>

<bundles_post_ra>
// kernel: encoder_forward.1
= control target key start
LH: loop header
LB: loop body
LE: loop exit
PB: predicated region body
PF: predicated region fallthrough
CT: control target
= control target key end

     0   :  { %s11373_s0 = inlined_call_operand.vmem [shape: f32[32,256], index: 0, kind: input, shape index: {}]   ;;  %s11374_s1 = inlined_call_operand.vmem [shape: f32[1,256], index: 1, kind: input, shape index: {}]   ;;  %s11375_s2 = inlined_call_operand.vmem [shape: f32[6,32,1], index: 2, kind: input, shape index: {}]   ;;  %s11376_s3 = inlined_call_operand.vmem [shape: f32[6,32,1], index: 3, kind: input, shape index: {}]   ;;  %s11377_s4 = inlined_call_operand.vmem [shape: bf16[6,32,96], index: 4, kind: input, shape index: {}]   ;;  %s11378_s5 = inlined_call_operand.vmem [shape: f32[6,32,1], index: 5, kind: input, shape index: {}]   ;;  %s11379_s6 = inlined_call_operand.vmem [shape: f32[6,32,1], index: 6, kind: input, shape index: {}]   ;;  %s11380_s7 = inlined_call_operand.vmem [shape: f32[6,32,1], index: 7, kind: input, shape index: {}]   ;;  %s11381_s8 = inlined_call_operand.vmem [shape: bf16[6,32,96], index: 8, kind: input, shape index: {}]   ;;  %s11382_s9 = inlined_call_operand.vmem [shape: f32[6,32,1], index: 9, kind: input, shape index: {}]   ;;  %s11383_s10 = inlined_call_operand.vmem [shape: f32[32,1], index: 10, kind: input, shape index: {}]   ;;  %s11384_s11 = inlined_call_operand.vmem [shape: f32[32,1], index: 11, kind: input, shape index: {}]   ;;  %s11385_s12 = inlined_call_operand.vmem [shape: bf16[32,32], index: 12, kind: input, shape index: {}]   ;;  %s11386_s13 = inlined_call_operand.vmem [shape: f32[32,1], index: 13, kind: input, shape index: {}]   ;;  %s11387_s14 = inlined_call_operand.vmem [shape: f32[2,32,1], index: 14, kind: input, shape index: {}]   ;;  %s11388_s15 = inlined_call_operand.vmem [shape: f32[2,32,1], index: 15, kind: input, shape index: {}]   ;;  %s11389_s16 = inlined_call_operand.vmem [shape: bf16[2,32,96], index: 16, kind: input, shape index: {}]   ;;  %s11390_s17 = inlined_call_operand.vmem [shape: f32[2,32,1], index: 17, kind: input, shape index: {}]   ;;  %s11391_s18 = inlined_call_operand.vmem [shape: bf16[1,32], index: 18, kind: input, shape index: {}]   ;;  %s11392_s19 = inlined_call_operand.<no memory space> [shape: f32[1,1], index: 19, kind: input, shape index: {}]   ;;  %s11393_s20 = inlined_call_operand.vmem [shape: f32[32,256], index: 20, kind: output, shape index: {0}]   ;;  %s11394_s21 = inlined_call_operand.hbm [shape: f32[1,256], index: 21, kind: output, shape index: {1}]  }
   0x1   :  { %11415 = sst [smem:[#allocation6_spill]] %s11373_s0  ;;  %v27_v0 = vstv %s11392_s19 }
   0x2   :  { %11416 = sst [smem:[#allocation7_spill]] %s11374_s1  ;;  %28 = vst [vmem:[#allocation2] sm:$0x1] %v27_v0 }
   0x3   :  { %11417 = sst [smem:[#allocation8_spill]] %s11375_s2 }
   0x4   :  { %11418 = sst [smem:[#allocation9_spill]] %s11376_s3 }
   0x5   :  { %11419 = sst [smem:[#allocation10_spill]] %s11377_s4 }
   0x6   :  { %11420 = sst [smem:[#allocation11_spill]] %s11378_s5 }
   0x7   :  { %11421 = sst [smem:[#allocation12_spill]] %s11386_s13 }
   0x8   :  { %11422 = sst [smem:[#allocation13_spill]] %s11391_s18 }
   0x9   :  { %11423 = sst [smem:[#allocation14_spill]] %s11393_s20 }
   0xa   :  { %11424 = sst [smem:[#allocation15_spill]] %s11394_s21 }
   0xb   :  { %v81_v1 = vlaneseq  ;;  %s11425_s3 = sld [smem:[#allocation7_spill]]  ;;  %vm91_vm0 = vcmask 1040384   ;;  %s11426_s0 = sld [smem:[#allocation6_spill]] }
   0xd   :  { %v7280_v3 = vshrl.u32 %v81_v1, 7 }
   0xf   :  { %v83_v6 = vsub.s32 0, %v7280_v3  ;;  %v87_v7 = vsub.s32 1, %v7280_v3 }
  0x11   :  { %v79_v2 = vld [vmem:[%s11425_s3] sm:$0x3]  ;;  %v7285_v4 = vld [vmem:[%s11426_s0 + $0x10] sm:$0xff]  ;;  %v7290_v5 = vld [vmem:[%s11426_s0 + $0x18] sm:$0xff] }
  0x12   :  { %v7297_v8 = vld [vmem:[%s11426_s0] sm:$0xff]  ;;  %v7302_v9 = vld [vmem:[%s11426_s0 + $0x8] sm:$0xff]  ;;  %v7312_v12 = vrot.slane %v79_v2, %v83_v6  ;;  %v7314_v13 = vrot.slane %v79_v2, %v87_v7  ;;  %v77_v14 = vld [vmem:[%s11426_s0 + $0x30] sm:$0xff] }
  0x13   :  { %v75_v10 = vld [vmem:[%s11426_s0 + $0x20] sm:$0xff]  ;;  %v76_v11 = vld [vmem:[%s11426_s0 + $0x28] sm:$0xff]  ;;  %v78_v15 = vld [vmem:[%s11426_s0 + $0x38] sm:$0xff] }
  0x14   :  { %v92_v16 = vsel %vm91_vm0, %v7312_v12, 0.0  ;;  %v93_v17 = vsel %vm91_vm0, %v7314_v13, 0.0  ;;  %v118_v18 = vmul.f32 %v7312_v12, %v7285_v4  ;;  %v119_v19 = vmul.f32 %v7314_v13, %v7290_v5 }
  0x15   :  { %v94_v20 = vadd.f32 %v93_v17, %v92_v16  ;;  %v116_v21 = vmul.f32 %v7312_v12, %v7297_v8  ;;  %v117_v22 = vmul.f32 %v7314_v13, %v7302_v9  ;;  %v120_v23 = vmul.f32 %v7312_v12, %v75_v10 }
  0x16   :  { %v127_v24 = vadd.f32 %v119_v19, %v118_v18  ;;  %v121_v25 = vmul.f32 %v7314_v13, %v76_v11  ;;  %v122_v27 = vmul.f32 %v7312_v12, %v77_v14  ;;  %v123_v28 = vmul.f32 %v7314_v13, %v78_v15 }
  0x17   :  { %95 = vadd.xlane.f32.xlu0 %v94_v20  ;;  %v124_v26 = vadd.f32 %v117_v22, %v116_v21 }
  0x18   :  { %128 = vadd.xlane.f32.xlu1 %v127_v24  ;;  %v130_v29 = vadd.f32 %v121_v25, %v120_v23  ;;  %v133_v30 = vadd.f32 %v123_v28, %v122_v27 }
  0x1b   :  { %125 = vadd.xlane.f32.xlu0 %v124_v26 }
  0x1c   :  { %131 = vadd.xlane.f32.xlu1 %v130_v29 }
  0x1f   :  { %134 = vadd.xlane.f32.xlu0 %v133_v30 }
  0x20   :  { %29 = vsyncpa [#allocation4], 0  ;;  %s11427_s30 = sld [smem:[#allocation8_spill]]  ;;  %v7153_v32 = vmov 0   ;;  %s7154_s5 = smov 1.0   ;;  %vm435_vm3 = vcmask 785408  }
  0x21   :  { %6171 = vset.pattern.permute.xlu1 %v7153_v32  ;;  %6172 = vset.pattern.permute.xlu0 %v7153_v32  ;;  %s11428_s2 = sld [smem:[#allocation9_spill]]  ;;  %s11402_s24 = smov 1   ;;  %vm5044_vm8 = vcmask 261120   ;;  %vm5899_vm9 = vcmp.lt.s32.totalorder %v81_v1, 256 }
  0x22   :  { %474 = vmatprep.mubr.bf16.mxu0 %v7153_v32  ;;  %855 = vmatprep.mubr.bf16.mxu1 %v7153_v32  ;;  %s11400_s25 = smov 127   ;;  %s11429_s3 = sld [smem:[#allocation11_spill]] }
  0x23   :  { %s11430_s26 = sld [smem:[#allocation10_spill]]  ;;  %s11408_s1 = smov 112  }
  0x24   :  { %s11433_s27 = smov 16   ;;  %s11434_s28 = smov 112  }
  0x25   :  { %s11436_s21 = smov 4  }
  0x26   :  { %v108_v31 = vld [vmem:[%s11427_s30] sm:$0xff]  ;;  %v109_v22 = vld [vmem:[%s11427_s30 + $0x8] sm:$0xff]  ;;  %v110_v23 = vld [vmem:[%s11427_s30 + $0x10] sm:$0xff] }
  0x27   :  { %v112_v20 = vld [vmem:[%s11428_s2] sm:$0xff]  ;;  %v113_v21 = vld [vmem:[%s11428_s2 + $0x8] sm:$0xff]  ;;  %v111_v24 = vld [vmem:[%s11427_s30 + $0x18] sm:$0xff] }
  0x28   :  { %v114_v25 = vld [vmem:[%s11428_s2 + $0x10] sm:$0xff]  ;;  %v115_v26 = vld [vmem:[%s11428_s2 + $0x18] sm:$0xff] }
  0x2d   :  { %199 = vperm.xlu1 %6171, %v108_v31  }
  0xa4   :  { %v96_v33 = vpop.xlane.xlu0 %95 }
  0xa5   :  { %v97_v34 = vrot.slane %v96_v33, 4  ;;  %v129_v42 = vpop.xlane.xlu1 %128 }
  0xa7   :  { %v98_v35 = vadd.f32 %v97_v34, %v96_v33 }
  0xa8   :  { %v126_v43 = vpop.xlane.xlu0 %125 }
  0xa9   :  { %v99_v36 = vrot.slane %v98_v35, 2  ;;  %v132_v44 = vpop.xlane.xlu1 %131 }
  0xab   :  { %v100_v37 = vadd.f32 %v99_v36, %v98_v35 }
  0xac   :  { %v135_v45 = vpop.xlane.xlu0 %134 }
  0xad   :  { %v101_v38 = vrot.slane %v100_v37, 1  ;;  %v200_v27 = vpop.permute.xlu1 %199 }
  0xaf   :  { %v102_v39 = vadd.f32 %v101_v38, %v100_v37 }
  0xb1   :  { %6157 = vpush %v102_v39 }
  0xe2   :  { %s6158_s19 = spop %6157 }
  0xe3   :  { %s104_s22 = smax.f32 %s7154_s5, %s6158_s19  ;;  %s11406_s19 = smov 4  }
  0xe4   :  { %v105_v40 = vstv %s104_s22  ;;  %s11404_s5 = smov 124   ;;  %s11432_s22 = smov 124  }
  0xe5   :  { %6763 = vrcp.f32 %v105_v40 }
  0xef   :  { %v6764_v41 = vpop.eup %6763 }
  0xf0   :  { %6159 = vpush %v6764_v41 }
 0x121   :  { %s6160_s23 = spop %6159 }
 0x122   :  { %v7343_v46 = vstv %s6160_s23  ;;  %s11431_s23 = smov 127  }
 0x123   :  { %v137_v47 = vmul.f32 %v7343_v46, %v126_v43  ;;  %v138_v48 = vmul.f32 %v7343_v46, %v129_v42  ;;  %v139_v49 = vmul.f32 %v7343_v46, %v132_v44  ;;  %v140_v50 = vmul.f32 %v7343_v46, %v135_v45 }
 0x125   :  { %v7349_v51 = vsub.f32 %v75_v10, %v139_v49  ;;  %v7351_v52 = vsub.f32 %v76_v11, %v139_v49  ;;  %v7354_v53 = vsub.f32 %v7297_v8, %v137_v47  ;;  %v7357_v54 = vsub.f32 %v7302_v9, %v137_v47 }
 0x126   :  { %v7360_v55 = vsub.f32 %v7285_v4, %v138_v48  ;;  %v7363_v56 = vsub.f32 %v7290_v5, %v138_v48  ;;  %v7365_v57 = vsub.f32 %v77_v14, %v140_v50  ;;  %v7367_v58 = vsub.f32 %v78_v15, %v140_v50 }
 0x127   :  { %v149_v59 = vmul.f32 %v7354_v53, %v7354_v53  ;;  %v150_v60 = vmul.f32 %v7357_v54, %v7357_v54  ;;  %v153_v61 = vmul.f32 %v7349_v51, %v7349_v51  ;;  %v154_v62 = vmul.f32 %v7351_v52, %v7351_v52 }
 0x128   :  { %v151_v63 = vmul.f32 %v7360_v55, %v7360_v55  ;;  %v152_v0 = vmul.f32 %v7363_v56, %v7363_v56  ;;  %v155_v2 = vmul.f32 %v7365_v57, %v7365_v57  ;;  %v156_v4 = vmul.f32 %v7367_v58, %v7367_v58 }
 0x129   :  { %v157_v5 = vmul.f32 %v149_v59, %v7312_v12  ;;  %v158_v7 = vmul.f32 %v150_v60, %v7314_v13  ;;  %v161_v11 = vmul.f32 %v153_v61, %v7312_v12  ;;  %v162_v14 = vmul.f32 %v154_v62, %v7314_v13 }
 0x12a   :  { %v159_v8 = vmul.f32 %v151_v63, %v7312_v12  ;;  %v160_v9 = vmul.f32 %v152_v0, %v7314_v13  ;;  %v163_v16 = vmul.f32 %v155_v2, %v7312_v12  ;;  %v164_v17 = vmul.f32 %v156_v4, %v7314_v13 }
 0x12b   :  { %v165_v10 = vadd.f32 %v158_v7, %v157_v5  ;;  %v171_v18 = vadd.f32 %v162_v14, %v161_v11 }
 0x12c   :  { %v168_v15 = vadd.f32 %v160_v9, %v159_v8  ;;  %v174_v19 = vadd.f32 %v164_v17, %v163_v16 }
 0x12d   :  { %166 = vadd.xlane.f32.xlu1 %v165_v10 }
 0x12e   :  { %169 = vadd.xlane.f32.xlu0 %v168_v15 }
 0x131   :  { %172 = vadd.xlane.f32.xlu1 %v171_v18 }
 0x132   :  { %175 = vadd.xlane.f32.xlu0 %v174_v19 }
 0x142   :  { %227 = vperm.xlu1 %6171, %v112_v20  }
 0x146   :  { %232 = vperm.xlu1 %6171, %v113_v21  }
 0x148   :  { %204 = vperm.xlu0 %6172, %v109_v22  }
 0x14a   :  { %209 = vperm.xlu1 %6171, %v110_v23  }
 0x14e   :  { %214 = vperm.xlu1 %6171, %v111_v24  }
 0x152   :  { %237 = vperm.xlu1 %6171, %v114_v25  }
 0x156   :  { %242 = vperm.xlu1 %6171, %v115_v26  }
 0x1ba   :  { %v167_v28 = vpop.xlane.xlu1 %166 }
 0x1bb   :  { %v177_v29 = vmul.f32 %v167_v28, %v7343_v46  ;;  %v170_v30 = vpop.xlane.xlu0 %169 }
 0x1bc   :  { %v178_v31 = vmul.f32 %v170_v30, %v7343_v46 }
 0x1bd   :  { %v181_v33 = vadd.f32 1e-05, %v177_v29 }
 0x1be   :  { %v182_v34 = vadd.f32 1e-05, %v178_v31  ;;  %v173_v35 = vpop.xlane.xlu1 %172 }
 0x1bf   :  { %6765 = vrsqrt.f32 %v181_v33  ;;  %v179_v36 = vmul.f32 %v173_v35, %v7343_v46  ;;  %v176_v37 = vpop.xlane.xlu0 %175 }
 0x1c0   :  { %6767 = vrsqrt.f32 %v182_v34  ;;  %v180_v38 = vmul.f32 %v176_v37, %v7343_v46 }
 0x1c1   :  { %v183_v39 = vadd.f32 1e-05, %v179_v36 }
 0x1c2   :  { %v184_v40 = vadd.f32 1e-05, %v180_v38  ;;  %v228_v41 = vpop.permute.xlu1 %227 }
 0x1c3   :  { %6769 = vrsqrt.f32 %v183_v39 }
 0x1c4   :  { %6771 = vrsqrt.f32 %v184_v40 }
 0x1c6   :  { %v233_v42 = vpop.permute.xlu1 %232 }
 0x1c7   :  { %v205_v49 = vpop.permute.xlu0 %204 }
 0x1c9   :  { %v6766_v43 = vpop.eup %6765 }
 0x1ca   :  { %v6768_v44 = vpop.eup %6767  ;;  %v189_v45 = vmul.f32 %v6766_v43, %v7354_v53  ;;  %v190_v47 = vmul.f32 %v6766_v43, %v7357_v54  ;;  %v210_v48 = vpop.permute.xlu1 %209 }
 0x1cb   :  { %v191_v50 = vmul.f32 %v6768_v44, %v7360_v55  ;;  %v192_v59 = vmul.f32 %v6768_v44, %v7363_v56 }
 0x1cc   :  { %v217_v60 = vmul.f32 %v200_v27, %v189_v45  ;;  %v218_v61 = vmul.f32 %v200_v27, %v190_v47 }
 0x1cd   :  { %v6770_v62 = vpop.eup %6769  ;;  %v219_v63 = vmul.f32 %v205_v49, %v191_v50  ;;  %v220_v0 = vmul.f32 %v205_v49, %v192_v59 }
 0x1ce   :  { %v7422_v2 = vadd.f32 %v228_v41, %v217_v60  ;;  %v7424_v4 = vadd.f32 %v228_v41, %v218_v61  ;;  %v193_v5 = vmul.f32 %v6770_v62, %v7349_v51  ;;  %v194_v53 = vmul.f32 %v6770_v62, %v7351_v52  ;;  %v215_v54 = vpop.permute.xlu1 %214  ;;  %v6772_v7 = vpop.eup %6771 }
 0x1cf   :  { %v7428_v8 = vadd.f32 %v233_v42, %v219_v63  ;;  %v7430_v55 = vadd.f32 %v233_v42, %v220_v0  ;;  %v195_v16 = vmul.f32 %v6772_v7, %v7365_v57  ;;  %v196_v17 = vmul.f32 %v6772_v7, %v7367_v58 }
 0x1d0   :  { %v253_v56 = vmul.f32 %v7422_v2, %v7422_v2  ;;  %v254_v9 = vmul.f32 %v7424_v4, %v7424_v4  ;;  %v221_v10 = vmul.f32 %v210_v48, %v193_v5  ;;  %v222_v11 = vmul.f32 %v210_v48, %v194_v53 }
 0x1d1   :  { %v255_v14 = vmul.f32 %v7428_v8, %v7428_v8  ;;  %v256_v51 = vmul.f32 %v7430_v55, %v7430_v55  ;;  %v223_v29 = vmul.f32 %v215_v54, %v195_v16  ;;  %v224_v30 = vmul.f32 %v215_v54, %v196_v17 }
 0x1d2   :  { %v261_v52 = vmul.f32 %v253_v56, %v7422_v2  ;;  %v262_v15 = vmul.f32 %v254_v9, %v7424_v4  ;;  %v238_v18 = vpop.permute.xlu1 %237 }
 0x1d3   :  { %v263_v19 = vmul.f32 %v255_v14, %v7428_v8  ;;  %v264_v20 = vmul.f32 %v256_v51, %v7430_v55  ;;  %v7446_v21 = vadd.f32 %v238_v18, %v221_v10  ;;  %v7448_v22 = vadd.f32 %v238_v18, %v222_v11 }
 0x1d4   :  { %v269_v23 = vmul.f32 0.044715, %v261_v52  ;;  %v270_v24 = vmul.f32 0.044715, %v262_v15 }
 0x1d5   :  { %v271_v25 = vmul.f32 0.044715, %v263_v19  ;;  %v272_v26 = vmul.f32 0.044715, %v264_v20  ;;  %v257_v27 = vmul.f32 %v7446_v21, %v7446_v21  ;;  %v258_v57 = vmul.f32 %v7448_v22, %v7448_v22 }
 0x1d6   :  { %v277_v58 = vadd.f32 %v269_v23, %v7422_v2  ;;  %v278_v28 = vadd.f32 %v270_v24, %v7424_v4  ;;  %v243_v31 = vpop.permute.xlu1 %242 }
 0x1d7   :  { %v279_v33 = vadd.f32 %v271_v25, %v7428_v8  ;;  %v280_v34 = vadd.f32 %v272_v26, %v7430_v55  ;;  %v265_v35 = vmul.f32 %v257_v27, %v7446_v21  ;;  %v266_v36 = vmul.f32 %v258_v57, %v7448_v22 }
 0x1d8   :  { %v285_v37 = vmul.f32 0.7978846, %v277_v58  ;;  %v286_v38 = vmul.f32 0.7978846, %v278_v28  ;;  %v7460_v39 = vadd.f32 %v243_v31, %v223_v29  ;;  %v7462_v40 = vadd.f32 %v243_v31, %v224_v30 }
 0x1d9   :  { %v287_v41 = vmul.f32 0.7978846, %v279_v33  ;;  %v288_v42 = vmul.f32 0.7978846, %v280_v34  ;;  %v273_v43 = vmul.f32 0.044715, %v265_v35 }
 0x1da   :  { %6773 = vtanh.f32 %v285_v37  ;;  %v274_v44 = vmul.f32 0.044715, %v266_v36  ;;  %v259_v45 = vmul.f32 %v7460_v39, %v7460_v39  ;;  %v260_v47 = vmul.f32 %v7462_v40, %v7462_v40 }
 0x1db   :  { %6775 = vtanh.f32 %v286_v38  ;;  %v281_v48 = vadd.f32 %v273_v43, %v7446_v21 }
 0x1dc   :  { %6777 = vtanh.f32 %v287_v41  ;;  %v282_v49 = vadd.f32 %v274_v44, %v7448_v22  ;;  %v267_v50 = vmul.f32 %v259_v45, %v7460_v39  ;;  %v268_v59 = vmul.f32 %v260_v47, %v7462_v40 }
 0x1dd   :  { %6779 = vtanh.f32 %v288_v42  ;;  %v289_v60 = vmul.f32 0.7978846, %v281_v48 }
 0x1de   :  { %v290_v61 = vmul.f32 0.7978846, %v282_v49  ;;  %v275_v62 = vmul.f32 0.044715, %v267_v50  ;;  %v276_v63 = vmul.f32 0.044715, %v268_v59 }
 0x1df   :  { %6781 = vtanh.f32 %v289_v60  ;;  %v337_v59 = vld [vmem:[%s11429_s3] sm:$0xff]  ;;  %v338_v60 = vld [vmem:[%s11429_s3 + $0x8] sm:$0xff] }
 0x1e0   :  { %6783 = vtanh.f32 %v290_v61  ;;  %v283_v0 = vadd.f32 %v275_v62, %v7460_v39  ;;  %v284_v5 = vadd.f32 %v276_v63, %v7462_v40  ;;  %v339_v61 = vld [vmem:[%s11429_s3 + $0x10] sm:$0xff]  ;;  %v340_v62 = vld [vmem:[%s11429_s3 + $0x18] sm:$0xff] }
 0x1e2   :  { %v291_v53 = vmul.f32 0.7978846, %v283_v0  ;;  %v292_v54 = vmul.f32 0.7978846, %v284_v5  ;;  %v7543_v0 = vand.u32 127, %v81_v1 }
 0x1e4   :  { %v6774_v7 = vpop.eup %6773  ;;  %6785 = vtanh.f32 %v291_v53  ;;  %vm359_vm1 = vcmp.lt.s32.totalorder %v7543_v0, 1  ;;  %vm384_vm2 = vcmp.lt.s32.totalorder %v7543_v0, 127  ;;  %vm1136_vm4 = vcmp.lt.s32.totalorder %v7543_v0, 4 }
 0x1e5   :  { %v6776_v56 = vpop.eup %6775  ;;  %6787 = vtanh.f32 %v292_v54  ;;  %v301_v9 = vadd.f32 1.0, %v6774_v7  ;;  %vm1161_vm5 = vcmp.lt.s32.totalorder %v7543_v0, 124  ;;  %vm1916_vm6 = vcmp.lt.s32.totalorder %v7543_v0, 16 }
 0x1e6   :  { %v6778_v10 = vpop.eup %6777  ;;  %v302_v11 = vadd.f32 1.0, %v6776_v56  ;;  %vm1941_vm7 = vcmp.lt.s32.totalorder %v7543_v0, 112 }
 0x1e7   :  { %v6780_v14 = vpop.eup %6779  ;;  %v303_v51 = vadd.f32 1.0, %v6778_v10  ;;  %v309_v52 = vmul.f32 0.5, %v301_v9 }
 0x1e8   :  { %v304_v15 = vadd.f32 1.0, %v6780_v14  ;;  %v310_v16 = vmul.f32 0.5, %v302_v11 }
 0x1e9   :  { %v6782_v17 = vpop.eup %6781  ;;  %v311_v18 = vmul.f32 0.5, %v303_v51  ;;  %v317_v19 = vmul.f32 %v309_v52, %v7422_v2 }
 0x1ea   :  { %v6784_v20 = vpop.eup %6783  ;;  %v312_v23 = vmul.f32 0.5, %v304_v15  ;;  %v318_v24 = vmul.f32 %v310_v16, %v7424_v4  ;;  %v305_v25 = vadd.f32 1.0, %v6782_v17 }
 0x1eb   :  { %v319_v26 = vmul.f32 %v311_v18, %v7428_v8  ;;  %v7478_v27 = vmul.f32 %v317_v19, %v7312_v12  ;;  %v306_v57 = vadd.f32 1.0, %v6784_v20 }
 0x1ec   :  { %v320_v58 = vmul.f32 %v312_v23, %v7430_v55  ;;  %v7485_v29 = vmul.f32 %v318_v24, %v7314_v13  ;;  %v313_v2 = vmul.f32 0.5, %v305_v25 }
 0x1ed   :  { %v7482_v28 = vmul.f32 %v319_v26, %v7312_v12  ;;  %v314_v4 = vmul.f32 0.5, %v306_v57 }
 0x1ee   :  { %v6786_v30 = vpop.eup %6785  ;;  %v7488_v31 = vmul.f32 %v320_v58, %v7314_v13  ;;  %v321_v36 = vmul.f32 %v313_v2, %v7446_v21 }
 0x1ef   :  { %v6788_v33 = vpop.eup %6787  ;;  %v6173_v8 = vpack.i.bf16 %v7482_v28, %v7478_v27  ;;  %v307_v34 = vadd.f32 1.0, %v6786_v30  ;;  %v397_v38 = vpack.c.bf16 %v7482_v28, %v7478_v27  ;;  %v322_v42 = vmul.f32 %v314_v4, %v7448_v22 }
 0x1f0   :  { %v308_v35 = vadd.f32 1.0, %v6788_v33  ;;  %v398_v37 = vpack.c.bf16 %v7488_v31, %v7485_v29  ;;  %v6178_v43 = vpack.i.bf16 %v7488_v31, %v7485_v29  ;;  %v7505_v21 = vmul.f32 %v321_v36, %v7312_v12 }
 0x1f1   :  { %6174 = vrot.lane.b32.xlu1 %v6173_v8, %s11402_s24  ;;  %v315_v55 = vmul.f32 0.5, %v307_v34  ;;  %v7511_v48 = vmul.f32 %v322_v42, %v7314_v13 }
 0x1f2   :  { %v316_v41 = vmul.f32 0.5, %v308_v35 }
 0x1f3   :  { %v323_v44 = vmul.f32 %v315_v55, %v7460_v39 }
 0x1f4   :  { %v324_v45 = vmul.f32 %v316_v41, %v7462_v40 }
 0x1f5   :  { %6179 = vrot.lane.b32.xlu1 %v6178_v43, %s11402_s24  ;;  %v7508_v47 = vmul.f32 %v323_v44, %v7312_v12 }
 0x1f6   :  { %v7514_v22 = vmul.f32 %v324_v45, %v7314_v13 }
 0x1f7   :  { %v6183_v49 = vpack.i.bf16 %v7508_v47, %v7505_v21  ;;  %v399_v39 = vpack.c.bf16 %v7508_v47, %v7505_v21  ;;  %v6733_v21 = vld [vmem:[%s11430_s26] sm:$0xff]   ;;  %v6734_v47 = vld [vmem:[%s11430_s26 + $0x8] sm:$0xff]  }
 0x1f8   :  { %v6188_v40 = vpack.i.bf16 %v7514_v22, %v7511_v48  ;;  %v400_v50 = vpack.c.bf16 %v7514_v22, %v7511_v48 }
 0x1f9   :  { %6184 = vrot.lane.b32.xlu0 %v6183_v49, %s11402_s24 }
 0x1fa   :  { %6189 = vrot.lane.b32.xlu1 %v6188_v40, %s11402_s24 }
 0x1fd   :  { %6194 = vrot.lane.b32.xlu0 %v6173_v8, %s11400_s25 }
 0x1fe   :  { %6199 = vrot.lane.b32.xlu1 %v6178_v43, %s11400_s25 }
 0x201   :  { %6204 = vrot.lane.b32.xlu0 %v6183_v49, %s11400_s25 }
 0x202   :  { %6209 = vrot.lane.b32.xlu1 %v6188_v40, %s11400_s25  ;;  %s11410_s25 = smov 16  }
 0x205   :  { %407 = vperm.xlu0 %6172, %v337_v59  }
 0x206   :  { %412 = vperm.xlu1 %6171, %v338_v60  }
 0x209   :  { %417 = vperm.xlu0 %6172, %v339_v61  }
 0x20a   :  { %422 = vperm.xlu1 %6171, %v340_v62  }
 0x263   :  { %v6175_v63 = vpop.permute.xlu1 %6174 }
 0x264   :  { %v6177_v53 = vunpack.i.h.bf16 %v6175_v63  ;;  %v6176_v54 = vunpack.i.l.bf16 %v6175_v63 }
 0x267   :  { %v6180_v5 = vpop.permute.xlu1 %6179 }
 0x268   :  { %v6182_v7 = vunpack.i.h.bf16 %v6180_v5  ;;  %v6181_v56 = vunpack.i.l.bf16 %v6180_v5 }
 0x26a   :  { %v360_v9 = vsel %vm359_vm1, %v6176_v54, %v6181_v56  ;;  %v361_v10 = vsel %vm359_vm1, %v6177_v53, %v6182_v7  ;;  %v364_v11 = vsel %vm359_vm1, %v6181_v56, %v6176_v54  ;;  %v365_v14 = vsel %vm359_vm1, %v6182_v7, %v6177_v53 }
 0x26b   :  { %v6185_v51 = vpop.permute.xlu0 %6184  ;;  %v394_v52 = vpack.c.bf16 %v361_v10, %v360_v9  ;;  %v393_v15 = vpack.c.bf16 %v365_v14, %v364_v11 }
 0x26c   :  { %v6190_v16 = vpop.permute.xlu1 %6189  ;;  %v6187_v17 = vunpack.i.h.bf16 %v6185_v51  ;;  %v6186_v18 = vunpack.i.l.bf16 %v6185_v51 }
 0x26d   :  { %v6192_v19 = vunpack.i.h.bf16 %v6190_v16  ;;  %v6191_v20 = vunpack.i.l.bf16 %v6190_v16  ;;  %442 = vmatprep.subr.bf16.mxu0 %v394_v52 }
 0x26e   :  { %443 = vmatpush1.bf16.msra.mxu0 %v393_v15 }
 0x26f   :  { %v6195_v23 = vpop.permute.xlu0 %6194  ;;  %v362_v24 = vsel %vm359_vm1, %v6186_v18, %v6191_v20  ;;  %v363_v25 = vsel %vm359_vm1, %v6187_v17, %v6192_v19  ;;  %v366_v26 = vsel %vm359_vm1, %v6191_v20, %v6186_v18  ;;  %v367_v57 = vsel %vm359_vm1, %v6192_v19, %v6187_v17 }
 0x270   :  { %v6200_v58 = vpop.permute.xlu1 %6199  ;;  %v396_v2 = vpack.c.bf16 %v363_v25, %v362_v24  ;;  %v395_v30 = vpack.c.bf16 %v367_v57, %v366_v26  ;;  %v6197_v8 = vunpack.i.h.bf16 %v6195_v23  ;;  %v6196_v34 = vunpack.i.l.bf16 %v6195_v23 }
 0x271   :  { %v6202_v4 = vunpack.i.h.bf16 %v6200_v58  ;;  %v6201_v33 = vunpack.i.l.bf16 %v6200_v58 }
 0x272   :  { %444 = vmatprep.subr.bf16.mxu0 %v396_v2 }
 0x273   :  { %445 = vmatpush1.bf16.msra.mxu0 %v395_v30  ;;  %v6205_v55 = vpop.permute.xlu0 %6204  ;;  %v389_v36 = vsel %vm384_vm2, %v6201_v33, %v6196_v34  ;;  %v390_v41 = vsel %vm384_vm2, %v6202_v4, %v6197_v8  ;;  %v385_v29 = vsel %vm384_vm2, %v6196_v34, %v6201_v33  ;;  %v386_v31 = vsel %vm384_vm2, %v6197_v8, %v6202_v4  ;;  %v495_v4 = vld [vmem:[%s11379_s6] sm:$0xff]  ;;  %v500_v8 = vld [vmem:[%s11380_s7 + $0x8] sm:$0xff]  ;;  %v498_v34 = vld [vmem:[%s11379_s6 + $0x18] sm:$0xff] }
 0x274   :  { %v6210_v35 = vpop.permute.xlu1 %6209  ;;  %446 = vmatprep.subr.bf16.mxu0 %v398_v37  ;;  %v6207_v44 = vunpack.i.h.bf16 %v6205_v55  ;;  %v6206_v45 = vunpack.i.l.bf16 %v6205_v55  ;;  %v402_v48 = vpack.c.bf16 %v390_v41, %v389_v36  ;;  %v401_v27 = vpack.c.bf16 %v386_v31, %v385_v29  ;;  %v499_v33 = vld [vmem:[%s11380_s7] sm:$0xff]  ;;  %v497_v55 = vld [vmem:[%s11379_s6 + $0x10] sm:$0xff] }
 0x275   :  { %v6212_v42 = vunpack.i.h.bf16 %v6210_v35  ;;  %v6211_v43 = vunpack.i.l.bf16 %v6210_v35  ;;  %v496_v35 = vld [vmem:[%s11379_s6 + $0x8] sm:$0xff] }
 0x277   :  { %447 = vmatpush1.bf16.msra.mxu0 %v397_v38  ;;  %v391_v37 = vsel %vm384_vm2, %v6211_v43, %v6206_v45  ;;  %v392_v22 = vsel %vm384_vm2, %v6212_v42, %v6207_v44  ;;  %v387_v38 = vsel %vm384_vm2, %v6206_v45, %v6211_v43  ;;  %v388_v49 = vsel %vm384_vm2, %v6207_v44, %v6212_v42 }
 0x278   :  { %448 = vmatprep.subr.bf16.mxu0 %v400_v50  ;;  %v404_v28 = vpack.c.bf16 %v392_v22, %v391_v37  ;;  %v403_v40 = vpack.c.bf16 %v388_v49, %v387_v38 }
 0x27b   :  { %449 = vmatpush1.bf16.msra.mxu0 %v399_v39 }
 0x27c   :  { %450 = vmatprep.subr.bf16.mxu0 %v402_v48 }
 0x27f   :  { %451 = vmatpush1.bf16.msra.mxu0 %v401_v27 }
 0x280   :  { %452 = vmatprep.subr.bf16.mxu0 %v404_v28 }
 0x283   :  { %453 = vmatpush1.bf16.msra.mxu0 %v403_v40 }
 0x284   :  { %v408_v39 = vpop.permute.xlu0 %407 }
 0x285   :  { %v413_v61 = vpop.permute.xlu1 %412 }
 0x286   :  { %5922 = vmatmul.mubr.msk.bf16.vlgmr.msra.gmra.mrb[0].mxu0 %vm435_vm3, %v6733_v21 }
 0x287   :  { %484 = vmatprep.mubr.bf16.mxu0 %v7153_v32 }
 0x288   :  { %v418_v14 = vpop.permute.xlu0 %417 }
 0x289   :  { %v423_v17 = vpop.permute.xlu1 %422 }
 0x28e   :  { %5923 = vmatmul.mubr.msk.bf16.gmra.mrb[4].mxu0 %vm435_vm3, %v6734_v47 }
 0x28f   :  { %1250 = vmatprep.mubr.bf16.mxu0 %v7153_v32 }
 0x359   :  { %v476_v50 = vpop.f32.mrb[0].mxu0 }
 0x35a   :  { %v477_v59 = vadd.f32 %v476_v50, %v408_v39  ;;  %v478_v60 = vpop.f32.mrb[1].mxu0 }
 0x35b   :  { %v479_v62 = vadd.f32 %v478_v60, %v408_v39  ;;  %v480_v63 = vpop.f32.mrb[2].mxu0 }
 0x35c   :  { %v503_v5 = vmul.f32 %v477_v59, %v7312_v12  ;;  %v481_v53 = vadd.f32 %v480_v63, %v413_v61  ;;  %v482_v54 = vpop.f32.mrb[3].mxu0 }
 0x35d   :  { %v504_v7 = vmul.f32 %v479_v62, %v7314_v13  ;;  %v483_v56 = vadd.f32 %v482_v54, %v413_v61 }
 0x35e   :  { %v505_v9 = vmul.f32 %v481_v53, %v7312_v12 }
 0x35f   :  { %v506_v10 = vmul.f32 %v483_v56, %v7314_v13  ;;  %v511_v11 = vadd.f32 %v504_v7, %v503_v5 }
 0x361   :  { %v486_v51 = vpop.f32.mrb[4].mxu0  ;;  %512 = vadd.xlane.f32.xlu0 %v511_v11  ;;  %v514_v52 = vadd.f32 %v506_v10, %v505_v9 }
 0x362   :  { %v487_v15 = vadd.f32 %v486_v51, %v418_v14  ;;  %v488_v16 = vpop.f32.mrb[5].mxu0 }
 0x363   :  { %v489_v18 = vadd.f32 %v488_v16, %v418_v14  ;;  %v490_v19 = vpop.f32.mrb[6].mxu0  ;;  %515 = vadd.xlane.f32.xlu1 %v514_v52  ;;  %v501_v16 = vld [vmem:[%s11380_s7 + $0x10] sm:$0xff] }
 0x364   :  { %v507_v20 = vmul.f32 %v487_v15, %v7312_v12  ;;  %v491_v23 = vadd.f32 %v490_v19, %v423_v17  ;;  %v492_v24 = vpop.f32.mrb[7].mxu0 }
 0x365   :  { %v508_v25 = vmul.f32 %v489_v18, %v7314_v13  ;;  %v493_v26 = vadd.f32 %v492_v24, %v423_v17 }
 0x366   :  { %v509_v57 = vmul.f32 %v491_v23, %v7312_v12 }
 0x367   :  { %v510_v58 = vmul.f32 %v493_v26, %v7314_v13  ;;  %v517_v2 = vadd.f32 %v508_v25, %v507_v20 }
 0x369   :  { %518 = vadd.xlane.f32.xlu0 %v517_v2  ;;  %v520_v30 = vadd.f32 %v510_v58, %v509_v57 }
 0x36d   :  { %521 = vadd.xlane.f32.xlu0 %v520_v30 }
 0x374   :  { %585 = vperm.xlu1 %6171, %v495_v4  }
 0x378   :  { %613 = vperm.xlu1 %6171, %v499_v33  }
 0x37c   :  { %618 = vperm.xlu1 %6171, %v500_v8  }
 0x380   :  { %600 = vperm.xlu1 %6171, %v498_v34  }
 0x383   :  { %590 = vperm.xlu0 %6172, %v496_v35  }
 0x387   :  { %595 = vperm.xlu0 %6172, %v497_v55  }
 0x3ee   :  { %v513_v36 = vpop.xlane.xlu0 %512 }
 0x3ef   :  { %v523_v41 = vmul.f32 %v513_v36, %v7343_v46 }
 0x3f0   :  { %v516_v42 = vpop.xlane.xlu1 %515 }
 0x3f1   :  { %v7625_v43 = vsub.f32 %v477_v59, %v523_v41  ;;  %v7627_v44 = vsub.f32 %v479_v62, %v523_v41  ;;  %v524_v45 = vmul.f32 %v516_v42, %v7343_v46 }
 0x3f3   :  { %v7630_v48 = vsub.f32 %v481_v53, %v524_v45  ;;  %v7632_v29 = vsub.f32 %v483_v56, %v524_v45  ;;  %v535_v31 = vmul.f32 %v7625_v43, %v7625_v43  ;;  %v536_v37 = vmul.f32 %v7627_v44, %v7627_v44 }
 0x3f4   :  { %v586_v17 = vpop.permute.xlu1 %585 }
 0x3f5   :  { %v543_v22 = vmul.f32 %v535_v31, %v7312_v12  ;;  %v544_v27 = vmul.f32 %v536_v37, %v7314_v13  ;;  %v537_v28 = vmul.f32 %v7630_v48, %v7630_v48  ;;  %v538_v38 = vmul.f32 %v7632_v29, %v7632_v29 }
 0x3f6   :  { %v519_v49 = vpop.xlane.xlu0 %518 }
 0x3f7   :  { %v525_v40 = vmul.f32 %v519_v49, %v7343_v46  ;;  %v551_v21 = vadd.f32 %v544_v27, %v543_v22  ;;  %v545_v47 = vmul.f32 %v537_v28, %v7312_v12  ;;  %v546_v39 = vmul.f32 %v538_v38, %v7314_v13 }
 0x3f9   :  { %v7647_v50 = vsub.f32 %v487_v15, %v525_v40  ;;  %v7649_v59 = vsub.f32 %v489_v18, %v525_v40  ;;  %552 = vadd.xlane.f32.xlu1 %v551_v21  ;;  %v554_v60 = vadd.f32 %v546_v39, %v545_v47  ;;  %v502_v15 = vld [vmem:[%s11380_s7 + $0x18] sm:$0xff]  ;;  %v614_v18 = vpop.permute.xlu1 %613 }
 0x3fa   :  { %v522_v61 = vpop.xlane.xlu0 %521 }
 0x3fb   :  { %v526_v62 = vmul.f32 %v522_v61, %v7343_v46  ;;  %555 = vadd.xlane.f32.xlu0 %v554_v60  ;;  %v539_v63 = vmul.f32 %v7647_v50, %v7647_v50  ;;  %v540_v5 = vmul.f32 %v7649_v59, %v7649_v59 }
 0x3fd   :  { %v7656_v53 = vsub.f32 %v491_v23, %v526_v62  ;;  %v7658_v54 = vsub.f32 %v493_v26, %v526_v62  ;;  %v547_v7 = vmul.f32 %v539_v63, %v7312_v12  ;;  %v548_v56 = vmul.f32 %v540_v5, %v7314_v13  ;;  %v619_v19 = vpop.permute.xlu1 %618 }
 0x3ff   :  { %v557_v9 = vadd.f32 %v548_v56, %v547_v7  ;;  %v541_v10 = vmul.f32 %v7656_v53, %v7656_v53  ;;  %v542_v11 = vmul.f32 %v7658_v54, %v7658_v54 }
 0x401   :  { %558 = vadd.xlane.f32.xlu1 %v557_v9  ;;  %v549_v14 = vmul.f32 %v541_v10, %v7312_v12  ;;  %v550_v51 = vmul.f32 %v542_v11, %v7314_v13  ;;  %v601_v23 = vpop.permute.xlu1 %600 }
 0x402   :  { %v591_v20 = vpop.permute.xlu0 %590 }
 0x403   :  { %v560_v52 = vadd.f32 %v550_v51, %v549_v14 }
 0x405   :  { %561 = vadd.xlane.f32.xlu0 %v560_v52 }
 0x406   :  { %v596_v24 = vpop.permute.xlu0 %595 }
 0x412   :  { %628 = vperm.xlu1 %6171, %v502_v15  }
 0x41b   :  { %623 = vperm.xlu0 %6172, %v501_v16  }
 0x486   :  { %v553_v25 = vpop.xlane.xlu1 %552 }
 0x487   :  { %v563_v26 = vmul.f32 %v553_v25, %v7343_v46 }
 0x488   :  { %v556_v57 = vpop.xlane.xlu0 %555 }
 0x489   :  { %v567_v58 = vadd.f32 1e-05, %v563_v26  ;;  %v564_v2 = vmul.f32 %v556_v57, %v7343_v46 }
 0x48b   :  { %6789 = vrsqrt.f32 %v567_v58  ;;  %v568_v30 = vadd.f32 1e-05, %v564_v2 }
 0x48d   :  { %6791 = vrsqrt.f32 %v568_v30 }
 0x48e   :  { %v559_v4 = vpop.xlane.xlu1 %558 }
 0x48f   :  { %v565_v33 = vmul.f32 %v559_v4, %v7343_v46 }
 0x491   :  { %v569_v8 = vadd.f32 1e-05, %v565_v33 }
 0x492   :  { %v562_v34 = vpop.xlane.xlu0 %561  ;;  %v629_v26 = vpop.permute.xlu1 %628 }
 0x493   :  { %6793 = vrsqrt.f32 %v569_v8  ;;  %v566_v35 = vmul.f32 %v562_v34, %v7343_v46 }
 0x495   :  { %v6790_v55 = vpop.eup %6789  ;;  %v570_v36 = vadd.f32 1e-05, %v566_v35 }
 0x496   :  { %v575_v41 = vmul.f32 %v6790_v55, %v7625_v43  ;;  %v576_v42 = vmul.f32 %v6790_v55, %v7627_v44 }
 0x497   :  { %v6792_v45 = vpop.eup %6791  ;;  %6795 = vrsqrt.f32 %v570_v36 }
 0x498   :  { %v603_v31 = vmul.f32 %v586_v17, %v575_v41  ;;  %v604_v37 = vmul.f32 %v586_v17, %v576_v42  ;;  %v577_v22 = vmul.f32 %v6792_v45, %v7630_v48  ;;  %v578_v27 = vmul.f32 %v6792_v45, %v7632_v29 }
 0x49a   :  { %v7682_v28 = vadd.f32 %v614_v18, %v603_v31  ;;  %v7684_v38 = vadd.f32 %v614_v18, %v604_v37  ;;  %v605_v49 = vmul.f32 %v591_v20, %v577_v22  ;;  %v606_v40 = vmul.f32 %v591_v20, %v578_v27  ;;  %v624_v11 = vpop.permute.xlu0 %623 }
 0x49c   :  { %v7686_v21 = vadd.f32 %v619_v19, %v605_v49  ;;  %v7688_v47 = vadd.f32 %v619_v19, %v606_v40  ;;  %v640_v43 = vmul.f32 %v7684_v38, %v7684_v38  ;;  %v639_v44 = vmul.f32 %v7682_v28, %v7682_v28 }
 0x49d   :  { %v6794_v39 = vpop.eup %6793 }
 0x49e   :  { %v579_v48 = vmul.f32 %v6794_v39, %v7647_v50  ;;  %v580_v29 = vmul.f32 %v6794_v39, %v7649_v59  ;;  %v642_v60 = vmul.f32 %v7688_v47, %v7688_v47  ;;  %v648_v61 = vmul.f32 %v640_v43, %v7684_v38 }
 0x49f   :  { %v641_v62 = vmul.f32 %v7686_v21, %v7686_v21  ;;  %v647_v63 = vmul.f32 %v639_v44, %v7682_v28 }
 0x4a0   :  { %v607_v5 = vmul.f32 %v596_v24, %v579_v48  ;;  %v608_v7 = vmul.f32 %v596_v24, %v580_v29  ;;  %v650_v56 = vmul.f32 %v642_v60, %v7688_v47  ;;  %v656_v9 = vmul.f32 0.044715, %v648_v61 }
 0x4a1   :  { %v6796_v10 = vpop.eup %6795  ;;  %v649_v50 = vmul.f32 %v641_v62, %v7686_v21  ;;  %v655_v59 = vmul.f32 0.044715, %v647_v63 }
 0x4a2   :  { %v581_v14 = vmul.f32 %v6796_v10, %v7656_v53  ;;  %v582_v51 = vmul.f32 %v6796_v10, %v7658_v54  ;;  %v7706_v52 = vadd.f32 %v624_v11, %v607_v5  ;;  %v7708_v15 = vadd.f32 %v624_v11, %v608_v7 }
 0x4a3   :  { %v658_v16 = vmul.f32 0.044715, %v650_v56  ;;  %v664_v17 = vadd.f32 %v656_v9, %v7684_v38  ;;  %v657_v18 = vmul.f32 0.044715, %v649_v50  ;;  %v663_v19 = vadd.f32 %v655_v59, %v7682_v28 }
 0x4a4   :  { %v609_v20 = vmul.f32 %v601_v23, %v581_v14  ;;  %v610_v24 = vmul.f32 %v601_v23, %v582_v51  ;;  %v643_v25 = vmul.f32 %v7706_v52, %v7706_v52  ;;  %v644_v53 = vmul.f32 %v7708_v15, %v7708_v15 }
 0x4a5   :  { %v666_v54 = vadd.f32 %v658_v16, %v7688_v47  ;;  %v672_v57 = vmul.f32 0.7978846, %v664_v17  ;;  %v665_v58 = vadd.f32 %v657_v18, %v7686_v21  ;;  %v671_v2 = vmul.f32 0.7978846, %v663_v19 }
 0x4a6   :  { %v7718_v30 = vadd.f32 %v629_v26, %v609_v20  ;;  %v7720_v4 = vadd.f32 %v629_v26, %v610_v24  ;;  %v651_v33 = vmul.f32 %v643_v25, %v7706_v52  ;;  %v652_v23 = vmul.f32 %v644_v53, %v7708_v15 }
 0x4a7   :  { %v674_v8 = vmul.f32 0.7978846, %v666_v54  ;;  %6797 = vtanh.f32 %v672_v57  ;;  %v673_v34 = vmul.f32 0.7978846, %v665_v58 }
 0x4a8   :  { %v659_v35 = vmul.f32 0.044715, %v651_v33  ;;  %v660_v55 = vmul.f32 0.044715, %v652_v23  ;;  %6799 = vtanh.f32 %v671_v2  ;;  %v646_v36 = vmul.f32 %v7720_v4, %v7720_v4 }
 0x4a9   :  { %6801 = vtanh.f32 %v674_v8  ;;  %v645_v41 = vmul.f32 %v7718_v30, %v7718_v30 }
 0x4aa   :  { %v667_v42 = vadd.f32 %v659_v35, %v7706_v52  ;;  %v668_v45 = vadd.f32 %v660_v55, %v7708_v15  ;;  %6803 = vtanh.f32 %v673_v34  ;;  %v654_v31 = vmul.f32 %v646_v36, %v7720_v4 }
 0x4ab   :  { %v653_v37 = vmul.f32 %v645_v41, %v7718_v30 }
 0x4ac   :  { %v675_v22 = vmul.f32 0.7978846, %v667_v42  ;;  %v676_v27 = vmul.f32 0.7978846, %v668_v45  ;;  %v662_v49 = vmul.f32 0.044715, %v654_v31 }
 0x4ad   :  { %v661_v40 = vmul.f32 0.044715, %v653_v37 }
 0x4ae   :  { %6805 = vtanh.f32 %v675_v22  ;;  %v670_v43 = vadd.f32 %v662_v49, %v7720_v4  ;;  %v724_v22 = vld [vmem:[%s11382_s9 + $0x8] sm:$0xff]  ;;  %v726_v49 = vld [vmem:[%s11382_s9 + $0x18] sm:$0xff] }
 0x4af   :  { %6807 = vtanh.f32 %v676_v27  ;;  %v669_v44 = vadd.f32 %v661_v40, %v7718_v30  ;;  %v723_v27 = vld [vmem:[%s11382_s9] sm:$0xff]  ;;  %v725_v40 = vld [vmem:[%s11382_s9 + $0x10] sm:$0xff] }
 0x4b0   :  { %v678_v39 = vmul.f32 0.7978846, %v670_v43 }
 0x4b1   :  { %v6798_v48 = vpop.eup %6797  ;;  %v677_v29 = vmul.f32 0.7978846, %v669_v44 }
 0x4b2   :  { %v6800_v60 = vpop.eup %6799  ;;  %v688_v61 = vadd.f32 1.0, %v6798_v48  ;;  %6809 = vtanh.f32 %v678_v39 }
 0x4b3   :  { %v6802_v62 = vpop.eup %6801  ;;  %v687_v63 = vadd.f32 1.0, %v6800_v60  ;;  %6811 = vtanh.f32 %v677_v29 }
 0x4b4   :  { %v6804_v5 = vpop.eup %6803  ;;  %v690_v7 = vadd.f32 1.0, %v6802_v62  ;;  %v696_v56 = vmul.f32 0.5, %v688_v61 }
 0x4b5   :  { %v689_v9 = vadd.f32 1.0, %v6804_v5  ;;  %v695_v10 = vmul.f32 0.5, %v687_v63 }
 0x4b6   :  { %v698_v11 = vmul.f32 0.5, %v690_v7  ;;  %v704_v50 = vmul.f32 %v696_v56, %v7684_v38 }
 0x4b7   :  { %v697_v59 = vmul.f32 0.5, %v689_v9  ;;  %v703_v14 = vmul.f32 %v695_v10, %v7682_v28 }
 0x4b8   :  { %v6806_v51 = vpop.eup %6805  ;;  %v706_v16 = vmul.f32 %v698_v11, %v7688_v47  ;;  %v7739_v20 = vmul.f32 %v704_v50, %v7314_v13 }
 0x4b9   :  { %v6808_v17 = vpop.eup %6807  ;;  %v705_v18 = vmul.f32 %v697_v59, %v7686_v21  ;;  %v691_v19 = vadd.f32 1.0, %v6806_v51  ;;  %v7745_v53 = vmul.f32 %v703_v14, %v7312_v12 }
 0x4ba   :  { %v7742_v24 = vmul.f32 %v706_v16, %v7314_v13  ;;  %v692_v25 = vadd.f32 1.0, %v6808_v17 }
 0x4bb   :  { %v7748_v38 = vmul.f32 %v705_v18, %v7312_v12  ;;  %v699_v21 = vmul.f32 0.5, %v691_v19 }
 0x4bc   :  { %v6810_v28 = vpop.eup %6809  ;;  %v6218_v47 = vpack.i.bf16 %v7742_v24, %v7739_v20  ;;  %v700_v26 = vmul.f32 0.5, %v692_v25  ;;  %v780_v54 = vpack.c.bf16 %v7742_v24, %v7739_v20 }
 0x4bd   :  { %v6812_v57 = vpop.eup %6811  ;;  %v6213_v58 = vpack.i.bf16 %v7748_v38, %v7745_v53  ;;  %v694_v2 = vadd.f32 1.0, %v6810_v28  ;;  %v779_v23 = vpack.c.bf16 %v7748_v38, %v7745_v53  ;;  %v707_v55 = vmul.f32 %v699_v21, %v7706_v52 }
 0x4be   :  { %6219 = vrot.lane.b32.xlu1 %v6218_v47, %s11402_s24  ;;  %v693_v33 = vadd.f32 1.0, %v6812_v57  ;;  %v708_v34 = vmul.f32 %v700_v26, %v7708_v15 }
 0x4bf   :  { %6214 = vrot.lane.b32.xlu0 %v6213_v58, %s11402_s24  ;;  %v702_v8 = vmul.f32 0.5, %v694_v2  ;;  %v7771_v31 = vmul.f32 %v707_v55, %v7312_v12 }
 0x4c0   :  { %v701_v35 = vmul.f32 0.5, %v693_v33  ;;  %v7765_v42 = vmul.f32 %v708_v34, %v7314_v13 }
 0x4c1   :  { %v710_v36 = vmul.f32 %v702_v8, %v7720_v4 }
 0x4c2   :  { %v709_v41 = vmul.f32 %v701_v35, %v7718_v30 }
 0x4c3   :  { %v7768_v45 = vmul.f32 %v710_v36, %v7314_v13 }
 0x4c4   :  { %v7774_v37 = vmul.f32 %v709_v41, %v7312_v12 }
 0x4c5   :  { %v6228_v15 = vpack.i.bf16 %v7768_v45, %v7765_v42  ;;  %v782_v52 = vpack.c.bf16 %v7768_v45, %v7765_v42 }
 0x4c6   :  { %v6223_v30 = vpack.i.bf16 %v7774_v37, %v7771_v31  ;;  %v781_v4 = vpack.c.bf16 %v7774_v37, %v7771_v31  ;;  %v6735_v31 = vld [vmem:[%s11381_s8] sm:$0xff]   ;;  %v6736_v37 = vld [vmem:[%s11381_s8 + $0x8] sm:$0xff]  }
 0x4c7   :  { %6229 = vrot.lane.b32.xlu1 %v6228_v15, %s11402_s24 }
 0x4c8   :  { %6224 = vrot.lane.b32.xlu0 %v6223_v30, %s11402_s24 }
 0x4cb   :  { %6239 = vrot.lane.b32.xlu1 %v6218_v47, %s11431_s23 }
 0x4cc   :  { %6234 = vrot.lane.b32.xlu0 %v6213_v58, %s11431_s23 }
 0x4cf   :  { %6249 = vrot.lane.b32.xlu1 %v6228_v15, %s11431_s23 }
 0x4d0   :  { %6244 = vrot.lane.b32.xlu0 %v6223_v30, %s11431_s23 }
 0x4d3   :  { %794 = vperm.xlu1 %6171, %v724_v22  }
 0x4d4   :  { %789 = vperm.xlu0 %6172, %v723_v27  }
 0x4d7   :  { %804 = vperm.xlu1 %6171, %v726_v49  }
 0x4d8   :  { %799 = vperm.xlu0 %6172, %v725_v40  }
 0x530   :  { %v6220_v43 = vpop.permute.xlu1 %6219 }
 0x531   :  { %v6222_v44 = vunpack.i.h.bf16 %v6220_v43  ;;  %v6221_v39 = vunpack.i.l.bf16 %v6220_v43  ;;  %v6215_v48 = vpop.permute.xlu0 %6214 }
 0x532   :  { %v6217_v29 = vunpack.i.h.bf16 %v6215_v48  ;;  %v6216_v60 = vunpack.i.l.bf16 %v6215_v48 }
 0x534   :  { %v743_v61 = vsel %vm359_vm1, %v6216_v60, %v6221_v39  ;;  %v744_v62 = vsel %vm359_vm1, %v6217_v29, %v6222_v44  ;;  %v747_v63 = vsel %vm359_vm1, %v6221_v39, %v6216_v60  ;;  %v748_v5 = vsel %vm359_vm1, %v6222_v44, %v6217_v29  ;;  %v7121_v44 = vld [vmem:[%s11426_s0] sm:$0xff]  ;;  %v7122_v60 = vld [vmem:[%s11426_s0 + $0x8] sm:$0xff] }
 0x535   :  { %v776_v7 = vpack.c.bf16 %v744_v62, %v743_v61  ;;  %v775_v56 = vpack.c.bf16 %v748_v5, %v747_v63  ;;  %v7123_v63 = vld [vmem:[%s11426_s0 + $0x10] sm:$0xff] }
 0x537   :  { %823 = vmatprep.subr.bf16.mxu1 %v776_v7 }
 0x538   :  { %824 = vmatpush1.bf16.msra.mxu1 %v775_v56  ;;  %v7124_v56 = vld [vmem:[%s11426_s0 + $0x18] sm:$0xff] }
 0x539   :  { %v6230_v9 = vpop.permute.xlu1 %6229 }
 0x53a   :  { %v6232_v10 = vunpack.i.h.bf16 %v6230_v9  ;;  %v6231_v11 = vunpack.i.l.bf16 %v6230_v9  ;;  %v6225_v50 = vpop.permute.xlu0 %6224 }
 0x53b   :  { %v6227_v59 = vunpack.i.h.bf16 %v6225_v50  ;;  %v6226_v14 = vunpack.i.l.bf16 %v6225_v50 }
 0x53d   :  { %v6240_v51 = vpop.permute.xlu1 %6239  ;;  %v745_v16 = vsel %vm359_vm1, %v6226_v14, %v6231_v11  ;;  %v746_v17 = vsel %vm359_vm1, %v6227_v59, %v6232_v10  ;;  %v749_v18 = vsel %vm359_vm1, %v6231_v11, %v6226_v14  ;;  %v750_v19 = vsel %vm359_vm1, %v6232_v10, %v6227_v59 }
 0x53e   :  { %v6235_v25 = vpop.permute.xlu0 %6234  ;;  %v778_v28 = vpack.c.bf16 %v746_v17, %v745_v16  ;;  %v777_v47 = vpack.c.bf16 %v750_v19, %v749_v18  ;;  %v6242_v26 = vunpack.i.h.bf16 %v6240_v51  ;;  %v6241_v21 = vunpack.i.l.bf16 %v6240_v51 }
 0x53f   :  { %v6237_v57 = vunpack.i.h.bf16 %v6235_v25  ;;  %v6236_v58 = vunpack.i.l.bf16 %v6235_v25 }
 0x540   :  { %825 = vmatprep.subr.bf16.mxu1 %v778_v28 }
 0x541   :  { %826 = vmatpush1.bf16.msra.mxu1 %v777_v47  ;;  %v6250_v2 = vpop.permute.xlu1 %6249  ;;  %v771_v8 = vsel %vm384_vm2, %v6241_v21, %v6236_v58  ;;  %v772_v34 = vsel %vm384_vm2, %v6242_v26, %v6237_v57  ;;  %v767_v20 = vsel %vm384_vm2, %v6236_v58, %v6241_v21  ;;  %v768_v24 = vsel %vm384_vm2, %v6237_v57, %v6242_v26  ;;  %v7125_v47 = vld [vmem:[%s11426_s0 + $0x20] sm:$0xff]  ;;  %v7126_v58 = vld [vmem:[%s11426_s0 + $0x28] sm:$0xff] }
 0x542   :  { %v6245_v33 = vpop.permute.xlu0 %6244  ;;  %827 = vmatprep.subr.bf16.mxu1 %v780_v54  ;;  %v6252_v35 = vunpack.i.h.bf16 %v6250_v2  ;;  %v6251_v55 = vunpack.i.l.bf16 %v6250_v2  ;;  %v784_v42 = vpack.c.bf16 %v772_v34, %v771_v8  ;;  %v783_v53 = vpack.c.bf16 %v768_v24, %v767_v20  ;;  %v7127_v8 = vld [vmem:[%s11426_s0 + $0x30] sm:$0xff] }
 0x543   :  { %v6247_v36 = vunpack.i.h.bf16 %v6245_v33  ;;  %v6246_v41 = vunpack.i.l.bf16 %v6245_v33 }
 0x545   :  { %828 = vmatpush1.bf16.msra.mxu1 %v779_v23  ;;  %v773_v54 = vsel %vm384_vm2, %v6251_v55, %v6246_v41  ;;  %v774_v45 = vsel %vm384_vm2, %v6252_v35, %v6247_v36  ;;  %v769_v23 = vsel %vm384_vm2, %v6246_v41, %v6251_v55  ;;  %v770_v15 = vsel %vm384_vm2, %v6247_v36, %v6252_v35  ;;  %v7128_v55 = vld [vmem:[%s11426_s0 + $0x38] sm:$0xff]  ;;  %s11435_s0 = smov 1  }
 0x546   :  { %829 = vmatprep.subr.bf16.mxu1 %v782_v52  ;;  %v786_v38 = vpack.c.bf16 %v774_v45, %v773_v54  ;;  %v785_v52 = vpack.c.bf16 %v770_v15, %v769_v23  ;;  %v5928_v45 = vld [vmem:[%s11427_s30 + $0x20] sm:$0xff]  ;;  %v5931_v23 = vld [vmem:[%s11427_s30 + $0x38] sm:$0xff]  ;;  %v5929_v15 = vld [vmem:[%s11427_s30 + $0x28] sm:$0xff] }
 0x549   :  { %830 = vmatpush1.bf16.msra.mxu1 %v781_v4 }
 0x54a   :  { %831 = vmatprep.subr.bf16.mxu1 %v784_v42 }
 0x54d   :  { %832 = vmatpush1.bf16.msra.mxu1 %v783_v53  ;;  %v5932_v53 = vld [vmem:[%s11428_s2 + $0x20] sm:$0xff] }
 0x54e   :  { %833 = vmatprep.subr.bf16.mxu1 %v786_v38  ;;  %v5933_v38 = vld [vmem:[%s11428_s2 + $0x28] sm:$0xff] }
 0x551   :  { %834 = vmatpush1.bf16.msra.mxu1 %v785_v52  ;;  %v5930_v52 = vld [vmem:[%s11427_s30 + $0x30] sm:$0xff] }
 0x552   :  { %v795_v49 = vpop.permute.xlu1 %794 }
 0x553   :  { %v790_v30 = vpop.permute.xlu0 %789 }
 0x554   :  { %5926 = vmatmul.mubr.msk.bf16.vlgmr.msra.gmra.mrb[0].mxu1 %vm435_vm3, %v6735_v31 }
 0x555   :  { %865 = vmatprep.mubr.bf16.mxu1 %v7153_v32 }
 0x556   :  { %v805_v18 = vpop.permute.xlu1 %804 }
 0x557   :  { %v800_v50 = vpop.permute.xlu0 %799 }
 0x55c   :  { %5927 = vmatmul.mubr.msk.bf16.gmra.mrb[4].mxu1 %vm435_vm3, %v6736_v37 }
 0x55d   :  { %1635 = vmatprep.mubr.bf16.mxu1 %v7153_v32 }
 0x627   :  { %v857_v4 = vpop.f32.mrb[0].mxu1 }
 0x628   :  { %v858_v22 = vadd.f32 %v857_v4, %v790_v30  ;;  %v859_v27 = vpop.f32.mrb[1].mxu1 }
 0x629   :  { %v860_v40 = vadd.f32 %v859_v27, %v790_v30  ;;  %v861_v43 = vpop.f32.mrb[2].mxu1 }
 0x62a   :  { %v7856_v39 = vadd.f32 %v7121_v44, %v858_v22  ;;  %v862_v48 = vadd.f32 %v861_v43, %v795_v49  ;;  %v863_v29 = vpop.f32.mrb[3].mxu1 }
 0x62b   :  { %v7861_v61 = vadd.f32 %v7122_v60, %v860_v40  ;;  %v864_v62 = vadd.f32 %v863_v29, %v795_v49 }
 0x62c   :  { %v7866_v5 = vadd.f32 %v7123_v63, %v862_v48  ;;  %v894_v7 = vmul.f32 %v7856_v39, %v7312_v12 }
 0x62d   :  { %v7873_v9 = vadd.f32 %v7124_v56, %v864_v62  ;;  %v895_v10 = vmul.f32 %v7861_v61, %v7314_v13 }
 0x62e   :  { %v896_v11 = vmul.f32 %v7866_v5, %v7312_v12 }
 0x62f   :  { %v867_v59 = vpop.f32.mrb[4].mxu1  ;;  %v902_v14 = vadd.f32 %v895_v10, %v894_v7  ;;  %v897_v51 = vmul.f32 %v7873_v9, %v7314_v13 }
 0x630   :  { %v868_v16 = vadd.f32 %v867_v59, %v800_v50  ;;  %v869_v17 = vpop.f32.mrb[5].mxu1 }
 0x631   :  { %v870_v19 = vadd.f32 %v869_v17, %v800_v50  ;;  %v871_v25 = vpop.f32.mrb[6].mxu1  ;;  %903 = vadd.xlane.f32.xlu0 %v902_v14  ;;  %v905_v28 = vadd.f32 %v897_v51, %v896_v11 }
 0x632   :  { %v7884_v26 = vadd.f32 %v7125_v47, %v868_v16  ;;  %v872_v21 = vadd.f32 %v871_v25, %v805_v18  ;;  %v873_v57 = vpop.f32.mrb[7].mxu1 }
 0x633   :  { %v7889_v2 = vadd.f32 %v7126_v58, %v870_v19  ;;  %v874_v33 = vadd.f32 %v873_v57, %v805_v18  ;;  %906 = vadd.xlane.f32.xlu1 %v905_v28 }
 0x634   :  { %v7894_v34 = vadd.f32 %v7127_v8, %v872_v21  ;;  %v898_v35 = vmul.f32 %v7884_v26, %v7312_v12 }
 0x635   :  { %v7901_v36 = vadd.f32 %v7128_v55, %v874_v33  ;;  %v899_v41 = vmul.f32 %v7889_v2, %v7314_v13  ;;  %v5935_v55 = vld [vmem:[%s11428_s2 + $0x38] sm:$0xff] }
 0x636   :  { %v900_v20 = vmul.f32 %v7894_v34, %v7312_v12 }
 0x637   :  { %v908_v42 = vadd.f32 %v899_v41, %v898_v35  ;;  %v901_v24 = vmul.f32 %v7901_v36, %v7314_v13  ;;  %v5934_v41 = vld [vmem:[%s11428_s2 + $0x30] sm:$0xff] }
 0x639   :  { %909 = vadd.xlane.f32.xlu0 %v908_v42  ;;  %v911_v54 = vadd.f32 %v901_v24, %v900_v20 }
 0x63d   :  { %912 = vadd.xlane.f32.xlu0 %v911_v54 }
 0x644   :  { %976 = vperm.xlu1 %6171, %v5928_v45  }
 0x648   :  { %1004 = vperm.xlu1 %6171, %v5932_v53  }
 0x64c   :  { %1009 = vperm.xlu1 %6171, %v5933_v38  }
 0x650   :  { %991 = vperm.xlu1 %6171, %v5931_v23  }
 0x653   :  { %981 = vperm.xlu0 %6172, %v5929_v15  }
 0x657   :  { %986 = vperm.xlu0 %6172, %v5930_v52  }
 0x6be   :  { %v904_v31 = vpop.xlane.xlu0 %903 }
 0x6bf   :  { %v914_v37 = vmul.f32 %v904_v31, %v7343_v46 }
 0x6c0   :  { %v907_v30 = vpop.xlane.xlu1 %906 }
 0x6c1   :  { %v7929_v4 = vsub.f32 %v7856_v39, %v914_v37  ;;  %v7932_v22 = vsub.f32 %v7861_v61, %v914_v37  ;;  %v915_v27 = vmul.f32 %v907_v30, %v7343_v46 }
 0x6c3   :  { %v7936_v49 = vsub.f32 %v7866_v5, %v915_v27  ;;  %v7939_v40 = vsub.f32 %v7873_v9, %v915_v27  ;;  %v926_v43 = vmul.f32 %v7929_v4, %v7929_v4  ;;  %v927_v44 = vmul.f32 %v7932_v22, %v7932_v22 }
 0x6c4   :  { %v977_v42 = vpop.permute.xlu1 %976 }
 0x6c5   :  { %v934_v48 = vmul.f32 %v926_v43, %v7312_v12  ;;  %v935_v29 = vmul.f32 %v927_v44, %v7314_v13  ;;  %v928_v60 = vmul.f32 %v7936_v49, %v7936_v49  ;;  %v929_v62 = vmul.f32 %v7939_v40, %v7939_v40 }
 0x6c6   :  { %v910_v63 = vpop.xlane.xlu0 %909 }
 0x6c7   :  { %v916_v7 = vmul.f32 %v910_v63, %v7343_v46  ;;  %v942_v56 = vadd.f32 %v935_v29, %v934_v48  ;;  %v936_v10 = vmul.f32 %v928_v60, %v7312_v12  ;;  %v937_v11 = vmul.f32 %v929_v62, %v7314_v13 }
 0x6c8   :  { %v1005_v20 = vpop.permute.xlu1 %1004 }
 0x6c9   :  { %v7955_v50 = vsub.f32 %v7884_v26, %v916_v7  ;;  %v7958_v59 = vsub.f32 %v7889_v2, %v916_v7  ;;  %943 = vadd.xlane.f32.xlu1 %v942_v56  ;;  %v945_v14 = vadd.f32 %v937_v11, %v936_v10 }
 0x6ca   :  { %v913_v51 = vpop.xlane.xlu0 %912 }
 0x6cb   :  { %v917_v16 = vmul.f32 %v913_v51, %v7343_v46  ;;  %946 = vadd.xlane.f32.xlu0 %v945_v14  ;;  %v930_v17 = vmul.f32 %v7955_v50, %v7955_v50  ;;  %v931_v18 = vmul.f32 %v7958_v59, %v7958_v59 }
 0x6cc   :  { %v1010_v24 = vpop.permute.xlu1 %1009 }
 0x6cd   :  { %v7966_v19 = vsub.f32 %v7894_v34, %v917_v16  ;;  %v7969_v25 = vsub.f32 %v7901_v36, %v917_v16  ;;  %v938_v28 = vmul.f32 %v930_v17, %v7312_v12  ;;  %v939_v47 = vmul.f32 %v931_v18, %v7314_v13 }
 0x6cf   :  { %v948_v21 = vadd.f32 %v939_v47, %v938_v28  ;;  %v932_v57 = vmul.f32 %v7966_v19, %v7966_v19  ;;  %v933_v58 = vmul.f32 %v7969_v25, %v7969_v25 }
 0x6d0   :  { %v992_v45 = vpop.permute.xlu1 %991 }
 0x6d1   :  { %949 = vadd.xlane.f32.xlu1 %v948_v21  ;;  %v940_v33 = vmul.f32 %v932_v57, %v7312_v12  ;;  %v941_v8 = vmul.f32 %v933_v58, %v7314_v13 }
 0x6d2   :  { %v982_v54 = vpop.permute.xlu0 %981 }
 0x6d3   :  { %v951_v35 = vadd.f32 %v941_v8, %v940_v33 }
 0x6d5   :  { %952 = vadd.xlane.f32.xlu0 %v951_v35 }
 0x6d6   :  { %v987_v53 = vpop.permute.xlu0 %986 }
 0x6e2   :  { %1019 = vperm.xlu1 %6171, %v5935_v55  }
 0x6eb   :  { %1014 = vperm.xlu0 %6172, %v5934_v41  }
 0x756   :  { %v944_v38 = vpop.xlane.xlu1 %943 }
 0x757   :  { %v954_v23 = vmul.f32 %v944_v38, %v7343_v46 }
 0x758   :  { %v947_v15 = vpop.xlane.xlu0 %946 }
 0x759   :  { %v958_v52 = vadd.f32 1e-05, %v954_v23  ;;  %v955_v31 = vmul.f32 %v947_v15, %v7343_v46 }
 0x75b   :  { %6813 = vrsqrt.f32 %v958_v52  ;;  %v959_v37 = vadd.f32 1e-05, %v955_v31 }
 0x75d   :  { %6815 = vrsqrt.f32 %v959_v37 }
 0x75e   :  { %v950_v30 = vpop.xlane.xlu1 %949 }
 0x75f   :  { %v956_v27 = vmul.f32 %v950_v30, %v7343_v46 }
 0x761   :  { %v960_v43 = vadd.f32 1e-05, %v956_v27 }
 0x762   :  { %v953_v44 = vpop.xlane.xlu0 %952 }
 0x763   :  { %6817 = vrsqrt.f32 %v960_v43  ;;  %v957_v48 = vmul.f32 %v953_v44, %v7343_v46  ;;  %v1020_v44 = vpop.permute.xlu1 %1019 }
 0x765   :  { %v6814_v29 = vpop.eup %6813  ;;  %v961_v60 = vadd.f32 1e-05, %v957_v48 }
 0x766   :  { %v966_v62 = vmul.f32 %v6814_v29, %v7929_v4  ;;  %v967_v63 = vmul.f32 %v6814_v29, %v7932_v22 }
 0x767   :  { %v6816_v7 = vpop.eup %6815  ;;  %6819 = vrsqrt.f32 %v961_v60 }
 0x768   :  { %v994_v56 = vmul.f32 %v977_v42, %v966_v62  ;;  %v995_v10 = vmul.f32 %v977_v42, %v967_v63  ;;  %v968_v11 = vmul.f32 %v6816_v7, %v7936_v49  ;;  %v969_v14 = vmul.f32 %v6816_v7, %v7939_v40 }
 0x76a   :  { %v7993_v51 = vadd.f32 %v1005_v20, %v994_v56  ;;  %v7995_v16 = vadd.f32 %v1005_v20, %v995_v10  ;;  %v996_v17 = vmul.f32 %v982_v54, %v968_v11  ;;  %v997_v18 = vmul.f32 %v982_v54, %v969_v14 }
 0x76c   :  { %v7997_v28 = vadd.f32 %v1010_v24, %v996_v17  ;;  %v7999_v47 = vadd.f32 %v1010_v24, %v997_v18  ;;  %v1031_v4 = vmul.f32 %v7995_v16, %v7995_v16  ;;  %v1030_v22 = vmul.f32 %v7993_v51, %v7993_v51  ;;  %v1015_v24 = vpop.permute.xlu0 %1014 }
 0x76d   :  { %v6818_v21 = vpop.eup %6817 }
 0x76e   :  { %v970_v49 = vmul.f32 %v6818_v21, %v7955_v50  ;;  %v971_v40 = vmul.f32 %v6818_v21, %v7958_v59  ;;  %v1033_v57 = vmul.f32 %v7999_v47, %v7999_v47  ;;  %v1039_v58 = vmul.f32 %v1031_v4, %v7995_v16 }
 0x76f   :  { %v1032_v33 = vmul.f32 %v7997_v28, %v7997_v28  ;;  %v1038_v8 = vmul.f32 %v1030_v22, %v7993_v51 }
 0x770   :  { %v998_v35 = vmul.f32 %v987_v53, %v970_v49  ;;  %v999_v55 = vmul.f32 %v987_v53, %v971_v40  ;;  %v1041_v41 = vmul.f32 %v1033_v57, %v7999_v47  ;;  %v1047_v42 = vmul.f32 0.044715, %v1039_v58 }
 0x771   :  { %v6820_v20 = vpop.eup %6819  ;;  %v1040_v50 = vmul.f32 %v1032_v33, %v7997_v28  ;;  %v1046_v59 = vmul.f32 0.044715, %v1038_v8 }
 0x772   :  { %v972_v54 = vmul.f32 %v6820_v20, %v7966_v19  ;;  %v973_v38 = vmul.f32 %v6820_v20, %v7969_v25  ;;  %v8017_v23 = vadd.f32 %v1015_v24, %v998_v35  ;;  %v8019_v15 = vadd.f32 %v1015_v24, %v999_v55 }
 0x773   :  { %v1049_v52 = vmul.f32 0.044715, %v1041_v41  ;;  %v1055_v31 = vadd.f32 %v1047_v42, %v7995_v16  ;;  %v1048_v53 = vmul.f32 0.044715, %v1040_v50  ;;  %v1054_v37 = vadd.f32 %v1046_v59, %v7993_v51 }
 0x774   :  { %v1000_v30 = vmul.f32 %v992_v45, %v972_v54  ;;  %v1001_v27 = vmul.f32 %v992_v45, %v973_v38  ;;  %v1034_v43 = vmul.f32 %v8017_v23, %v8017_v23  ;;  %v1035_v19 = vmul.f32 %v8019_v15, %v8019_v15 }
 0x775   :  { %v1057_v25 = vadd.f32 %v1049_v52, %v7999_v47  ;;  %v1063_v48 = vmul.f32 0.7978846, %v1055_v31  ;;  %v1056_v29 = vadd.f32 %v1048_v53, %v7997_v28  ;;  %v1062_v60 = vmul.f32 0.7978846, %v1054_v37 }
 0x776   :  { %v8029_v62 = vadd.f32 %v1020_v44, %v1000_v30  ;;  %v8031_v63 = vadd.f32 %v1020_v44, %v1001_v27  ;;  %v1042_v7 = vmul.f32 %v1034_v43, %v8017_v23  ;;  %v1043_v45 = vmul.f32 %v1035_v19, %v8019_v15 }
 0x777   :  { %v1065_v56 = vmul.f32 0.7978846, %v1057_v25  ;;  %6821 = vtanh.f32 %v1063_v48  ;;  %v1064_v10 = vmul.f32 0.7978846, %v1056_v29 }
 0x778   :  { %v1050_v11 = vmul.f32 0.044715, %v1042_v7  ;;  %v1051_v14 = vmul.f32 0.044715, %v1043_v45  ;;  %6823 = vtanh.f32 %v1062_v60  ;;  %v1037_v17 = vmul.f32 %v8031_v63, %v8031_v63 }
 0x779   :  { %6825 = vtanh.f32 %v1065_v56  ;;  %v1036_v18 = vmul.f32 %v8029_v62, %v8029_v62 }
 0x77a   :  { %v1058_v4 = vadd.f32 %v1050_v11, %v8017_v23  ;;  %v1059_v22 = vadd.f32 %v1051_v14, %v8019_v15  ;;  %6827 = vtanh.f32 %v1064_v10  ;;  %v1045_v21 = vmul.f32 %v1037_v17, %v8031_v63 }
 0x77b   :  { %v1044_v49 = vmul.f32 %v1036_v18, %v8029_v62 }
 0x77c   :  { %v1066_v40 = vmul.f32 0.7978846, %v1058_v4  ;;  %v1067_v57 = vmul.f32 0.7978846, %v1059_v22  ;;  %v1053_v58 = vmul.f32 0.044715, %v1045_v21 }
 0x77d   :  { %v1052_v33 = vmul.f32 0.044715, %v1044_v49 }
 0x77e   :  { %6829 = vtanh.f32 %v1066_v40  ;;  %v1061_v8 = vadd.f32 %v1053_v58, %v8031_v63 }
 0x77f   :  { %6831 = vtanh.f32 %v1067_v57  ;;  %v1060_v35 = vadd.f32 %v1052_v33, %v8029_v62 }
 0x780   :  { %v1069_v55 = vmul.f32 0.7978846, %v1061_v8 }
 0x781   :  { %v6822_v41 = vpop.eup %6821  ;;  %v1068_v42 = vmul.f32 0.7978846, %v1060_v35 }
 0x782   :  { %v6824_v20 = vpop.eup %6823  ;;  %v1079_v24 = vadd.f32 1.0, %v6822_v41  ;;  %6833 = vtanh.f32 %v1069_v55 }
 0x783   :  { %v6826_v50 = vpop.eup %6825  ;;  %v1078_v59 = vadd.f32 1.0, %v6824_v20  ;;  %6835 = vtanh.f32 %v1068_v42  ;;  %v5941_v42 = vld [vmem:[%s11429_s3 + $0x28] sm:$0xff]  ;;  %v5940_v20 = vld [vmem:[%s11429_s3 + $0x20] sm:$0xff] }
 0x784   :  { %v6828_v54 = vpop.eup %6827  ;;  %v1081_v38 = vadd.f32 1.0, %v6826_v50  ;;  %v1087_v52 = vmul.f32 0.5, %v1079_v24  ;;  %v5943_v24 = vld [vmem:[%s11429_s3 + $0x38] sm:$0xff]  ;;  %v5942_v50 = vld [vmem:[%s11429_s3 + $0x30] sm:$0xff] }
 0x785   :  { %v1080_v31 = vadd.f32 1.0, %v6828_v54  ;;  %v1086_v53 = vmul.f32 0.5, %v1078_v59 }
 0x786   :  { %v1089_v37 = vmul.f32 0.5, %v1081_v38  ;;  %v1095_v30 = vmul.f32 %v1087_v52, %v7995_v16 }
 0x787   :  { %v1088_v27 = vmul.f32 0.5, %v1080_v31  ;;  %v1094_v43 = vmul.f32 %v1086_v53, %v7993_v51 }
 0x788   :  { %v6830_v19 = vpop.eup %6829  ;;  %v1097_v44 = vmul.f32 %v1089_v37, %v7999_v47  ;;  %v8050_v60 = vmul.f32 %v1095_v30, %v7314_v13 }
 0x789   :  { %v6832_v25 = vpop.eup %6831  ;;  %v1096_v48 = vmul.f32 %v1088_v27, %v7997_v28  ;;  %v1082_v29 = vadd.f32 1.0, %v6830_v19  ;;  %v8056_v56 = vmul.f32 %v1094_v43, %v7312_v12 }
 0x78a   :  { %v8053_v7 = vmul.f32 %v1097_v44, %v7314_v13  ;;  %v1083_v45 = vadd.f32 1.0, %v6832_v25 }
 0x78b   :  { %v8059_v16 = vmul.f32 %v1096_v48, %v7312_v12  ;;  %v1090_v28 = vmul.f32 0.5, %v1082_v29 }
 0x78c   :  { %v6834_v51 = vpop.eup %6833  ;;  %v6258_v47 = vpack.i.bf16 %v8053_v7, %v8050_v60  ;;  %v1091_v10 = vmul.f32 0.5, %v1083_v45  ;;  %v1175_v11 = vpack.c.bf16 %v8053_v7, %v8050_v60 }
 0x78d   :  { %v6836_v14 = vpop.eup %6835  ;;  %v6253_v17 = vpack.i.bf16 %v8059_v16, %v8056_v56  ;;  %v1085_v18 = vadd.f32 1.0, %v6834_v51  ;;  %v1174_v22 = vpack.c.bf16 %v8059_v16, %v8056_v56  ;;  %v1098_v57 = vmul.f32 %v1090_v28, %v8017_v23 }
 0x78e   :  { %6259 = vrot.lane.b32.xlu1 %v6258_v47, %s11406_s19  ;;  %v1084_v4 = vadd.f32 1.0, %v6836_v14  ;;  %v1099_v49 = vmul.f32 %v1091_v10, %v8019_v15 }
 0x78f   :  { %6254 = vrot.lane.b32.xlu0 %v6253_v17, %s11406_s19  ;;  %v1093_v21 = vmul.f32 0.5, %v1085_v18  ;;  %v8082_v55 = vmul.f32 %v1098_v57, %v7312_v12 }
 0x790   :  { %v1092_v40 = vmul.f32 0.5, %v1084_v4  ;;  %v8076_v8 = vmul.f32 %v1099_v49, %v7314_v13 }
 0x791   :  { %v1101_v58 = vmul.f32 %v1093_v21, %v8031_v63 }
 0x792   :  { %v1100_v33 = vmul.f32 %v1092_v40, %v8029_v62 }
 0x793   :  { %v8079_v35 = vmul.f32 %v1101_v58, %v7314_v13 }
 0x794   :  { %v8085_v41 = vmul.f32 %v1100_v33, %v7312_v12 }
 0x795   :  { %v6268_v15 = vpack.i.bf16 %v8079_v35, %v8076_v8  ;;  %v1177_v23 = vpack.c.bf16 %v8079_v35, %v8076_v8 }
 0x796   :  { %v6263_v62 = vpack.i.bf16 %v8085_v41, %v8082_v55  ;;  %v1176_v63 = vpack.c.bf16 %v8085_v41, %v8082_v55  ;;  %v6737_v55 = vld [vmem:[%s11430_s26 + $0x10] sm:$0xff]   ;;  %v6738_v41 = vld [vmem:[%s11430_s26 + $0x18] sm:$0xff]  }
 0x797   :  { %6269 = vrot.lane.b32.xlu1 %v6268_v15, %s11406_s19 }
 0x798   :  { %6264 = vrot.lane.b32.xlu0 %v6263_v62, %s11406_s19 }
 0x79b   :  { %6279 = vrot.lane.b32.xlu1 %v6258_v47, %s11404_s5 }
 0x79c   :  { %6274 = vrot.lane.b32.xlu0 %v6253_v17, %s11404_s5 }
 0x79f   :  { %6289 = vrot.lane.b32.xlu1 %v6268_v15, %s11404_s5 }
 0x7a0   :  { %6284 = vrot.lane.b32.xlu0 %v6263_v62, %s11404_s5 }
 0x7a3   :  { %1189 = vperm.xlu1 %6171, %v5941_v42  }
 0x7a4   :  { %1184 = vperm.xlu0 %6172, %v5940_v20  }
 0x7a7   :  { %1199 = vperm.xlu1 %6171, %v5943_v24  }
 0x7a8   :  { %1194 = vperm.xlu0 %6172, %v5942_v50  }
 0x800   :  { %v6260_v59 = vpop.permute.xlu1 %6259 }
 0x801   :  { %v6262_v54 = vunpack.i.h.bf16 %v6260_v59  ;;  %v6261_v38 = vunpack.i.l.bf16 %v6260_v59  ;;  %v6255_v52 = vpop.permute.xlu0 %6254 }
 0x802   :  { %v6257_v31 = vunpack.i.h.bf16 %v6255_v52  ;;  %v6256_v53 = vunpack.i.l.bf16 %v6255_v52 }
 0x804   :  { %v1142_v37 = vsel %vm1136_vm4, %v6262_v54, %v6257_v31  ;;  %v1141_v30 = vsel %vm1136_vm4, %v6261_v38, %v6256_v53  ;;  %v1137_v27 = vsel %vm1136_vm4, %v6256_v53, %v6261_v38  ;;  %v1138_v43 = vsel %vm1136_vm4, %v6257_v31, %v6262_v54 }
 0x805   :  { %v1171_v19 = vpack.c.bf16 %v1138_v43, %v1137_v27  ;;  %v1170_v44 = vpack.c.bf16 %v1142_v37, %v1141_v30 }
 0x807   :  { %1218 = vmatprep.subr.bf16.mxu0 %v1171_v19 }
 0x808   :  { %1219 = vmatpush1.bf16.msra.mxu0 %v1170_v44 }
 0x809   :  { %v6270_v25 = vpop.permute.xlu1 %6269 }
 0x80a   :  { %v6272_v48 = vunpack.i.h.bf16 %v6270_v25  ;;  %v6271_v29 = vunpack.i.l.bf16 %v6270_v25  ;;  %v6265_v45 = vpop.permute.xlu0 %6264 }
 0x80b   :  { %v6267_v51 = vunpack.i.h.bf16 %v6265_v45  ;;  %v6266_v47 = vunpack.i.l.bf16 %v6265_v45 }
 0x80d   :  { %v1144_v10 = vsel %vm1136_vm4, %v6272_v48, %v6267_v51  ;;  %v1143_v28 = vsel %vm1136_vm4, %v6271_v29, %v6266_v47  ;;  %v6280_v14 = vpop.permute.xlu1 %6279  ;;  %v1139_v17 = vsel %vm1136_vm4, %v6266_v47, %v6271_v29  ;;  %v1140_v18 = vsel %vm1136_vm4, %v6267_v51, %v6272_v48 }
 0x80e   :  { %v6275_v4 = vpop.permute.xlu0 %6274  ;;  %v1173_v21 = vpack.c.bf16 %v1140_v18, %v1139_v17  ;;  %v1172_v49 = vpack.c.bf16 %v1144_v10, %v1143_v28  ;;  %v6282_v40 = vunpack.i.h.bf16 %v6280_v14  ;;  %v6281_v57 = vunpack.i.l.bf16 %v6280_v14 }
 0x80f   :  { %v6277_v58 = vunpack.i.h.bf16 %v6275_v4  ;;  %v6276_v33 = vunpack.i.l.bf16 %v6275_v4 }
 0x810   :  { %1220 = vmatprep.subr.bf16.mxu0 %v1173_v21 }
 0x811   :  { %1221 = vmatpush1.bf16.msra.mxu0 %v1172_v49  ;;  %v6290_v15 = vpop.permute.xlu1 %6289  ;;  %v1166_v42 = vsel %vm1161_vm5, %v6281_v57, %v6276_v33  ;;  %v1167_v20 = vsel %vm1161_vm5, %v6282_v40, %v6277_v58  ;;  %v1163_v60 = vsel %vm1161_vm5, %v6277_v58, %v6282_v40  ;;  %v1162_v7 = vsel %vm1161_vm5, %v6276_v33, %v6281_v57 }
 0x812   :  { %v6285_v62 = vpop.permute.xlu0 %6284  ;;  %1222 = vmatprep.subr.bf16.mxu0 %v1175_v11  ;;  %v6292_v24 = vunpack.i.h.bf16 %v6290_v15  ;;  %v6291_v50 = vunpack.i.l.bf16 %v6290_v15  ;;  %v1179_v11 = vpack.c.bf16 %v1167_v20, %v1166_v42  ;;  %v1178_v16 = vpack.c.bf16 %v1163_v60, %v1162_v7  ;;  %v5949_v60 = vld [vmem:[%s11379_s6 + $0x28] sm:$0xff]  ;;  %v5950_v7 = vld [vmem:[%s11379_s6 + $0x30] sm:$0xff] }
 0x813   :  { %v6287_v59 = vunpack.i.h.bf16 %v6285_v62  ;;  %v6286_v54 = vunpack.i.l.bf16 %v6285_v62 }
 0x815   :  { %1223 = vmatpush1.bf16.msra.mxu0 %v1174_v22  ;;  %v1168_v38 = vsel %vm1161_vm5, %v6291_v50, %v6286_v54  ;;  %v1169_v56 = vsel %vm1161_vm5, %v6292_v24, %v6287_v59  ;;  %v1165_v22 = vsel %vm1161_vm5, %v6287_v59, %v6292_v24  ;;  %v1164_v8 = vsel %vm1161_vm5, %v6286_v54, %v6291_v50  ;;  %v5948_v24 = vld [vmem:[%s11379_s6 + $0x20] sm:$0xff]  ;;  %v5953_v59 = vld [vmem:[%s11380_s7 + $0x28] sm:$0xff]  ;;  %v5951_v54 = vld [vmem:[%s11379_s6 + $0x38] sm:$0xff] }
 0x816   :  { %1224 = vmatprep.subr.bf16.mxu0 %v1177_v23  ;;  %v1181_v35 = vpack.c.bf16 %v1169_v56, %v1168_v38  ;;  %v1180_v23 = vpack.c.bf16 %v1165_v22, %v1164_v8  ;;  %v5952_v50 = vld [vmem:[%s11380_s7 + $0x20] sm:$0xff] }
 0x819   :  { %1225 = vmatpush1.bf16.msra.mxu0 %v1176_v63 }
 0x81a   :  { %1226 = vmatprep.subr.bf16.mxu0 %v1179_v11 }
 0x81d   :  { %1227 = vmatpush1.bf16.msra.mxu0 %v1178_v16 }
 0x81e   :  { %1228 = vmatprep.subr.bf16.mxu0 %v1181_v35 }
 0x821   :  { %1229 = vmatpush1.bf16.msra.mxu0 %v1180_v23 }
 0x822   :  { %v1190_v37 = vpop.permute.xlu1 %1189 }
 0x823   :  { %v1185_v63 = vpop.permute.xlu0 %1184 }
 0x824   :  { %5946 = vmatmul.mubr.msk.bf16.vlgmr.msra.gmra.mrb[8].mxu0 %vm435_vm3, %v6737_v55 }
 0x825   :  { %1260 = vmatprep.mubr.bf16.mxu0 %v7153_v32 }
 0x826   :  { %v1200_v18 = vpop.permute.xlu1 %1199 }
 0x827   :  { %v1195_v47 = vpop.permute.xlu0 %1194 }
 0x82c   :  { %5947 = vmatmul.mubr.msk.bf16.gmra.mrb[12].mxu0 %vm435_vm3, %v6738_v41 }
 0x82d   :  { %2030 = vmatprep.mubr.bf16.mxu0 %v7153_v32 }
 0x8f7   :  { %v1252_v52 = vpop.f32.mrb[8].mxu0 }
 0x8f8   :  { %v1253_v31 = vadd.f32 %v1252_v52, %v1185_v63  ;;  %v1254_v53 = vpop.f32.mrb[9].mxu0 }
 0x8f9   :  { %v1255_v30 = vadd.f32 %v1254_v53, %v1185_v63  ;;  %v1256_v27 = vpop.f32.mrb[10].mxu0 }
 0x8fa   :  { %v1281_v43 = vmul.f32 %v1253_v31, %v7312_v12  ;;  %v1257_v19 = vadd.f32 %v1256_v27, %v1190_v37  ;;  %v1258_v44 = vpop.f32.mrb[11].mxu0 }
 0x8fb   :  { %v1282_v25 = vmul.f32 %v1255_v30, %v7314_v13  ;;  %v1259_v48 = vadd.f32 %v1258_v44, %v1190_v37 }
 0x8fc   :  { %v1283_v29 = vmul.f32 %v1257_v19, %v7312_v12 }
 0x8fd   :  { %v1284_v45 = vmul.f32 %v1259_v48, %v7314_v13  ;;  %v1289_v51 = vadd.f32 %v1282_v25, %v1281_v43 }
 0x8ff   :  { %v1262_v10 = vpop.f32.mrb[12].mxu0  ;;  %1290 = vadd.xlane.f32.xlu0 %v1289_v51  ;;  %v1292_v28 = vadd.f32 %v1284_v45, %v1283_v29 }
 0x900   :  { %v1263_v14 = vadd.f32 %v1262_v10, %v1195_v47  ;;  %v1264_v17 = vpop.f32.mrb[13].mxu0 }
 0x901   :  { %v1265_v4 = vadd.f32 %v1264_v17, %v1195_v47  ;;  %v1266_v21 = vpop.f32.mrb[14].mxu0  ;;  %1293 = vadd.xlane.f32.xlu1 %v1292_v28 }
 0x902   :  { %v1285_v49 = vmul.f32 %v1263_v14, %v7312_v12  ;;  %v1267_v40 = vadd.f32 %v1266_v21, %v1200_v18  ;;  %v1268_v57 = vpop.f32.mrb[15].mxu0 }
 0x903   :  { %v1286_v58 = vmul.f32 %v1265_v4, %v7314_v13  ;;  %v1269_v33 = vadd.f32 %v1268_v57, %v1200_v18 }
 0x904   :  { %v1287_v15 = vmul.f32 %v1267_v40, %v7312_v12 }
 0x905   :  { %v1288_v62 = vmul.f32 %v1269_v33, %v7314_v13  ;;  %v1295_v42 = vadd.f32 %v1286_v58, %v1285_v49  ;;  %v5955_v58 = vld [vmem:[%s11380_s7 + $0x38] sm:$0xff] }
 0x907   :  { %1296 = vadd.xlane.f32.xlu0 %v1295_v42  ;;  %v1298_v20 = vadd.f32 %v1288_v62, %v1287_v15 }
 0x90b   :  { %1299 = vadd.xlane.f32.xlu0 %v1298_v20 }
 0x912   :  { %1363 = vperm.xlu1 %6171, %v5948_v24  }
 0x916   :  { %1391 = vperm.xlu1 %6171, %v5952_v50  }
 0x91a   :  { %1396 = vperm.xlu1 %6171, %v5953_v59  }
 0x91e   :  { %1378 = vperm.xlu1 %6171, %v5951_v54  }
 0x921   :  { %1368 = vperm.xlu0 %6172, %v5949_v60  }
 0x925   :  { %1373 = vperm.xlu0 %6172, %v5950_v7  }
 0x98c   :  { %v1291_v11 = vpop.xlane.xlu0 %1290 }
 0x98d   :  { %v1301_v38 = vmul.f32 %v1291_v11, %v7343_v46 }
 0x98e   :  { %v1294_v56 = vpop.xlane.xlu1 %1293 }
 0x98f   :  { %v8196_v16 = vsub.f32 %v1253_v31, %v1301_v38  ;;  %v8198_v22 = vsub.f32 %v1255_v30, %v1301_v38  ;;  %v1302_v8 = vmul.f32 %v1294_v56, %v7343_v46 }
 0x991   :  { %v1313_v35 = vmul.f32 %v8196_v16, %v8196_v16  ;;  %v1314_v23 = vmul.f32 %v8198_v22, %v8198_v22  ;;  %v8205_v55 = vsub.f32 %v1257_v19, %v1302_v8  ;;  %v8207_v41 = vsub.f32 %v1259_v48, %v1302_v8 }
 0x992   :  { %v1364_v15 = vpop.permute.xlu1 %1363 }
 0x993   :  { %v1321_v63 = vmul.f32 %v1313_v35, %v7312_v12  ;;  %v1322_v52 = vmul.f32 %v1314_v23, %v7314_v13  ;;  %v1315_v31 = vmul.f32 %v8205_v55, %v8205_v55  ;;  %v1316_v53 = vmul.f32 %v8207_v41, %v8207_v41 }
 0x994   :  { %v1297_v37 = vpop.xlane.xlu0 %1296 }
 0x995   :  { %v1303_v30 = vmul.f32 %v1297_v37, %v7343_v46  ;;  %v1329_v27 = vadd.f32 %v1322_v52, %v1321_v63  ;;  %v1323_v43 = vmul.f32 %v1315_v31, %v7312_v12  ;;  %v1324_v19 = vmul.f32 %v1316_v53, %v7314_v13 }
 0x996   :  { %v1392_v62 = vpop.permute.xlu1 %1391 }
 0x997   :  { %v8218_v44 = vsub.f32 %v1263_v14, %v1303_v30  ;;  %v8220_v25 = vsub.f32 %v1265_v4, %v1303_v30  ;;  %1330 = vadd.xlane.f32.xlu1 %v1329_v27  ;;  %v1332_v48 = vadd.f32 %v1324_v19, %v1323_v43 }
 0x998   :  { %v1300_v29 = vpop.xlane.xlu0 %1299 }
 0x999   :  { %v1317_v45 = vmul.f32 %v8218_v44, %v8218_v44  ;;  %v1318_v51 = vmul.f32 %v8220_v25, %v8220_v25  ;;  %v1304_v47 = vmul.f32 %v1300_v29, %v7343_v46  ;;  %1333 = vadd.xlane.f32.xlu0 %v1332_v48 }
 0x99a   :  { %v1397_v42 = vpop.permute.xlu1 %1396 }
 0x99b   :  { %v8227_v10 = vsub.f32 %v1267_v40, %v1304_v47  ;;  %v8229_v28 = vsub.f32 %v1269_v33, %v1304_v47  ;;  %v1325_v14 = vmul.f32 %v1317_v45, %v7312_v12  ;;  %v1326_v17 = vmul.f32 %v1318_v51, %v7314_v13  ;;  %v5954_v33 = vld [vmem:[%s11380_s7 + $0x30] sm:$0xff] }
 0x99d   :  { %v1335_v18 = vadd.f32 %v1326_v17, %v1325_v14  ;;  %v1319_v4 = vmul.f32 %v8227_v10, %v8227_v10  ;;  %v1320_v21 = vmul.f32 %v8229_v28, %v8229_v28 }
 0x99e   :  { %v1379_v24 = vpop.permute.xlu1 %1378 }
 0x99f   :  { %1336 = vadd.xlane.f32.xlu1 %v1335_v18  ;;  %v1327_v49 = vmul.f32 %v1319_v4, %v7312_v12  ;;  %v1328_v57 = vmul.f32 %v1320_v21, %v7314_v13 }
 0x9a0   :  { %v1369_v20 = vpop.permute.xlu0 %1368 }
 0x9a1   :  { %v1338_v40 = vadd.f32 %v1328_v57, %v1327_v49 }
 0x9a3   :  { %1339 = vadd.xlane.f32.xlu0 %v1338_v40 }
 0x9a4   :  { %v1374_v50 = vpop.permute.xlu0 %1373 }
 0x9b0   :  { %1406 = vperm.xlu1 %6171, %v5955_v58  }
 0x9b9   :  { %1401 = vperm.xlu0 %6172, %v5954_v33  }
 0xa24   :  { %v1331_v59 = vpop.xlane.xlu1 %1330 }
 0xa25   :  { %v1341_v54 = vmul.f32 %v1331_v59, %v7343_v46 }
 0xa26   :  { %v1334_v60 = vpop.xlane.xlu0 %1333 }
 0xa27   :  { %v1345_v7 = vadd.f32 1e-05, %v1341_v54  ;;  %v1342_v11 = vmul.f32 %v1334_v60, %v7343_v46 }
 0xa29   :  { %6837 = vrsqrt.f32 %v1345_v7  ;;  %v1346_v38 = vadd.f32 1e-05, %v1342_v11 }
 0xa2b   :  { %6839 = vrsqrt.f32 %v1346_v38 }
 0xa2c   :  { %v1337_v56 = vpop.xlane.xlu1 %1336 }
 0xa2d   :  { %v1343_v8 = vmul.f32 %v1337_v56, %v7343_v46 }
 0xa2f   :  { %v1347_v35 = vadd.f32 1e-05, %v1343_v8 }
 0xa30   :  { %v1340_v23 = vpop.xlane.xlu0 %1339 }
 0xa31   :  { %6841 = vrsqrt.f32 %v1347_v35  ;;  %v1344_v63 = vmul.f32 %v1340_v23, %v7343_v46  ;;  %v1407_v23 = vpop.permute.xlu1 %1406 }
 0xa33   :  { %v6838_v52 = vpop.eup %6837  ;;  %v1348_v31 = vadd.f32 1e-05, %v1344_v63 }
 0xa34   :  { %v1353_v53 = vmul.f32 %v6838_v52, %v8196_v16  ;;  %v1354_v37 = vmul.f32 %v6838_v52, %v8198_v22 }
 0xa35   :  { %v6840_v30 = vpop.eup %6839  ;;  %6843 = vrsqrt.f32 %v1348_v31 }
 0xa36   :  { %v1381_v27 = vmul.f32 %v1364_v15, %v1353_v53  ;;  %v1382_v43 = vmul.f32 %v1364_v15, %v1354_v37  ;;  %v1355_v19 = vmul.f32 %v6840_v30, %v8205_v55  ;;  %v1356_v48 = vmul.f32 %v6840_v30, %v8207_v41 }
 0xa38   :  { %v8253_v29 = vadd.f32 %v1392_v62, %v1381_v27  ;;  %v8255_v45 = vadd.f32 %v1392_v62, %v1382_v43  ;;  %v1383_v51 = vmul.f32 %v1369_v20, %v1355_v19  ;;  %v1384_v47 = vmul.f32 %v1369_v20, %v1356_v48 }
 0xa3a   :  { %v8257_v14 = vadd.f32 %v1397_v42, %v1383_v51  ;;  %v8259_v17 = vadd.f32 %v1397_v42, %v1384_v47  ;;  %v1418_v16 = vmul.f32 %v8255_v45, %v8255_v45  ;;  %v1417_v22 = vmul.f32 %v8253_v29, %v8253_v29  ;;  %v1402_v42 = vpop.permute.xlu0 %1401 }
 0xa3b   :  { %v6842_v18 = vpop.eup %6841 }
 0xa3c   :  { %v1357_v55 = vmul.f32 %v6842_v18, %v8218_v44  ;;  %v1358_v41 = vmul.f32 %v6842_v18, %v8220_v25  ;;  %v1420_v4 = vmul.f32 %v8259_v17, %v8259_v17  ;;  %v1426_v21 = vmul.f32 %v1418_v16, %v8255_v45 }
 0xa3d   :  { %v1419_v49 = vmul.f32 %v8257_v14, %v8257_v14  ;;  %v1425_v57 = vmul.f32 %v1417_v22, %v8253_v29 }
 0xa3e   :  { %v1385_v40 = vmul.f32 %v1374_v50, %v1357_v55  ;;  %v1386_v58 = vmul.f32 %v1374_v50, %v1358_v41  ;;  %v1428_v33 = vmul.f32 %v1420_v4, %v8259_v17  ;;  %v1434_v15 = vmul.f32 0.044715, %v1426_v21 }
 0xa3f   :  { %v6844_v62 = vpop.eup %6843  ;;  %v1427_v44 = vmul.f32 %v1419_v49, %v8257_v14  ;;  %v1433_v25 = vmul.f32 0.044715, %v1425_v57 }
 0xa40   :  { %v1359_v20 = vmul.f32 %v6844_v62, %v8227_v10  ;;  %v1360_v59 = vmul.f32 %v6844_v62, %v8229_v28  ;;  %v8277_v54 = vadd.f32 %v1402_v42, %v1385_v40  ;;  %v8279_v60 = vadd.f32 %v1402_v42, %v1386_v58 }
 0xa41   :  { %v1436_v7 = vmul.f32 0.044715, %v1428_v33  ;;  %v1442_v11 = vadd.f32 %v1434_v15, %v8255_v45  ;;  %v1435_v50 = vmul.f32 0.044715, %v1427_v44  ;;  %v1441_v38 = vadd.f32 %v1433_v25, %v8253_v29 }
 0xa42   :  { %v1387_v56 = vmul.f32 %v1379_v24, %v1359_v20  ;;  %v1388_v8 = vmul.f32 %v1379_v24, %v1360_v59  ;;  %v1421_v35 = vmul.f32 %v8277_v54, %v8277_v54  ;;  %v1422_v10 = vmul.f32 %v8279_v60, %v8279_v60 }
 0xa43   :  { %v1444_v28 = vadd.f32 %v1436_v7, %v8259_v17  ;;  %v1450_v63 = vmul.f32 0.7978846, %v1442_v11  ;;  %v1443_v52 = vadd.f32 %v1435_v50, %v8257_v14  ;;  %v1449_v31 = vmul.f32 0.7978846, %v1441_v38 }
 0xa44   :  { %v8289_v53 = vadd.f32 %v1407_v23, %v1387_v56  ;;  %v8291_v37 = vadd.f32 %v1407_v23, %v1388_v8  ;;  %v1429_v30 = vmul.f32 %v1421_v35, %v8277_v54  ;;  %v1430_v24 = vmul.f32 %v1422_v10, %v8279_v60 }
 0xa45   :  { %v1452_v27 = vmul.f32 0.7978846, %v1444_v28  ;;  %6845 = vtanh.f32 %v1450_v63  ;;  %v1451_v43 = vmul.f32 0.7978846, %v1443_v52 }
 0xa46   :  { %v1437_v19 = vmul.f32 0.044715, %v1429_v30  ;;  %v1438_v48 = vmul.f32 0.044715, %v1430_v24  ;;  %6847 = vtanh.f32 %v1449_v31  ;;  %v1424_v51 = vmul.f32 %v8291_v37, %v8291_v37 }
 0xa47   :  { %6849 = vtanh.f32 %v1452_v27  ;;  %v1423_v47 = vmul.f32 %v8289_v53, %v8289_v53 }
 0xa48   :  { %v1445_v16 = vadd.f32 %v1437_v19, %v8277_v54  ;;  %v1446_v22 = vadd.f32 %v1438_v48, %v8279_v60  ;;  %6851 = vtanh.f32 %v1451_v43  ;;  %v1432_v18 = vmul.f32 %v1424_v51, %v8291_v37 }
 0xa49   :  { %v1431_v55 = vmul.f32 %v1423_v47, %v8289_v53 }
 0xa4a   :  { %v1453_v41 = vmul.f32 0.7978846, %v1445_v16  ;;  %v1454_v4 = vmul.f32 0.7978846, %v1446_v22  ;;  %v1440_v21 = vmul.f32 0.044715, %v1432_v18 }
 0xa4b   :  { %v1439_v49 = vmul.f32 0.044715, %v1431_v55 }
 0xa4c   :  { %6853 = vtanh.f32 %v1453_v41  ;;  %v1448_v57 = vadd.f32 %v1440_v21, %v8291_v37 }
 0xa4d   :  { %6855 = vtanh.f32 %v1454_v4  ;;  %v1447_v40 = vadd.f32 %v1439_v49, %v8289_v53 }
 0xa4e   :  { %v1456_v58 = vmul.f32 0.7978846, %v1448_v57 }
 0xa4f   :  { %v6846_v33 = vpop.eup %6845  ;;  %v1455_v15 = vmul.f32 0.7978846, %v1447_v40 }
 0xa50   :  { %v6848_v62 = vpop.eup %6847  ;;  %v1466_v42 = vadd.f32 1.0, %v6846_v33  ;;  %6857 = vtanh.f32 %v1456_v58 }
 0xa51   :  { %v6850_v44 = vpop.eup %6849  ;;  %v1465_v25 = vadd.f32 1.0, %v6848_v62  ;;  %6859 = vtanh.f32 %v1455_v15  ;;  %v5961_v15 = vld [vmem:[%s11382_s9 + $0x28] sm:$0xff]  ;;  %v5960_v62 = vld [vmem:[%s11382_s9 + $0x20] sm:$0xff] }
 0xa52   :  { %v6852_v20 = vpop.eup %6851  ;;  %v1468_v59 = vadd.f32 1.0, %v6850_v44  ;;  %v1474_v7 = vmul.f32 0.5, %v1466_v42  ;;  %v5963_v42 = vld [vmem:[%s11382_s9 + $0x38] sm:$0xff]  ;;  %v5962_v44 = vld [vmem:[%s11382_s9 + $0x30] sm:$0xff] }
 0xa53   :  { %v1467_v11 = vadd.f32 1.0, %v6852_v20  ;;  %v1473_v50 = vmul.f32 0.5, %v1465_v25 }
 0xa54   :  { %v1476_v38 = vmul.f32 0.5, %v1468_v59  ;;  %v1482_v56 = vmul.f32 %v1474_v7, %v8255_v45 }
 0xa55   :  { %v1475_v8 = vmul.f32 0.5, %v1467_v11  ;;  %v1481_v35 = vmul.f32 %v1473_v50, %v8253_v29 }
 0xa56   :  { %v6854_v10 = vpop.eup %6853  ;;  %v1484_v23 = vmul.f32 %v1476_v38, %v8259_v17  ;;  %v8310_v30 = vmul.f32 %v1482_v56, %v7314_v13 }
 0xa57   :  { %v6856_v28 = vpop.eup %6855  ;;  %v1483_v63 = vmul.f32 %v1475_v8, %v8257_v14  ;;  %v1469_v52 = vadd.f32 1.0, %v6854_v10  ;;  %v8316_v27 = vmul.f32 %v1481_v35, %v7312_v12 }
 0xa58   :  { %v1470_v31 = vadd.f32 1.0, %v6856_v28  ;;  %v8313_v24 = vmul.f32 %v1484_v23, %v7314_v13 }
 0xa59   :  { %v8319_v45 = vmul.f32 %v1483_v63, %v7312_v12  ;;  %v1477_v14 = vmul.f32 0.5, %v1469_v52 }
 0xa5a   :  { %v6858_v29 = vpop.eup %6857  ;;  %v1478_v43 = vmul.f32 0.5, %v1470_v31  ;;  %v6298_v17 = vpack.i.bf16 %v8313_v24, %v8310_v30  ;;  %v1560_v19 = vpack.c.bf16 %v8313_v24, %v8310_v30 }
 0xa5b   :  { %v6860_v48 = vpop.eup %6859  ;;  %v6293_v51 = vpack.i.bf16 %v8319_v45, %v8316_v27  ;;  %v1472_v47 = vadd.f32 1.0, %v6858_v29  ;;  %v1559_v22 = vpack.c.bf16 %v8319_v45, %v8316_v27  ;;  %v1485_v4 = vmul.f32 %v1477_v14, %v8277_v54 }
 0xa5c   :  { %6299 = vrot.lane.b32.xlu1 %v6298_v17, %s11406_s19  ;;  %v1471_v16 = vadd.f32 1.0, %v6860_v48  ;;  %v1486_v18 = vmul.f32 %v1478_v43, %v8279_v60 }
 0xa5d   :  { %6294 = vrot.lane.b32.xlu0 %v6293_v51, %s11406_s19  ;;  %v1480_v55 = vmul.f32 0.5, %v1472_v47  ;;  %v8342_v58 = vmul.f32 %v1485_v4, %v7312_v12 }
 0xa5e   :  { %v1479_v41 = vmul.f32 0.5, %v1471_v16  ;;  %v8336_v57 = vmul.f32 %v1486_v18, %v7314_v13 }
 0xa5f   :  { %v1488_v21 = vmul.f32 %v1480_v55, %v8291_v37 }
 0xa60   :  { %v1487_v49 = vmul.f32 %v1479_v41, %v8289_v53 }
 0xa61   :  { %v8339_v40 = vmul.f32 %v1488_v21, %v7314_v13 }
 0xa62   :  { %v8345_v60 = vmul.f32 %v1487_v49, %v7312_v12 }
 0xa63   :  { %v6308_v33 = vpack.i.bf16 %v8339_v40, %v8336_v57  ;;  %v1562_v54 = vpack.c.bf16 %v8339_v40, %v8336_v57 }
 0xa64   :  { %v6303_v53 = vpack.i.bf16 %v8345_v60, %v8342_v58  ;;  %v1561_v37 = vpack.c.bf16 %v8345_v60, %v8342_v58  ;;  %v6739_v58 = vld [vmem:[%s11381_s8 + $0x10] sm:$0xff]   ;;  %v6740_v60 = vld [vmem:[%s11381_s8 + $0x18] sm:$0xff]  }
 0xa65   :  { %6309 = vrot.lane.b32.xlu1 %v6308_v33, %s11406_s19 }
 0xa66   :  { %6304 = vrot.lane.b32.xlu0 %v6303_v53, %s11406_s19 }
 0xa69   :  { %6319 = vrot.lane.b32.xlu1 %v6298_v17, %s11432_s22 }
 0xa6a   :  { %6314 = vrot.lane.b32.xlu0 %v6293_v51, %s11432_s22 }
 0xa6d   :  { %6329 = vrot.lane.b32.xlu1 %v6308_v33, %s11432_s22 }
 0xa6e   :  { %6324 = vrot.lane.b32.xlu0 %v6303_v53, %s11432_s22 }
 0xa71   :  { %1574 = vperm.xlu1 %6171, %v5961_v15  }
 0xa72   :  { %1569 = vperm.xlu0 %6172, %v5960_v62  }
 0xa75   :  { %1584 = vperm.xlu1 %6171, %v5963_v42  }
 0xa76   :  { %1579 = vperm.xlu0 %6172, %v5962_v44  }
 0xace   :  { %v6300_v25 = vpop.permute.xlu1 %6299 }
 0xacf   :  { %v6302_v20 = vunpack.i.h.bf16 %v6300_v25  ;;  %v6301_v59 = vunpack.i.l.bf16 %v6300_v25  ;;  %v6295_v7 = vpop.permute.xlu0 %6294 }
 0xad0   :  { %v6297_v11 = vunpack.i.h.bf16 %v6295_v7  ;;  %v6296_v50 = vunpack.i.l.bf16 %v6295_v7 }
 0xad2   :  { %v1528_v38 = vsel %vm1136_vm4, %v6302_v20, %v6297_v11  ;;  %v1527_v56 = vsel %vm1136_vm4, %v6301_v59, %v6296_v50  ;;  %v1523_v8 = vsel %vm1136_vm4, %v6296_v50, %v6301_v59  ;;  %v1524_v35 = vsel %vm1136_vm4, %v6297_v11, %v6302_v20 }
 0xad3   :  { %v1556_v10 = vpack.c.bf16 %v1524_v35, %v1523_v8  ;;  %v1555_v23 = vpack.c.bf16 %v1528_v38, %v1527_v56 }
 0xad5   :  { %1603 = vmatprep.subr.bf16.mxu1 %v1556_v10 }
 0xad6   :  { %1604 = vmatpush1.bf16.msra.mxu1 %v1555_v23 }
 0xad7   :  { %v6310_v28 = vpop.permute.xlu1 %6309 }
 0xad8   :  { %v6312_v63 = vunpack.i.h.bf16 %v6310_v28  ;;  %v6311_v52 = vunpack.i.l.bf16 %v6310_v28  ;;  %v6305_v31 = vpop.permute.xlu0 %6304 }
 0xad9   :  { %v6307_v29 = vunpack.i.h.bf16 %v6305_v31  ;;  %v6306_v43 = vunpack.i.l.bf16 %v6305_v31 }
 0xadb   :  { %v1530_v17 = vsel %vm1136_vm4, %v6312_v63, %v6307_v29  ;;  %v1529_v14 = vsel %vm1136_vm4, %v6311_v52, %v6306_v43  ;;  %v6320_v48 = vpop.permute.xlu1 %6319  ;;  %v1525_v51 = vsel %vm1136_vm4, %v6306_v43, %v6311_v52  ;;  %v1526_v47 = vsel %vm1136_vm4, %v6307_v29, %v6312_v63 }
 0xadc   :  { %v6315_v16 = vpop.permute.xlu0 %6314  ;;  %v1558_v18 = vpack.c.bf16 %v1526_v47, %v1525_v51  ;;  %v1557_v55 = vpack.c.bf16 %v1530_v17, %v1529_v14  ;;  %v6322_v41 = vunpack.i.h.bf16 %v6320_v48  ;;  %v6321_v4 = vunpack.i.l.bf16 %v6320_v48 }
 0xadd   :  { %v6317_v21 = vunpack.i.h.bf16 %v6315_v16  ;;  %v6316_v49 = vunpack.i.l.bf16 %v6315_v16 }
 0xade   :  { %1605 = vmatprep.subr.bf16.mxu1 %v1558_v18 }
 0xadf   :  { %1606 = vmatpush1.bf16.msra.mxu1 %v1557_v55  ;;  %v6330_v57 = vpop.permute.xlu1 %6329  ;;  %v1551_v33 = vsel %vm1161_vm5, %v6321_v4, %v6316_v49  ;;  %v1552_v53 = vsel %vm1161_vm5, %v6322_v41, %v6317_v21  ;;  %v1548_v25 = vsel %vm1161_vm5, %v6317_v21, %v6322_v41  ;;  %v1547_v30 = vsel %vm1161_vm5, %v6316_v49, %v6321_v4 }
 0xae0   :  { %v6325_v40 = vpop.permute.xlu0 %6324  ;;  %1607 = vmatprep.subr.bf16.mxu1 %v1560_v19  ;;  %v6332_v15 = vunpack.i.h.bf16 %v6330_v57  ;;  %v6331_v62 = vunpack.i.l.bf16 %v6330_v57  ;;  %v1564_v24 = vpack.c.bf16 %v1552_v53, %v1551_v33  ;;  %v1563_v27 = vpack.c.bf16 %v1548_v25, %v1547_v30  ;;  %v5969_v25 = vld [vmem:[%s11427_s30 + $0x48] sm:$0xff]  ;;  %v5970_v30 = vld [vmem:[%s11427_s30 + $0x50] sm:$0xff] }
 0xae1   :  { %v6327_v42 = vunpack.i.h.bf16 %v6325_v40  ;;  %v6326_v44 = vunpack.i.l.bf16 %v6325_v40 }
 0xae3   :  { %1608 = vmatpush1.bf16.msra.mxu1 %v1559_v22  ;;  %v1553_v19 = vsel %vm1161_vm5, %v6331_v62, %v6326_v44  ;;  %v1554_v20 = vsel %vm1161_vm5, %v6332_v15, %v6327_v42  ;;  %v1550_v45 = vsel %vm1161_vm5, %v6327_v42, %v6332_v15  ;;  %v1549_v22 = vsel %vm1161_vm5, %v6326_v44, %v6331_v62  ;;  %v5973_v42 = vld [vmem:[%s11428_s2 + $0x48] sm:$0xff]  ;;  %v5971_v44 = vld [vmem:[%s11427_s30 + $0x58] sm:$0xff] }
 0xae4   :  { %1609 = vmatprep.subr.bf16.mxu1 %v1562_v54  ;;  %v1566_v54 = vpack.c.bf16 %v1554_v20, %v1553_v19  ;;  %v1565_v59 = vpack.c.bf16 %v1550_v45, %v1549_v22 }
 0xae7   :  { %1610 = vmatpush1.bf16.msra.mxu1 %v1561_v37 }
 0xae8   :  { %1611 = vmatprep.subr.bf16.mxu1 %v1564_v24 }
 0xaeb   :  { %1612 = vmatpush1.bf16.msra.mxu1 %v1563_v27 }
 0xaec   :  { %1613 = vmatprep.subr.bf16.mxu1 %v1566_v54 }
 0xaef   :  { %1614 = vmatpush1.bf16.msra.mxu1 %v1565_v59 }
 0xaf0   :  { %v1575_v38 = vpop.permute.xlu1 %1574 }
 0xaf1   :  { %v1570_v37 = vpop.permute.xlu0 %1569 }
 0xaf2   :  { %5966 = vmatmul.mubr.msk.bf16.vlgmr.msra.gmra.mrb[8].mxu1 %vm435_vm3, %v6739_v58 }
 0xaf3   :  { %1645 = vmatprep.mubr.bf16.mxu1 %v7153_v32 }
 0xaf4   :  { %v1585_v47 = vpop.permute.xlu1 %1584 }
 0xaf5   :  { %v1580_v17 = vpop.permute.xlu0 %1579 }
 0xafa   :  { %5967 = vmatmul.mubr.msk.bf16.gmra.mrb[12].mxu1 %vm435_vm3, %v6740_v60 }
 0xafb   :  { %2415 = vmatprep.mubr.bf16.mxu1 %v7153_v32 }
 0xbc5   :  { %v1637_v7 = vpop.f32.mrb[8].mxu1 }
 0xbc6   :  { %v1638_v11 = vadd.f32 %v1637_v7, %v1570_v37  ;;  %v1639_v50 = vpop.f32.mrb[9].mxu1 }
 0xbc7   :  { %v1640_v56 = vadd.f32 %v1639_v50, %v1570_v37  ;;  %v1641_v8 = vpop.f32.mrb[10].mxu1 }
 0xbc8   :  { %v8425_v35 = vadd.f32 %v1638_v11, %v7856_v39  ;;  %v1642_v10 = vadd.f32 %v1641_v8, %v1575_v38  ;;  %v1643_v23 = vpop.f32.mrb[11].mxu1 }
 0xbc9   :  { %v8428_v28 = vadd.f32 %v1640_v56, %v7861_v61  ;;  %v1644_v63 = vadd.f32 %v1643_v23, %v1575_v38 }
 0xbca   :  { %v8431_v52 = vadd.f32 %v1642_v10, %v7866_v5  ;;  %v1674_v31 = vmul.f32 %v8425_v35, %v7312_v12 }
 0xbcb   :  { %v8436_v29 = vadd.f32 %v1644_v63, %v7873_v9  ;;  %v1675_v43 = vmul.f32 %v8428_v28, %v7314_v13 }
 0xbcc   :  { %v1676_v39 = vmul.f32 %v8431_v52, %v7312_v12 }
 0xbcd   :  { %v1647_v14 = vpop.f32.mrb[12].mxu1  ;;  %v1682_v61 = vadd.f32 %v1675_v43, %v1674_v31  ;;  %v1677_v48 = vmul.f32 %v8436_v29, %v7314_v13 }
 0xbce   :  { %v1648_v5 = vadd.f32 %v1647_v14, %v1580_v17  ;;  %v1649_v51 = vpop.f32.mrb[13].mxu1 }
 0xbcf   :  { %v1650_v16 = vadd.f32 %v1649_v51, %v1580_v17  ;;  %v1651_v18 = vpop.f32.mrb[14].mxu1  ;;  %1683 = vadd.xlane.f32.xlu0 %v1682_v61  ;;  %v1685_v9 = vadd.f32 %v1677_v48, %v1676_v39 }
 0xbd0   :  { %v8445_v55 = vadd.f32 %v1648_v5, %v7884_v26  ;;  %v1652_v41 = vadd.f32 %v1651_v18, %v1585_v47  ;;  %v1653_v4 = vpop.f32.mrb[15].mxu1 }
 0xbd1   :  { %v8448_v21 = vadd.f32 %v1650_v16, %v7889_v2  ;;  %v1654_v49 = vadd.f32 %v1653_v4, %v1585_v47  ;;  %1686 = vadd.xlane.f32.xlu1 %v1685_v9 }
 0xbd2   :  { %v8451_v57 = vadd.f32 %v1652_v41, %v7894_v34  ;;  %v1678_v40 = vmul.f32 %v8445_v55, %v7312_v12  ;;  %v5968_v34 = vld [vmem:[%s11427_s30 + $0x40] sm:$0xff] }
 0xbd3   :  { %v8456_v33 = vadd.f32 %v1654_v49, %v7901_v36  ;;  %v1679_v26 = vmul.f32 %v8448_v21, %v7314_v13  ;;  %v5972_v36 = vld [vmem:[%s11428_s2 + $0x40] sm:$0xff] }
 0xbd4   :  { %v1680_v15 = vmul.f32 %v8451_v57, %v7312_v12 }
 0xbd5   :  { %v1688_v53 = vadd.f32 %v1679_v26, %v1678_v40  ;;  %v1681_v2 = vmul.f32 %v8456_v33, %v7314_v13  ;;  %v5975_v40 = vld [vmem:[%s11428_s2 + $0x58] sm:$0xff]  ;;  %v5974_v26 = vld [vmem:[%s11428_s2 + $0x50] sm:$0xff] }
 0xbd7   :  { %1689 = vadd.xlane.f32.xlu0 %v1688_v53  ;;  %v1691_v62 = vadd.f32 %v1681_v2, %v1680_v15 }
 0xbdb   :  { %1692 = vadd.xlane.f32.xlu0 %v1691_v62 }
 0xbe2   :  { %1756 = vperm.xlu1 %6171, %v5968_v34  }
 0xbe6   :  { %1784 = vperm.xlu1 %6171, %v5972_v36  }
 0xbea   :  { %1789 = vperm.xlu1 %6171, %v5973_v42  }
 0xbee   :  { %1771 = vperm.xlu1 %6171, %v5971_v44  }
 0xbf1   :  { %1761 = vperm.xlu0 %6172, %v5969_v25  }
 0xbf5   :  { %1766 = vperm.xlu0 %6172, %v5970_v30  }
 0xc5c   :  { %v1684_v24 = vpop.xlane.xlu0 %1683 }
 0xc5d   :  { %v1694_v19 = vmul.f32 %v1684_v24, %v7343_v46 }
 0xc5e   :  { %v1687_v20 = vpop.xlane.xlu1 %1686 }
 0xc5f   :  { %v8484_v27 = vsub.f32 %v8425_v35, %v1694_v19  ;;  %v8487_v45 = vsub.f32 %v8428_v28, %v1694_v19  ;;  %v1695_v22 = vmul.f32 %v1687_v20, %v7343_v46 }
 0xc61   :  { %v1706_v54 = vmul.f32 %v8484_v27, %v8484_v27  ;;  %v1707_v59 = vmul.f32 %v8487_v45, %v8487_v45  ;;  %v8495_v58 = vsub.f32 %v8431_v52, %v1695_v22  ;;  %v8498_v60 = vsub.f32 %v8436_v29, %v1695_v22 }
 0xc62   :  { %v1757_v53 = vpop.permute.xlu1 %1756 }
 0xc63   :  { %v1708_v37 = vmul.f32 %v8495_v58, %v8495_v58  ;;  %v1709_v7 = vmul.f32 %v8498_v60, %v8498_v60  ;;  %v1714_v11 = vmul.f32 %v1706_v54, %v7312_v12  ;;  %v1715_v50 = vmul.f32 %v1707_v59, %v7314_v13 }
 0xc64   :  { %v1690_v38 = vpop.xlane.xlu0 %1689 }
 0xc65   :  { %v1696_v56 = vmul.f32 %v1690_v38, %v7343_v46  ;;  %v1722_v8 = vadd.f32 %v1715_v50, %v1714_v11  ;;  %v1716_v10 = vmul.f32 %v1708_v37, %v7312_v12  ;;  %v1717_v23 = vmul.f32 %v1709_v7, %v7314_v13 }
 0xc66   :  { %v1785_v15 = vpop.permute.xlu1 %1784 }
 0xc67   :  { %v8510_v63 = vsub.f32 %v8445_v55, %v1696_v56  ;;  %v8513_v31 = vsub.f32 %v8448_v21, %v1696_v56  ;;  %1723 = vadd.xlane.f32.xlu1 %v1722_v8  ;;  %v1725_v43 = vadd.f32 %v1717_v23, %v1716_v10 }
 0xc68   :  { %v1693_v39 = vpop.xlane.xlu0 %1692 }
 0xc69   :  { %v1710_v17 = vmul.f32 %v8510_v63, %v8510_v63  ;;  %v1711_v14 = vmul.f32 %v8513_v31, %v8513_v31  ;;  %v1697_v61 = vmul.f32 %v1693_v39, %v7343_v46  ;;  %1726 = vadd.xlane.f32.xlu0 %v1725_v43 }
 0xc6a   :  { %v1790_v2 = vpop.permute.xlu1 %1789 }
 0xc6b   :  { %v8521_v48 = vsub.f32 %v8451_v57, %v1697_v61  ;;  %v8524_v5 = vsub.f32 %v8456_v33, %v1697_v61  ;;  %v1718_v51 = vmul.f32 %v1710_v17, %v7312_v12  ;;  %v1719_v47 = vmul.f32 %v1711_v14, %v7314_v13 }
 0xc6d   :  { %v1712_v16 = vmul.f32 %v8521_v48, %v8521_v48  ;;  %v1713_v18 = vmul.f32 %v8524_v5, %v8524_v5  ;;  %v1728_v9 = vadd.f32 %v1719_v47, %v1718_v51 }
 0xc6e   :  { %v1772_v34 = vpop.permute.xlu1 %1771 }
 0xc6f   :  { %1729 = vadd.xlane.f32.xlu1 %v1728_v9  ;;  %v1720_v41 = vmul.f32 %v1712_v16, %v7312_v12  ;;  %v1721_v4 = vmul.f32 %v1713_v18, %v7314_v13 }
 0xc70   :  { %v1762_v62 = vpop.permute.xlu0 %1761 }
 0xc71   :  { %v1731_v49 = vadd.f32 %v1721_v4, %v1720_v41 }
 0xc73   :  { %1732 = vadd.xlane.f32.xlu0 %v1731_v49 }
 0xc74   :  { %v1767_v36 = vpop.permute.xlu0 %1766 }
 0xc80   :  { %1799 = vperm.xlu1 %6171, %v5975_v40  }
 0xc89   :  { %1794 = vperm.xlu0 %6172, %v5974_v26  }
 0xcf4   :  { %v1724_v42 = vpop.xlane.xlu1 %1723 }
 0xcf5   :  { %v1734_v44 = vmul.f32 %v1724_v42, %v7343_v46 }
 0xcf6   :  { %v1727_v25 = vpop.xlane.xlu0 %1726 }
 0xcf7   :  { %v1738_v30 = vadd.f32 1e-05, %v1734_v44  ;;  %v1735_v24 = vmul.f32 %v1727_v25, %v7343_v46 }
 0xcf9   :  { %6861 = vrsqrt.f32 %v1738_v30  ;;  %v1739_v19 = vadd.f32 1e-05, %v1735_v24 }
 0xcfb   :  { %6863 = vrsqrt.f32 %v1739_v19 }
 0xcfc   :  { %v1730_v20 = vpop.xlane.xlu1 %1729 }
 0xcfd   :  { %v1736_v22 = vmul.f32 %v1730_v20, %v7343_v46 }
 0xcff   :  { %v1740_v54 = vadd.f32 1e-05, %v1736_v22 }
 0xd00   :  { %v1733_v59 = vpop.xlane.xlu0 %1732 }
 0xd01   :  { %6865 = vrsqrt.f32 %v1740_v54  ;;  %v1737_v37 = vmul.f32 %v1733_v59, %v7343_v46  ;;  %v1800_v59 = vpop.permute.xlu1 %1799 }
 0xd03   :  { %v6862_v7 = vpop.eup %6861  ;;  %v1741_v11 = vadd.f32 1e-05, %v1737_v37 }
 0xd04   :  { %v1746_v50 = vmul.f32 %v6862_v7, %v8484_v27  ;;  %v1747_v38 = vmul.f32 %v6862_v7, %v8487_v45 }
 0xd05   :  { %v6864_v56 = vpop.eup %6863  ;;  %6867 = vrsqrt.f32 %v1741_v11 }
 0xd06   :  { %v1774_v8 = vmul.f32 %v1757_v53, %v1746_v50  ;;  %v1775_v10 = vmul.f32 %v1757_v53, %v1747_v38  ;;  %v1748_v23 = vmul.f32 %v6864_v56, %v8495_v58  ;;  %v1749_v43 = vmul.f32 %v6864_v56, %v8498_v60 }
 0xd08   :  { %v8548_v39 = vadd.f32 %v1785_v15, %v1774_v8  ;;  %v8550_v17 = vadd.f32 %v1785_v15, %v1775_v10  ;;  %v1776_v14 = vmul.f32 %v1762_v62, %v1748_v23  ;;  %v1777_v61 = vmul.f32 %v1762_v62, %v1749_v43 }
 0xd0a   :  { %v8552_v51 = vadd.f32 %v1790_v2, %v1776_v14  ;;  %v8554_v47 = vadd.f32 %v1790_v2, %v1777_v61  ;;  %v1811_v27 = vmul.f32 %v8550_v17, %v8550_v17  ;;  %v1810_v45 = vmul.f32 %v8548_v39, %v8548_v39  ;;  %v1795_v2 = vpop.permute.xlu0 %1794 }
 0xd0b   :  { %v6866_v16 = vpop.eup %6865 }
 0xd0c   :  { %v1750_v58 = vmul.f32 %v6866_v16, %v8510_v63  ;;  %v1751_v60 = vmul.f32 %v6866_v16, %v8513_v31  ;;  %v1813_v18 = vmul.f32 %v8554_v47, %v8554_v47  ;;  %v1819_v9 = vmul.f32 %v1811_v27, %v8550_v17 }
 0xd0d   :  { %v1812_v41 = vmul.f32 %v8552_v51, %v8552_v51  ;;  %v1818_v4 = vmul.f32 %v1810_v45, %v8548_v39 }
 0xd0e   :  { %v1778_v49 = vmul.f32 %v1767_v36, %v1750_v58  ;;  %v1779_v40 = vmul.f32 %v1767_v36, %v1751_v60  ;;  %v1821_v26 = vmul.f32 %v1813_v18, %v8554_v47  ;;  %v1827_v53 = vmul.f32 0.044715, %v1819_v9 }
 0xd0f   :  { %v6868_v15 = vpop.eup %6867  ;;  %v1820_v63 = vmul.f32 %v1812_v41, %v8552_v51  ;;  %v1826_v31 = vmul.f32 0.044715, %v1818_v4 }
 0xd10   :  { %v1752_v62 = vmul.f32 %v6868_v15, %v8521_v48  ;;  %v1753_v42 = vmul.f32 %v6868_v15, %v8524_v5  ;;  %v8572_v44 = vadd.f32 %v1795_v2, %v1778_v49  ;;  %v8574_v25 = vadd.f32 %v1795_v2, %v1779_v40 }
 0xd11   :  { %v1829_v30 = vmul.f32 0.044715, %v1821_v26  ;;  %v1835_v24 = vadd.f32 %v1827_v53, %v8550_v17  ;;  %v1828_v36 = vmul.f32 0.044715, %v1820_v63  ;;  %v1834_v19 = vadd.f32 %v1826_v31, %v8548_v39 }
 0xd12   :  { %v1780_v20 = vmul.f32 %v1772_v34, %v1752_v62  ;;  %v1781_v22 = vmul.f32 %v1772_v34, %v1753_v42  ;;  %v1814_v54 = vmul.f32 %v8572_v44, %v8572_v44  ;;  %v1815_v48 = vmul.f32 %v8574_v25, %v8574_v25 }
 0xd13   :  { %v1837_v5 = vadd.f32 %v1829_v30, %v8554_v47  ;;  %v1843_v37 = vmul.f32 0.7978846, %v1835_v24  ;;  %v1836_v7 = vadd.f32 %v1828_v36, %v8552_v51  ;;  %v1842_v11 = vmul.f32 0.7978846, %v1834_v19 }
 0xd14   :  { %v8584_v50 = vadd.f32 %v1800_v59, %v1780_v20  ;;  %v8586_v38 = vadd.f32 %v1800_v59, %v1781_v22  ;;  %v1822_v56 = vmul.f32 %v1814_v54, %v8572_v44  ;;  %v1823_v34 = vmul.f32 %v1815_v48, %v8574_v25 }
 0xd15   :  { %v1845_v8 = vmul.f32 0.7978846, %v1837_v5  ;;  %6869 = vtanh.f32 %v1843_v37  ;;  %v1844_v10 = vmul.f32 0.7978846, %v1836_v7 }
 0xd16   :  { %v1830_v23 = vmul.f32 0.044715, %v1822_v56  ;;  %v1831_v43 = vmul.f32 0.044715, %v1823_v34  ;;  %6871 = vtanh.f32 %v1842_v11  ;;  %v1817_v14 = vmul.f32 %v8586_v38, %v8586_v38 }
 0xd17   :  { %6873 = vtanh.f32 %v1845_v8  ;;  %v1816_v61 = vmul.f32 %v8584_v50, %v8584_v50 }
 0xd18   :  { %v1838_v27 = vadd.f32 %v1830_v23, %v8572_v44  ;;  %v1839_v45 = vadd.f32 %v1831_v43, %v8574_v25  ;;  %6875 = vtanh.f32 %v1844_v10  ;;  %v1825_v16 = vmul.f32 %v1817_v14, %v8586_v38 }
 0xd19   :  { %v1824_v58 = vmul.f32 %v1816_v61, %v8584_v50 }
 0xd1a   :  { %v1846_v60 = vmul.f32 0.7978846, %v1838_v27  ;;  %v1847_v18 = vmul.f32 0.7978846, %v1839_v45  ;;  %v1833_v9 = vmul.f32 0.044715, %v1825_v16 }
 0xd1b   :  { %v1832_v41 = vmul.f32 0.044715, %v1824_v58 }
 0xd1c   :  { %6877 = vtanh.f32 %v1846_v60  ;;  %v1841_v4 = vadd.f32 %v1833_v9, %v8586_v38 }
 0xd1d   :  { %6879 = vtanh.f32 %v1847_v18  ;;  %v1840_v49 = vadd.f32 %v1832_v41, %v8584_v50 }
 0xd1e   :  { %v1849_v40 = vmul.f32 0.7978846, %v1841_v4 }
 0xd1f   :  { %v6870_v26 = vpop.eup %6869  ;;  %v1848_v53 = vmul.f32 0.7978846, %v1840_v49 }
 0xd20   :  { %v6872_v15 = vpop.eup %6871  ;;  %v1859_v2 = vadd.f32 1.0, %v6870_v26  ;;  %6881 = vtanh.f32 %v1849_v40 }
 0xd21   :  { %v6874_v63 = vpop.eup %6873  ;;  %v1858_v31 = vadd.f32 1.0, %v6872_v15  ;;  %6883 = vtanh.f32 %v1848_v53  ;;  %v5981_v53 = vld [vmem:[%s11429_s3 + $0x48] sm:$0xff]  ;;  %v5980_v15 = vld [vmem:[%s11429_s3 + $0x40] sm:$0xff] }
 0xd22   :  { %v6876_v62 = vpop.eup %6875  ;;  %v1861_v42 = vadd.f32 1.0, %v6874_v63  ;;  %v1867_v30 = vmul.f32 0.5, %v1859_v2  ;;  %v5983_v2 = vld [vmem:[%s11429_s3 + $0x58] sm:$0xff]  ;;  %v5982_v63 = vld [vmem:[%s11429_s3 + $0x50] sm:$0xff] }
 0xd23   :  { %v1860_v24 = vadd.f32 1.0, %v6876_v62  ;;  %v1866_v36 = vmul.f32 0.5, %v1858_v31 }
 0xd24   :  { %v1869_v19 = vmul.f32 0.5, %v1861_v42  ;;  %v1875_v20 = vmul.f32 %v1867_v30, %v8550_v17 }
 0xd25   :  { %v1868_v22 = vmul.f32 0.5, %v1860_v24  ;;  %v1874_v54 = vmul.f32 %v1866_v36, %v8548_v39 }
 0xd26   :  { %v6878_v48 = vpop.eup %6877  ;;  %v1877_v59 = vmul.f32 %v1869_v19, %v8554_v47  ;;  %v8605_v56 = vmul.f32 %v1875_v20, %v7314_v13 }
 0xd27   :  { %v6880_v5 = vpop.eup %6879  ;;  %v1862_v37 = vadd.f32 1.0, %v6878_v48  ;;  %v1876_v7 = vmul.f32 %v1868_v22, %v8552_v51  ;;  %v8611_v8 = vmul.f32 %v1874_v54, %v7312_v12 }
 0xd28   :  { %v1863_v11 = vadd.f32 1.0, %v6880_v5  ;;  %v8608_v34 = vmul.f32 %v1877_v59, %v7314_v13 }
 0xd29   :  { %v8614_v17 = vmul.f32 %v1876_v7, %v7312_v12  ;;  %v1870_v10 = vmul.f32 0.5, %v1862_v37 }
 0xd2a   :  { %v6882_v39 = vpop.eup %6881  ;;  %v1871_v47 = vmul.f32 0.5, %v1863_v11  ;;  %v6338_v23 = vpack.i.bf16 %v8608_v34, %v8605_v56  ;;  %v1955_v51 = vpack.c.bf16 %v8608_v34, %v8605_v56 }
 0xd2b   :  { %v6884_v43 = vpop.eup %6883  ;;  %v6333_v14 = vpack.i.bf16 %v8614_v17, %v8611_v8  ;;  %v1865_v61 = vadd.f32 1.0, %v6882_v39  ;;  %v1954_v45 = vpack.c.bf16 %v8614_v17, %v8611_v8  ;;  %v1878_v60 = vmul.f32 %v1870_v10, %v8572_v44 }
 0xd2c   :  { %6339 = vrot.lane.b32.xlu1 %v6338_v23, %s11410_s25  ;;  %v1864_v27 = vadd.f32 1.0, %v6884_v43  ;;  %v1879_v16 = vmul.f32 %v1871_v47, %v8574_v25 }
 0xd2d   :  { %6334 = vrot.lane.b32.xlu0 %v6333_v14, %s11410_s25  ;;  %v1873_v58 = vmul.f32 0.5, %v1865_v61  ;;  %v8637_v40 = vmul.f32 %v1878_v60, %v7312_v12 }
 0xd2e   :  { %v1872_v18 = vmul.f32 0.5, %v1864_v27  ;;  %v8631_v4 = vmul.f32 %v1879_v16, %v7314_v13 }
 0xd2f   :  { %v1881_v9 = vmul.f32 %v1873_v58, %v8586_v38 }
 0xd30   :  { %v1880_v41 = vmul.f32 %v1872_v18, %v8584_v50 }
 0xd31   :  { %v8634_v49 = vmul.f32 %v1881_v9, %v7314_v13 }
 0xd32   :  { %v8640_v25 = vmul.f32 %v1880_v41, %v7312_v12 }
 0xd33   :  { %v6348_v44 = vpack.i.bf16 %v8634_v49, %v8631_v4  ;;  %v1957_v38 = vpack.c.bf16 %v8634_v49, %v8631_v4 }
 0xd34   :  { %v6343_v50 = vpack.i.bf16 %v8640_v25, %v8637_v40  ;;  %v1956_v26 = vpack.c.bf16 %v8640_v25, %v8637_v40  ;;  %v6741_v40 = vld [vmem:[%s11430_s26 + $0x20] sm:$0xff]   ;;  %v6742_v25 = vld [vmem:[%s11430_s26 + $0x28] sm:$0xff]  }
 0xd35   :  { %6349 = vrot.lane.b32.xlu1 %v6348_v44, %s11410_s25 }
 0xd36   :  { %6344 = vrot.lane.b32.xlu0 %v6343_v50, %s11410_s25 }
 0xd39   :  { %6359 = vrot.lane.b32.xlu1 %v6338_v23, %s11408_s1 }
 0xd3a   :  { %6354 = vrot.lane.b32.xlu0 %v6333_v14, %s11408_s1 }
 0xd3d   :  { %6369 = vrot.lane.b32.xlu1 %v6348_v44, %s11408_s1 }
 0xd3e   :  { %6364 = vrot.lane.b32.xlu0 %v6343_v50, %s11408_s1 }
 0xd41   :  { %1969 = vperm.xlu1 %6171, %v5981_v53  }
 0xd42   :  { %1964 = vperm.xlu0 %6172, %v5980_v15  }
 0xd45   :  { %1979 = vperm.xlu1 %6171, %v5983_v2  }
 0xd46   :  { %1974 = vperm.xlu0 %6172, %v5982_v63  }
 0xd9e   :  { %v6340_v31 = vpop.permute.xlu1 %6339 }
 0xd9f   :  { %v6342_v62 = vunpack.i.h.bf16 %v6340_v31  ;;  %v6341_v42 = vunpack.i.l.bf16 %v6340_v31  ;;  %v6335_v30 = vpop.permute.xlu0 %6334 }
 0xda0   :  { %v6337_v24 = vunpack.i.h.bf16 %v6335_v30  ;;  %v6336_v36 = vunpack.i.l.bf16 %v6335_v30 }
 0xda2   :  { %v1922_v19 = vsel %vm1916_vm6, %v6342_v62, %v6337_v24  ;;  %v1921_v20 = vsel %vm1916_vm6, %v6341_v42, %v6336_v36  ;;  %v1917_v22 = vsel %vm1916_vm6, %v6336_v36, %v6341_v42  ;;  %v1918_v54 = vsel %vm1916_vm6, %v6337_v24, %v6342_v62 }
 0xda3   :  { %v1951_v48 = vpack.c.bf16 %v1918_v54, %v1917_v22  ;;  %v1950_v59 = vpack.c.bf16 %v1922_v19, %v1921_v20 }
 0xda5   :  { %1998 = vmatprep.subr.bf16.mxu0 %v1951_v48 }
 0xda6   :  { %1999 = vmatpush1.bf16.msra.mxu0 %v1950_v59 }
 0xda7   :  { %v6350_v5 = vpop.permute.xlu1 %6349 }
 0xda8   :  { %v6352_v37 = vunpack.i.h.bf16 %v6350_v5  ;;  %v6351_v7 = vunpack.i.l.bf16 %v6350_v5  ;;  %v6345_v11 = vpop.permute.xlu0 %6344 }
 0xda9   :  { %v6347_v39 = vunpack.i.h.bf16 %v6345_v11  ;;  %v6346_v10 = vunpack.i.l.bf16 %v6345_v11 }
 0xdab   :  { %v1924_v47 = vsel %vm1916_vm6, %v6352_v37, %v6347_v39  ;;  %v1923_v23 = vsel %vm1916_vm6, %v6351_v7, %v6346_v10  ;;  %v6360_v43 = vpop.permute.xlu1 %6359  ;;  %v1919_v14 = vsel %vm1916_vm6, %v6346_v10, %v6351_v7  ;;  %v1920_v61 = vsel %vm1916_vm6, %v6347_v39, %v6352_v37 }
 0xdac   :  { %v6355_v27 = vpop.permute.xlu0 %6354  ;;  %v1953_v16 = vpack.c.bf16 %v1920_v61, %v1919_v14  ;;  %v1952_v58 = vpack.c.bf16 %v1924_v47, %v1923_v23  ;;  %v6362_v60 = vunpack.i.h.bf16 %v6360_v43  ;;  %v6361_v18 = vunpack.i.l.bf16 %v6360_v43 }
 0xdad   :  { %v6357_v9 = vunpack.i.h.bf16 %v6355_v27  ;;  %v6356_v41 = vunpack.i.l.bf16 %v6355_v27 }
 0xdae   :  { %2000 = vmatprep.subr.bf16.mxu0 %v1953_v16 }
 0xdaf   :  { %2001 = vmatpush1.bf16.msra.mxu0 %v1952_v58  ;;  %v6370_v44 = vpop.permute.xlu1 %6369  ;;  %v1946_v53 = vsel %vm1941_vm7, %v6361_v18, %v6356_v41  ;;  %v1947_v15 = vsel %vm1941_vm7, %v6362_v60, %v6357_v9  ;;  %v1943_v56 = vsel %vm1941_vm7, %v6357_v9, %v6362_v60  ;;  %v1942_v34 = vsel %vm1941_vm7, %v6356_v41, %v6361_v18 }
 0xdb0   :  { %v6365_v50 = vpop.permute.xlu0 %6364  ;;  %2002 = vmatprep.subr.bf16.mxu0 %v1955_v51  ;;  %v6372_v2 = vunpack.i.h.bf16 %v6370_v44  ;;  %v6371_v63 = vunpack.i.l.bf16 %v6370_v44  ;;  %v1959_v51 = vpack.c.bf16 %v1947_v15, %v1946_v53  ;;  %v1958_v17 = vpack.c.bf16 %v1943_v56, %v1942_v34  ;;  %v5989_v56 = vld [vmem:[%s11379_s6 + $0x48] sm:$0xff]  ;;  %v5990_v34 = vld [vmem:[%s11379_s6 + $0x50] sm:$0xff] }
 0xdb1   :  { %v6367_v31 = vunpack.i.h.bf16 %v6365_v50  ;;  %v6366_v62 = vunpack.i.l.bf16 %v6365_v50 }
 0xdb3   :  { %2003 = vmatpush1.bf16.msra.mxu0 %v1954_v45  ;;  %v1948_v42 = vsel %vm1941_vm7, %v6371_v63, %v6366_v62  ;;  %v1949_v8 = vsel %vm1941_vm7, %v6372_v2, %v6367_v31  ;;  %v1945_v45 = vsel %vm1941_vm7, %v6367_v31, %v6372_v2  ;;  %v1944_v4 = vsel %vm1941_vm7, %v6366_v62, %v6371_v63  ;;  %v5988_v2 = vld [vmem:[%s11379_s6 + $0x40] sm:$0xff]  ;;  %v5993_v31 = vld [vmem:[%s11380_s7 + $0x48] sm:$0xff]  ;;  %v5991_v62 = vld [vmem:[%s11379_s6 + $0x58] sm:$0xff] }
 0xdb4   :  { %2004 = vmatprep.subr.bf16.mxu0 %v1957_v38  ;;  %v1961_v49 = vpack.c.bf16 %v1949_v8, %v1948_v42  ;;  %v1960_v38 = vpack.c.bf16 %v1945_v45, %v1944_v4  ;;  %v5992_v63 = vld [vmem:[%s11380_s7 + $0x40] sm:$0xff] }
 0xdb7   :  { %2005 = vmatpush1.bf16.msra.mxu0 %v1956_v26 }
 0xdb8   :  { %2006 = vmatprep.subr.bf16.mxu0 %v1959_v51 }
 0xdbb   :  { %2007 = vmatpush1.bf16.msra.mxu0 %v1958_v17 }
 0xdbc   :  { %2008 = vmatprep.subr.bf16.mxu0 %v1961_v49 }
 0xdbf   :  { %2009 = vmatpush1.bf16.msra.mxu0 %v1960_v38 }
 0xdc0   :  { %v1970_v19 = vpop.permute.xlu1 %1969 }
 0xdc1   :  { %v1965_v26 = vpop.permute.xlu0 %1964 }
 0xdc2   :  { %5986 = vmatmul.mubr.msk.bf16.vlgmr.msra.gmra.mrb[16].mxu0 %vm435_vm3, %v6741_v40 }
 0xdc3   :  { %2040 = vmatprep.mubr.bf16.mxu0 %v7153_v32 }
 0xdc4   :  { %v1980_v61 = vpop.permute.xlu1 %1979 }
 0xdc5   :  { %v1975_v10 = vpop.permute.xlu0 %1974 }
 0xdca   :  { %5987 = vmatmul.mubr.msk.bf16.gmra.mrb[20].mxu0 %vm435_vm3, %v6742_v25 }
 0xdcb   :  { %2808 = vmatprep.mubr.bf16.mxu0 %v7153_v32 }
 0xe95   :  { %v2032_v30 = vpop.f32.mrb[16].mxu0 }
 0xe96   :  { %v2033_v24 = vadd.f32 %v2032_v30, %v1965_v26  ;;  %v2034_v36 = vpop.f32.mrb[17].mxu0 }
 0xe97   :  { %v2035_v20 = vadd.f32 %v2034_v36, %v1965_v26  ;;  %v2036_v22 = vpop.f32.mrb[18].mxu0 }
 0xe98   :  { %v2061_v54 = vmul.f32 %v2033_v24, %v7312_v12  ;;  %v2037_v48 = vadd.f32 %v2036_v22, %v1970_v19  ;;  %v2038_v59 = vpop.f32.mrb[19].mxu0 }
 0xe99   :  { %v2062_v5 = vmul.f32 %v2035_v20, %v7314_v13  ;;  %v2039_v37 = vadd.f32 %v2038_v59, %v1970_v19 }
 0xe9a   :  { %v2063_v7 = vmul.f32 %v2037_v48, %v7312_v12 }
 0xe9b   :  { %v2064_v11 = vmul.f32 %v2039_v37, %v7314_v13  ;;  %v2069_v39 = vadd.f32 %v2062_v5, %v2061_v54 }
 0xe9d   :  { %v2042_v47 = vpop.f32.mrb[20].mxu0  ;;  %2070 = vadd.xlane.f32.xlu0 %v2069_v39  ;;  %v2072_v23 = vadd.f32 %v2064_v11, %v2063_v7 }
 0xe9e   :  { %v2043_v43 = vadd.f32 %v2042_v47, %v1975_v10  ;;  %v2044_v14 = vpop.f32.mrb[21].mxu0 }
 0xe9f   :  { %v2045_v27 = vadd.f32 %v2044_v14, %v1975_v10  ;;  %v2046_v16 = vpop.f32.mrb[22].mxu0  ;;  %2073 = vadd.xlane.f32.xlu1 %v2072_v23 }
 0xea0   :  { %v2065_v58 = vmul.f32 %v2043_v43, %v7312_v12  ;;  %v2047_v60 = vadd.f32 %v2046_v16, %v1980_v61  ;;  %v2048_v18 = vpop.f32.mrb[23].mxu0 }
 0xea1   :  { %v2066_v9 = vmul.f32 %v2045_v27, %v7314_v13  ;;  %v2049_v41 = vadd.f32 %v2048_v18, %v1980_v61 }
 0xea2   :  { %v2067_v44 = vmul.f32 %v2047_v60, %v7312_v12 }
 0xea3   :  { %v2068_v50 = vmul.f32 %v2049_v41, %v7314_v13  ;;  %v2075_v53 = vadd.f32 %v2066_v9, %v2065_v58  ;;  %v5995_v9 = vld [vmem:[%s11380_s7 + $0x58] sm:$0xff] }
 0xea5   :  { %2076 = vadd.xlane.f32.xlu0 %v2075_v53  ;;  %v2078_v15 = vadd.f32 %v2068_v50, %v2067_v44 }
 0xea9   :  { %2079 = vadd.xlane.f32.xlu0 %v2078_v15 }
 0xeb0   :  { %2143 = vperm.xlu1 %6171, %v5988_v2  }
 0xeb4   :  { %2171 = vperm.xlu1 %6171, %v5992_v63  }
 0xeb8   :  { %2176 = vperm.xlu1 %6171, %v5993_v31  }
 0xebc   :  { %2158 = vperm.xlu1 %6171, %v5991_v62  }
 0xebf   :  { %2148 = vperm.xlu0 %6172, %v5989_v56  }
 0xec3   :  { %2153 = vperm.xlu0 %6172, %v5990_v34  }
 0xf2a   :  { %v2071_v51 = vpop.xlane.xlu0 %2070 }
 0xf2b   :  { %v2081_v42 = vmul.f32 %v2071_v51, %v7343_v46 }
 0xf2c   :  { %v2074_v8 = vpop.xlane.xlu1 %2073 }
 0xf2d   :  { %v8751_v17 = vsub.f32 %v2033_v24, %v2081_v42  ;;  %v8753_v45 = vsub.f32 %v2035_v20, %v2081_v42  ;;  %v2082_v4 = vmul.f32 %v2074_v8, %v7343_v46 }
 0xf2f   :  { %v2093_v49 = vmul.f32 %v8751_v17, %v8751_v17  ;;  %v2094_v38 = vmul.f32 %v8753_v45, %v8753_v45  ;;  %v8760_v40 = vsub.f32 %v2037_v48, %v2082_v4  ;;  %v8762_v25 = vsub.f32 %v2039_v37, %v2082_v4 }
 0xf30   :  { %v2144_v44 = vpop.permute.xlu1 %2143 }
 0xf31   :  { %v2095_v26 = vmul.f32 %v8760_v40, %v8760_v40  ;;  %v2096_v30 = vmul.f32 %v8762_v25, %v8762_v25  ;;  %v2101_v24 = vmul.f32 %v2093_v49, %v7312_v12  ;;  %v2102_v36 = vmul.f32 %v2094_v38, %v7314_v13 }
 0xf32   :  { %v2077_v19 = vpop.xlane.xlu0 %2076 }
 0xf33   :  { %v2083_v20 = vmul.f32 %v2077_v19, %v7343_v46  ;;  %v2109_v22 = vadd.f32 %v2102_v36, %v2101_v24  ;;  %v2103_v54 = vmul.f32 %v2095_v26, %v7312_v12  ;;  %v2104_v48 = vmul.f32 %v2096_v30, %v7314_v13 }
 0xf34   :  { %v2172_v50 = vpop.permute.xlu1 %2171 }
 0xf35   :  { %v8773_v59 = vsub.f32 %v2043_v43, %v2083_v20  ;;  %v8775_v5 = vsub.f32 %v2045_v27, %v2083_v20  ;;  %2110 = vadd.xlane.f32.xlu1 %v2109_v22  ;;  %v2112_v37 = vadd.f32 %v2104_v48, %v2103_v54 }
 0xf36   :  { %v2080_v7 = vpop.xlane.xlu0 %2079 }
 0xf37   :  { %v2097_v11 = vmul.f32 %v8773_v59, %v8773_v59  ;;  %v2098_v39 = vmul.f32 %v8775_v5, %v8775_v5  ;;  %v2084_v10 = vmul.f32 %v2080_v7, %v7343_v46  ;;  %2113 = vadd.xlane.f32.xlu0 %v2112_v37 }
 0xf38   :  { %v2177_v53 = vpop.permute.xlu1 %2176 }
 0xf39   :  { %v8782_v47 = vsub.f32 %v2047_v60, %v2084_v10  ;;  %v8784_v23 = vsub.f32 %v2049_v41, %v2084_v10  ;;  %v2105_v43 = vmul.f32 %v2097_v11, %v7312_v12  ;;  %v2106_v14 = vmul.f32 %v2098_v39, %v7314_v13  ;;  %v5994_v41 = vld [vmem:[%s11380_s7 + $0x50] sm:$0xff] }
 0xf3b   :  { %v2099_v61 = vmul.f32 %v8782_v47, %v8782_v47  ;;  %v2100_v27 = vmul.f32 %v8784_v23, %v8784_v23  ;;  %v2115_v16 = vadd.f32 %v2106_v14, %v2105_v43 }
 0xf3c   :  { %v2159_v2 = vpop.permute.xlu1 %2158 }
 0xf3d   :  { %2116 = vadd.xlane.f32.xlu1 %v2115_v16  ;;  %v2107_v58 = vmul.f32 %v2099_v61, %v7312_v12  ;;  %v2108_v18 = vmul.f32 %v2100_v27, %v7314_v13 }
 0xf3e   :  { %v2149_v15 = vpop.permute.xlu0 %2148 }
 0xf3f   :  { %v2118_v60 = vadd.f32 %v2108_v18, %v2107_v58 }
 0xf41   :  { %2119 = vadd.xlane.f32.xlu0 %v2118_v60 }
 0xf42   :  { %v2154_v63 = vpop.permute.xlu0 %2153 }
 0xf4e   :  { %2186 = vperm.xlu1 %6171, %v5995_v9  }
 0xf57   :  { %2181 = vperm.xlu0 %6172, %v5994_v41  }
 0xfc2   :  { %v2111_v31 = vpop.xlane.xlu1 %2110 }
 0xfc3   :  { %v2121_v62 = vmul.f32 %v2111_v31, %v7343_v46 }
 0xfc4   :  { %v2114_v56 = vpop.xlane.xlu0 %2113 }
 0xfc5   :  { %v2125_v34 = vadd.f32 1e-05, %v2121_v62  ;;  %v2122_v51 = vmul.f32 %v2114_v56, %v7343_v46 }
 0xfc7   :  { %6885 = vrsqrt.f32 %v2125_v34  ;;  %v2126_v42 = vadd.f32 1e-05, %v2122_v51 }
 0xfc9   :  { %6887 = vrsqrt.f32 %v2126_v42 }
 0xfca   :  { %v2117_v8 = vpop.xlane.xlu1 %2116 }
 0xfcb   :  { %v2123_v4 = vmul.f32 %v2117_v8, %v7343_v46 }
 0xfcd   :  { %v2127_v49 = vadd.f32 1e-05, %v2123_v4 }
 0xfce   :  { %v2120_v38 = vpop.xlane.xlu0 %2119 }
 0xfcf   :  { %6889 = vrsqrt.f32 %v2127_v49  ;;  %v2124_v26 = vmul.f32 %v2120_v38, %v7343_v46  ;;  %v2187_v38 = vpop.permute.xlu1 %2186 }
 0xfd1   :  { %v6886_v30 = vpop.eup %6885  ;;  %v2128_v24 = vadd.f32 1e-05, %v2124_v26 }
 0xfd2   :  { %v2133_v36 = vmul.f32 %v6886_v30, %v8751_v17  ;;  %v2134_v19 = vmul.f32 %v6886_v30, %v8753_v45 }
 0xfd3   :  { %v6888_v20 = vpop.eup %6887  ;;  %6891 = vrsqrt.f32 %v2128_v24 }
 0xfd4   :  { %v2161_v22 = vmul.f32 %v2144_v44, %v2133_v36  ;;  %v2162_v54 = vmul.f32 %v2144_v44, %v2134_v19  ;;  %v2135_v48 = vmul.f32 %v6888_v20, %v8760_v40  ;;  %v2136_v37 = vmul.f32 %v6888_v20, %v8762_v25 }
 0xfd6   :  { %v8808_v7 = vadd.f32 %v2172_v50, %v2161_v22  ;;  %v8810_v11 = vadd.f32 %v2172_v50, %v2162_v54  ;;  %v2163_v39 = vmul.f32 %v2149_v15, %v2135_v48  ;;  %v2164_v10 = vmul.f32 %v2149_v15, %v2136_v37 }
 0xfd8   :  { %v8812_v43 = vadd.f32 %v2177_v53, %v2163_v39  ;;  %v8814_v14 = vadd.f32 %v2177_v53, %v2164_v10  ;;  %v2198_v17 = vmul.f32 %v8810_v11, %v8810_v11  ;;  %v2197_v45 = vmul.f32 %v8808_v7, %v8808_v7  ;;  %v2182_v53 = vpop.permute.xlu0 %2181 }
 0xfd9   :  { %v6890_v61 = vpop.eup %6889 }
 0xfda   :  { %v2137_v40 = vmul.f32 %v6890_v61, %v8773_v59  ;;  %v2138_v25 = vmul.f32 %v6890_v61, %v8775_v5  ;;  %v2200_v27 = vmul.f32 %v8814_v14, %v8814_v14  ;;  %v2206_v16 = vmul.f32 %v2198_v17, %v8810_v11 }
 0xfdb   :  { %v2199_v58 = vmul.f32 %v8812_v43, %v8812_v43  ;;  %v2205_v18 = vmul.f32 %v2197_v45, %v8808_v7 }
 0xfdc   :  { %v2165_v60 = vmul.f32 %v2154_v63, %v2137_v40  ;;  %v2166_v9 = vmul.f32 %v2154_v63, %v2138_v25  ;;  %v2208_v41 = vmul.f32 %v2200_v27, %v8814_v14  ;;  %v2214_v44 = vmul.f32 0.044715, %v2206_v16 }
 0xfdd   :  { %v6892_v50 = vpop.eup %6891  ;;  %v2207_v59 = vmul.f32 %v2199_v58, %v8812_v43  ;;  %v2213_v5 = vmul.f32 0.044715, %v2205_v18 }
 0xfde   :  { %v2139_v15 = vmul.f32 %v6892_v50, %v8782_v47  ;;  %v2140_v31 = vmul.f32 %v6892_v50, %v8784_v23  ;;  %v8832_v62 = vadd.f32 %v2182_v53, %v2165_v60  ;;  %v8834_v56 = vadd.f32 %v2182_v53, %v2166_v9 }
 0xfdf   :  { %v2216_v34 = vmul.f32 0.044715, %v2208_v41  ;;  %v2222_v51 = vadd.f32 %v2214_v44, %v8810_v11  ;;  %v2215_v63 = vmul.f32 0.044715, %v2207_v59  ;;  %v2221_v42 = vadd.f32 %v2213_v5, %v8808_v7 }
 0xfe0   :  { %v2167_v8 = vmul.f32 %v2159_v2, %v2139_v15  ;;  %v2168_v4 = vmul.f32 %v2159_v2, %v2140_v31  ;;  %v2201_v49 = vmul.f32 %v8832_v62, %v8832_v62  ;;  %v2202_v47 = vmul.f32 %v8834_v56, %v8834_v56 }
 0xfe1   :  { %v2224_v23 = vadd.f32 %v2216_v34, %v8814_v14  ;;  %v2230_v26 = vmul.f32 0.7978846, %v2222_v51  ;;  %v2223_v30 = vadd.f32 %v2215_v63, %v8812_v43  ;;  %v2229_v24 = vmul.f32 0.7978846, %v2221_v42 }
 0xfe2   :  { %v8844_v36 = vadd.f32 %v2187_v38, %v2167_v8  ;;  %v8846_v19 = vadd.f32 %v2187_v38, %v2168_v4  ;;  %v2209_v20 = vmul.f32 %v2201_v49, %v8832_v62  ;;  %v2210_v2 = vmul.f32 %v2202_v47, %v8834_v56 }
 0xfe3   :  { %v2232_v22 = vmul.f32 0.7978846, %v2224_v23  ;;  %6893 = vtanh.f32 %v2230_v26  ;;  %v2231_v54 = vmul.f32 0.7978846, %v2223_v30 }
 0xfe4   :  { %v2217_v48 = vmul.f32 0.044715, %v2209_v20  ;;  %v2218_v37 = vmul.f32 0.044715, %v2210_v2  ;;  %6895 = vtanh.f32 %v2229_v24  ;;  %v2204_v39 = vmul.f32 %v8846_v19, %v8846_v19 }
 0xfe5   :  { %6897 = vtanh.f32 %v2232_v22  ;;  %v2203_v10 = vmul.f32 %v8844_v36, %v8844_v36 }
 0xfe6   :  { %v2225_v17 = vadd.f32 %v2217_v48, %v8832_v62  ;;  %v2226_v45 = vadd.f32 %v2218_v37, %v8834_v56  ;;  %6899 = vtanh.f32 %v2231_v54  ;;  %v2212_v61 = vmul.f32 %v2204_v39, %v8846_v19 }
 0xfe7   :  { %v2211_v40 = vmul.f32 %v2203_v10, %v8844_v36 }
 0xfe8   :  { %v2233_v25 = vmul.f32 0.7978846, %v2225_v17  ;;  %v2234_v27 = vmul.f32 0.7978846, %v2226_v45  ;;  %v2220_v16 = vmul.f32 0.044715, %v2212_v61 }
 0xfe9   :  { %v2219_v58 = vmul.f32 0.044715, %v2211_v40 }
 0xfea   :  { %6901 = vtanh.f32 %v2233_v25  ;;  %v2228_v18 = vadd.f32 %v2220_v16, %v8846_v19 }
 0xfeb   :  { %6903 = vtanh.f32 %v2234_v27  ;;  %v2227_v60 = vadd.f32 %v2219_v58, %v8844_v36 }
 0xfec   :  { %v2236_v9 = vmul.f32 0.7978846, %v2228_v18 }
 0xfed   :  { %v6894_v41 = vpop.eup %6893  ;;  %v2235_v44 = vmul.f32 0.7978846, %v2227_v60 }
 0xfee   :  { %v6896_v50 = vpop.eup %6895  ;;  %v2246_v53 = vadd.f32 1.0, %v6894_v41  ;;  %6905 = vtanh.f32 %v2236_v9 }
 0xfef   :  { %v6898_v59 = vpop.eup %6897  ;;  %v2245_v5 = vadd.f32 1.0, %v6896_v50  ;;  %6907 = vtanh.f32 %v2235_v44  ;;  %v6001_v44 = vld [vmem:[%s11382_s9 + $0x48] sm:$0xff]  ;;  %v6000_v50 = vld [vmem:[%s11382_s9 + $0x40] sm:$0xff] }
 0xff0   :  { %v6900_v15 = vpop.eup %6899  ;;  %v2248_v31 = vadd.f32 1.0, %v6898_v59  ;;  %v2254_v34 = vmul.f32 0.5, %v2246_v53  ;;  %v6003_v53 = vld [vmem:[%s11382_s9 + $0x58] sm:$0xff]  ;;  %v6002_v59 = vld [vmem:[%s11382_s9 + $0x50] sm:$0xff] }
 0xff1   :  { %v2247_v51 = vadd.f32 1.0, %v6900_v15  ;;  %v2253_v63 = vmul.f32 0.5, %v2245_v5 }
 0xff2   :  { %v2256_v42 = vmul.f32 0.5, %v2248_v31  ;;  %v2262_v8 = vmul.f32 %v2254_v34, %v8810_v11 }
 0xff3   :  { %v2255_v4 = vmul.f32 0.5, %v2247_v51  ;;  %v2261_v49 = vmul.f32 %v2253_v63, %v8808_v7 }
 0xff4   :  { %v6902_v47 = vpop.eup %6901  ;;  %v2264_v38 = vmul.f32 %v2256_v42, %v8814_v14  ;;  %v8865_v20 = vmul.f32 %v2262_v8, %v7314_v13 }
 0xff5   :  { %v6904_v23 = vpop.eup %6903  ;;  %v2249_v26 = vadd.f32 1.0, %v6902_v47  ;;  %v2263_v30 = vmul.f32 %v2255_v4, %v8812_v43  ;;  %v8871_v22 = vmul.f32 %v2261_v49, %v7312_v12 }
 0xff6   :  { %v2250_v24 = vadd.f32 1.0, %v6904_v23  ;;  %v8868_v2 = vmul.f32 %v2264_v38, %v7314_v13 }
 0xff7   :  { %v8874_v11 = vmul.f32 %v2263_v30, %v7312_v12  ;;  %v2257_v54 = vmul.f32 0.5, %v2249_v26 }
 0xff8   :  { %v6906_v7 = vpop.eup %6905  ;;  %v2258_v14 = vmul.f32 0.5, %v2250_v24  ;;  %v6378_v48 = vpack.i.bf16 %v8868_v2, %v8865_v20  ;;  %v2340_v43 = vpack.c.bf16 %v8868_v2, %v8865_v20 }
 0xff9   :  { %v6908_v37 = vpop.eup %6907  ;;  %v6373_v39 = vpack.i.bf16 %v8874_v11, %v8871_v22  ;;  %v2252_v10 = vadd.f32 1.0, %v6906_v7  ;;  %v2339_v45 = vpack.c.bf16 %v8874_v11, %v8871_v22  ;;  %v2265_v25 = vmul.f32 %v2257_v54, %v8832_v62 }
 0xffa   :  { %6379 = vrot.lane.b32.xlu1 %v6378_v48, %s11433_s27  ;;  %v2251_v17 = vadd.f32 1.0, %v6908_v37  ;;  %v2266_v61 = vmul.f32 %v2258_v14, %v8834_v56 }
 0xffb   :  { %6374 = vrot.lane.b32.xlu0 %v6373_v39, %s11433_s27  ;;  %v2260_v40 = vmul.f32 0.5, %v2252_v10  ;;  %v8897_v9 = vmul.f32 %v2265_v25, %v7312_v12 }
 0xffc   :  { %v2259_v27 = vmul.f32 0.5, %v2251_v17  ;;  %v8891_v18 = vmul.f32 %v2266_v61, %v7314_v13 }
 0xffd   :  { %v2268_v16 = vmul.f32 %v2260_v40, %v8846_v19 }
 0xffe   :  { %v2267_v58 = vmul.f32 %v2259_v27, %v8844_v36 }
 0xfff   :  { %v8894_v60 = vmul.f32 %v2268_v16, %v7314_v13 }
0x1000   :  { %v8900_v56 = vmul.f32 %v2267_v58, %v7312_v12 }
0x1001   :  { %v6388_v62 = vpack.i.bf16 %v8894_v60, %v8891_v18  ;;  %v2342_v19 = vpack.c.bf16 %v8894_v60, %v8891_v18 }
0x1002   :  { %v6383_v36 = vpack.i.bf16 %v8900_v56, %v8897_v9  ;;  %v2341_v41 = vpack.c.bf16 %v8900_v56, %v8897_v9  ;;  %v6743_v9 = vld [vmem:[%s11381_s8 + $0x20] sm:$0xff]   ;;  %v6744_v56 = vld [vmem:[%s11381_s8 + $0x28] sm:$0xff]  }
0x1003   :  { %6389 = vrot.lane.b32.xlu1 %v6388_v62, %s11433_s27 }
0x1004   :  { %6384 = vrot.lane.b32.xlu0 %v6383_v36, %s11433_s27 }
0x1007   :  { %6399 = vrot.lane.b32.xlu1 %v6378_v48, %s11434_s28 }
0x1008   :  { %6394 = vrot.lane.b32.xlu0 %v6373_v39, %s11434_s28 }
0x100b   :  { %6409 = vrot.lane.b32.xlu1 %v6388_v62, %s11434_s28 }
0x100c   :  { %6404 = vrot.lane.b32.xlu0 %v6383_v36, %s11434_s28 }
0x100f   :  { %2354 = vperm.xlu1 %6171, %v6001_v44  }
0x1010   :  { %2349 = vperm.xlu0 %6172, %v6000_v50  }
0x1013   :  { %2364 = vperm.xlu1 %6171, %v6003_v53  }
0x1014   :  { %2359 = vperm.xlu0 %6172, %v6002_v59  }
0x106c   :  { %v6380_v5 = vpop.permute.xlu1 %6379 }
0x106d   :  { %v6382_v15 = vunpack.i.h.bf16 %v6380_v5  ;;  %v6381_v31 = vunpack.i.l.bf16 %v6380_v5  ;;  %v6375_v34 = vpop.permute.xlu0 %6374 }
0x106e   :  { %v6377_v51 = vunpack.i.h.bf16 %v6375_v34  ;;  %v6376_v63 = vunpack.i.l.bf16 %v6375_v34 }
0x1070   :  { %v2308_v42 = vsel %vm1916_vm6, %v6382_v15, %v6377_v51  ;;  %v2307_v8 = vsel %vm1916_vm6, %v6381_v31, %v6376_v63  ;;  %v2303_v4 = vsel %vm1916_vm6, %v6376_v63, %v6381_v31  ;;  %v2304_v49 = vsel %vm1916_vm6, %v6377_v51, %v6382_v15 }
0x1071   :  { %v2336_v47 = vpack.c.bf16 %v2304_v49, %v2303_v4  ;;  %v2335_v38 = vpack.c.bf16 %v2308_v42, %v2307_v8 }
0x1073   :  { %2383 = vmatprep.subr.bf16.mxu1 %v2336_v47 }
0x1074   :  { %2384 = vmatpush1.bf16.msra.mxu1 %v2335_v38 }
0x1075   :  { %v6390_v23 = vpop.permute.xlu1 %6389 }
0x1076   :  { %v6392_v26 = vunpack.i.h.bf16 %v6390_v23  ;;  %v6391_v30 = vunpack.i.l.bf16 %v6390_v23  ;;  %v6385_v24 = vpop.permute.xlu0 %6384 }
0x1077   :  { %v6387_v7 = vunpack.i.h.bf16 %v6385_v24  ;;  %v6386_v54 = vunpack.i.l.bf16 %v6385_v24 }
0x1079   :  { %v2310_v14 = vsel %vm1916_vm6, %v6392_v26, %v6387_v7  ;;  %v2309_v48 = vsel %vm1916_vm6, %v6391_v30, %v6386_v54  ;;  %v6400_v37 = vpop.permute.xlu1 %6399  ;;  %v2305_v39 = vsel %vm1916_vm6, %v6386_v54, %v6391_v30  ;;  %v2306_v10 = vsel %vm1916_vm6, %v6387_v7, %v6392_v26 }
0x107a   :  { %v6395_v17 = vpop.permute.xlu0 %6394  ;;  %v2338_v61 = vpack.c.bf16 %v2306_v10, %v2305_v39  ;;  %v2337_v40 = vpack.c.bf16 %v2310_v14, %v2309_v48  ;;  %v6402_v25 = vunpack.i.h.bf16 %v6400_v37  ;;  %v6401_v27 = vunpack.i.l.bf16 %v6400_v37 }
0x107b   :  { %v6397_v16 = vunpack.i.h.bf16 %v6395_v17  ;;  %v6396_v58 = vunpack.i.l.bf16 %v6395_v17 }
0x107c   :  { %2385 = vmatprep.subr.bf16.mxu1 %v2338_v61 }
0x107d   :  { %2386 = vmatpush1.bf16.msra.mxu1 %v2337_v40  ;;  %v6410_v18 = vpop.permute.xlu1 %6409  ;;  %v2331_v62 = vsel %vm1941_vm7, %v6401_v27, %v6396_v58  ;;  %v2332_v36 = vsel %vm1941_vm7, %v6402_v25, %v6397_v16  ;;  %v2328_v5 = vsel %vm1941_vm7, %v6397_v16, %v6402_v25  ;;  %v2327_v20 = vsel %vm1941_vm7, %v6396_v58, %v6401_v27 }
0x107e   :  { %v6405_v60 = vpop.permute.xlu0 %6404  ;;  %2387 = vmatprep.subr.bf16.mxu1 %v2340_v43  ;;  %v6412_v44 = vunpack.i.h.bf16 %v6410_v18  ;;  %v6411_v50 = vunpack.i.l.bf16 %v6410_v18  ;;  %v2344_v2 = vpack.c.bf16 %v2332_v36, %v2331_v62  ;;  %v2343_v22 = vpack.c.bf16 %v2328_v5, %v2327_v20  ;;  %v6009_v5 = vld [vmem:[%s11427_s30 + $0x68] sm:$0xff]  ;;  %v6010_v20 = vld [vmem:[%s11427_s30 + $0x70] sm:$0xff] }
0x107f   :  { %v6407_v53 = vunpack.i.h.bf16 %v6405_v60  ;;  %v6406_v59 = vunpack.i.l.bf16 %v6405_v60 }
0x1081   :  { %2388 = vmatpush1.bf16.msra.mxu1 %v2339_v45  ;;  %v2333_v43 = vsel %vm1941_vm7, %v6411_v50, %v6406_v59  ;;  %v2334_v15 = vsel %vm1941_vm7, %v6412_v44, %v6407_v53  ;;  %v2330_v11 = vsel %vm1941_vm7, %v6407_v53, %v6412_v44  ;;  %v2329_v45 = vsel %vm1941_vm7, %v6406_v59, %v6411_v50  ;;  %v6013_v53 = vld [vmem:[%s11428_s2 + $0x68] sm:$0xff]  ;;  %v6011_v59 = vld [vmem:[%s11427_s30 + $0x78] sm:$0xff] }
0x1082   :  { %2389 = vmatprep.subr.bf16.mxu1 %v2342_v19  ;;  %v2346_v19 = vpack.c.bf16 %v2334_v15, %v2333_v43  ;;  %v2345_v31 = vpack.c.bf16 %v2330_v11, %v2329_v45 }
0x1085   :  { %2390 = vmatpush1.bf16.msra.mxu1 %v2341_v41 }
0x1086   :  { %2391 = vmatprep.subr.bf16.mxu1 %v2344_v2 }
0x1089   :  { %2392 = vmatpush1.bf16.msra.mxu1 %v2343_v22 }
0x108a   :  { %2393 = vmatprep.subr.bf16.mxu1 %v2346_v19 }
0x108d   :  { %2394 = vmatpush1.bf16.msra.mxu1 %v2345_v31 }
0x108e   :  { %v2355_v42 = vpop.permute.xlu1 %2354 }
0x108f   :  { %v2350_v41 = vpop.permute.xlu0 %2349 }
0x1090   :  { %6006 = vmatmul.mubr.msk.bf16.vlgmr.msra.gmra.mrb[16].mxu1 %vm435_vm3, %v6743_v9 }
0x1091   :  { %2425 = vmatprep.mubr.bf16.mxu1 %v7153_v32 }
0x1092   :  { %v2365_v10 = vpop.permute.xlu1 %2364 }
0x1093   :  { %v2360_v14 = vpop.permute.xlu0 %2359 }
0x1098   :  { %6007 = vmatmul.mubr.msk.bf16.gmra.mrb[20].mxu1 %vm435_vm3, %v6744_v56 }
0x1099   :  { %3193 = vmatprep.mubr.bf16.mxu1 %v7153_v32 }
0x1163   :  { %v2417_v34 = vpop.f32.mrb[16].mxu1 }
0x1164   :  { %v2418_v51 = vadd.f32 %v2417_v34, %v2350_v41  ;;  %v2419_v63 = vpop.f32.mrb[17].mxu1 }
0x1165   :  { %v2420_v8 = vadd.f32 %v2419_v63, %v2350_v41  ;;  %v2421_v4 = vpop.f32.mrb[18].mxu1 }
0x1166   :  { %v8980_v49 = vadd.f32 %v2418_v51, %v8425_v35  ;;  %v2422_v47 = vadd.f32 %v2421_v4, %v2355_v42  ;;  %v2423_v38 = vpop.f32.mrb[19].mxu1 }
0x1167   :  { %v8983_v23 = vadd.f32 %v2420_v8, %v8428_v28  ;;  %v2424_v26 = vadd.f32 %v2423_v38, %v2355_v42 }
0x1168   :  { %v8986_v30 = vadd.f32 %v2422_v47, %v8431_v52  ;;  %v2454_v24 = vmul.f32 %v8980_v49, %v7312_v12 }
0x1169   :  { %v8991_v7 = vadd.f32 %v2424_v26, %v8436_v29  ;;  %v2455_v54 = vmul.f32 %v8983_v23, %v7314_v13 }
0x116a   :  { %v2456_v35 = vmul.f32 %v8986_v30, %v7312_v12 }
0x116b   :  { %v2427_v48 = vpop.f32.mrb[20].mxu1  ;;  %v2462_v28 = vadd.f32 %v2455_v54, %v2454_v24  ;;  %v2457_v37 = vmul.f32 %v8991_v7, %v7314_v13 }
0x116c   :  { %v2428_v52 = vadd.f32 %v2427_v48, %v2360_v14  ;;  %v2429_v39 = vpop.f32.mrb[21].mxu1 }
0x116d   :  { %v2430_v17 = vadd.f32 %v2429_v39, %v2360_v14  ;;  %v2431_v61 = vpop.f32.mrb[22].mxu1  ;;  %2463 = vadd.xlane.f32.xlu0 %v2462_v28  ;;  %v2465_v29 = vadd.f32 %v2457_v37, %v2456_v35 }
0x116e   :  { %v9000_v40 = vadd.f32 %v2428_v52, %v8445_v55  ;;  %v2432_v25 = vadd.f32 %v2431_v61, %v2365_v10  ;;  %v2433_v27 = vpop.f32.mrb[23].mxu1 }
0x116f   :  { %v9003_v16 = vadd.f32 %v2430_v17, %v8448_v21  ;;  %v2434_v58 = vadd.f32 %v2433_v27, %v2365_v10  ;;  %2466 = vadd.xlane.f32.xlu1 %v2465_v29 }
0x1170   :  { %v9006_v18 = vadd.f32 %v2432_v25, %v8451_v57  ;;  %v2458_v60 = vmul.f32 %v9000_v40, %v7312_v12  ;;  %v6008_v57 = vld [vmem:[%s11427_s30 + $0x60] sm:$0xff] }
0x1171   :  { %v9011_v62 = vadd.f32 %v2434_v58, %v8456_v33  ;;  %v2459_v55 = vmul.f32 %v9003_v16, %v7314_v13  ;;  %v6012_v33 = vld [vmem:[%s11428_s2 + $0x60] sm:$0xff] }
0x1172   :  { %v2460_v44 = vmul.f32 %v9006_v18, %v7312_v12 }
0x1173   :  { %v2468_v36 = vadd.f32 %v2459_v55, %v2458_v60  ;;  %v2461_v21 = vmul.f32 %v9011_v62, %v7314_v13  ;;  %v6015_v60 = vld [vmem:[%s11428_s2 + $0x78] sm:$0xff]  ;;  %v6014_v55 = vld [vmem:[%s11428_s2 + $0x70] sm:$0xff] }
0x1175   :  { %2469 = vadd.xlane.f32.xlu0 %v2468_v36  ;;  %v2471_v50 = vadd.f32 %v2461_v21, %v2460_v44 }
0x1179   :  { %2472 = vadd.xlane.f32.xlu0 %v2471_v50 }
0x1180   :  { %2536 = vperm.xlu1 %6171, %v6008_v57  }
0x1184   :  { %2564 = vperm.xlu1 %6171, %v6012_v33  }
0x1188   :  { %2569 = vperm.xlu1 %6171, %v6013_v53  }
0x118c   :  { %2551 = vperm.xlu1 %6171, %v6011_v59  }
0x118f   :  { %2541 = vperm.xlu0 %6172, %v6009_v5  }
0x1193   :  { %2546 = vperm.xlu0 %6172, %v6010_v20  }
0x11fa   :  { %v2464_v2 = vpop.xlane.xlu0 %2463 }
0x11fb   :  { %v2474_v43 = vmul.f32 %v2464_v2, %v7343_v46 }
0x11fc   :  { %v2467_v15 = vpop.xlane.xlu1 %2466 }
0x11fd   :  { %v9039_v22 = vsub.f32 %v8980_v49, %v2474_v43  ;;  %v9042_v11 = vsub.f32 %v8983_v23, %v2474_v43  ;;  %v2475_v45 = vmul.f32 %v2467_v15, %v7343_v46 }
0x11ff   :  { %v2486_v19 = vmul.f32 %v9039_v22, %v9039_v22  ;;  %v2487_v31 = vmul.f32 %v9042_v11, %v9042_v11  ;;  %v9050_v9 = vsub.f32 %v8986_v30, %v2475_v45  ;;  %v9053_v56 = vsub.f32 %v8991_v7, %v2475_v45 }
0x1200   :  { %v2537_v36 = vpop.permute.xlu1 %2536 }
0x1201   :  { %v2488_v41 = vmul.f32 %v9050_v9, %v9050_v9  ;;  %v2489_v34 = vmul.f32 %v9053_v56, %v9053_v56  ;;  %v2494_v51 = vmul.f32 %v2486_v19, %v7312_v12  ;;  %v2495_v63 = vmul.f32 %v2487_v31, %v7314_v13 }
0x1202   :  { %v2470_v42 = vpop.xlane.xlu0 %2469 }
0x1203   :  { %v2476_v8 = vmul.f32 %v2470_v42, %v7343_v46  ;;  %v2502_v4 = vadd.f32 %v2495_v63, %v2494_v51  ;;  %v2496_v47 = vmul.f32 %v2488_v41, %v7312_v12  ;;  %v2497_v38 = vmul.f32 %v2489_v34, %v7314_v13 }
0x1204   :  { %v2565_v44 = vpop.permute.xlu1 %2564 }
0x1205   :  { %v9065_v26 = vsub.f32 %v9000_v40, %v2476_v8  ;;  %v9068_v24 = vsub.f32 %v9003_v16, %v2476_v8  ;;  %2503 = vadd.xlane.f32.xlu1 %v2502_v4  ;;  %v2505_v54 = vadd.f32 %v2497_v38, %v2496_v47 }
0x1206   :  { %v2473_v35 = vpop.xlane.xlu0 %2472 }
0x1207   :  { %v2490_v14 = vmul.f32 %v9065_v26, %v9065_v26  ;;  %v2491_v48 = vmul.f32 %v9068_v24, %v9068_v24  ;;  %v2477_v28 = vmul.f32 %v2473_v35, %v7343_v46  ;;  %2506 = vadd.xlane.f32.xlu0 %v2505_v54 }
0x1208   :  { %v2570_v21 = vpop.permute.xlu1 %2569 }
0x1209   :  { %v9076_v37 = vsub.f32 %v9006_v18, %v2477_v28  ;;  %v9079_v52 = vsub.f32 %v9011_v62, %v2477_v28  ;;  %v2498_v39 = vmul.f32 %v2490_v14, %v7312_v12  ;;  %v2499_v10 = vmul.f32 %v2491_v48, %v7314_v13 }
0x120b   :  { %v2492_v17 = vmul.f32 %v9076_v37, %v9076_v37  ;;  %v2493_v61 = vmul.f32 %v9079_v52, %v9079_v52  ;;  %v2508_v29 = vadd.f32 %v2499_v10, %v2498_v39 }
0x120c   :  { %v2552_v57 = vpop.permute.xlu1 %2551 }
0x120d   :  { %2509 = vadd.xlane.f32.xlu1 %v2508_v29  ;;  %v2500_v25 = vmul.f32 %v2492_v17, %v7312_v12  ;;  %v2501_v27 = vmul.f32 %v2493_v61, %v7314_v13 }
0x120e   :  { %v2542_v50 = vpop.permute.xlu0 %2541 }
0x120f   :  { %v2511_v58 = vadd.f32 %v2501_v27, %v2500_v25 }
0x1211   :  { %2512 = vadd.xlane.f32.xlu0 %v2511_v58 }
0x1212   :  { %v2547_v33 = vpop.permute.xlu0 %2546 }
0x121e   :  { %2579 = vperm.xlu1 %6171, %v6015_v60  }
0x1227   :  { %2574 = vperm.xlu0 %6172, %v6014_v55  }
0x1292   :  { %v2504_v53 = vpop.xlane.xlu1 %2503 }
0x1293   :  { %v2514_v59 = vmul.f32 %v2504_v53, %v7343_v46 }
0x1294   :  { %v2507_v5 = vpop.xlane.xlu0 %2506 }
0x1295   :  { %v2518_v20 = vadd.f32 1e-05, %v2514_v59  ;;  %v2515_v2 = vmul.f32 %v2507_v5, %v7343_v46 }
0x1297   :  { %6909 = vrsqrt.f32 %v2518_v20  ;;  %v2519_v43 = vadd.f32 1e-05, %v2515_v2 }
0x1299   :  { %6911 = vrsqrt.f32 %v2519_v43 }
0x129a   :  { %v2510_v15 = vpop.xlane.xlu1 %2509 }
0x129b   :  { %v2516_v45 = vmul.f32 %v2510_v15, %v7343_v46 }
0x129d   :  { %v2520_v19 = vadd.f32 1e-05, %v2516_v45 }
0x129e   :  { %v2513_v31 = vpop.xlane.xlu0 %2512 }
0x129f   :  { %6913 = vrsqrt.f32 %v2520_v19  ;;  %v2517_v41 = vmul.f32 %v2513_v31, %v7343_v46  ;;  %v2580_v31 = vpop.permute.xlu1 %2579 }
0x12a1   :  { %v6910_v34 = vpop.eup %6909  ;;  %v2521_v51 = vadd.f32 1e-05, %v2517_v41 }
0x12a2   :  { %v2526_v63 = vmul.f32 %v6910_v34, %v9039_v22  ;;  %v2527_v42 = vmul.f32 %v6910_v34, %v9042_v11 }
0x12a3   :  { %v6912_v8 = vpop.eup %6911  ;;  %6915 = vrsqrt.f32 %v2521_v51 }
0x12a4   :  { %v2554_v4 = vmul.f32 %v2537_v36, %v2526_v63  ;;  %v2555_v47 = vmul.f32 %v2537_v36, %v2527_v42  ;;  %v2528_v38 = vmul.f32 %v6912_v8, %v9050_v9  ;;  %v2529_v54 = vmul.f32 %v6912_v8, %v9053_v56 }
0x12a6   :  { %v9103_v35 = vadd.f32 %v2565_v44, %v2554_v4  ;;  %v9105_v14 = vadd.f32 %v2565_v44, %v2555_v47  ;;  %v2556_v48 = vmul.f32 %v2542_v50, %v2528_v38  ;;  %v2557_v28 = vmul.f32 %v2542_v50, %v2529_v54 }
0x12a8   :  { %v9107_v39 = vadd.f32 %v2570_v21, %v2556_v48  ;;  %v9109_v10 = vadd.f32 %v2570_v21, %v2557_v28  ;;  %v2591_v22 = vmul.f32 %v9105_v14, %v9105_v14  ;;  %v2590_v11 = vmul.f32 %v9103_v35, %v9103_v35  ;;  %v2575_v21 = vpop.permute.xlu0 %2574 }
0x12a9   :  { %v6914_v17 = vpop.eup %6913 }
0x12aa   :  { %v2530_v9 = vmul.f32 %v6914_v17, %v9065_v26  ;;  %v2531_v56 = vmul.f32 %v6914_v17, %v9068_v24  ;;  %v2593_v61 = vmul.f32 %v9109_v10, %v9109_v10  ;;  %v2599_v29 = vmul.f32 %v2591_v22, %v9105_v14 }
0x12ab   :  { %v2592_v25 = vmul.f32 %v9107_v39, %v9107_v39  ;;  %v2598_v27 = vmul.f32 %v2590_v11, %v9103_v35 }
0x12ac   :  { %v2558_v58 = vmul.f32 %v2547_v33, %v2530_v9  ;;  %v2559_v60 = vmul.f32 %v2547_v33, %v2531_v56  ;;  %v2601_v55 = vmul.f32 %v2593_v61, %v9109_v10  ;;  %v2607_v36 = vmul.f32 0.044715, %v2599_v29 }
0x12ad   :  { %v6916_v44 = vpop.eup %6915  ;;  %v2600_v26 = vmul.f32 %v2592_v25, %v9107_v39  ;;  %v2606_v24 = vmul.f32 0.044715, %v2598_v27 }
0x12ae   :  { %v2532_v50 = vmul.f32 %v6916_v44, %v9076_v37  ;;  %v2533_v53 = vmul.f32 %v6916_v44, %v9079_v52  ;;  %v9127_v59 = vadd.f32 %v2575_v21, %v2558_v58  ;;  %v9129_v5 = vadd.f32 %v2575_v21, %v2559_v60 }
0x12af   :  { %v2609_v20 = vmul.f32 0.044715, %v2601_v55  ;;  %v2615_v2 = vadd.f32 %v2607_v36, %v9105_v14  ;;  %v2608_v33 = vmul.f32 0.044715, %v2600_v26  ;;  %v2614_v43 = vadd.f32 %v2606_v24, %v9103_v35 }
0x12b0   :  { %v2560_v15 = vmul.f32 %v2552_v57, %v2532_v50  ;;  %v2561_v45 = vmul.f32 %v2552_v57, %v2533_v53  ;;  %v2594_v19 = vmul.f32 %v9127_v59, %v9127_v59  ;;  %v2595_v37 = vmul.f32 %v9129_v5, %v9129_v5 }
0x12b1   :  { %v2617_v52 = vadd.f32 %v2609_v20, %v9109_v10  ;;  %v2623_v41 = vmul.f32 0.7978846, %v2615_v2  ;;  %v2616_v34 = vadd.f32 %v2608_v33, %v9107_v39  ;;  %v2622_v51 = vmul.f32 0.7978846, %v2614_v43 }
0x12b2   :  { %v9139_v63 = vadd.f32 %v2580_v31, %v2560_v15  ;;  %v9141_v42 = vadd.f32 %v2580_v31, %v2561_v45  ;;  %v2602_v8 = vmul.f32 %v2594_v19, %v9127_v59  ;;  %v2603_v57 = vmul.f32 %v2595_v37, %v9129_v5 }
0x12b3   :  { %v2625_v4 = vmul.f32 0.7978846, %v2617_v52  ;;  %6917 = vtanh.f32 %v2623_v41  ;;  %v2624_v47 = vmul.f32 0.7978846, %v2616_v34 }
0x12b4   :  { %v2610_v38 = vmul.f32 0.044715, %v2602_v8  ;;  %v2611_v54 = vmul.f32 0.044715, %v2603_v57  ;;  %6919 = vtanh.f32 %v2622_v51  ;;  %v2597_v48 = vmul.f32 %v9141_v42, %v9141_v42 }
0x12b5   :  { %6921 = vtanh.f32 %v2625_v4  ;;  %v2596_v28 = vmul.f32 %v9139_v63, %v9139_v63 }
0x12b6   :  { %v2618_v22 = vadd.f32 %v2610_v38, %v9127_v59  ;;  %v2619_v11 = vadd.f32 %v2611_v54, %v9129_v5  ;;  %6923 = vtanh.f32 %v2624_v47  ;;  %v2605_v17 = vmul.f32 %v2597_v48, %v9141_v42 }
0x12b7   :  { %v2604_v9 = vmul.f32 %v2596_v28, %v9139_v63 }
0x12b8   :  { %v2626_v56 = vmul.f32 0.7978846, %v2618_v22  ;;  %v2627_v61 = vmul.f32 0.7978846, %v2619_v11  ;;  %v2613_v29 = vmul.f32 0.044715, %v2605_v17 }
0x12b9   :  { %v2612_v25 = vmul.f32 0.044715, %v2604_v9 }
0x12ba   :  { %6925 = vtanh.f32 %v2626_v56  ;;  %v2621_v27 = vadd.f32 %v2613_v29, %v9141_v42 }
0x12bb   :  { %6927 = vtanh.f32 %v2627_v61  ;;  %v2620_v58 = vadd.f32 %v2612_v25, %v9139_v63 }
0x12bc   :  { %v2629_v60 = vmul.f32 0.7978846, %v2621_v27 }
0x12bd   :  { %v6918_v55 = vpop.eup %6917  ;;  %v2628_v36 = vmul.f32 0.7978846, %v2620_v58 }
0x12be   :  { %v6920_v44 = vpop.eup %6919  ;;  %v2639_v21 = vadd.f32 1.0, %v6918_v55  ;;  %6929 = vtanh.f32 %v2629_v60 }
0x12bf   :  { %v6922_v26 = vpop.eup %6921  ;;  %v2638_v24 = vadd.f32 1.0, %v6920_v44  ;;  %6931 = vtanh.f32 %v2628_v36  ;;  %v6021_v36 = vld [vmem:[%s11429_s3 + $0x68] sm:$0xff]  ;;  %v6020_v44 = vld [vmem:[%s11429_s3 + $0x60] sm:$0xff] }
0x12c0   :  { %v6924_v50 = vpop.eup %6923  ;;  %v2641_v53 = vadd.f32 1.0, %v6922_v26  ;;  %v2647_v20 = vmul.f32 0.5, %v2639_v21  ;;  %v6023_v21 = vld [vmem:[%s11429_s3 + $0x78] sm:$0xff]  ;;  %v6022_v26 = vld [vmem:[%s11429_s3 + $0x70] sm:$0xff] }
0x12c1   :  { %v2640_v2 = vadd.f32 1.0, %v6924_v50  ;;  %v2646_v33 = vmul.f32 0.5, %v2638_v24 }
0x12c2   :  { %v2649_v43 = vmul.f32 0.5, %v2641_v53  ;;  %v2655_v15 = vmul.f32 %v2647_v20, %v9105_v14 }
0x12c3   :  { %v2648_v45 = vmul.f32 0.5, %v2640_v2  ;;  %v2654_v19 = vmul.f32 %v2646_v33, %v9103_v35 }
0x12c4   :  { %v6926_v37 = vpop.eup %6925  ;;  %v2657_v31 = vmul.f32 %v2649_v43, %v9109_v10  ;;  %v9160_v8 = vmul.f32 %v2655_v15, %v7314_v13 }
0x12c5   :  { %v6928_v52 = vpop.eup %6927  ;;  %v2642_v41 = vadd.f32 1.0, %v6926_v37  ;;  %v2656_v34 = vmul.f32 %v2648_v45, %v9107_v39  ;;  %v9166_v4 = vmul.f32 %v2654_v19, %v7312_v12 }
0x12c6   :  { %v2643_v51 = vadd.f32 1.0, %v6928_v52  ;;  %v9163_v57 = vmul.f32 %v2657_v31, %v7314_v13 }
0x12c7   :  { %v9169_v14 = vmul.f32 %v2656_v34, %v7312_v12  ;;  %v2650_v47 = vmul.f32 0.5, %v2642_v41 }
0x12c8   :  { %v6930_v35 = vpop.eup %6929  ;;  %v2651_v10 = vmul.f32 0.5, %v2643_v51  ;;  %v6418_v38 = vpack.i.bf16 %v9163_v57, %v9160_v8  ;;  %v2733_v39 = vpack.c.bf16 %v9163_v57, %v9160_v8 }
0x12c9   :  { %v6932_v54 = vpop.eup %6931  ;;  %v6413_v48 = vpack.i.bf16 %v9169_v14, %v9166_v4  ;;  %v2645_v28 = vadd.f32 1.0, %v6930_v35  ;;  %v2732_v11 = vpack.c.bf16 %v9169_v14, %v9166_v4  ;;  %v2658_v56 = vmul.f32 %v2650_v47, %v9127_v59 }
0x12ca   :  { %6419 = vrot.lane.b32.xlu1 %v6418_v38, %s11435_s0  ;;  %v2644_v22 = vadd.f32 1.0, %v6932_v54  ;;  %v2659_v17 = vmul.f32 %v2651_v10, %v9129_v5 }
0x12cb   :  { %6414 = vrot.lane.b32.xlu0 %v6413_v48, %s11435_s0  ;;  %v2653_v9 = vmul.f32 0.5, %v2645_v28  ;;  %v9192_v60 = vmul.f32 %v2658_v56, %v7312_v12 }
0x12cc   :  { %v2652_v61 = vmul.f32 0.5, %v2644_v22  ;;  %v9186_v27 = vmul.f32 %v2659_v17, %v7314_v13 }
0x12cd   :  { %v2661_v29 = vmul.f32 %v2653_v9, %v9141_v42 }
0x12ce   :  { %v2660_v25 = vmul.f32 %v2652_v61, %v9139_v63 }
0x12cf   :  { %v9189_v58 = vmul.f32 %v2661_v29, %v7314_v13 }
0x12d0   :  { %v9195_v5 = vmul.f32 %v2660_v25, %v7312_v12 }
0x12d1   :  { %v6428_v59 = vpack.i.bf16 %v9189_v58, %v9186_v27  ;;  %v2735_v42 = vpack.c.bf16 %v9189_v58, %v9186_v27 }
0x12d2   :  { %v6423_v63 = vpack.i.bf16 %v9195_v5, %v9192_v60  ;;  %v2734_v55 = vpack.c.bf16 %v9195_v5, %v9192_v60  ;;  %v6745_v60 = vld [vmem:[%s11430_s26 + $0x30] sm:$0xff]   ;;  %v6746_v5 = vld [vmem:[%s11430_s26 + $0x38] sm:$0xff]  }
0x12d3   :  { %6429 = vrot.lane.b32.xlu1 %v6428_v59, %s11435_s0 }
0x12d4   :  { %6424 = vrot.lane.b32.xlu0 %v6423_v63, %s11435_s0 }
0x12d7   :  { %6439 = vrot.lane.b32.xlu1 %v6418_v38, %s11431_s23 }
0x12d8   :  { %6434 = vrot.lane.b32.xlu0 %v6413_v48, %s11431_s23 }
0x12db   :  { %6449 = vrot.lane.b32.xlu1 %v6428_v59, %s11431_s23 }
0x12dc   :  { %6444 = vrot.lane.b32.xlu0 %v6423_v63, %s11431_s23 }
0x12df   :  { %2747 = vperm.xlu1 %6171, %v6021_v36  }
0x12e0   :  { %2742 = vperm.xlu0 %6172, %v6020_v44  }
0x12e3   :  { %2757 = vperm.xlu1 %6171, %v6023_v21  }
0x12e4   :  { %2752 = vperm.xlu0 %6172, %v6022_v26  }
0x133c   :  { %v6420_v24 = vpop.permute.xlu1 %6419 }
0x133d   :  { %v6422_v50 = vunpack.i.h.bf16 %v6420_v24  ;;  %v6421_v53 = vunpack.i.l.bf16 %v6420_v24  ;;  %v6415_v20 = vpop.permute.xlu0 %6414 }
0x133e   :  { %v6417_v2 = vunpack.i.h.bf16 %v6415_v20  ;;  %v6416_v33 = vunpack.i.l.bf16 %v6415_v20 }
0x1340   :  { %v2701_v43 = vsel %vm359_vm1, %v6422_v50, %v6417_v2  ;;  %v2700_v15 = vsel %vm359_vm1, %v6421_v53, %v6416_v33  ;;  %v2696_v45 = vsel %vm359_vm1, %v6416_v33, %v6421_v53  ;;  %v2697_v19 = vsel %vm359_vm1, %v6417_v2, %v6422_v50 }
0x1341   :  { %v2729_v37 = vpack.c.bf16 %v2697_v19, %v2696_v45  ;;  %v2728_v31 = vpack.c.bf16 %v2701_v43, %v2700_v15 }
0x1343   :  { %2776 = vmatprep.subr.bf16.mxu0 %v2729_v37 }
0x1344   :  { %2777 = vmatpush1.bf16.msra.mxu0 %v2728_v31 }
0x1345   :  { %v6430_v52 = vpop.permute.xlu1 %6429 }
0x1346   :  { %v6432_v41 = vunpack.i.h.bf16 %v6430_v52  ;;  %v6431_v34 = vunpack.i.l.bf16 %v6430_v52  ;;  %v6425_v51 = vpop.permute.xlu0 %6424 }
0x1347   :  { %v6427_v35 = vunpack.i.h.bf16 %v6425_v51  ;;  %v6426_v47 = vunpack.i.l.bf16 %v6425_v51 }
0x1349   :  { %v2703_v10 = vsel %vm359_vm1, %v6432_v41, %v6427_v35  ;;  %v2702_v38 = vsel %vm359_vm1, %v6431_v34, %v6426_v47  ;;  %v6440_v54 = vpop.permute.xlu1 %6439  ;;  %v2698_v48 = vsel %vm359_vm1, %v6426_v47, %v6431_v34  ;;  %v2699_v28 = vsel %vm359_vm1, %v6427_v35, %v6432_v41 }
0x134a   :  { %v6435_v22 = vpop.permute.xlu0 %6434  ;;  %v2731_v17 = vpack.c.bf16 %v2699_v28, %v2698_v48  ;;  %v2730_v9 = vpack.c.bf16 %v2703_v10, %v2702_v38  ;;  %v6442_v56 = vunpack.i.h.bf16 %v6440_v54  ;;  %v6441_v61 = vunpack.i.l.bf16 %v6440_v54 }
0x134b   :  { %v6437_v29 = vunpack.i.h.bf16 %v6435_v22  ;;  %v6436_v25 = vunpack.i.l.bf16 %v6435_v22 }
0x134c   :  { %2778 = vmatprep.subr.bf16.mxu0 %v2731_v17 }
0x134d   :  { %2779 = vmatpush1.bf16.msra.mxu0 %v2730_v9  ;;  %v6450_v27 = vpop.permute.xlu1 %6449  ;;  %v2724_v59 = vsel %vm384_vm2, %v6441_v61, %v6436_v25  ;;  %v2725_v63 = vsel %vm384_vm2, %v6442_v56, %v6437_v29  ;;  %v2721_v24 = vsel %vm384_vm2, %v6437_v29, %v6442_v56  ;;  %v2720_v8 = vsel %vm384_vm2, %v6436_v25, %v6441_v61 }
0x134e   :  { %v6445_v58 = vpop.permute.xlu0 %6444  ;;  %2780 = vmatprep.subr.bf16.mxu0 %v2733_v39  ;;  %v6452_v36 = vunpack.i.h.bf16 %v6450_v27  ;;  %v6451_v44 = vunpack.i.l.bf16 %v6450_v27  ;;  %v2737_v57 = vpack.c.bf16 %v2725_v63, %v2724_v59  ;;  %v2736_v4 = vpack.c.bf16 %v2721_v24, %v2720_v8  ;;  %v6029_v24 = vld [vmem:[%s11379_s6 + $0x68] sm:$0xff]  ;;  %v6030_v8 = vld [vmem:[%s11379_s6 + $0x70] sm:$0xff] }
0x134f   :  { %v6447_v21 = vunpack.i.h.bf16 %v6445_v58  ;;  %v6446_v26 = vunpack.i.l.bf16 %v6445_v58 }
0x1351   :  { %2781 = vmatpush1.bf16.msra.mxu0 %v2732_v11  ;;  %v2726_v39 = vsel %vm384_vm2, %v6451_v44, %v6446_v26  ;;  %v2727_v50 = vsel %vm384_vm2, %v6452_v36, %v6447_v21  ;;  %v2723_v14 = vsel %vm384_vm2, %v6447_v21, %v6452_v36  ;;  %v2722_v11 = vsel %vm384_vm2, %v6446_v26, %v6451_v44  ;;  %v6028_v36 = vld [vmem:[%s11379_s6 + $0x60] sm:$0xff]  ;;  %v6033_v21 = vld [vmem:[%s11380_s7 + $0x68] sm:$0xff]  ;;  %v6031_v26 = vld [vmem:[%s11379_s6 + $0x78] sm:$0xff] }
0x1352   :  { %2782 = vmatprep.subr.bf16.mxu0 %v2735_v42  ;;  %v2739_v42 = vpack.c.bf16 %v2727_v50, %v2726_v39  ;;  %v2738_v53 = vpack.c.bf16 %v2723_v14, %v2722_v11  ;;  %v6032_v44 = vld [vmem:[%s11380_s7 + $0x60] sm:$0xff] }
0x1355   :  { %2783 = vmatpush1.bf16.msra.mxu0 %v2734_v55 }
0x1356   :  { %2784 = vmatprep.subr.bf16.mxu0 %v2737_v57 }
0x1359   :  { %2785 = vmatpush1.bf16.msra.mxu0 %v2736_v4 }
0x135a   :  { %2786 = vmatprep.subr.bf16.mxu0 %v2739_v42 }
0x135d   :  { %2787 = vmatpush1.bf16.msra.mxu0 %v2738_v53 }
0x135e   :  { %v2748_v43 = vpop.permute.xlu1 %2747 }
0x135f   :  { %v2743_v55 = vpop.permute.xlu0 %2742 }
0x1360   :  { %6026 = vmatmul.mubr.msk.bf16.vlgmr.msra.gmra.mrb[24].mxu0 %vm435_vm3, %v6745_v60 }
0x1361   :  { %2818 = vmatprep.mubr.bf16.mxu0 %v7153_v32 }
0x1362   :  { %v2758_v28 = vpop.permute.xlu1 %2757 }
0x1363   :  { %v2753_v47 = vpop.permute.xlu0 %2752 }
0x1368   :  { %6027 = vmatmul.mubr.msk.bf16.gmra.mrb[28].mxu0 %vm435_vm3, %v6746_v5 }
0x1369   :  { %3586 = vmatprep.mubr.bf16.mxu0 %v7153_v32 }
0x1433   :  { %v2810_v20 = vpop.f32.mrb[24].mxu0 }
0x1434   :  { %v2811_v2 = vadd.f32 %v2810_v20, %v2743_v55  ;;  %v2812_v33 = vpop.f32.mrb[25].mxu0 }
0x1435   :  { %v2813_v15 = vadd.f32 %v2812_v33, %v2743_v55  ;;  %v2814_v45 = vpop.f32.mrb[26].mxu0 }
0x1436   :  { %v2839_v19 = vmul.f32 %v2811_v2, %v7312_v12  ;;  %v2815_v37 = vadd.f32 %v2814_v45, %v2748_v43  ;;  %v2816_v31 = vpop.f32.mrb[27].mxu0 }
0x1437   :  { %v2840_v52 = vmul.f32 %v2813_v15, %v7314_v13  ;;  %v2817_v41 = vadd.f32 %v2816_v31, %v2748_v43 }
0x1438   :  { %v2841_v34 = vmul.f32 %v2815_v37, %v7312_v12 }
0x1439   :  { %v2842_v51 = vmul.f32 %v2817_v41, %v7314_v13  ;;  %v2847_v35 = vadd.f32 %v2840_v52, %v2839_v19 }
0x143b   :  { %v2820_v10 = vpop.f32.mrb[28].mxu0  ;;  %2848 = vadd.xlane.f32.xlu0 %v2847_v35  ;;  %v2850_v38 = vadd.f32 %v2842_v51, %v2841_v34 }
0x143c   :  { %v2821_v54 = vadd.f32 %v2820_v10, %v2753_v47  ;;  %v2822_v48 = vpop.f32.mrb[29].mxu0 }
0x143d   :  { %v2823_v22 = vadd.f32 %v2822_v48, %v2753_v47  ;;  %v2824_v17 = vpop.f32.mrb[30].mxu0  ;;  %2851 = vadd.xlane.f32.xlu1 %v2850_v38 }
0x143e   :  { %v2843_v9 = vmul.f32 %v2821_v54, %v7312_v12  ;;  %v2825_v56 = vadd.f32 %v2824_v17, %v2758_v28  ;;  %v2826_v61 = vpop.f32.mrb[31].mxu0 }
0x143f   :  { %v2844_v29 = vmul.f32 %v2823_v22, %v7314_v13  ;;  %v2827_v25 = vadd.f32 %v2826_v61, %v2758_v28 }
0x1440   :  { %v2845_v27 = vmul.f32 %v2825_v56, %v7312_v12 }
0x1441   :  { %v2846_v58 = vmul.f32 %v2827_v25, %v7314_v13  ;;  %v2853_v59 = vadd.f32 %v2844_v29, %v2843_v9  ;;  %v6035_v29 = vld [vmem:[%s11380_s7 + $0x78] sm:$0xff] }
0x1443   :  { %2854 = vadd.xlane.f32.xlu0 %v2853_v59  ;;  %v2856_v63 = vadd.f32 %v2846_v58, %v2845_v27 }
0x1447   :  { %2857 = vadd.xlane.f32.xlu0 %v2856_v63 }
0x144e   :  { %2921 = vperm.xlu1 %6171, %v6028_v36  }
0x1452   :  { %2949 = vperm.xlu1 %6171, %v6032_v44  }
0x1456   :  { %2954 = vperm.xlu1 %6171, %v6033_v21  }
0x145a   :  { %2936 = vperm.xlu1 %6171, %v6031_v26  }
0x145d   :  { %2926 = vperm.xlu0 %6172, %v6029_v24  }
0x1461   :  { %2931 = vperm.xlu0 %6172, %v6030_v8  }
0x14c8   :  { %v2849_v57 = vpop.xlane.xlu0 %2848 }
0x14c9   :  { %v2859_v39 = vmul.f32 %v2849_v57, %v7343_v46 }
0x14ca   :  { %v2852_v50 = vpop.xlane.xlu1 %2851 }
0x14cb   :  { %v9301_v4 = vsub.f32 %v2811_v2, %v2859_v39  ;;  %v9303_v14 = vsub.f32 %v2813_v15, %v2859_v39  ;;  %v2860_v11 = vmul.f32 %v2852_v50, %v7343_v46 }
0x14cd   :  { %v2871_v42 = vmul.f32 %v9301_v4, %v9301_v4  ;;  %v2872_v53 = vmul.f32 %v9303_v14, %v9303_v14  ;;  %v9310_v60 = vsub.f32 %v2815_v37, %v2860_v11  ;;  %v9312_v5 = vsub.f32 %v2817_v41, %v2860_v11 }
0x14ce   :  { %v2922_v27 = vpop.permute.xlu1 %2921 }
0x14cf   :  { %v2873_v55 = vmul.f32 %v9310_v60, %v9310_v60  ;;  %v2874_v20 = vmul.f32 %v9312_v5, %v9312_v5  ;;  %v2879_v2 = vmul.f32 %v2871_v42, %v7312_v12  ;;  %v2880_v33 = vmul.f32 %v2872_v53, %v7314_v13 }
0x14d0   :  { %v2855_v43 = vpop.xlane.xlu0 %2854 }
0x14d1   :  { %v2861_v15 = vmul.f32 %v2855_v43, %v7343_v46  ;;  %v2887_v45 = vadd.f32 %v2880_v33, %v2879_v2  ;;  %v2881_v19 = vmul.f32 %v2873_v55, %v7312_v12  ;;  %v2882_v37 = vmul.f32 %v2874_v20, %v7314_v13 }
0x14d2   :  { %v2950_v58 = vpop.permute.xlu1 %2949 }
0x14d3   :  { %v9323_v31 = vsub.f32 %v2821_v54, %v2861_v15  ;;  %v9325_v52 = vsub.f32 %v2823_v22, %v2861_v15  ;;  %2888 = vadd.xlane.f32.xlu1 %v2887_v45  ;;  %v2890_v41 = vadd.f32 %v2882_v37, %v2881_v19 }
0x14d4   :  { %v2858_v34 = vpop.xlane.xlu0 %2857 }
0x14d5   :  { %v2875_v51 = vmul.f32 %v9323_v31, %v9323_v31  ;;  %v2876_v35 = vmul.f32 %v9325_v52, %v9325_v52  ;;  %v2862_v47 = vmul.f32 %v2858_v34, %v7343_v46  ;;  %2891 = vadd.xlane.f32.xlu0 %v2890_v41 }
0x14d6   :  { %v2955_v59 = vpop.permute.xlu1 %2954 }
0x14d7   :  { %v9332_v10 = vsub.f32 %v2825_v56, %v2862_v47  ;;  %v9334_v38 = vsub.f32 %v2827_v25, %v2862_v47  ;;  %v2883_v54 = vmul.f32 %v2875_v51, %v7312_v12  ;;  %v2884_v48 = vmul.f32 %v2876_v35, %v7314_v13  ;;  %v6034_v25 = vld [vmem:[%s11380_s7 + $0x70] sm:$0xff] }
0x14d9   :  { %v2877_v28 = vmul.f32 %v9332_v10, %v9332_v10  ;;  %v2878_v22 = vmul.f32 %v9334_v38, %v9334_v38  ;;  %v2893_v17 = vadd.f32 %v2884_v48, %v2883_v54 }
0x14da   :  { %v2937_v36 = vpop.permute.xlu1 %2936 }
0x14db   :  { %2894 = vadd.xlane.f32.xlu1 %v2893_v17  ;;  %v2885_v9 = vmul.f32 %v2877_v28, %v7312_v12  ;;  %v2886_v61 = vmul.f32 %v2878_v22, %v7314_v13 }
0x14dc   :  { %v2927_v63 = vpop.permute.xlu0 %2926 }
0x14dd   :  { %v2896_v56 = vadd.f32 %v2886_v61, %v2885_v9 }
0x14df   :  { %2897 = vadd.xlane.f32.xlu0 %v2896_v56 }
0x14e0   :  { %v2932_v44 = vpop.permute.xlu0 %2931 }
0x14ec   :  { %2964 = vperm.xlu1 %6171, %v6035_v29  }
0x14f5   :  { %2959 = vperm.xlu0 %6172, %v6034_v25  }
0x1560   :  { %v2889_v21 = vpop.xlane.xlu1 %2888 }
0x1561   :  { %v2899_v26 = vmul.f32 %v2889_v21, %v7343_v46 }
0x1562   :  { %v2892_v24 = vpop.xlane.xlu0 %2891 }
0x1563   :  { %v2903_v8 = vadd.f32 1e-05, %v2899_v26  ;;  %v2900_v57 = vmul.f32 %v2892_v24, %v7343_v46 }
0x1565   :  { %6933 = vrsqrt.f32 %v2903_v8  ;;  %v2904_v39 = vadd.f32 1e-05, %v2900_v57 }
0x1567   :  { %6935 = vrsqrt.f32 %v2904_v39 }
0x1568   :  { %v2895_v50 = vpop.xlane.xlu1 %2894 }
0x1569   :  { %v2901_v11 = vmul.f32 %v2895_v50, %v7343_v46 }
0x156b   :  { %v2905_v42 = vadd.f32 1e-05, %v2901_v11 }
0x156c   :  { %v2898_v53 = vpop.xlane.xlu0 %2897 }
0x156d   :  { %6937 = vrsqrt.f32 %v2905_v42  ;;  %v2902_v55 = vmul.f32 %v2898_v53, %v7343_v46  ;;  %v2965_v53 = vpop.permute.xlu1 %2964 }
0x156f   :  { %v6934_v20 = vpop.eup %6933  ;;  %v2906_v2 = vadd.f32 1e-05, %v2902_v55 }
0x1570   :  { %v2911_v33 = vmul.f32 %v6934_v20, %v9301_v4  ;;  %v2912_v43 = vmul.f32 %v6934_v20, %v9303_v14 }
0x1571   :  { %v6936_v15 = vpop.eup %6935  ;;  %6939 = vrsqrt.f32 %v2906_v2 }
0x1572   :  { %v2939_v45 = vmul.f32 %v2922_v27, %v2911_v33  ;;  %v2940_v19 = vmul.f32 %v2922_v27, %v2912_v43  ;;  %v2913_v37 = vmul.f32 %v6936_v15, %v9310_v60  ;;  %v2914_v41 = vmul.f32 %v6936_v15, %v9312_v5 }
0x1574   :  { %v9358_v34 = vadd.f32 %v2950_v58, %v2939_v45  ;;  %v9360_v51 = vadd.f32 %v2950_v58, %v2940_v19  ;;  %v2941_v35 = vmul.f32 %v2927_v63, %v2913_v37  ;;  %v2942_v47 = vmul.f32 %v2927_v63, %v2914_v41 }
0x1576   :  { %v9362_v54 = vadd.f32 %v2955_v59, %v2941_v35  ;;  %v9364_v48 = vadd.f32 %v2955_v59, %v2942_v47  ;;  %v2976_v4 = vmul.f32 %v9360_v51, %v9360_v51  ;;  %v2975_v14 = vmul.f32 %v9358_v34, %v9358_v34  ;;  %v2960_v59 = vpop.permute.xlu0 %2959 }
0x1577   :  { %v6938_v28 = vpop.eup %6937 }
0x1578   :  { %v2915_v60 = vmul.f32 %v6938_v28, %v9323_v31  ;;  %v2916_v5 = vmul.f32 %v6938_v28, %v9325_v52  ;;  %v2978_v22 = vmul.f32 %v9364_v48, %v9364_v48  ;;  %v2984_v17 = vmul.f32 %v2976_v4, %v9360_v51 }
0x1579   :  { %v2977_v9 = vmul.f32 %v9362_v54, %v9362_v54  ;;  %v2983_v61 = vmul.f32 %v2975_v14, %v9358_v34 }
0x157a   :  { %v2943_v56 = vmul.f32 %v2932_v44, %v2915_v60  ;;  %v2944_v29 = vmul.f32 %v2932_v44, %v2916_v5  ;;  %v2986_v25 = vmul.f32 %v2978_v22, %v9364_v48  ;;  %v2992_v27 = vmul.f32 0.044715, %v2984_v17 }
0x157b   :  { %v6940_v58 = vpop.eup %6939  ;;  %v2985_v31 = vmul.f32 %v2977_v9, %v9362_v54  ;;  %v2991_v52 = vmul.f32 0.044715, %v2983_v61 }
0x157c   :  { %v2917_v63 = vmul.f32 %v6940_v58, %v9332_v10  ;;  %v2918_v21 = vmul.f32 %v6940_v58, %v9334_v38  ;;  %v9382_v26 = vadd.f32 %v2960_v59, %v2943_v56  ;;  %v9384_v24 = vadd.f32 %v2960_v59, %v2944_v29 }
0x157d   :  { %v2994_v8 = vmul.f32 0.044715, %v2986_v25  ;;  %v3000_v57 = vadd.f32 %v2992_v27, %v9360_v51  ;;  %v2993_v44 = vmul.f32 0.044715, %v2985_v31  ;;  %v2999_v39 = vadd.f32 %v2991_v52, %v9358_v34 }
0x157e   :  { %v2945_v50 = vmul.f32 %v2937_v36, %v2917_v63  ;;  %v2946_v11 = vmul.f32 %v2937_v36, %v2918_v21  ;;  %v2979_v42 = vmul.f32 %v9382_v26, %v9382_v26  ;;  %v2980_v10 = vmul.f32 %v9384_v24, %v9384_v24 }
0x157f   :  { %v3002_v38 = vadd.f32 %v2994_v8, %v9364_v48  ;;  %v3008_v55 = vmul.f32 0.7978846, %v3000_v57  ;;  %v3001_v20 = vadd.f32 %v2993_v44, %v9362_v54  ;;  %v3007_v2 = vmul.f32 0.7978846, %v2999_v39 }
0x1580   :  { %v9394_v33 = vadd.f32 %v2965_v53, %v2945_v50  ;;  %v9396_v43 = vadd.f32 %v2965_v53, %v2946_v11  ;;  %v2987_v15 = vmul.f32 %v2979_v42, %v9382_v26  ;;  %v2988_v36 = vmul.f32 %v2980_v10, %v9384_v24 }
0x1581   :  { %v3010_v45 = vmul.f32 0.7978846, %v3002_v38  ;;  %6941 = vtanh.f32 %v3008_v55  ;;  %v3009_v19 = vmul.f32 0.7978846, %v3001_v20 }
0x1582   :  { %v2995_v37 = vmul.f32 0.044715, %v2987_v15  ;;  %v2996_v41 = vmul.f32 0.044715, %v2988_v36  ;;  %6943 = vtanh.f32 %v3007_v2  ;;  %v2982_v35 = vmul.f32 %v9396_v43, %v9396_v43 }
0x1583   :  { %6945 = vtanh.f32 %v3010_v45  ;;  %v2981_v47 = vmul.f32 %v9394_v33, %v9394_v33 }
0x1584   :  { %v3003_v4 = vadd.f32 %v2995_v37, %v9382_v26  ;;  %v3004_v14 = vadd.f32 %v2996_v41, %v9384_v24  ;;  %6947 = vtanh.f32 %v3009_v19  ;;  %v2990_v28 = vmul.f32 %v2982_v35, %v9396_v43 }
0x1585   :  { %v2989_v60 = vmul.f32 %v2981_v47, %v9394_v33 }
0x1586   :  { %v3011_v5 = vmul.f32 0.7978846, %v3003_v4  ;;  %v3012_v22 = vmul.f32 0.7978846, %v3004_v14  ;;  %v2998_v17 = vmul.f32 0.044715, %v2990_v28 }
0x1587   :  { %v2997_v9 = vmul.f32 0.044715, %v2989_v60 }
0x1588   :  { %6949 = vtanh.f32 %v3011_v5  ;;  %v3006_v61 = vadd.f32 %v2998_v17, %v9396_v43 }
0x1589   :  { %6951 = vtanh.f32 %v3012_v22  ;;  %v3005_v56 = vadd.f32 %v2997_v9, %v9394_v33 }
0x158a   :  { %v3014_v29 = vmul.f32 0.7978846, %v3006_v61 }
0x158b   :  { %v6942_v25 = vpop.eup %6941  ;;  %v3013_v27 = vmul.f32 0.7978846, %v3005_v56 }
0x158c   :  { %v6944_v58 = vpop.eup %6943  ;;  %v3024_v59 = vadd.f32 1.0, %v6942_v25  ;;  %6953 = vtanh.f32 %v3014_v29 }
0x158d   :  { %v6946_v31 = vpop.eup %6945  ;;  %v3023_v52 = vadd.f32 1.0, %v6944_v58  ;;  %6955 = vtanh.f32 %v3013_v27  ;;  %v6041_v27 = vld [vmem:[%s11382_s9 + $0x68] sm:$0xff]  ;;  %v6040_v58 = vld [vmem:[%s11382_s9 + $0x60] sm:$0xff] }
0x158e   :  { %v6948_v63 = vpop.eup %6947  ;;  %v3026_v21 = vadd.f32 1.0, %v6946_v31  ;;  %v3032_v8 = vmul.f32 0.5, %v3024_v59  ;;  %v6043_v59 = vld [vmem:[%s11382_s9 + $0x78] sm:$0xff]  ;;  %v6042_v31 = vld [vmem:[%s11382_s9 + $0x70] sm:$0xff] }
0x158f   :  { %v3025_v57 = vadd.f32 1.0, %v6948_v63  ;;  %v3031_v44 = vmul.f32 0.5, %v3023_v52 }
0x1590   :  { %v3034_v39 = vmul.f32 0.5, %v3026_v21  ;;  %v3040_v50 = vmul.f32 %v3032_v8, %v9360_v51 }
0x1591   :  { %v3033_v11 = vmul.f32 0.5, %v3025_v57  ;;  %v3039_v42 = vmul.f32 %v3031_v44, %v9358_v34 }
0x1592   :  { %v6950_v10 = vpop.eup %6949  ;;  %v3042_v53 = vmul.f32 %v3034_v39, %v9364_v48  ;;  %v9415_v15 = vmul.f32 %v3040_v50, %v7314_v13 }
0x1593   :  { %v6952_v38 = vpop.eup %6951  ;;  %v3027_v55 = vadd.f32 1.0, %v6950_v10  ;;  %v3041_v20 = vmul.f32 %v3033_v11, %v9362_v54  ;;  %v9421_v45 = vmul.f32 %v3039_v42, %v7312_v12 }
0x1594   :  { %v3028_v2 = vadd.f32 1.0, %v6952_v38  ;;  %v9418_v36 = vmul.f32 %v3042_v53, %v7314_v13 }
0x1595   :  { %v9424_v51 = vmul.f32 %v3041_v20, %v7312_v12  ;;  %v3035_v19 = vmul.f32 0.5, %v3027_v55 }
0x1596   :  { %v6954_v34 = vpop.eup %6953  ;;  %v3036_v48 = vmul.f32 0.5, %v3028_v2  ;;  %v6458_v37 = vpack.i.bf16 %v9418_v36, %v9415_v15  ;;  %v3118_v54 = vpack.c.bf16 %v9418_v36, %v9415_v15 }
0x1597   :  { %v6956_v41 = vpop.eup %6955  ;;  %v6453_v35 = vpack.i.bf16 %v9424_v51, %v9421_v45  ;;  %v3030_v47 = vadd.f32 1.0, %v6954_v34  ;;  %v3117_v14 = vpack.c.bf16 %v9424_v51, %v9421_v45  ;;  %v3043_v5 = vmul.f32 %v3035_v19, %v9382_v26 }
0x1598   :  { %6459 = vrot.lane.b32.xlu1 %v6458_v37, %s11435_s0  ;;  %v3029_v4 = vadd.f32 1.0, %v6956_v41  ;;  %v3044_v28 = vmul.f32 %v3036_v48, %v9384_v24 }
0x1599   :  { %6454 = vrot.lane.b32.xlu0 %v6453_v35, %s11435_s0  ;;  %v3038_v60 = vmul.f32 0.5, %v3030_v47  ;;  %v9447_v29 = vmul.f32 %v3043_v5, %v7312_v12 }
0x159a   :  { %v3037_v22 = vmul.f32 0.5, %v3029_v4  ;;  %v9441_v61 = vmul.f32 %v3044_v28, %v7314_v13 }
0x159b   :  { %v3046_v17 = vmul.f32 %v3038_v60, %v9396_v43 }
0x159c   :  { %v3045_v9 = vmul.f32 %v3037_v22, %v9394_v33 }
0x159d   :  { %v9444_v56 = vmul.f32 %v3046_v17, %v7314_v13 }
0x159e   :  { %v9450_v24 = vmul.f32 %v3045_v9, %v7312_v12 }
0x159f   :  { %v6468_v26 = vpack.i.bf16 %v9444_v56, %v9441_v61  ;;  %v3120_v43 = vpack.c.bf16 %v9444_v56, %v9441_v61 }
0x15a0   :  { %v6463_v33 = vpack.i.bf16 %v9450_v24, %v9447_v29  ;;  %v3119_v25 = vpack.c.bf16 %v9450_v24, %v9447_v29  ;;  %v6747_v29 = vld [vmem:[%s11381_s8 + $0x30] sm:$0xff]   ;;  %v6748_v24 = vld [vmem:[%s11381_s8 + $0x38] sm:$0xff]  }
0x15a1   :  { %6469 = vrot.lane.b32.xlu1 %v6468_v26, %s11435_s0 }
0x15a2   :  { %6464 = vrot.lane.b32.xlu0 %v6463_v33, %s11435_s0 }
0x15a5   :  { %6479 = vrot.lane.b32.xlu1 %v6458_v37, %s11431_s23 }
0x15a6   :  { %6474 = vrot.lane.b32.xlu0 %v6453_v35, %s11431_s23 }
0x15a9   :  { %6489 = vrot.lane.b32.xlu1 %v6468_v26, %s11431_s23 }
0x15aa   :  { %6484 = vrot.lane.b32.xlu0 %v6463_v33, %s11431_s23 }
0x15ad   :  { %3132 = vperm.xlu1 %6171, %v6041_v27  }
0x15ae   :  { %3127 = vperm.xlu0 %6172, %v6040_v58  }
0x15b1   :  { %3142 = vperm.xlu1 %6171, %v6043_v59  }
0x15b2   :  { %3137 = vperm.xlu0 %6172, %v6042_v31  }
0x160a   :  { %v6460_v52 = vpop.permute.xlu1 %6459 }
0x160b   :  { %v6462_v63 = vunpack.i.h.bf16 %v6460_v52  ;;  %v6461_v21 = vunpack.i.l.bf16 %v6460_v52  ;;  %v6455_v8 = vpop.permute.xlu0 %6454 }
0x160c   :  { %v6457_v57 = vunpack.i.h.bf16 %v6455_v8  ;;  %v6456_v44 = vunpack.i.l.bf16 %v6455_v8 }
0x160e   :  { %v3086_v39 = vsel %vm359_vm1, %v6462_v63, %v6457_v57  ;;  %v3085_v50 = vsel %vm359_vm1, %v6461_v21, %v6456_v44  ;;  %v3081_v11 = vsel %vm359_vm1, %v6456_v44, %v6461_v21  ;;  %v3082_v42 = vsel %vm359_vm1, %v6457_v57, %v6462_v63 }
0x160f   :  { %v3114_v10 = vpack.c.bf16 %v3082_v42, %v3081_v11  ;;  %v3113_v53 = vpack.c.bf16 %v3086_v39, %v3085_v50 }
0x1611   :  { %3161 = vmatprep.subr.bf16.mxu1 %v3114_v10 }
0x1612   :  { %3162 = vmatpush1.bf16.msra.mxu1 %v3113_v53 }
0x1613   :  { %v6470_v38 = vpop.permute.xlu1 %6469 }
0x1614   :  { %v6472_v55 = vunpack.i.h.bf16 %v6470_v38  ;;  %v6471_v20 = vunpack.i.l.bf16 %v6470_v38  ;;  %v6465_v2 = vpop.permute.xlu0 %6464 }
0x1615   :  { %v6467_v34 = vunpack.i.h.bf16 %v6465_v2  ;;  %v6466_v19 = vunpack.i.l.bf16 %v6465_v2 }
0x1617   :  { %v3088_v48 = vsel %vm359_vm1, %v6472_v55, %v6467_v34  ;;  %v3087_v37 = vsel %vm359_vm1, %v6471_v20, %v6466_v19  ;;  %v6480_v41 = vpop.permute.xlu1 %6479  ;;  %v3083_v35 = vsel %vm359_vm1, %v6466_v19, %v6471_v20  ;;  %v3084_v47 = vsel %vm359_vm1, %v6467_v34, %v6472_v55 }
0x1618   :  { %v6475_v4 = vpop.permute.xlu0 %6474  ;;  %v3116_v28 = vpack.c.bf16 %v3084_v47, %v3083_v35  ;;  %v3115_v60 = vpack.c.bf16 %v3088_v48, %v3087_v37  ;;  %v6482_v5 = vunpack.i.h.bf16 %v6480_v41  ;;  %v6481_v22 = vunpack.i.l.bf16 %v6480_v41 }
0x1619   :  { %v6477_v17 = vunpack.i.h.bf16 %v6475_v4  ;;  %v6476_v9 = vunpack.i.l.bf16 %v6475_v4 }
0x161a   :  { %3163 = vmatprep.subr.bf16.mxu1 %v3116_v28 }
0x161b   :  { %3164 = vmatpush1.bf16.msra.mxu1 %v3115_v60  ;;  %v6490_v61 = vpop.permute.xlu1 %6489  ;;  %v3109_v26 = vsel %vm384_vm2, %v6481_v22, %v6476_v9  ;;  %v3110_v33 = vsel %vm384_vm2, %v6482_v5, %v6477_v17  ;;  %v3106_v52 = vsel %vm384_vm2, %v6477_v17, %v6482_v5  ;;  %v3105_v15 = vsel %vm384_vm2, %v6476_v9, %v6481_v22 }
0x161c   :  { %v6485_v56 = vpop.permute.xlu0 %6484  ;;  %3165 = vmatprep.subr.bf16.mxu1 %v3118_v54  ;;  %v6492_v27 = vunpack.i.h.bf16 %v6490_v61  ;;  %v6491_v58 = vunpack.i.l.bf16 %v6490_v61  ;;  %v3122_v36 = vpack.c.bf16 %v3110_v33, %v3109_v26  ;;  %v3121_v45 = vpack.c.bf16 %v3106_v52, %v3105_v15  ;;  %v6049_v52 = vld [vmem:[%s11427_s30 + $0x88] sm:$0xff]  ;;  %v6050_v15 = vld [vmem:[%s11427_s30 + $0x90] sm:$0xff] }
0x161d   :  { %v6487_v59 = vunpack.i.h.bf16 %v6485_v56  ;;  %v6486_v31 = vunpack.i.l.bf16 %v6485_v56 }
0x161f   :  { %3166 = vmatpush1.bf16.msra.mxu1 %v3117_v14  ;;  %v3111_v54 = vsel %vm384_vm2, %v6491_v58, %v6486_v31  ;;  %v3112_v63 = vsel %vm384_vm2, %v6492_v27, %v6487_v59  ;;  %v3108_v51 = vsel %vm384_vm2, %v6487_v59, %v6492_v27  ;;  %v3107_v14 = vsel %vm384_vm2, %v6486_v31, %v6491_v58  ;;  %v6053_v59 = vld [vmem:[%s11428_s2 + $0x88] sm:$0xff]  ;;  %v6051_v31 = vld [vmem:[%s11427_s30 + $0x98] sm:$0xff] }
0x1620   :  { %3167 = vmatprep.subr.bf16.mxu1 %v3120_v43  ;;  %v3124_v43 = vpack.c.bf16 %v3112_v63, %v3111_v54  ;;  %v3123_v21 = vpack.c.bf16 %v3108_v51, %v3107_v14 }
0x1623   :  { %3168 = vmatpush1.bf16.msra.mxu1 %v3119_v25 }
0x1624   :  { %3169 = vmatprep.subr.bf16.mxu1 %v3122_v36 }
0x1627   :  { %3170 = vmatpush1.bf16.msra.mxu1 %v3121_v45 }
0x1628   :  { %3171 = vmatprep.subr.bf16.mxu1 %v3124_v43 }
0x162b   :  { %3172 = vmatpush1.bf16.msra.mxu1 %v3123_v21 }
0x162c   :  { %v3133_v39 = vpop.permute.xlu1 %3132 }
0x162d   :  { %v3128_v25 = vpop.permute.xlu0 %3127 }
0x162e   :  { %6046 = vmatmul.mubr.msk.bf16.vlgmr.msra.gmra.mrb[24].mxu1 %vm435_vm3, %v6747_v29 }
0x162f   :  { %3203 = vmatprep.mubr.bf16.mxu1 %v7153_v32 }
0x1630   :  { %v3143_v47 = vpop.permute.xlu1 %3142 }
0x1631   :  { %v3138_v48 = vpop.permute.xlu0 %3137 }
0x1636   :  { %6047 = vmatmul.mubr.msk.bf16.gmra.mrb[28].mxu1 %vm435_vm3, %v6748_v24 }
0x1637   :  { %3971 = vmatprep.mubr.bf16.mxu1 %v7153_v32 }
0x1701   :  { %v3195_v8 = vpop.f32.mrb[24].mxu1 }
0x1702   :  { %v3196_v57 = vadd.f32 %v3195_v8, %v3128_v25  ;;  %v3197_v44 = vpop.f32.mrb[25].mxu1 }
0x1703   :  { %v3198_v50 = vadd.f32 %v3197_v44, %v3128_v25  ;;  %v3199_v11 = vpop.f32.mrb[26].mxu1 }
0x1704   :  { %v9530_v42 = vadd.f32 %v3196_v57, %v8980_v49  ;;  %v3200_v10 = vadd.f32 %v3199_v11, %v3133_v39  ;;  %v3201_v53 = vpop.f32.mrb[27].mxu1 }
0x1705   :  { %v9533_v38 = vadd.f32 %v3198_v50, %v8983_v23  ;;  %v3202_v55 = vadd.f32 %v3201_v53, %v3133_v39 }
0x1706   :  { %v9536_v20 = vadd.f32 %v3200_v10, %v8986_v30  ;;  %v3232_v2 = vmul.f32 %v9530_v42, %v7312_v12 }
0x1707   :  { %v9541_v34 = vadd.f32 %v3202_v55, %v8991_v7  ;;  %v3233_v19 = vmul.f32 %v9533_v38, %v7314_v13 }
0x1708   :  { %v3234_v49 = vmul.f32 %v9536_v20, %v7312_v12 }
0x1709   :  { %v3205_v37 = vpop.f32.mrb[28].mxu1  ;;  %v3240_v23 = vadd.f32 %v3233_v19, %v3232_v2  ;;  %v3235_v41 = vmul.f32 %v9541_v34, %v7314_v13 }
0x170a   :  { %v3206_v30 = vadd.f32 %v3205_v37, %v3138_v48  ;;  %v3207_v35 = vpop.f32.mrb[29].mxu1 }
0x170b   :  { %v3208_v4 = vadd.f32 %v3207_v35, %v3138_v48  ;;  %v3209_v28 = vpop.f32.mrb[30].mxu1  ;;  %3241 = vadd.xlane.f32.xlu0 %v3240_v23  ;;  %v3243_v7 = vadd.f32 %v3235_v41, %v3234_v49 }
0x170c   :  { %v9550_v60 = vadd.f32 %v3206_v30, %v9000_v40  ;;  %v3210_v5 = vadd.f32 %v3209_v28, %v3143_v47  ;;  %v3211_v22 = vpop.f32.mrb[31].mxu1 }
0x170d   :  { %v9553_v17 = vadd.f32 %v3208_v4, %v9003_v16  ;;  %v3212_v9 = vadd.f32 %v3211_v22, %v3143_v47  ;;  %3244 = vadd.xlane.f32.xlu1 %v3243_v7 }
0x170e   :  { %v9556_v61 = vadd.f32 %v3210_v5, %v9006_v18  ;;  %v3236_v56 = vmul.f32 %v9550_v60, %v7312_v12  ;;  %v6048_v18 = vld [vmem:[%s11427_s30 + $0x80] sm:$0xff] }
0x170f   :  { %v9561_v26 = vadd.f32 %v3212_v9, %v9011_v62  ;;  %v3237_v40 = vmul.f32 %v9553_v17, %v7314_v13  ;;  %v6052_v62 = vld [vmem:[%s11428_s2 + $0x80] sm:$0xff] }
0x1710   :  { %v3238_v27 = vmul.f32 %v9556_v61, %v7312_v12 }
0x1711   :  { %v3246_v33 = vadd.f32 %v3237_v40, %v3236_v56  ;;  %v3239_v16 = vmul.f32 %v9561_v26, %v7314_v13  ;;  %v6055_v56 = vld [vmem:[%s11428_s2 + $0x98] sm:$0xff]  ;;  %v6054_v40 = vld [vmem:[%s11428_s2 + $0x90] sm:$0xff] }
0x1713   :  { %3247 = vadd.xlane.f32.xlu0 %v3246_v33  ;;  %v3249_v58 = vadd.f32 %v3239_v16, %v3238_v27 }
0x1717   :  { %3250 = vadd.xlane.f32.xlu0 %v3249_v58 }
0x171e   :  { %3314 = vperm.xlu1 %6171, %v6048_v18  }
0x1722   :  { %3342 = vperm.xlu1 %6171, %v6052_v62  }
0x1726   :  { %3347 = vperm.xlu1 %6171, %v6053_v59  }
0x172a   :  { %3329 = vperm.xlu1 %6171, %v6051_v31  }
0x172d   :  { %3319 = vperm.xlu0 %6172, %v6049_v52  }
0x1731   :  { %3324 = vperm.xlu0 %6172, %v6050_v15  }
0x1798   :  { %v3242_v36 = vpop.xlane.xlu0 %3241 }
0x1799   :  { %v3252_v54 = vmul.f32 %v3242_v36, %v7343_v46 }
0x179a   :  { %v3245_v63 = vpop.xlane.xlu1 %3244 }
0x179b   :  { %v9589_v45 = vsub.f32 %v9530_v42, %v3252_v54  ;;  %v9592_v51 = vsub.f32 %v9533_v38, %v3252_v54  ;;  %v3253_v14 = vmul.f32 %v3245_v63, %v7343_v46 }
0x179d   :  { %v3264_v43 = vmul.f32 %v9589_v45, %v9589_v45  ;;  %v3265_v21 = vmul.f32 %v9592_v51, %v9592_v51  ;;  %v9600_v29 = vsub.f32 %v9536_v20, %v3253_v14  ;;  %v9603_v24 = vsub.f32 %v9541_v34, %v3253_v14 }
0x179e   :  { %v3315_v33 = vpop.permute.xlu1 %3314 }
0x179f   :  { %v3266_v25 = vmul.f32 %v9600_v29, %v9600_v29  ;;  %v3267_v8 = vmul.f32 %v9603_v24, %v9603_v24  ;;  %v3272_v57 = vmul.f32 %v3264_v43, %v7312_v12  ;;  %v3273_v44 = vmul.f32 %v3265_v21, %v7314_v13 }
0x17a0   :  { %v3248_v39 = vpop.xlane.xlu0 %3247 }
0x17a1   :  { %v3254_v50 = vmul.f32 %v3248_v39, %v7343_v46  ;;  %v3280_v11 = vadd.f32 %v3273_v44, %v3272_v57  ;;  %v3274_v10 = vmul.f32 %v3266_v25, %v7312_v12  ;;  %v3275_v53 = vmul.f32 %v3267_v8, %v7314_v13 }
0x17a2   :  { %v3343_v27 = vpop.permute.xlu1 %3342 }
0x17a3   :  { %v9615_v55 = vsub.f32 %v9550_v60, %v3254_v50  ;;  %v9618_v2 = vsub.f32 %v9553_v17, %v3254_v50  ;;  %3281 = vadd.xlane.f32.xlu1 %v3280_v11  ;;  %v3283_v19 = vadd.f32 %v3275_v53, %v3274_v10 }
0x17a4   :  { %v3251_v49 = vpop.xlane.xlu0 %3250 }
0x17a5   :  { %v3268_v48 = vmul.f32 %v9615_v55, %v9615_v55  ;;  %v3269_v37 = vmul.f32 %v9618_v2, %v9618_v2  ;;  %v3255_v23 = vmul.f32 %v3251_v49, %v7343_v46  ;;  %3284 = vadd.xlane.f32.xlu0 %v3283_v19 }
0x17a6   :  { %v3348_v16 = vpop.permute.xlu1 %3347 }
0x17a7   :  { %v9626_v41 = vsub.f32 %v9556_v61, %v3255_v23  ;;  %v9629_v30 = vsub.f32 %v9561_v26, %v3255_v23  ;;  %v3276_v35 = vmul.f32 %v3268_v48, %v7312_v12  ;;  %v3277_v47 = vmul.f32 %v3269_v37, %v7314_v13 }
0x17a9   :  { %v3270_v4 = vmul.f32 %v9626_v41, %v9626_v41  ;;  %v3271_v28 = vmul.f32 %v9629_v30, %v9629_v30  ;;  %v3286_v7 = vadd.f32 %v3277_v47, %v3276_v35 }
0x17aa   :  { %v3330_v18 = vpop.permute.xlu1 %3329 }
0x17ab   :  { %3287 = vadd.xlane.f32.xlu1 %v3286_v7  ;;  %v3278_v5 = vmul.f32 %v3270_v4, %v7312_v12  ;;  %v3279_v22 = vmul.f32 %v3271_v28, %v7314_v13 }
0x17ac   :  { %v3320_v58 = vpop.permute.xlu0 %3319 }
0x17ad   :  { %v3289_v9 = vadd.f32 %v3279_v22, %v3278_v5 }
0x17af   :  { %3290 = vadd.xlane.f32.xlu0 %v3289_v9 }
0x17b0   :  { %v3325_v62 = vpop.permute.xlu0 %3324 }
0x17bc   :  { %3357 = vperm.xlu1 %6171, %v6055_v56  }
0x17c5   :  { %3352 = vperm.xlu0 %6172, %v6054_v40  }
0x1830   :  { %v3282_v59 = vpop.xlane.xlu1 %3281 }
0x1831   :  { %v3292_v31 = vmul.f32 %v3282_v59, %v7343_v46 }
0x1832   :  { %v3285_v52 = vpop.xlane.xlu0 %3284 }
0x1833   :  { %v3296_v15 = vadd.f32 1e-05, %v3292_v31  ;;  %v3293_v36 = vmul.f32 %v3285_v52, %v7343_v46 }
0x1835   :  { %6957 = vrsqrt.f32 %v3296_v15  ;;  %v3297_v54 = vadd.f32 1e-05, %v3293_v36 }
0x1837   :  { %6959 = vrsqrt.f32 %v3297_v54 }
0x1838   :  { %v3288_v63 = vpop.xlane.xlu1 %3287 }
0x1839   :  { %v3294_v14 = vmul.f32 %v3288_v63, %v7343_v46 }
0x183b   :  { %v3298_v43 = vadd.f32 1e-05, %v3294_v14 }
0x183c   :  { %v3291_v21 = vpop.xlane.xlu0 %3290 }
0x183d   :  { %6961 = vrsqrt.f32 %v3298_v43  ;;  %v3295_v25 = vmul.f32 %v3291_v21, %v7343_v46  ;;  %v3358_v21 = vpop.permute.xlu1 %3357 }
0x183f   :  { %v6958_v8 = vpop.eup %6957  ;;  %v3299_v57 = vadd.f32 1e-05, %v3295_v25 }
0x1840   :  { %v3304_v44 = vmul.f32 %v6958_v8, %v9589_v45  ;;  %v3305_v39 = vmul.f32 %v6958_v8, %v9592_v51 }
0x1841   :  { %v6960_v50 = vpop.eup %6959  ;;  %6963 = vrsqrt.f32 %v3299_v57 }
0x1842   :  { %v3332_v11 = vmul.f32 %v3315_v33, %v3304_v44  ;;  %v3333_v10 = vmul.f32 %v3315_v33, %v3305_v39  ;;  %v3306_v53 = vmul.f32 %v6960_v50, %v9600_v29  ;;  %v3307_v19 = vmul.f32 %v6960_v50, %v9603_v24 }
0x1844   :  { %v9653_v49 = vadd.f32 %v3343_v27, %v3332_v11  ;;  %v9655_v48 = vadd.f32 %v3343_v27, %v3333_v10  ;;  %v3334_v37 = vmul.f32 %v3320_v58, %v3306_v53  ;;  %v3335_v23 = vmul.f32 %v3320_v58, %v3307_v19 }
0x1846   :  { %v9657_v35 = vadd.f32 %v3348_v16, %v3334_v37  ;;  %v9659_v47 = vadd.f32 %v3348_v16, %v3335_v23  ;;  %v3369_v45 = vmul.f32 %v9655_v48, %v9655_v48  ;;  %v3368_v51 = vmul.f32 %v9653_v49, %v9653_v49  ;;  %v3353_v16 = vpop.permute.xlu0 %3352 }
0x1847   :  { %v6962_v4 = vpop.eup %6961 }
0x1848   :  { %v3308_v29 = vmul.f32 %v6962_v4, %v9615_v55  ;;  %v3309_v24 = vmul.f32 %v6962_v4, %v9618_v2  ;;  %v3371_v28 = vmul.f32 %v9659_v47, %v9659_v47  ;;  %v3377_v7 = vmul.f32 %v3369_v45, %v9655_v48 }
0x1849   :  { %v3370_v5 = vmul.f32 %v9657_v35, %v9657_v35  ;;  %v3376_v22 = vmul.f32 %v3368_v51, %v9653_v49 }
0x184a   :  { %v3336_v9 = vmul.f32 %v3325_v62, %v3308_v29  ;;  %v3337_v56 = vmul.f32 %v3325_v62, %v3309_v24  ;;  %v3379_v40 = vmul.f32 %v3371_v28, %v9659_v47  ;;  %v3385_v33 = vmul.f32 0.044715, %v3377_v7 }
0x184b   :  { %v6964_v27 = vpop.eup %6963  ;;  %v3378_v55 = vmul.f32 %v3370_v5, %v9657_v35  ;;  %v3384_v2 = vmul.f32 0.044715, %v3376_v22 }
0x184c   :  { %v3310_v58 = vmul.f32 %v6964_v27, %v9626_v41  ;;  %v3311_v59 = vmul.f32 %v6964_v27, %v9629_v30  ;;  %v9677_v31 = vadd.f32 %v3353_v16, %v3336_v9  ;;  %v9679_v52 = vadd.f32 %v3353_v16, %v3337_v56 }
0x184d   :  { %v3387_v15 = vmul.f32 0.044715, %v3379_v40  ;;  %v3393_v36 = vadd.f32 %v3385_v33, %v9655_v48  ;;  %v3386_v62 = vmul.f32 0.044715, %v3378_v55  ;;  %v3392_v54 = vadd.f32 %v3384_v2, %v9653_v49 }
0x184e   :  { %v3338_v63 = vmul.f32 %v3330_v18, %v3310_v58  ;;  %v3339_v14 = vmul.f32 %v3330_v18, %v3311_v59  ;;  %v3372_v43 = vmul.f32 %v9677_v31, %v9677_v31  ;;  %v3373_v41 = vmul.f32 %v9679_v52, %v9679_v52 }
0x184f   :  { %v3395_v30 = vadd.f32 %v3387_v15, %v9659_v47  ;;  %v3401_v25 = vmul.f32 0.7978846, %v3393_v36  ;;  %v3394_v8 = vadd.f32 %v3386_v62, %v9657_v35  ;;  %v3400_v57 = vmul.f32 0.7978846, %v3392_v54 }
0x1850   :  { %v9689_v44 = vadd.f32 %v3358_v21, %v3338_v63  ;;  %v9691_v39 = vadd.f32 %v3358_v21, %v3339_v14  ;;  %v3380_v50 = vmul.f32 %v3372_v43, %v9677_v31  ;;  %v3381_v18 = vmul.f32 %v3373_v41, %v9679_v52 }
0x1851   :  { %v3403_v11 = vmul.f32 0.7978846, %v3395_v30  ;;  %6965 = vtanh.f32 %v3401_v25  ;;  %v3402_v10 = vmul.f32 0.7978846, %v3394_v8 }
0x1852   :  { %v3388_v53 = vmul.f32 0.044715, %v3380_v50  ;;  %v3389_v19 = vmul.f32 0.044715, %v3381_v18  ;;  %6967 = vtanh.f32 %v3400_v57  ;;  %v3375_v37 = vmul.f32 %v9691_v39, %v9691_v39 }
0x1853   :  { %6969 = vtanh.f32 %v3403_v11  ;;  %v3374_v23 = vmul.f32 %v9689_v44, %v9689_v44 }
0x1854   :  { %v3396_v45 = vadd.f32 %v3388_v53, %v9677_v31  ;;  %v3397_v51 = vadd.f32 %v3389_v19, %v9679_v52  ;;  %6971 = vtanh.f32 %v3402_v10  ;;  %v3383_v4 = vmul.f32 %v3375_v37, %v9691_v39 }
0x1855   :  { %v3382_v29 = vmul.f32 %v3374_v23, %v9689_v44 }
0x1856   :  { %v3404_v24 = vmul.f32 0.7978846, %v3396_v45  ;;  %v3405_v28 = vmul.f32 0.7978846, %v3397_v51  ;;  %v3391_v7 = vmul.f32 0.044715, %v3383_v4 }
0x1857   :  { %v3390_v5 = vmul.f32 0.044715, %v3382_v29 }
0x1858   :  { %6973 = vtanh.f32 %v3404_v24  ;;  %v3399_v22 = vadd.f32 %v3391_v7, %v9691_v39 }
0x1859   :  { %6975 = vtanh.f32 %v3405_v28  ;;  %v3398_v9 = vadd.f32 %v3390_v5, %v9689_v44 }
0x185a   :  { %v3407_v56 = vmul.f32 0.7978846, %v3399_v22 }
0x185b   :  { %v6966_v40 = vpop.eup %6965  ;;  %v3406_v33 = vmul.f32 0.7978846, %v3398_v9 }
0x185c   :  { %v6968_v27 = vpop.eup %6967  ;;  %v3417_v16 = vadd.f32 1.0, %v6966_v40  ;;  %6977 = vtanh.f32 %v3407_v56 }
0x185d   :  { %v6970_v55 = vpop.eup %6969  ;;  %v3416_v2 = vadd.f32 1.0, %v6968_v27  ;;  %6979 = vtanh.f32 %v3406_v33  ;;  %v6061_v33 = vld [vmem:[%s11429_s3 + $0x88] sm:$0xff]  ;;  %v6060_v27 = vld [vmem:[%s11429_s3 + $0x80] sm:$0xff] }
0x185e   :  { %v6972_v58 = vpop.eup %6971  ;;  %v3419_v59 = vadd.f32 1.0, %v6970_v55  ;;  %v3425_v15 = vmul.f32 0.5, %v3417_v16  ;;  %v6063_v16 = vld [vmem:[%s11429_s3 + $0x98] sm:$0xff]  ;;  %v6062_v55 = vld [vmem:[%s11429_s3 + $0x90] sm:$0xff] }
0x185f   :  { %v3418_v36 = vadd.f32 1.0, %v6972_v58  ;;  %v3424_v62 = vmul.f32 0.5, %v3416_v2 }
0x1860   :  { %v3427_v54 = vmul.f32 0.5, %v3419_v59  ;;  %v3433_v63 = vmul.f32 %v3425_v15, %v9655_v48 }
0x1861   :  { %v3426_v14 = vmul.f32 0.5, %v3418_v36  ;;  %v3432_v43 = vmul.f32 %v3424_v62, %v9653_v49 }
0x1862   :  { %v6974_v41 = vpop.eup %6973  ;;  %v3435_v21 = vmul.f32 %v3427_v54, %v9659_v47  ;;  %v9710_v50 = vmul.f32 %v3433_v63, %v7314_v13 }
0x1863   :  { %v6976_v30 = vpop.eup %6975  ;;  %v3420_v25 = vadd.f32 1.0, %v6974_v41  ;;  %v3434_v8 = vmul.f32 %v3426_v14, %v9657_v35  ;;  %v9716_v11 = vmul.f32 %v3432_v43, %v7312_v12 }
0x1864   :  { %v3421_v57 = vadd.f32 1.0, %v6976_v30  ;;  %v9713_v18 = vmul.f32 %v3435_v21, %v7314_v13 }
0x1865   :  { %v9719_v48 = vmul.f32 %v3434_v8, %v7312_v12  ;;  %v3428_v10 = vmul.f32 0.5, %v3420_v25 }
0x1866   :  { %v6978_v49 = vpop.eup %6977  ;;  %v3429_v47 = vmul.f32 0.5, %v3421_v57  ;;  %v6498_v53 = vpack.i.bf16 %v9713_v18, %v9710_v50  ;;  %v3511_v35 = vpack.c.bf16 %v9713_v18, %v9710_v50 }
0x1867   :  { %v6980_v19 = vpop.eup %6979  ;;  %v6493_v37 = vpack.i.bf16 %v9719_v48, %v9716_v11  ;;  %v3423_v23 = vadd.f32 1.0, %v6978_v49  ;;  %v3510_v51 = vpack.c.bf16 %v9719_v48, %v9716_v11  ;;  %v3436_v24 = vmul.f32 %v3428_v10, %v9677_v31 }
0x1868   :  { %6499 = vrot.lane.b32.xlu1 %v6498_v53, %s11436_s21  ;;  %v3422_v45 = vadd.f32 1.0, %v6980_v19  ;;  %v3437_v4 = vmul.f32 %v3429_v47, %v9679_v52 }
0x1869   :  { %6494 = vrot.lane.b32.xlu0 %v6493_v37, %s11436_s21  ;;  %v3431_v29 = vmul.f32 0.5, %v3423_v23  ;;  %v9742_v56 = vmul.f32 %v3436_v24, %v7312_v12 }
0x186a   :  { %v3430_v28 = vmul.f32 0.5, %v3422_v45  ;;  %v9736_v22 = vmul.f32 %v3437_v4, %v7314_v13 }
0x186b   :  { %v3439_v7 = vmul.f32 %v3431_v29, %v9691_v39 }
0x186c   :  { %v3438_v5 = vmul.f32 %v3430_v28, %v9689_v44 }
0x186d   :  { %v9739_v9 = vmul.f32 %v3439_v7, %v7314_v13 }
0x186e   :  { %v9745_v52 = vmul.f32 %v3438_v5, %v7312_v12 }
0x186f   :  { %v6508_v31 = vpack.i.bf16 %v9739_v9, %v9736_v22  ;;  %v3513_v39 = vpack.c.bf16 %v9739_v9, %v9736_v22 }
0x1870   :  { %v6503_v44 = vpack.i.bf16 %v9745_v52, %v9742_v56  ;;  %v3512_v40 = vpack.c.bf16 %v9745_v52, %v9742_v56  ;;  %v6749_v56 = vld [vmem:[%s11430_s26 + $0x40] sm:$0xff]   ;;  %v6750_v52 = vld [vmem:[%s11430_s26 + $0x48] sm:$0xff]  }
0x1871   :  { %6509 = vrot.lane.b32.xlu1 %v6508_v31, %s11436_s21 }
0x1872   :  { %6504 = vrot.lane.b32.xlu0 %v6503_v44, %s11436_s21 }
0x1875   :  { %6519 = vrot.lane.b32.xlu1 %v6498_v53, %s11432_s22 }
0x1876   :  { %6514 = vrot.lane.b32.xlu0 %v6493_v37, %s11432_s22 }
0x1879   :  { %6529 = vrot.lane.b32.xlu1 %v6508_v31, %s11432_s22 }
0x187a   :  { %6524 = vrot.lane.b32.xlu0 %v6503_v44, %s11432_s22 }
0x187d   :  { %3525 = vperm.xlu1 %6171, %v6061_v33  }
0x187e   :  { %3520 = vperm.xlu0 %6172, %v6060_v27  }
0x1881   :  { %3535 = vperm.xlu1 %6171, %v6063_v16  }
0x1882   :  { %3530 = vperm.xlu0 %6172, %v6062_v55  }
0x18da   :  { %v6500_v2 = vpop.permute.xlu1 %6499 }
0x18db   :  { %v6502_v58 = vunpack.i.h.bf16 %v6500_v2  ;;  %v6501_v59 = vunpack.i.l.bf16 %v6500_v2  ;;  %v6495_v15 = vpop.permute.xlu0 %6494 }
0x18dc   :  { %v6497_v36 = vunpack.i.h.bf16 %v6495_v15  ;;  %v6496_v62 = vunpack.i.l.bf16 %v6495_v15 }
0x18de   :  { %v3479_v54 = vsel %vm1136_vm4, %v6502_v58, %v6497_v36  ;;  %v3478_v63 = vsel %vm1136_vm4, %v6501_v59, %v6496_v62  ;;  %v3474_v14 = vsel %vm1136_vm4, %v6496_v62, %v6501_v59  ;;  %v3475_v43 = vsel %vm1136_vm4, %v6497_v36, %v6502_v58 }
0x18df   :  { %v3507_v41 = vpack.c.bf16 %v3475_v43, %v3474_v14  ;;  %v3506_v21 = vpack.c.bf16 %v3479_v54, %v3478_v63 }
0x18e1   :  { %3554 = vmatprep.subr.bf16.mxu0 %v3507_v41 }
0x18e2   :  { %3555 = vmatpush1.bf16.msra.mxu0 %v3506_v21 }
0x18e3   :  { %v6510_v30 = vpop.permute.xlu1 %6509 }
0x18e4   :  { %v6512_v25 = vunpack.i.h.bf16 %v6510_v30  ;;  %v6511_v8 = vunpack.i.l.bf16 %v6510_v30  ;;  %v6505_v57 = vpop.permute.xlu0 %6504 }
0x18e5   :  { %v6507_v49 = vunpack.i.h.bf16 %v6505_v57  ;;  %v6506_v10 = vunpack.i.l.bf16 %v6505_v57 }
0x18e7   :  { %v3481_v47 = vsel %vm1136_vm4, %v6512_v25, %v6507_v49  ;;  %v3480_v53 = vsel %vm1136_vm4, %v6511_v8, %v6506_v10  ;;  %v6520_v19 = vpop.permute.xlu1 %6519  ;;  %v3476_v37 = vsel %vm1136_vm4, %v6506_v10, %v6511_v8  ;;  %v3477_v23 = vsel %vm1136_vm4, %v6507_v49, %v6512_v25 }
0x18e8   :  { %v6515_v45 = vpop.permute.xlu0 %6514  ;;  %v3509_v4 = vpack.c.bf16 %v3477_v23, %v3476_v37  ;;  %v3508_v29 = vpack.c.bf16 %v3481_v47, %v3480_v53  ;;  %v6522_v24 = vunpack.i.h.bf16 %v6520_v19  ;;  %v6521_v28 = vunpack.i.l.bf16 %v6520_v19 }
0x18e9   :  { %v6517_v7 = vunpack.i.h.bf16 %v6515_v45  ;;  %v6516_v5 = vunpack.i.l.bf16 %v6515_v45 }
0x18ea   :  { %3556 = vmatprep.subr.bf16.mxu0 %v3509_v4 }
0x18eb   :  { %3557 = vmatpush1.bf16.msra.mxu0 %v3508_v29  ;;  %v6530_v22 = vpop.permute.xlu1 %6529  ;;  %v3502_v31 = vsel %vm1161_vm5, %v6521_v28, %v6516_v5  ;;  %v3503_v44 = vsel %vm1161_vm5, %v6522_v24, %v6517_v7  ;;  %v3499_v2 = vsel %vm1161_vm5, %v6517_v7, %v6522_v24  ;;  %v3498_v50 = vsel %vm1161_vm5, %v6516_v5, %v6521_v28 }
0x18ec   :  { %v6525_v9 = vpop.permute.xlu0 %6524  ;;  %3558 = vmatprep.subr.bf16.mxu0 %v3511_v35  ;;  %v6532_v33 = vunpack.i.h.bf16 %v6530_v22  ;;  %v6531_v27 = vunpack.i.l.bf16 %v6530_v22  ;;  %v3515_v18 = vpack.c.bf16 %v3503_v44, %v3502_v31  ;;  %v3514_v11 = vpack.c.bf16 %v3499_v2, %v3498_v50  ;;  %v6069_v2 = vld [vmem:[%s11379_s6 + $0x88] sm:$0xff]  ;;  %v6070_v50 = vld [vmem:[%s11379_s6 + $0x90] sm:$0xff] }
0x18ed   :  { %v6527_v16 = vunpack.i.h.bf16 %v6525_v9  ;;  %v6526_v55 = vunpack.i.l.bf16 %v6525_v9 }
0x18ef   :  { %3559 = vmatpush1.bf16.msra.mxu0 %v3510_v51  ;;  %v3504_v35 = vsel %vm1161_vm5, %v6531_v27, %v6526_v55  ;;  %v3505_v58 = vsel %vm1161_vm5, %v6532_v33, %v6527_v16  ;;  %v3501_v48 = vsel %vm1161_vm5, %v6527_v16, %v6532_v33  ;;  %v3500_v51 = vsel %vm1161_vm5, %v6526_v55, %v6531_v27  ;;  %v6068_v33 = vld [vmem:[%s11379_s6 + $0x80] sm:$0xff]  ;;  %v6073_v16 = vld [vmem:[%s11380_s7 + $0x88] sm:$0xff]  ;;  %v6071_v55 = vld [vmem:[%s11379_s6 + $0x98] sm:$0xff] }
0x18f0   :  { %3560 = vmatprep.subr.bf16.mxu0 %v3513_v39  ;;  %v3517_v39 = vpack.c.bf16 %v3505_v58, %v3504_v35  ;;  %v3516_v59 = vpack.c.bf16 %v3501_v48, %v3500_v51  ;;  %v6072_v27 = vld [vmem:[%s11380_s7 + $0x80] sm:$0xff] }
0x18f3   :  { %3561 = vmatpush1.bf16.msra.mxu0 %v3512_v40 }
0x18f4   :  { %3562 = vmatprep.subr.bf16.mxu0 %v3515_v18 }
0x18f7   :  { %3563 = vmatpush1.bf16.msra.mxu0 %v3514_v11 }
0x18f8   :  { %3564 = vmatprep.subr.bf16.mxu0 %v3517_v39 }
0x18fb   :  { %3565 = vmatpush1.bf16.msra.mxu0 %v3516_v59 }
0x18fc   :  { %v3526_v54 = vpop.permute.xlu1 %3525 }
0x18fd   :  { %v3521_v40 = vpop.permute.xlu0 %3520 }
0x18fe   :  { %6066 = vmatmul.mubr.msk.bf16.vlgmr.msra.gmra.mrb[32].mxu0 %vm435_vm3, %v6749_v56 }
0x18ff   :  { %3596 = vmatprep.mubr.bf16.mxu0 %v7153_v32 }
0x1900   :  { %v3536_v23 = vpop.permute.xlu1 %3535 }
0x1901   :  { %v3531_v10 = vpop.permute.xlu0 %3530 }
0x1906   :  { %6067 = vmatmul.mubr.msk.bf16.gmra.mrb[36].mxu0 %vm435_vm3, %v6750_v52 }
0x1907   :  { %4364 = vmatprep.mubr.bf16.mxu0 %v7153_v32 }
0x19d1   :  { %v3588_v15 = vpop.f32.mrb[32].mxu0 }
0x19d2   :  { %v3589_v36 = vadd.f32 %v3588_v15, %v3521_v40  ;;  %v3590_v62 = vpop.f32.mrb[33].mxu0 }
0x19d3   :  { %v3591_v63 = vadd.f32 %v3590_v62, %v3521_v40  ;;  %v3592_v14 = vpop.f32.mrb[34].mxu0 }
0x19d4   :  { %v3617_v43 = vmul.f32 %v3589_v36, %v7312_v12  ;;  %v3593_v41 = vadd.f32 %v3592_v14, %v3526_v54  ;;  %v3594_v21 = vpop.f32.mrb[35].mxu0 }
0x19d5   :  { %v3618_v30 = vmul.f32 %v3591_v63, %v7314_v13  ;;  %v3595_v25 = vadd.f32 %v3594_v21, %v3526_v54 }
0x19d6   :  { %v3619_v8 = vmul.f32 %v3593_v41, %v7312_v12 }
0x19d7   :  { %v3620_v57 = vmul.f32 %v3595_v25, %v7314_v13  ;;  %v3625_v49 = vadd.f32 %v3618_v30, %v3617_v43 }
0x19d9   :  { %v3598_v47 = vpop.f32.mrb[36].mxu0  ;;  %3626 = vadd.xlane.f32.xlu0 %v3625_v49  ;;  %v3628_v53 = vadd.f32 %v3620_v57, %v3619_v8 }
0x19da   :  { %v3599_v19 = vadd.f32 %v3598_v47, %v3531_v10  ;;  %v3600_v37 = vpop.f32.mrb[37].mxu0 }
0x19db   :  { %v3601_v45 = vadd.f32 %v3600_v37, %v3531_v10  ;;  %v3602_v4 = vpop.f32.mrb[38].mxu0  ;;  %3629 = vadd.xlane.f32.xlu1 %v3628_v53 }
0x19dc   :  { %v3621_v29 = vmul.f32 %v3599_v19, %v7312_v12  ;;  %v3603_v24 = vadd.f32 %v3602_v4, %v3536_v23  ;;  %v3604_v28 = vpop.f32.mrb[39].mxu0 }
0x19dd   :  { %v3622_v7 = vmul.f32 %v3601_v45, %v7314_v13  ;;  %v3605_v5 = vadd.f32 %v3604_v28, %v3536_v23 }
0x19de   :  { %v3623_v22 = vmul.f32 %v3603_v24, %v7312_v12 }
0x19df   :  { %v3624_v9 = vmul.f32 %v3605_v5, %v7314_v13  ;;  %v3631_v31 = vadd.f32 %v3622_v7, %v3621_v29  ;;  %v6075_v7 = vld [vmem:[%s11380_s7 + $0x98] sm:$0xff] }
0x19e1   :  { %3632 = vadd.xlane.f32.xlu0 %v3631_v31  ;;  %v3634_v44 = vadd.f32 %v3624_v9, %v3623_v22 }
0x19e5   :  { %3635 = vadd.xlane.f32.xlu0 %v3634_v44 }
0x19ec   :  { %3699 = vperm.xlu1 %6171, %v6068_v33  }
0x19f0   :  { %3727 = vperm.xlu1 %6171, %v6072_v27  }
0x19f4   :  { %3732 = vperm.xlu1 %6171, %v6073_v16  }
0x19f8   :  { %3714 = vperm.xlu1 %6171, %v6071_v55  }
0x19fb   :  { %3704 = vperm.xlu0 %6172, %v6069_v2  }
0x19ff   :  { %3709 = vperm.xlu0 %6172, %v6070_v50  }
0x1a66   :  { %v3627_v18 = vpop.xlane.xlu0 %3626 }
0x1a67   :  { %v3637_v35 = vmul.f32 %v3627_v18, %v7343_v46 }
0x1a68   :  { %v3630_v58 = vpop.xlane.xlu1 %3629 }
0x1a69   :  { %v9851_v11 = vsub.f32 %v3589_v36, %v3637_v35  ;;  %v9853_v48 = vsub.f32 %v3591_v63, %v3637_v35  ;;  %v3638_v51 = vmul.f32 %v3630_v58, %v7343_v46 }
0x1a6b   :  { %v3649_v39 = vmul.f32 %v9851_v11, %v9851_v11  ;;  %v3650_v59 = vmul.f32 %v9853_v48, %v9853_v48  ;;  %v9860_v56 = vsub.f32 %v3593_v41, %v3638_v51  ;;  %v9862_v52 = vsub.f32 %v3595_v25, %v3638_v51 }
0x1a6c   :  { %v3700_v22 = vpop.permute.xlu1 %3699 }
0x1a6d   :  { %v3651_v40 = vmul.f32 %v9860_v56, %v9860_v56  ;;  %v3652_v15 = vmul.f32 %v9862_v52, %v9862_v52  ;;  %v3657_v36 = vmul.f32 %v3649_v39, %v7312_v12  ;;  %v3658_v62 = vmul.f32 %v3650_v59, %v7314_v13 }
0x1a6e   :  { %v3633_v54 = vpop.xlane.xlu0 %3632 }
0x1a6f   :  { %v3639_v63 = vmul.f32 %v3633_v54, %v7343_v46  ;;  %v3665_v14 = vadd.f32 %v3658_v62, %v3657_v36  ;;  %v3659_v43 = vmul.f32 %v3651_v40, %v7312_v12  ;;  %v3660_v41 = vmul.f32 %v3652_v15, %v7314_v13 }
0x1a70   :  { %v3728_v9 = vpop.permute.xlu1 %3727 }
0x1a71   :  { %v9873_v21 = vsub.f32 %v3599_v19, %v3639_v63  ;;  %v9875_v30 = vsub.f32 %v3601_v45, %v3639_v63  ;;  %3666 = vadd.xlane.f32.xlu1 %v3665_v14  ;;  %v3668_v25 = vadd.f32 %v3660_v41, %v3659_v43 }
0x1a72   :  { %v3636_v8 = vpop.xlane.xlu0 %3635 }
0x1a73   :  { %v3653_v57 = vmul.f32 %v9873_v21, %v9873_v21  ;;  %v3654_v49 = vmul.f32 %v9875_v30, %v9875_v30  ;;  %v3640_v10 = vmul.f32 %v3636_v8, %v7343_v46  ;;  %3669 = vadd.xlane.f32.xlu0 %v3668_v25 }
0x1a74   :  { %v3733_v31 = vpop.permute.xlu1 %3732 }
0x1a75   :  { %v9882_v47 = vsub.f32 %v3603_v24, %v3640_v10  ;;  %v9884_v53 = vsub.f32 %v3605_v5, %v3640_v10  ;;  %v3661_v19 = vmul.f32 %v3653_v57, %v7312_v12  ;;  %v3662_v37 = vmul.f32 %v3654_v49, %v7314_v13  ;;  %v6074_v5 = vld [vmem:[%s11380_s7 + $0x90] sm:$0xff] }
0x1a77   :  { %v3655_v23 = vmul.f32 %v9882_v47, %v9882_v47  ;;  %v3656_v45 = vmul.f32 %v9884_v53, %v9884_v53  ;;  %v3671_v4 = vadd.f32 %v3662_v37, %v3661_v19 }
0x1a78   :  { %v3715_v33 = vpop.permute.xlu1 %3714 }
0x1a79   :  { %3672 = vadd.xlane.f32.xlu1 %v3671_v4  ;;  %v3663_v29 = vmul.f32 %v3655_v23, %v7312_v12  ;;  %v3664_v28 = vmul.f32 %v3656_v45, %v7314_v13 }
0x1a7a   :  { %v3705_v44 = vpop.permute.xlu0 %3704 }
0x1a7b   :  { %v3674_v24 = vadd.f32 %v3664_v28, %v3663_v29 }
0x1a7d   :  { %3675 = vadd.xlane.f32.xlu0 %v3674_v24 }
0x1a7e   :  { %v3710_v27 = vpop.permute.xlu0 %3709 }
0x1a8a   :  { %3742 = vperm.xlu1 %6171, %v6075_v7  }
0x1a93   :  { %3737 = vperm.xlu0 %6172, %v6074_v5  }
0x1afe   :  { %v3667_v16 = vpop.xlane.xlu1 %3666 }
0x1aff   :  { %v3677_v55 = vmul.f32 %v3667_v16, %v7343_v46 }
0x1b00   :  { %v3670_v2 = vpop.xlane.xlu0 %3669 }
0x1b01   :  { %v3681_v50 = vadd.f32 1e-05, %v3677_v55  ;;  %v3678_v18 = vmul.f32 %v3670_v2, %v7343_v46 }
0x1b03   :  { %6981 = vrsqrt.f32 %v3681_v50  ;;  %v3682_v35 = vadd.f32 1e-05, %v3678_v18 }
0x1b05   :  { %6983 = vrsqrt.f32 %v3682_v35 }
0x1b06   :  { %v3673_v58 = vpop.xlane.xlu1 %3672 }
0x1b07   :  { %v3679_v51 = vmul.f32 %v3673_v58, %v7343_v46 }
0x1b09   :  { %v3683_v39 = vadd.f32 1e-05, %v3679_v51 }
0x1b0a   :  { %v3676_v59 = vpop.xlane.xlu0 %3675 }
0x1b0b   :  { %6985 = vrsqrt.f32 %v3683_v39  ;;  %v3680_v40 = vmul.f32 %v3676_v59, %v7343_v46  ;;  %v3743_v59 = vpop.permute.xlu1 %3742 }
0x1b0d   :  { %v6982_v15 = vpop.eup %6981  ;;  %v3684_v36 = vadd.f32 1e-05, %v3680_v40 }
0x1b0e   :  { %v3689_v62 = vmul.f32 %v6982_v15, %v9851_v11  ;;  %v3690_v54 = vmul.f32 %v6982_v15, %v9853_v48 }
0x1b0f   :  { %v6984_v63 = vpop.eup %6983  ;;  %6987 = vrsqrt.f32 %v3684_v36 }
0x1b10   :  { %v3717_v14 = vmul.f32 %v3700_v22, %v3689_v62  ;;  %v3718_v43 = vmul.f32 %v3700_v22, %v3690_v54  ;;  %v3691_v41 = vmul.f32 %v6984_v63, %v9860_v56  ;;  %v3692_v25 = vmul.f32 %v6984_v63, %v9862_v52 }
0x1b12   :  { %v9908_v8 = vadd.f32 %v3728_v9, %v3717_v14  ;;  %v9910_v57 = vadd.f32 %v3728_v9, %v3718_v43  ;;  %v3719_v49 = vmul.f32 %v3705_v44, %v3691_v41  ;;  %v3720_v10 = vmul.f32 %v3705_v44, %v3692_v25 }
0x1b14   :  { %v9912_v19 = vadd.f32 %v3733_v31, %v3719_v49  ;;  %v9914_v37 = vadd.f32 %v3733_v31, %v3720_v10  ;;  %v3754_v11 = vmul.f32 %v9910_v57, %v9910_v57  ;;  %v3753_v48 = vmul.f32 %v9908_v8, %v9908_v8  ;;  %v3738_v31 = vpop.permute.xlu0 %3737 }
0x1b15   :  { %v6986_v23 = vpop.eup %6985 }
0x1b16   :  { %v3693_v56 = vmul.f32 %v6986_v23, %v9873_v21  ;;  %v3694_v52 = vmul.f32 %v6986_v23, %v9875_v30  ;;  %v3756_v45 = vmul.f32 %v9914_v37, %v9914_v37  ;;  %v3762_v4 = vmul.f32 %v3754_v11, %v9910_v57 }
0x1b17   :  { %v3755_v29 = vmul.f32 %v9912_v19, %v9912_v19  ;;  %v3761_v28 = vmul.f32 %v3753_v48, %v9908_v8 }
0x1b18   :  { %v3721_v24 = vmul.f32 %v3710_v27, %v3693_v56  ;;  %v3722_v7 = vmul.f32 %v3710_v27, %v3694_v52  ;;  %v3764_v5 = vmul.f32 %v3756_v45, %v9914_v37  ;;  %v3770_v22 = vmul.f32 0.044715, %v3762_v4 }
0x1b19   :  { %v6988_v9 = vpop.eup %6987  ;;  %v3763_v21 = vmul.f32 %v3755_v29, %v9912_v19  ;;  %v3769_v30 = vmul.f32 0.044715, %v3761_v28 }
0x1b1a   :  { %v3695_v44 = vmul.f32 %v6988_v9, %v9882_v47  ;;  %v3696_v16 = vmul.f32 %v6988_v9, %v9884_v53  ;;  %v9932_v55 = vadd.f32 %v3738_v31, %v3721_v24  ;;  %v9934_v2 = vadd.f32 %v3738_v31, %v3722_v7 }
0x1b1b   :  { %v3772_v50 = vmul.f32 0.044715, %v3764_v5  ;;  %v3778_v18 = vadd.f32 %v3770_v22, %v9910_v57  ;;  %v3771_v27 = vmul.f32 0.044715, %v3763_v21  ;;  %v3777_v35 = vadd.f32 %v3769_v30, %v9908_v8 }
0x1b1c   :  { %v3723_v58 = vmul.f32 %v3715_v33, %v3695_v44  ;;  %v3724_v51 = vmul.f32 %v3715_v33, %v3696_v16  ;;  %v3757_v39 = vmul.f32 %v9932_v55, %v9932_v55  ;;  %v3758_v47 = vmul.f32 %v9934_v2, %v9934_v2 }
0x1b1d   :  { %v3780_v53 = vadd.f32 %v3772_v50, %v9914_v37  ;;  %v3786_v40 = vmul.f32 0.7978846, %v3778_v18  ;;  %v3779_v15 = vadd.f32 %v3771_v27, %v9912_v19  ;;  %v3785_v36 = vmul.f32 0.7978846, %v3777_v35 }
0x1b1e   :  { %v9944_v62 = vadd.f32 %v3743_v59, %v3723_v58  ;;  %v9946_v54 = vadd.f32 %v3743_v59, %v3724_v51  ;;  %v3765_v63 = vmul.f32 %v3757_v39, %v9932_v55  ;;  %v3766_v33 = vmul.f32 %v3758_v47, %v9934_v2 }
0x1b1f   :  { %v3788_v14 = vmul.f32 0.7978846, %v3780_v53  ;;  %6989 = vtanh.f32 %v3786_v40  ;;  %v3787_v43 = vmul.f32 0.7978846, %v3779_v15 }
0x1b20   :  { %v3773_v41 = vmul.f32 0.044715, %v3765_v63  ;;  %v3774_v25 = vmul.f32 0.044715, %v3766_v33  ;;  %6991 = vtanh.f32 %v3785_v36  ;;  %v3760_v49 = vmul.f32 %v9946_v54, %v9946_v54 }
0x1b21   :  { %6993 = vtanh.f32 %v3788_v14  ;;  %v3759_v10 = vmul.f32 %v9944_v62, %v9944_v62 }
0x1b22   :  { %v3781_v11 = vadd.f32 %v3773_v41, %v9932_v55  ;;  %v3782_v48 = vadd.f32 %v3774_v25, %v9934_v2  ;;  %6995 = vtanh.f32 %v3787_v43  ;;  %v3768_v23 = vmul.f32 %v3760_v49, %v9946_v54 }
0x1b23   :  { %v3767_v56 = vmul.f32 %v3759_v10, %v9944_v62 }
0x1b24   :  { %v3789_v52 = vmul.f32 0.7978846, %v3781_v11  ;;  %v3790_v45 = vmul.f32 0.7978846, %v3782_v48  ;;  %v3776_v4 = vmul.f32 0.044715, %v3768_v23 }
0x1b25   :  { %v3775_v29 = vmul.f32 0.044715, %v3767_v56 }
0x1b26   :  { %6997 = vtanh.f32 %v3789_v52  ;;  %v3784_v28 = vadd.f32 %v3776_v4, %v9946_v54 }
0x1b27   :  { %6999 = vtanh.f32 %v3790_v45  ;;  %v3783_v24 = vadd.f32 %v3775_v29, %v9944_v62 }
0x1b28   :  { %v3792_v7 = vmul.f32 0.7978846, %v3784_v28 }
0x1b29   :  { %v6990_v5 = vpop.eup %6989  ;;  %v3791_v22 = vmul.f32 0.7978846, %v3783_v24 }
0x1b2a   :  { %v6992_v9 = vpop.eup %6991  ;;  %v3802_v31 = vadd.f32 1.0, %v6990_v5  ;;  %7001 = vtanh.f32 %v3792_v7 }
0x1b2b   :  { %v6994_v21 = vpop.eup %6993  ;;  %v3801_v30 = vadd.f32 1.0, %v6992_v9  ;;  %7003 = vtanh.f32 %v3791_v22  ;;  %v6081_v22 = vld [vmem:[%s11382_s9 + $0x88] sm:$0xff]  ;;  %v6080_v9 = vld [vmem:[%s11382_s9 + $0x80] sm:$0xff] }
0x1b2c   :  { %v6996_v44 = vpop.eup %6995  ;;  %v3804_v16 = vadd.f32 1.0, %v6994_v21  ;;  %v3810_v50 = vmul.f32 0.5, %v3802_v31  ;;  %v6083_v31 = vld [vmem:[%s11382_s9 + $0x98] sm:$0xff]  ;;  %v6082_v21 = vld [vmem:[%s11382_s9 + $0x90] sm:$0xff] }
0x1b2d   :  { %v3803_v18 = vadd.f32 1.0, %v6996_v44  ;;  %v3809_v27 = vmul.f32 0.5, %v3801_v30 }
0x1b2e   :  { %v3812_v35 = vmul.f32 0.5, %v3804_v16  ;;  %v3818_v58 = vmul.f32 %v3810_v50, %v9910_v57 }
0x1b2f   :  { %v3811_v51 = vmul.f32 0.5, %v3803_v18  ;;  %v3817_v39 = vmul.f32 %v3809_v27, %v9908_v8 }
0x1b30   :  { %v6998_v47 = vpop.eup %6997  ;;  %v3820_v59 = vmul.f32 %v3812_v35, %v9914_v37  ;;  %v9965_v63 = vmul.f32 %v3818_v58, %v7314_v13 }
0x1b31   :  { %v7000_v53 = vpop.eup %6999  ;;  %v3805_v40 = vadd.f32 1.0, %v6998_v47  ;;  %v3819_v15 = vmul.f32 %v3811_v51, %v9912_v19  ;;  %v9971_v14 = vmul.f32 %v3817_v39, %v7312_v12 }
0x1b32   :  { %v3806_v36 = vadd.f32 1.0, %v7000_v53  ;;  %v9968_v33 = vmul.f32 %v3820_v59, %v7314_v13 }
0x1b33   :  { %v9974_v57 = vmul.f32 %v3819_v15, %v7312_v12  ;;  %v3813_v43 = vmul.f32 0.5, %v3805_v40 }
0x1b34   :  { %v7002_v8 = vpop.eup %7001  ;;  %v3814_v37 = vmul.f32 0.5, %v3806_v36  ;;  %v6538_v41 = vpack.i.bf16 %v9968_v33, %v9965_v63  ;;  %v3896_v19 = vpack.c.bf16 %v9968_v33, %v9965_v63 }
0x1b35   :  { %v7004_v25 = vpop.eup %7003  ;;  %v6533_v49 = vpack.i.bf16 %v9974_v57, %v9971_v14  ;;  %v3808_v10 = vadd.f32 1.0, %v7002_v8  ;;  %v3895_v48 = vpack.c.bf16 %v9974_v57, %v9971_v14  ;;  %v3821_v52 = vmul.f32 %v3813_v43, %v9932_v55 }
0x1b36   :  { %6539 = vrot.lane.b32.xlu1 %v6538_v41, %s11436_s21  ;;  %v3807_v11 = vadd.f32 1.0, %v7004_v25  ;;  %v3822_v23 = vmul.f32 %v3814_v37, %v9934_v2 }
0x1b37   :  { %6534 = vrot.lane.b32.xlu0 %v6533_v49, %s11436_s21  ;;  %v3816_v56 = vmul.f32 0.5, %v3808_v10  ;;  %v9997_v7 = vmul.f32 %v3821_v52, %v7312_v12 }
0x1b38   :  { %v3815_v45 = vmul.f32 0.5, %v3807_v11  ;;  %v9991_v28 = vmul.f32 %v3822_v23, %v7314_v13 }
0x1b39   :  { %v3824_v4 = vmul.f32 %v3816_v56, %v9946_v54 }
0x1b3a   :  { %v3823_v29 = vmul.f32 %v3815_v45, %v9944_v62 }
0x1b3b   :  { %v9994_v24 = vmul.f32 %v3824_v4, %v7314_v13 }
0x1b3c   :  { %v10000_v2 = vmul.f32 %v3823_v29, %v7312_v12 }
0x1b3d   :  { %v6548_v55 = vpack.i.bf16 %v9994_v24, %v9991_v28  ;;  %v3898_v54 = vpack.c.bf16 %v9994_v24, %v9991_v28 }
0x1b3e   :  { %v6543_v62 = vpack.i.bf16 %v10000_v2, %v9997_v7  ;;  %v3897_v5 = vpack.c.bf16 %v10000_v2, %v9997_v7  ;;  %v6751_v7 = vld [vmem:[%s11381_s8 + $0x40] sm:$0xff]   ;;  %v6752_v2 = vld [vmem:[%s11381_s8 + $0x48] sm:$0xff]  }
0x1b3f   :  { %6549 = vrot.lane.b32.xlu1 %v6548_v55, %s11436_s21 }
0x1b40   :  { %6544 = vrot.lane.b32.xlu0 %v6543_v62, %s11436_s21  ;;  %s11437_s21 = sld [smem:[#allocation12_spill]] }
0x1b43   :  { %6559 = vrot.lane.b32.xlu1 %v6538_v41, %s11432_s22 }
0x1b44   :  { %6554 = vrot.lane.b32.xlu0 %v6533_v49, %s11432_s22 }
0x1b47   :  { %6569 = vrot.lane.b32.xlu1 %v6548_v55, %s11432_s22 }
0x1b48   :  { %6564 = vrot.lane.b32.xlu0 %v6543_v62, %s11432_s22 }
0x1b4b   :  { %3910 = vperm.xlu1 %6171, %v6081_v22  }
0x1b4c   :  { %3905 = vperm.xlu0 %6172, %v6080_v9  }
0x1b4f   :  { %3920 = vperm.xlu1 %6171, %v6083_v31  }
0x1b50   :  { %3915 = vperm.xlu0 %6172, %v6082_v21  }
0x1ba8   :  { %v6540_v30 = vpop.permute.xlu1 %6539 }
0x1ba9   :  { %v6542_v44 = vunpack.i.h.bf16 %v6540_v30  ;;  %v6541_v16 = vunpack.i.l.bf16 %v6540_v30  ;;  %v6535_v50 = vpop.permute.xlu0 %6534 }
0x1baa   :  { %v6537_v18 = vunpack.i.h.bf16 %v6535_v50  ;;  %v6536_v27 = vunpack.i.l.bf16 %v6535_v50 }
0x1bac   :  { %v3864_v35 = vsel %vm1136_vm4, %v6542_v44, %v6537_v18  ;;  %v3863_v58 = vsel %vm1136_vm4, %v6541_v16, %v6536_v27  ;;  %v3859_v51 = vsel %vm1136_vm4, %v6536_v27, %v6541_v16  ;;  %v3860_v39 = vsel %vm1136_vm4, %v6537_v18, %v6542_v44 }
0x1bad   :  { %v3892_v47 = vpack.c.bf16 %v3860_v39, %v3859_v51  ;;  %v3891_v59 = vpack.c.bf16 %v3864_v35, %v3863_v58 }
0x1baf   :  { %3939 = vmatprep.subr.bf16.mxu1 %v3892_v47 }
0x1bb0   :  { %3940 = vmatpush1.bf16.msra.mxu1 %v3891_v59 }
0x1bb1   :  { %v6550_v53 = vpop.permute.xlu1 %6549 }
0x1bb2   :  { %v6552_v40 = vunpack.i.h.bf16 %v6550_v53  ;;  %v6551_v15 = vunpack.i.l.bf16 %v6550_v53  ;;  %v6545_v36 = vpop.permute.xlu0 %6544 }
0x1bb3   :  { %v6547_v8 = vunpack.i.h.bf16 %v6545_v36  ;;  %v6546_v43 = vunpack.i.l.bf16 %v6545_v36 }
0x1bb5   :  { %v3866_v37 = vsel %vm1136_vm4, %v6552_v40, %v6547_v8  ;;  %v3865_v41 = vsel %vm1136_vm4, %v6551_v15, %v6546_v43  ;;  %v6560_v25 = vpop.permute.xlu1 %6559  ;;  %v3861_v49 = vsel %vm1136_vm4, %v6546_v43, %v6551_v15  ;;  %v3862_v10 = vsel %vm1136_vm4, %v6547_v8, %v6552_v40 }
0x1bb6   :  { %v6555_v11 = vpop.permute.xlu0 %6554  ;;  %v3894_v23 = vpack.c.bf16 %v3862_v10, %v3861_v49  ;;  %v3893_v56 = vpack.c.bf16 %v3866_v37, %v3865_v41  ;;  %v6562_v52 = vunpack.i.h.bf16 %v6560_v25  ;;  %v6561_v45 = vunpack.i.l.bf16 %v6560_v25 }
0x1bb7   :  { %v6557_v4 = vunpack.i.h.bf16 %v6555_v11  ;;  %v6556_v29 = vunpack.i.l.bf16 %v6555_v11 }
0x1bb8   :  { %3941 = vmatprep.subr.bf16.mxu1 %v3894_v23 }
0x1bb9   :  { %3942 = vmatpush1.bf16.msra.mxu1 %v3893_v56  ;;  %v6570_v28 = vpop.permute.xlu1 %6569  ;;  %v3887_v55 = vsel %vm1161_vm5, %v6561_v45, %v6556_v29  ;;  %v3888_v62 = vsel %vm1161_vm5, %v6562_v52, %v6557_v4  ;;  %v3884_v30 = vsel %vm1161_vm5, %v6557_v4, %v6562_v52  ;;  %v3883_v63 = vsel %vm1161_vm5, %v6556_v29, %v6561_v45 }
0x1bba   :  { %v6565_v24 = vpop.permute.xlu0 %6564  ;;  %3943 = vmatprep.subr.bf16.mxu1 %v3896_v19  ;;  %v6572_v22 = vunpack.i.h.bf16 %v6570_v28  ;;  %v6571_v9 = vunpack.i.l.bf16 %v6570_v28  ;;  %v3900_v33 = vpack.c.bf16 %v3888_v62, %v3887_v55  ;;  %v3899_v14 = vpack.c.bf16 %v3884_v30, %v3883_v63  ;;  %v6089_v30 = vld [vmem:[%s11427_s30 + $0xa8] sm:$0xff]  ;;  %v6090_v63 = vld [vmem:[%s11427_s30 + $0xb0] sm:$0xff] }
0x1bbb   :  { %v6567_v31 = vunpack.i.h.bf16 %v6565_v24  ;;  %v6566_v21 = vunpack.i.l.bf16 %v6565_v24 }
0x1bbd   :  { %3944 = vmatpush1.bf16.msra.mxu1 %v3895_v48  ;;  %v3889_v19 = vsel %vm1161_vm5, %v6571_v9, %v6566_v21  ;;  %v3890_v44 = vsel %vm1161_vm5, %v6572_v22, %v6567_v31  ;;  %v3886_v57 = vsel %vm1161_vm5, %v6567_v31, %v6572_v22  ;;  %v3885_v48 = vsel %vm1161_vm5, %v6566_v21, %v6571_v9  ;;  %v6093_v31 = vld [vmem:[%s11428_s2 + $0xa8] sm:$0xff]  ;;  %v6091_v21 = vld [vmem:[%s11427_s30 + $0xb8] sm:$0xff] }
0x1bbe   :  { %3945 = vmatprep.subr.bf16.mxu1 %v3898_v54  ;;  %v3902_v54 = vpack.c.bf16 %v3890_v44, %v3889_v19  ;;  %v3901_v16 = vpack.c.bf16 %v3886_v57, %v3885_v48 }
0x1bc1   :  { %3946 = vmatpush1.bf16.msra.mxu1 %v3897_v5 }
0x1bc2   :  { %3947 = vmatprep.subr.bf16.mxu1 %v3900_v33 }
0x1bc5   :  { %3948 = vmatpush1.bf16.msra.mxu1 %v3899_v14 }
0x1bc6   :  { %3949 = vmatprep.subr.bf16.mxu1 %v3902_v54 }
0x1bc9   :  { %3950 = vmatpush1.bf16.msra.mxu1 %v3901_v16 }
0x1bca   :  { %v3911_v35 = vpop.permute.xlu1 %3910 }
0x1bcb   :  { %v3906_v5 = vpop.permute.xlu0 %3905 }
0x1bcc   :  { %6086 = vmatmul.mubr.msk.bf16.vlgmr.msra.gmra.mrb[32].mxu1 %vm435_vm3, %v6751_v7 }
0x1bcd   :  { %3981 = vmatprep.mubr.bf16.mxu1 %v7153_v32 }
0x1bce   :  { %v3921_v10 = vpop.permute.xlu1 %3920 }
0x1bcf   :  { %v3916_v37 = vpop.permute.xlu0 %3915 }
0x1bd4   :  { %6087 = vmatmul.mubr.msk.bf16.gmra.mrb[36].mxu1 %vm435_vm3, %v6752_v2 }
0x1bd5   :  { %4749 = vmatprep.mubr.bf16.mxu1 %v7153_v32 }
0x1c9f   :  { %v3973_v50 = vpop.f32.mrb[32].mxu1 }
0x1ca0   :  { %v3974_v18 = vadd.f32 %v3973_v50, %v3906_v5  ;;  %v3975_v27 = vpop.f32.mrb[33].mxu1 }
0x1ca1   :  { %v3976_v58 = vadd.f32 %v3975_v27, %v3906_v5  ;;  %v3977_v51 = vpop.f32.mrb[34].mxu1 }
0x1ca2   :  { %v10080_v39 = vadd.f32 %v3974_v18, %v9530_v42  ;;  %v3978_v47 = vadd.f32 %v3977_v51, %v3911_v35  ;;  %v3979_v59 = vpop.f32.mrb[35].mxu1 }
0x1ca3   :  { %v10083_v53 = vadd.f32 %v3976_v58, %v9533_v38  ;;  %v3980_v40 = vadd.f32 %v3979_v59, %v3911_v35 }
0x1ca4   :  { %v10086_v15 = vadd.f32 %v3978_v47, %v9536_v20  ;;  %v4010_v36 = vmul.f32 %v10080_v39, %v7312_v12 }
0x1ca5   :  { %v10091_v8 = vadd.f32 %v3980_v40, %v9541_v34  ;;  %v4011_v43 = vmul.f32 %v10083_v53, %v7314_v13 }
0x1ca6   :  { %v4012_v42 = vmul.f32 %v10086_v15, %v7312_v12 }
0x1ca7   :  { %v3983_v41 = vpop.f32.mrb[36].mxu1  ;;  %v4018_v38 = vadd.f32 %v4011_v43, %v4010_v36  ;;  %v4013_v25 = vmul.f32 %v10091_v8, %v7314_v13 }
0x1ca8   :  { %v3984_v20 = vadd.f32 %v3983_v41, %v3916_v37  ;;  %v3985_v49 = vpop.f32.mrb[37].mxu1 }
0x1ca9   :  { %v3986_v11 = vadd.f32 %v3985_v49, %v3916_v37  ;;  %v3987_v23 = vpop.f32.mrb[38].mxu1  ;;  %4019 = vadd.xlane.f32.xlu0 %v4018_v38  ;;  %v4021_v34 = vadd.f32 %v4013_v25, %v4012_v42 }
0x1caa   :  { %v10100_v56 = vadd.f32 %v3984_v20, %v9550_v60  ;;  %v3988_v52 = vadd.f32 %v3987_v23, %v3921_v10  ;;  %v3989_v45 = vpop.f32.mrb[39].mxu1 }
0x1cab   :  { %v10103_v4 = vadd.f32 %v3986_v11, %v9553_v17  ;;  %v3990_v29 = vadd.f32 %v3989_v45, %v3921_v10  ;;  %4022 = vadd.xlane.f32.xlu1 %v4021_v34 }
0x1cac   :  { %v10106_v28 = vadd.f32 %v3988_v52, %v9556_v61  ;;  %v4014_v24 = vmul.f32 %v10100_v56, %v7312_v12  ;;  %v6088_v61 = vld [vmem:[%s11427_s30 + $0xa0] sm:$0xff] }
0x1cad   :  { %v10111_v55 = vadd.f32 %v3990_v29, %v9561_v26  ;;  %v4015_v60 = vmul.f32 %v10103_v4, %v7314_v13  ;;  %v6092_v26 = vld [vmem:[%s11428_s2 + $0xa0] sm:$0xff] }
0x1cae   :  { %v4016_v22 = vmul.f32 %v10106_v28, %v7312_v12 }
0x1caf   :  { %v4024_v62 = vadd.f32 %v4015_v60, %v4014_v24  ;;  %v4017_v17 = vmul.f32 %v10111_v55, %v7314_v13  ;;  %v6095_v24 = vld [vmem:[%s11428_s2 + $0xb8] sm:$0xff]  ;;  %v6094_v60 = vld [vmem:[%s11428_s2 + $0xb0] sm:$0xff] }
0x1cb1   :  { %4025 = vadd.xlane.f32.xlu0 %v4024_v62  ;;  %v4027_v9 = vadd.f32 %v4017_v17, %v4016_v22 }
0x1cb5   :  { %4028 = vadd.xlane.f32.xlu0 %v4027_v9 }
0x1cbc   :  { %4092 = vperm.xlu1 %6171, %v6088_v61  }
0x1cc0   :  { %4120 = vperm.xlu1 %6171, %v6092_v26  }
0x1cc4   :  { %4125 = vperm.xlu1 %6171, %v6093_v31  }
0x1cc8   :  { %4107 = vperm.xlu1 %6171, %v6091_v21  }
0x1ccb   :  { %4097 = vperm.xlu0 %6172, %v6089_v30  }
0x1ccf   :  { %4102 = vperm.xlu0 %6172, %v6090_v63  }
0x1d36   :  { %v4020_v33 = vpop.xlane.xlu0 %4019 }
0x1d37   :  { %v4030_v19 = vmul.f32 %v4020_v33, %v7343_v46 }
0x1d38   :  { %v4023_v44 = vpop.xlane.xlu1 %4022 }
0x1d39   :  { %v10139_v14 = vsub.f32 %v10080_v39, %v4030_v19  ;;  %v10142_v57 = vsub.f32 %v10083_v53, %v4030_v19  ;;  %v4031_v48 = vmul.f32 %v4023_v44, %v7343_v46 }
0x1d3b   :  { %v4042_v54 = vmul.f32 %v10139_v14, %v10139_v14  ;;  %v4043_v16 = vmul.f32 %v10142_v57, %v10142_v57  ;;  %v10150_v7 = vsub.f32 %v10086_v15, %v4031_v48  ;;  %v10153_v2 = vsub.f32 %v10091_v8, %v4031_v48 }
0x1d3c   :  { %v4093_v62 = vpop.permute.xlu1 %4092 }
0x1d3d   :  { %v4044_v5 = vmul.f32 %v10150_v7, %v10150_v7  ;;  %v4045_v50 = vmul.f32 %v10153_v2, %v10153_v2  ;;  %v4050_v18 = vmul.f32 %v4042_v54, %v7312_v12  ;;  %v4051_v27 = vmul.f32 %v4043_v16, %v7314_v13 }
0x1d3e   :  { %v4026_v35 = vpop.xlane.xlu0 %4025 }
0x1d3f   :  { %v4032_v58 = vmul.f32 %v4026_v35, %v7343_v46  ;;  %v4058_v51 = vadd.f32 %v4051_v27, %v4050_v18  ;;  %v4052_v47 = vmul.f32 %v4044_v5, %v7312_v12  ;;  %v4053_v59 = vmul.f32 %v4045_v50, %v7314_v13 }
0x1d40   :  { %v4121_v22 = vpop.permute.xlu1 %4120 }
0x1d41   :  { %v10165_v40 = vsub.f32 %v10100_v56, %v4032_v58  ;;  %v10168_v36 = vsub.f32 %v10103_v4, %v4032_v58  ;;  %4059 = vadd.xlane.f32.xlu1 %v4058_v51  ;;  %v4061_v43 = vadd.f32 %v4053_v59, %v4052_v47 }
0x1d42   :  { %v4029_v42 = vpop.xlane.xlu0 %4028 }
0x1d43   :  { %v4046_v37 = vmul.f32 %v10165_v40, %v10165_v40  ;;  %v4047_v41 = vmul.f32 %v10168_v36, %v10168_v36  ;;  %v4033_v38 = vmul.f32 %v4029_v42, %v7343_v46  ;;  %4062 = vadd.xlane.f32.xlu0 %v4061_v43 }
0x1d44   :  { %v4126_v17 = vpop.permute.xlu1 %4125 }
0x1d45   :  { %v10176_v25 = vsub.f32 %v10106_v28, %v4033_v38  ;;  %v10179_v20 = vsub.f32 %v10111_v55, %v4033_v38  ;;  %v4054_v49 = vmul.f32 %v4046_v37, %v7312_v12  ;;  %v4055_v10 = vmul.f32 %v4047_v41, %v7314_v13 }
0x1d47   :  { %v4048_v11 = vmul.f32 %v10176_v25, %v10176_v25  ;;  %v4049_v23 = vmul.f32 %v10179_v20, %v10179_v20  ;;  %v4064_v34 = vadd.f32 %v4055_v10, %v4054_v49 }
0x1d48   :  { %v4108_v61 = vpop.permute.xlu1 %4107 }
0x1d49   :  { %4065 = vadd.xlane.f32.xlu1 %v4064_v34  ;;  %v4056_v52 = vmul.f32 %v4048_v11, %v7312_v12  ;;  %v4057_v45 = vmul.f32 %v4049_v23, %v7314_v13 }
0x1d4a   :  { %v4098_v9 = vpop.permute.xlu0 %4097 }
0x1d4b   :  { %v4067_v29 = vadd.f32 %v4057_v45, %v4056_v52 }
0x1d4d   :  { %4068 = vadd.xlane.f32.xlu0 %v4067_v29 }
0x1d4e   :  { %v4103_v26 = vpop.permute.xlu0 %4102 }
0x1d5a   :  { %4135 = vperm.xlu1 %6171, %v6095_v24  }
0x1d63   :  { %4130 = vperm.xlu0 %6172, %v6094_v60  }
0x1dce   :  { %v4060_v31 = vpop.xlane.xlu1 %4059 }
0x1dcf   :  { %v4070_v21 = vmul.f32 %v4060_v31, %v7343_v46 }
0x1dd0   :  { %v4063_v30 = vpop.xlane.xlu0 %4062 }
0x1dd1   :  { %v4074_v63 = vadd.f32 1e-05, %v4070_v21  ;;  %v4071_v33 = vmul.f32 %v4063_v30, %v7343_v46 }
0x1dd3   :  { %7005 = vrsqrt.f32 %v4074_v63  ;;  %v4075_v19 = vadd.f32 1e-05, %v4071_v33 }
0x1dd5   :  { %7007 = vrsqrt.f32 %v4075_v19 }
0x1dd6   :  { %v4066_v44 = vpop.xlane.xlu1 %4065 }
0x1dd7   :  { %v4072_v48 = vmul.f32 %v4066_v44, %v7343_v46 }
0x1dd9   :  { %v4076_v54 = vadd.f32 1e-05, %v4072_v48 }
0x1dda   :  { %v4069_v16 = vpop.xlane.xlu0 %4068 }
0x1ddb   :  { %7009 = vrsqrt.f32 %v4076_v54  ;;  %v4073_v5 = vmul.f32 %v4069_v16, %v7343_v46  ;;  %v4136_v16 = vpop.permute.xlu1 %4135 }
0x1ddd   :  { %v7006_v50 = vpop.eup %7005  ;;  %v4077_v18 = vadd.f32 1e-05, %v4073_v5 }
0x1dde   :  { %v4082_v27 = vmul.f32 %v7006_v50, %v10139_v14  ;;  %v4083_v35 = vmul.f32 %v7006_v50, %v10142_v57 }
0x1ddf   :  { %v7008_v58 = vpop.eup %7007  ;;  %7011 = vrsqrt.f32 %v4077_v18 }
0x1de0   :  { %v4110_v51 = vmul.f32 %v4093_v62, %v4082_v27  ;;  %v4111_v47 = vmul.f32 %v4093_v62, %v4083_v35  ;;  %v4084_v59 = vmul.f32 %v7008_v58, %v10150_v7  ;;  %v4085_v43 = vmul.f32 %v7008_v58, %v10153_v2 }
0x1de2   :  { %v10203_v42 = vadd.f32 %v4121_v22, %v4110_v51  ;;  %v10205_v37 = vadd.f32 %v4121_v22, %v4111_v47  ;;  %v4112_v41 = vmul.f32 %v4098_v9, %v4084_v59  ;;  %v4113_v38 = vmul.f32 %v4098_v9, %v4085_v43 }
0x1de4   :  { %v10207_v49 = vadd.f32 %v4126_v17, %v4112_v41  ;;  %v10209_v10 = vadd.f32 %v4126_v17, %v4113_v38  ;;  %v4147_v14 = vmul.f32 %v10205_v37, %v10205_v37  ;;  %v4146_v57 = vmul.f32 %v10203_v42, %v10203_v42  ;;  %v4131_v17 = vpop.permute.xlu0 %4130 }
0x1de5   :  { %v7010_v11 = vpop.eup %7009 }
0x1de6   :  { %v4086_v7 = vmul.f32 %v7010_v11, %v10165_v40  ;;  %v4087_v2 = vmul.f32 %v7010_v11, %v10168_v36  ;;  %v4149_v23 = vmul.f32 %v10209_v10, %v10209_v10  ;;  %v4155_v34 = vmul.f32 %v4147_v14, %v10205_v37 }
0x1de7   :  { %v4148_v52 = vmul.f32 %v10207_v49, %v10207_v49  ;;  %v4154_v45 = vmul.f32 %v4146_v57, %v10203_v42 }
0x1de8   :  { %v4114_v29 = vmul.f32 %v4103_v26, %v4086_v7  ;;  %v4115_v24 = vmul.f32 %v4103_v26, %v4087_v2  ;;  %v4157_v60 = vmul.f32 %v4149_v23, %v10209_v10  ;;  %v4163_v62 = vmul.f32 0.044715, %v4155_v34 }
0x1de9   :  { %v7012_v22 = vpop.eup %7011  ;;  %v4156_v40 = vmul.f32 %v4148_v52, %v10207_v49  ;;  %v4162_v36 = vmul.f32 0.044715, %v4154_v45 }
0x1dea   :  { %v4088_v9 = vmul.f32 %v7012_v22, %v10176_v25  ;;  %v4089_v31 = vmul.f32 %v7012_v22, %v10179_v20  ;;  %v10227_v21 = vadd.f32 %v4131_v17, %v4114_v29  ;;  %v10229_v30 = vadd.f32 %v4131_v17, %v4115_v24 }
0x1deb   :  { %v4165_v63 = vmul.f32 0.044715, %v4157_v60  ;;  %v4171_v33 = vadd.f32 %v4163_v62, %v10205_v37  ;;  %v4164_v26 = vmul.f32 0.044715, %v4156_v40  ;;  %v4170_v19 = vadd.f32 %v4162_v36, %v10203_v42 }
0x1dec   :  { %v4116_v44 = vmul.f32 %v4108_v61, %v4088_v9  ;;  %v4117_v48 = vmul.f32 %v4108_v61, %v4089_v31  ;;  %v4150_v54 = vmul.f32 %v10227_v21, %v10227_v21  ;;  %v4151_v25 = vmul.f32 %v10229_v30, %v10229_v30 }
0x1ded   :  { %v4173_v20 = vadd.f32 %v4165_v63, %v10209_v10  ;;  %v4179_v5 = vmul.f32 0.7978846, %v4171_v33  ;;  %v4172_v50 = vadd.f32 %v4164_v26, %v10207_v49  ;;  %v4178_v18 = vmul.f32 0.7978846, %v4170_v19 }
0x1dee   :  { %v10239_v27 = vadd.f32 %v4136_v16, %v4116_v44  ;;  %v10241_v35 = vadd.f32 %v4136_v16, %v4117_v48  ;;  %v4158_v58 = vmul.f32 %v4150_v54, %v10227_v21  ;;  %v4159_v61 = vmul.f32 %v4151_v25, %v10229_v30 }
0x1def   :  { %v4181_v51 = vmul.f32 0.7978846, %v4173_v20  ;;  %7013 = vtanh.f32 %v4179_v5  ;;  %v4180_v47 = vmul.f32 0.7978846, %v4172_v50 }
0x1df0   :  { %v4166_v59 = vmul.f32 0.044715, %v4158_v58  ;;  %v4167_v43 = vmul.f32 0.044715, %v4159_v61  ;;  %7015 = vtanh.f32 %v4178_v18  ;;  %v4153_v41 = vmul.f32 %v10241_v35, %v10241_v35 }
0x1df1   :  { %7017 = vtanh.f32 %v4181_v51  ;;  %v4152_v38 = vmul.f32 %v10239_v27, %v10239_v27 }
0x1df2   :  { %v4174_v14 = vadd.f32 %v4166_v59, %v10227_v21  ;;  %v4175_v57 = vadd.f32 %v4167_v43, %v10229_v30  ;;  %7019 = vtanh.f32 %v4180_v47  ;;  %v4161_v11 = vmul.f32 %v4153_v41, %v10241_v35 }
0x1df3   :  { %v4160_v7 = vmul.f32 %v4152_v38, %v10239_v27 }
0x1df4   :  { %v4182_v2 = vmul.f32 0.7978846, %v4174_v14  ;;  %v4183_v23 = vmul.f32 0.7978846, %v4175_v57  ;;  %v4169_v34 = vmul.f32 0.044715, %v4161_v11 }
0x1df5   :  { %v4168_v52 = vmul.f32 0.044715, %v4160_v7 }
0x1df6   :  { %7021 = vtanh.f32 %v4182_v2  ;;  %v4177_v45 = vadd.f32 %v4169_v34, %v10241_v35 }
0x1df7   :  { %7023 = vtanh.f32 %v4183_v23  ;;  %v4176_v29 = vadd.f32 %v4168_v52, %v10239_v27 }
0x1df8   :  { %v4185_v24 = vmul.f32 0.7978846, %v4177_v45 }
0x1df9   :  { %v7014_v60 = vpop.eup %7013  ;;  %v4184_v62 = vmul.f32 0.7978846, %v4176_v29 }
0x1dfa   :  { %v7016_v22 = vpop.eup %7015  ;;  %v4195_v17 = vadd.f32 1.0, %v7014_v60  ;;  %7025 = vtanh.f32 %v4185_v24 }
0x1dfb   :  { %v7018_v40 = vpop.eup %7017  ;;  %v4194_v36 = vadd.f32 1.0, %v7016_v22  ;;  %7027 = vtanh.f32 %v4184_v62  ;;  %v6101_v62 = vld [vmem:[%s11429_s3 + $0xa8] sm:$0xff]  ;;  %v6100_v22 = vld [vmem:[%s11429_s3 + $0xa0] sm:$0xff] }
0x1dfc   :  { %v7020_v9 = vpop.eup %7019  ;;  %v4197_v31 = vadd.f32 1.0, %v7018_v40  ;;  %v4203_v63 = vmul.f32 0.5, %v4195_v17  ;;  %v6103_v17 = vld [vmem:[%s11429_s3 + $0xb8] sm:$0xff]  ;;  %v6102_v40 = vld [vmem:[%s11429_s3 + $0xb0] sm:$0xff] }
0x1dfd   :  { %v4196_v33 = vadd.f32 1.0, %v7020_v9  ;;  %v4202_v26 = vmul.f32 0.5, %v4194_v36 }
0x1dfe   :  { %v4205_v19 = vmul.f32 0.5, %v4197_v31  ;;  %v4211_v44 = vmul.f32 %v4203_v63, %v10205_v37 }
0x1dff   :  { %v4204_v48 = vmul.f32 0.5, %v4196_v33  ;;  %v4210_v54 = vmul.f32 %v4202_v26, %v10203_v42 }
0x1e00   :  { %v7022_v25 = vpop.eup %7021  ;;  %v4213_v16 = vmul.f32 %v4205_v19, %v10209_v10  ;;  %v10260_v58 = vmul.f32 %v4211_v44, %v7314_v13 }
0x1e01   :  { %v7024_v20 = vpop.eup %7023  ;;  %v4198_v5 = vadd.f32 1.0, %v7022_v25  ;;  %v4212_v50 = vmul.f32 %v4204_v48, %v10207_v49  ;;  %v10266_v51 = vmul.f32 %v4210_v54, %v7312_v12 }
0x1e02   :  { %v4199_v18 = vadd.f32 1.0, %v7024_v20  ;;  %v10263_v61 = vmul.f32 %v4213_v16, %v7314_v13 }
0x1e03   :  { %v10269_v37 = vmul.f32 %v4212_v50, %v7312_v12  ;;  %v4206_v47 = vmul.f32 0.5, %v4198_v5 }
0x1e04   :  { %v7026_v42 = vpop.eup %7025  ;;  %v4207_v10 = vmul.f32 0.5, %v4199_v18  ;;  %v6578_v59 = vpack.i.bf16 %v10263_v61, %v10260_v58  ;;  %v4289_v49 = vpack.c.bf16 %v10263_v61, %v10260_v58 }
0x1e05   :  { %v7028_v43 = vpop.eup %7027  ;;  %v6573_v41 = vpack.i.bf16 %v10269_v37, %v10266_v51  ;;  %v4201_v38 = vadd.f32 1.0, %v7026_v42  ;;  %v4288_v57 = vpack.c.bf16 %v10269_v37, %v10266_v51  ;;  %v4214_v2 = vmul.f32 %v4206_v47, %v10227_v21 }
0x1e06   :  { %6579 = vrot.lane.b32.xlu1 %v6578_v59, %s11433_s27  ;;  %v4200_v14 = vadd.f32 1.0, %v7028_v43  ;;  %v4215_v11 = vmul.f32 %v4207_v10, %v10229_v30 }
0x1e07   :  { %6574 = vrot.lane.b32.xlu0 %v6573_v41, %s11433_s27  ;;  %v4209_v7 = vmul.f32 0.5, %v4201_v38  ;;  %v10292_v24 = vmul.f32 %v4214_v2, %v7312_v12 }
0x1e08   :  { %v4208_v23 = vmul.f32 0.5, %v4200_v14  ;;  %v10286_v45 = vmul.f32 %v4215_v11, %v7314_v13 }
0x1e09   :  { %v4217_v34 = vmul.f32 %v4209_v7, %v10241_v35 }
0x1e0a   :  { %v4216_v52 = vmul.f32 %v4208_v23, %v10239_v27 }
0x1e0b   :  { %v10289_v29 = vmul.f32 %v4217_v34, %v7314_v13 }
0x1e0c   :  { %v10295_v30 = vmul.f32 %v4216_v52, %v7312_v12 }
0x1e0d   :  { %v6588_v21 = vpack.i.bf16 %v10289_v29, %v10286_v45  ;;  %v4291_v35 = vpack.c.bf16 %v10289_v29, %v10286_v45 }
0x1e0e   :  { %v6583_v27 = vpack.i.bf16 %v10295_v30, %v10292_v24  ;;  %v4290_v60 = vpack.c.bf16 %v10295_v30, %v10292_v24  ;;  %v6753_v24 = vld [vmem:[%s11430_s26 + $0x50] sm:$0xff]   ;;  %v6754_v30 = vld [vmem:[%s11430_s26 + $0x58] sm:$0xff]  }
0x1e0f   :  { %6589 = vrot.lane.b32.xlu1 %v6588_v21, %s11433_s27 }
0x1e10   :  { %6584 = vrot.lane.b32.xlu0 %v6583_v27, %s11433_s27 }
0x1e13   :  { %6599 = vrot.lane.b32.xlu1 %v6578_v59, %s11434_s28 }
0x1e14   :  { %6594 = vrot.lane.b32.xlu0 %v6573_v41, %s11434_s28 }
0x1e17   :  { %6609 = vrot.lane.b32.xlu1 %v6588_v21, %s11434_s28 }
0x1e18   :  { %6604 = vrot.lane.b32.xlu0 %v6583_v27, %s11434_s28 }
0x1e1b   :  { %4303 = vperm.xlu1 %6171, %v6101_v62  }
0x1e1c   :  { %4298 = vperm.xlu0 %6172, %v6100_v22  }
0x1e1f   :  { %4313 = vperm.xlu1 %6171, %v6103_v17  }
0x1e20   :  { %4308 = vperm.xlu0 %6172, %v6102_v40  }
0x1e78   :  { %v6580_v36 = vpop.permute.xlu1 %6579 }
0x1e79   :  { %v6582_v9 = vunpack.i.h.bf16 %v6580_v36  ;;  %v6581_v31 = vunpack.i.l.bf16 %v6580_v36  ;;  %v6575_v63 = vpop.permute.xlu0 %6574 }
0x1e7a   :  { %v6577_v33 = vunpack.i.h.bf16 %v6575_v63  ;;  %v6576_v26 = vunpack.i.l.bf16 %v6575_v63 }
0x1e7c   :  { %v4257_v19 = vsel %vm1916_vm6, %v6582_v9, %v6577_v33  ;;  %v4256_v44 = vsel %vm1916_vm6, %v6581_v31, %v6576_v26  ;;  %v4252_v48 = vsel %vm1916_vm6, %v6576_v26, %v6581_v31  ;;  %v4253_v54 = vsel %vm1916_vm6, %v6577_v33, %v6582_v9 }
0x1e7d   :  { %v4285_v25 = vpack.c.bf16 %v4253_v54, %v4252_v48  ;;  %v4284_v16 = vpack.c.bf16 %v4257_v19, %v4256_v44 }
0x1e7f   :  { %4332 = vmatprep.subr.bf16.mxu0 %v4285_v25 }
0x1e80   :  { %4333 = vmatpush1.bf16.msra.mxu0 %v4284_v16 }
0x1e81   :  { %v6590_v20 = vpop.permute.xlu1 %6589 }
0x1e82   :  { %v6592_v5 = vunpack.i.h.bf16 %v6590_v20  ;;  %v6591_v50 = vunpack.i.l.bf16 %v6590_v20  ;;  %v6585_v18 = vpop.permute.xlu0 %6584 }
0x1e83   :  { %v6587_v42 = vunpack.i.h.bf16 %v6585_v18  ;;  %v6586_v47 = vunpack.i.l.bf16 %v6585_v18 }
0x1e85   :  { %v4259_v10 = vsel %vm1916_vm6, %v6592_v5, %v6587_v42  ;;  %v4258_v59 = vsel %vm1916_vm6, %v6591_v50, %v6586_v47  ;;  %v6600_v43 = vpop.permute.xlu1 %6599  ;;  %v4254_v41 = vsel %vm1916_vm6, %v6586_v47, %v6591_v50  ;;  %v4255_v38 = vsel %vm1916_vm6, %v6587_v42, %v6592_v5 }
0x1e86   :  { %v6595_v14 = vpop.permute.xlu0 %6594  ;;  %v4287_v11 = vpack.c.bf16 %v4255_v38, %v4254_v41  ;;  %v4286_v7 = vpack.c.bf16 %v4259_v10, %v4258_v59  ;;  %v6602_v2 = vunpack.i.h.bf16 %v6600_v43  ;;  %v6601_v23 = vunpack.i.l.bf16 %v6600_v43 }
0x1e87   :  { %v6597_v34 = vunpack.i.h.bf16 %v6595_v14  ;;  %v6596_v52 = vunpack.i.l.bf16 %v6595_v14 }
0x1e88   :  { %4334 = vmatprep.subr.bf16.mxu0 %v4287_v11 }
0x1e89   :  { %4335 = vmatpush1.bf16.msra.mxu0 %v4286_v7  ;;  %v6610_v45 = vpop.permute.xlu1 %6609  ;;  %v4280_v21 = vsel %vm1941_vm7, %v6601_v23, %v6596_v52  ;;  %v4281_v27 = vsel %vm1941_vm7, %v6602_v2, %v6597_v34  ;;  %v4277_v36 = vsel %vm1941_vm7, %v6597_v34, %v6602_v2  ;;  %v4276_v58 = vsel %vm1941_vm7, %v6596_v52, %v6601_v23 }
0x1e8a   :  { %v6605_v29 = vpop.permute.xlu0 %6604  ;;  %4336 = vmatprep.subr.bf16.mxu0 %v4289_v49  ;;  %v6612_v62 = vunpack.i.h.bf16 %v6610_v45  ;;  %v6611_v22 = vunpack.i.l.bf16 %v6610_v45  ;;  %v4293_v61 = vpack.c.bf16 %v4281_v27, %v4280_v21  ;;  %v4292_v51 = vpack.c.bf16 %v4277_v36, %v4276_v58  ;;  %v6109_v36 = vld [vmem:[%s11379_s6 + $0xa8] sm:$0xff]  ;;  %v6110_v58 = vld [vmem:[%s11379_s6 + $0xb0] sm:$0xff] }
0x1e8b   :  { %v6607_v17 = vunpack.i.h.bf16 %v6605_v29  ;;  %v6606_v40 = vunpack.i.l.bf16 %v6605_v29 }
0x1e8d   :  { %4337 = vmatpush1.bf16.msra.mxu0 %v4288_v57  ;;  %v4282_v49 = vsel %vm1941_vm7, %v6611_v22, %v6606_v40  ;;  %v4283_v9 = vsel %vm1941_vm7, %v6612_v62, %v6607_v17  ;;  %v4279_v37 = vsel %vm1941_vm7, %v6607_v17, %v6612_v62  ;;  %v4278_v57 = vsel %vm1941_vm7, %v6606_v40, %v6611_v22  ;;  %v6108_v62 = vld [vmem:[%s11379_s6 + $0xa0] sm:$0xff]  ;;  %v6113_v17 = vld [vmem:[%s11380_s7 + $0xa8] sm:$0xff]  ;;  %v6111_v40 = vld [vmem:[%s11379_s6 + $0xb8] sm:$0xff] }
0x1e8e   :  { %4338 = vmatprep.subr.bf16.mxu0 %v4291_v35  ;;  %v4295_v35 = vpack.c.bf16 %v4283_v9, %v4282_v49  ;;  %v4294_v31 = vpack.c.bf16 %v4279_v37, %v4278_v57  ;;  %v6112_v22 = vld [vmem:[%s11380_s7 + $0xa0] sm:$0xff] }
0x1e91   :  { %4339 = vmatpush1.bf16.msra.mxu0 %v4290_v60 }
0x1e92   :  { %4340 = vmatprep.subr.bf16.mxu0 %v4293_v61 }
0x1e95   :  { %4341 = vmatpush1.bf16.msra.mxu0 %v4292_v51 }
0x1e96   :  { %4342 = vmatprep.subr.bf16.mxu0 %v4295_v35 }
0x1e99   :  { %4343 = vmatpush1.bf16.msra.mxu0 %v4294_v31 }
0x1e9a   :  { %v4304_v19 = vpop.permute.xlu1 %4303 }
0x1e9b   :  { %v4299_v60 = vpop.permute.xlu0 %4298 }
0x1e9c   :  { %6106 = vmatmul.mubr.msk.bf16.vlgmr.msra.gmra.mrb[40].mxu0 %vm435_vm3, %v6753_v24 }
0x1e9d   :  { %4374 = vmatprep.mubr.bf16.mxu0 %v7153_v32 }
0x1e9e   :  { %v4314_v38 = vpop.permute.xlu1 %4313 }
0x1e9f   :  { %v4309_v47 = vpop.permute.xlu0 %4308 }
0x1ea4   :  { %6107 = vmatmul.mubr.msk.bf16.gmra.mrb[44].mxu0 %vm435_vm3, %v6754_v30 }
0x1ea5   :  { %5083 = vmatprep.mubr.bf16.mxu0 %v7153_v32 }
0x1f6f   :  { %v4366_v63 = vpop.f32.mrb[40].mxu0 }
0x1f70   :  { %v4367_v33 = vadd.f32 %v4366_v63, %v4299_v60  ;;  %v4368_v26 = vpop.f32.mrb[41].mxu0 }
0x1f71   :  { %v4369_v44 = vadd.f32 %v4368_v26, %v4299_v60  ;;  %v4370_v48 = vpop.f32.mrb[42].mxu0 }
0x1f72   :  { %v4395_v54 = vmul.f32 %v4367_v33, %v7312_v12  ;;  %v4371_v25 = vadd.f32 %v4370_v48, %v4304_v19  ;;  %v4372_v16 = vpop.f32.mrb[43].mxu0 }
0x1f73   :  { %v4396_v20 = vmul.f32 %v4369_v44, %v7314_v13  ;;  %v4373_v5 = vadd.f32 %v4372_v16, %v4304_v19 }
0x1f74   :  { %v4397_v50 = vmul.f32 %v4371_v25, %v7312_v12 }
0x1f75   :  { %v4398_v18 = vmul.f32 %v4373_v5, %v7314_v13  ;;  %v4403_v42 = vadd.f32 %v4396_v20, %v4395_v54 }
0x1f77   :  { %v4376_v10 = vpop.f32.mrb[44].mxu0  ;;  %4404 = vadd.xlane.f32.xlu0 %v4403_v42  ;;  %v4406_v59 = vadd.f32 %v4398_v18, %v4397_v50 }
0x1f78   :  { %v4377_v43 = vadd.f32 %v4376_v10, %v4309_v47  ;;  %v4378_v41 = vpop.f32.mrb[45].mxu0 }
0x1f79   :  { %v4379_v14 = vadd.f32 %v4378_v41, %v4309_v47  ;;  %v4380_v11 = vpop.f32.mrb[46].mxu0  ;;  %4407 = vadd.xlane.f32.xlu1 %v4406_v59 }
0x1f7a   :  { %v4399_v7 = vmul.f32 %v4377_v43, %v7312_v12  ;;  %v4381_v2 = vadd.f32 %v4380_v11, %v4314_v38  ;;  %v4382_v23 = vpop.f32.mrb[47].mxu0 }
0x1f7b   :  { %v4400_v34 = vmul.f32 %v4379_v14, %v7314_v13  ;;  %v4383_v52 = vadd.f32 %v4382_v23, %v4314_v38 }
0x1f7c   :  { %v4401_v45 = vmul.f32 %v4381_v2, %v7312_v12 }
0x1f7d   :  { %v4402_v29 = vmul.f32 %v4383_v52, %v7314_v13  ;;  %v4409_v21 = vadd.f32 %v4400_v34, %v4399_v7  ;;  %v6115_v34 = vld [vmem:[%s11380_s7 + $0xb8] sm:$0xff] }
0x1f7f   :  { %4410 = vadd.xlane.f32.xlu0 %v4409_v21  ;;  %v4412_v27 = vadd.f32 %v4402_v29, %v4401_v45 }
0x1f83   :  { %4413 = vadd.xlane.f32.xlu0 %v4412_v27 }
0x1f8a   :  { %4477 = vperm.xlu1 %6171, %v6108_v62  }
0x1f8e   :  { %4505 = vperm.xlu1 %6171, %v6112_v22  }
0x1f92   :  { %4510 = vperm.xlu1 %6171, %v6113_v17  }
0x1f96   :  { %4492 = vperm.xlu1 %6171, %v6111_v40  }
0x1f99   :  { %4482 = vperm.xlu0 %6172, %v6109_v36  }
0x1f9d   :  { %4487 = vperm.xlu0 %6172, %v6110_v58  }
0x2004   :  { %v4405_v61 = vpop.xlane.xlu0 %4404 }
0x2005   :  { %v4415_v49 = vmul.f32 %v4405_v61, %v7343_v46 }
0x2006   :  { %v4408_v9 = vpop.xlane.xlu1 %4407 }
0x2007   :  { %v10401_v51 = vsub.f32 %v4367_v33, %v4415_v49  ;;  %v10403_v37 = vsub.f32 %v4369_v44, %v4415_v49  ;;  %v4416_v57 = vmul.f32 %v4408_v9, %v7343_v46 }
0x2009   :  { %v4427_v35 = vmul.f32 %v10401_v51, %v10401_v51  ;;  %v4428_v31 = vmul.f32 %v10403_v37, %v10403_v37  ;;  %v10410_v24 = vsub.f32 %v4371_v25, %v4416_v57  ;;  %v10412_v30 = vsub.f32 %v4373_v5, %v4416_v57 }
0x200a   :  { %v4478_v45 = vpop.permute.xlu1 %4477 }
0x200b   :  { %v4429_v60 = vmul.f32 %v10410_v24, %v10410_v24  ;;  %v4430_v63 = vmul.f32 %v10412_v30, %v10412_v30  ;;  %v4435_v33 = vmul.f32 %v4427_v35, %v7312_v12  ;;  %v4436_v26 = vmul.f32 %v4428_v31, %v7314_v13 }
0x200c   :  { %v4411_v19 = vpop.xlane.xlu0 %4410 }
0x200d   :  { %v4417_v44 = vmul.f32 %v4411_v19, %v7343_v46  ;;  %v4443_v48 = vadd.f32 %v4436_v26, %v4435_v33  ;;  %v4437_v54 = vmul.f32 %v4429_v60, %v7312_v12  ;;  %v4438_v25 = vmul.f32 %v4430_v63, %v7314_v13 }
0x200e   :  { %v4506_v29 = vpop.permute.xlu1 %4505 }
0x200f   :  { %v10423_v16 = vsub.f32 %v4377_v43, %v4417_v44  ;;  %v10425_v20 = vsub.f32 %v4379_v14, %v4417_v44  ;;  %4444 = vadd.xlane.f32.xlu1 %v4443_v48  ;;  %v4446_v5 = vadd.f32 %v4438_v25, %v4437_v54 }
0x2010   :  { %v4414_v50 = vpop.xlane.xlu0 %4413 }
0x2011   :  { %v4431_v18 = vmul.f32 %v10423_v16, %v10423_v16  ;;  %v4432_v42 = vmul.f32 %v10425_v20, %v10425_v20  ;;  %v4418_v47 = vmul.f32 %v4414_v50, %v7343_v46  ;;  %4447 = vadd.xlane.f32.xlu0 %v4446_v5 }
0x2012   :  { %v4511_v21 = vpop.permute.xlu1 %4510 }
0x2013   :  { %v10432_v10 = vsub.f32 %v4381_v2, %v4418_v47  ;;  %v10434_v59 = vsub.f32 %v4383_v52, %v4418_v47  ;;  %v4439_v43 = vmul.f32 %v4431_v18, %v7312_v12  ;;  %v4440_v41 = vmul.f32 %v4432_v42, %v7314_v13  ;;  %v6114_v52 = vld [vmem:[%s11380_s7 + $0xb0] sm:$0xff] }
0x2015   :  { %v4433_v38 = vmul.f32 %v10432_v10, %v10432_v10  ;;  %v4434_v14 = vmul.f32 %v10434_v59, %v10434_v59  ;;  %v4449_v11 = vadd.f32 %v4440_v41, %v4439_v43 }
0x2016   :  { %v4493_v62 = vpop.permute.xlu1 %4492 }
0x2017   :  { %4450 = vadd.xlane.f32.xlu1 %v4449_v11  ;;  %v4441_v7 = vmul.f32 %v4433_v38, %v7312_v12  ;;  %v4442_v23 = vmul.f32 %v4434_v14, %v7314_v13 }
0x2018   :  { %v4483_v27 = vpop.permute.xlu0 %4482 }
0x2019   :  { %v4452_v2 = vadd.f32 %v4442_v23, %v4441_v7 }
0x201b   :  { %4453 = vadd.xlane.f32.xlu0 %v4452_v2 }
0x201c   :  { %v4488_v22 = vpop.permute.xlu0 %4487 }
0x2028   :  { %4520 = vperm.xlu1 %6171, %v6115_v34  }
0x2031   :  { %4515 = vperm.xlu0 %6172, %v6114_v52  }
0x209c   :  { %v4445_v17 = vpop.xlane.xlu1 %4444 }
0x209d   :  { %v4455_v40 = vmul.f32 %v4445_v17, %v7343_v46 }
0x209e   :  { %v4448_v36 = vpop.xlane.xlu0 %4447 }
0x209f   :  { %v4459_v58 = vadd.f32 1e-05, %v4455_v40  ;;  %v4456_v61 = vmul.f32 %v4448_v36, %v7343_v46 }
0x20a1   :  { %7029 = vrsqrt.f32 %v4459_v58  ;;  %v4460_v49 = vadd.f32 1e-05, %v4456_v61 }
0x20a3   :  { %7031 = vrsqrt.f32 %v4460_v49 }
0x20a4   :  { %v4451_v9 = vpop.xlane.xlu1 %4450 }
0x20a5   :  { %v4457_v57 = vmul.f32 %v4451_v9, %v7343_v46 }
0x20a7   :  { %v4461_v35 = vadd.f32 1e-05, %v4457_v57 }
0x20a8   :  { %v4454_v31 = vpop.xlane.xlu0 %4453 }
0x20a9   :  { %7033 = vrsqrt.f32 %v4461_v35  ;;  %v4458_v60 = vmul.f32 %v4454_v31, %v7343_v46  ;;  %v4521_v31 = vpop.permute.xlu1 %4520 }
0x20ab   :  { %v7030_v63 = vpop.eup %7029  ;;  %v4462_v33 = vadd.f32 1e-05, %v4458_v60 }
0x20ac   :  { %v4467_v26 = vmul.f32 %v7030_v63, %v10401_v51  ;;  %v4468_v19 = vmul.f32 %v7030_v63, %v10403_v37 }
0x20ad   :  { %v7032_v44 = vpop.eup %7031  ;;  %7035 = vrsqrt.f32 %v4462_v33 }
0x20ae   :  { %v4495_v48 = vmul.f32 %v4478_v45, %v4467_v26  ;;  %v4496_v54 = vmul.f32 %v4478_v45, %v4468_v19  ;;  %v4469_v25 = vmul.f32 %v7032_v44, %v10410_v24  ;;  %v4470_v5 = vmul.f32 %v7032_v44, %v10412_v30 }
0x20b0   :  { %v10458_v50 = vadd.f32 %v4506_v29, %v4495_v48  ;;  %v10460_v18 = vadd.f32 %v4506_v29, %v4496_v54  ;;  %v4497_v42 = vmul.f32 %v4483_v27, %v4469_v25  ;;  %v4498_v47 = vmul.f32 %v4483_v27, %v4470_v5 }
0x20b2   :  { %v4531_v43 = vmul.f32 %v10458_v50, %v10458_v50  ;;  %v4532_v51 = vmul.f32 %v10460_v18, %v10460_v18  ;;  %v10466_v37 = vadd.f32 %v4511_v21, %v4497_v42  ;;  %v10468_v41 = vadd.f32 %v4511_v21, %v4498_v47  ;;  %v4516_v21 = vpop.permute.xlu0 %4515 }
0x20b3   :  { %v7034_v38 = vpop.eup %7033 }
0x20b4   :  { %v4533_v24 = vmul.f32 %v10466_v37, %v10466_v37  ;;  %v4534_v30 = vmul.f32 %v10468_v41, %v10468_v41  ;;  %v4471_v14 = vmul.f32 %v7034_v38, %v10423_v16  ;;  %v4472_v11 = vmul.f32 %v7034_v38, %v10425_v20 }
0x20b5   :  { %v4540_v7 = vmul.f32 %v4532_v51, %v10460_v18  ;;  %v4539_v23 = vmul.f32 %v4531_v43, %v10458_v50 }
0x20b6   :  { %v4499_v2 = vmul.f32 %v4488_v22, %v4471_v14  ;;  %v4500_v34 = vmul.f32 %v4488_v22, %v4472_v11  ;;  %v4542_v52 = vmul.f32 %v4534_v30, %v10468_v41  ;;  %v4541_v45 = vmul.f32 %v4533_v24, %v10466_v37 }
0x20b7   :  { %v7036_v29 = vpop.eup %7035  ;;  %v4548_v27 = vmul.f32 0.044715, %v4540_v7  ;;  %v4547_v17 = vmul.f32 0.044715, %v4539_v23 }
0x20b8   :  { %v4473_v40 = vmul.f32 %v7036_v29, %v10432_v10  ;;  %v4474_v16 = vmul.f32 %v7036_v29, %v10434_v59  ;;  %v10482_v36 = vadd.f32 %v4516_v21, %v4499_v2  ;;  %v10484_v20 = vadd.f32 %v4516_v21, %v4500_v34 }
0x20b9   :  { %v4550_v58 = vmul.f32 0.044715, %v4542_v52  ;;  %v4556_v61 = vadd.f32 %v4548_v27, %v10460_v18  ;;  %v4549_v22 = vmul.f32 0.044715, %v4541_v45  ;;  %v4555_v49 = vadd.f32 %v4547_v17, %v10458_v50 }
0x20ba   :  { %v4501_v9 = vmul.f32 %v4493_v62, %v4473_v40  ;;  %v4502_v57 = vmul.f32 %v4493_v62, %v4474_v16  ;;  %v4535_v35 = vmul.f32 %v10482_v36, %v10482_v36  ;;  %v4536_v10 = vmul.f32 %v10484_v20, %v10484_v20 }
0x20bb   :  { %v4558_v59 = vadd.f32 %v4550_v58, %v10468_v41  ;;  %v4564_v60 = vmul.f32 0.7978846, %v4556_v61  ;;  %v4557_v63 = vadd.f32 %v4549_v22, %v10466_v37  ;;  %v4563_v33 = vmul.f32 0.7978846, %v4555_v49 }
0x20bc   :  { %v10494_v26 = vadd.f32 %v4521_v31, %v4501_v9  ;;  %v10496_v19 = vadd.f32 %v4521_v31, %v4502_v57  ;;  %v4543_v44 = vmul.f32 %v4535_v35, %v10482_v36  ;;  %v4544_v62 = vmul.f32 %v4536_v10, %v10484_v20 }
0x20bd   :  { %v4566_v48 = vmul.f32 0.7978846, %v4558_v59  ;;  %7037 = vtanh.f32 %v4564_v60  ;;  %v4565_v54 = vmul.f32 0.7978846, %v4557_v63 }
0x20be   :  { %v4537_v25 = vmul.f32 %v10494_v26, %v10494_v26  ;;  %v4538_v5 = vmul.f32 %v10496_v19, %v10496_v19  ;;  %v4551_v42 = vmul.f32 0.044715, %v4543_v44  ;;  %v4552_v47 = vmul.f32 0.044715, %v4544_v62 }
0x20bf   :  { %7039 = vtanh.f32 %v4566_v48 }
0x20c0   :  { %v4559_v43 = vadd.f32 %v4551_v42, %v10482_v36  ;;  %v4560_v51 = vadd.f32 %v4552_v47, %v10484_v20  ;;  %7041 = vtanh.f32 %v4563_v33  ;;  %v4546_v38 = vmul.f32 %v4538_v5, %v10496_v19 }
0x20c1   :  { %7043 = vtanh.f32 %v4565_v54  ;;  %v4545_v24 = vmul.f32 %v4537_v25, %v10494_v26 }
0x20c2   :  { %v4567_v30 = vmul.f32 0.7978846, %v4559_v43  ;;  %v4568_v14 = vmul.f32 0.7978846, %v4560_v51  ;;  %v4554_v11 = vmul.f32 0.044715, %v4546_v38 }
0x20c3   :  { %v4553_v7 = vmul.f32 0.044715, %v4545_v24 }
0x20c4   :  { %7045 = vtanh.f32 %v4567_v30  ;;  %v4562_v23 = vadd.f32 %v4554_v11, %v10496_v19 }
0x20c5   :  { %7047 = vtanh.f32 %v4568_v14  ;;  %v4561_v2 = vadd.f32 %v4553_v7, %v10494_v26 }
0x20c6   :  { %v4570_v34 = vmul.f32 0.7978846, %v4562_v23 }
0x20c7   :  { %v7038_v52 = vpop.eup %7037  ;;  %v4569_v45 = vmul.f32 0.7978846, %v4561_v2 }
0x20c8   :  { %v4580_v29 = vadd.f32 1.0, %v7038_v52  ;;  %7049 = vtanh.f32 %v4570_v34 }
0x20c9   :  { %v7040_v21 = vpop.eup %7039  ;;  %7051 = vtanh.f32 %v4569_v45  ;;  %v6121_v45 = vld [vmem:[%s11382_s9 + $0xa8] sm:$0xff] }
0x20ca   :  { %v7042_v27 = vpop.eup %7041  ;;  %v4582_v17 = vadd.f32 1.0, %v7040_v21  ;;  %v4588_v40 = vmul.f32 0.5, %v4580_v29  ;;  %v6120_v29 = vld [vmem:[%s11382_s9 + $0xa0] sm:$0xff]  ;;  %v6123_v21 = vld [vmem:[%s11382_s9 + $0xb8] sm:$0xff] }
0x20cb   :  { %v7044_v16 = vpop.eup %7043  ;;  %v4579_v58 = vadd.f32 1.0, %v7042_v27  ;;  %v6122_v27 = vld [vmem:[%s11382_s9 + $0xb0] sm:$0xff] }
0x20cc   :  { %v4590_v61 = vmul.f32 0.5, %v4582_v17  ;;  %v4596_v22 = vmul.f32 %v4588_v40, %v10460_v18  ;;  %v4581_v49 = vadd.f32 1.0, %v7044_v16 }
0x20cd   :  { %v4587_v9 = vmul.f32 0.5, %v4579_v58 }
0x20ce   :  { %v7046_v57 = vpop.eup %7045  ;;  %v4598_v35 = vmul.f32 %v4590_v61, %v10468_v41  ;;  %v4589_v10 = vmul.f32 0.5, %v4581_v49  ;;  %v10514_v33 = vmul.f32 %v4596_v22, %v7314_v13 }
0x20cf   :  { %v7048_v31 = vpop.eup %7047  ;;  %v4583_v59 = vadd.f32 1.0, %v7046_v57  ;;  %v4595_v60 = vmul.f32 %v4587_v9, %v10458_v50 }
0x20d0   :  { %v4584_v63 = vadd.f32 1.0, %v7048_v31  ;;  %v10517_v44 = vmul.f32 %v4598_v35, %v7314_v13  ;;  %v4597_v62 = vmul.f32 %v4589_v10, %v10466_v37 }
0x20d1   :  { %v4591_v18 = vmul.f32 0.5, %v4583_v59  ;;  %v10523_v25 = vmul.f32 %v4595_v60, %v7312_v12 }
0x20d2   :  { %v7050_v48 = vpop.eup %7049  ;;  %v4592_v54 = vmul.f32 0.5, %v4584_v63  ;;  %v6618_v41 = vpack.i.bf16 %v10517_v44, %v10514_v33  ;;  %v10526_v50 = vmul.f32 %v4597_v62, %v7312_v12  ;;  %v4674_v47 = vpack.c.bf16 %v10517_v44, %v10514_v33 }
0x20d3   :  { %v7052_v5 = vpop.eup %7051  ;;  %v4586_v42 = vadd.f32 1.0, %v7050_v48  ;;  %v4599_v30 = vmul.f32 %v4591_v18, %v10482_v36 }
0x20d4   :  { %6619 = vrot.lane.b32.xlu1 %v6618_v41, %s11433_s27  ;;  %v6613_v37 = vpack.i.bf16 %v10526_v50, %v10523_v25  ;;  %v4585_v43 = vadd.f32 1.0, %v7052_v5  ;;  %v4600_v51 = vmul.f32 %v4592_v54, %v10484_v20  ;;  %v4673_v24 = vpack.c.bf16 %v10526_v50, %v10523_v25 }
0x20d5   :  { %v4594_v38 = vmul.f32 0.5, %v4586_v42  ;;  %v10547_v20 = vmul.f32 %v4599_v30, %v7312_v12 }
0x20d6   :  { %6614 = vrot.lane.b32.xlu0 %v6613_v37, %s11433_s27  ;;  %v4593_v14 = vmul.f32 0.5, %v4585_v43  ;;  %v10541_v23 = vmul.f32 %v4600_v51, %v7314_v13 }
0x20d7   :  { %v4602_v11 = vmul.f32 %v4594_v38, %v10496_v19 }
0x20d8   :  { %v4601_v7 = vmul.f32 %v4593_v14, %v10494_v26 }
0x20d9   :  { %v10544_v2 = vmul.f32 %v4602_v11, %v7314_v13 }
0x20da   :  { %v10550_v34 = vmul.f32 %v4601_v7, %v7312_v12 }
0x20db   :  { %v6628_v36 = vpack.i.bf16 %v10544_v2, %v10541_v23  ;;  %v4676_v19 = vpack.c.bf16 %v10544_v2, %v10541_v23 }
0x20dc   :  { %v6623_v26 = vpack.i.bf16 %v10550_v34, %v10547_v20  ;;  %v4675_v52 = vpack.c.bf16 %v10550_v34, %v10547_v20  ;;  %v6755_v20 = vld [vmem:[%s11381_s8 + $0x50] sm:$0xff]   ;;  %v6756_v34 = vld [vmem:[%s11381_s8 + $0x58] sm:$0xff]   ;;  %s11439_s8 = sld [smem:[#allocation13_spill]] }
0x20dd   :  { %6629 = vrot.lane.b32.xlu1 %v6628_v36, %s11433_s27 }
0x20de   :  { %6624 = vrot.lane.b32.xlu0 %v6623_v26, %s11433_s27 }
0x20e1   :  { %6639 = vrot.lane.b32.xlu1 %v6618_v41, %s11434_s28 }
0x20e2   :  { %6634 = vrot.lane.b32.xlu0 %v6613_v37, %s11434_s28 }
0x20e5   :  { %6649 = vrot.lane.b32.xlu1 %v6628_v36, %s11434_s28 }
0x20e6   :  { %6644 = vrot.lane.b32.xlu0 %v6623_v26, %s11434_s28 }
0x20e9   :  { %4688 = vperm.xlu1 %6171, %v6121_v45  }
0x20ea   :  { %4683 = vperm.xlu0 %6172, %v6120_v29  }
0x20ed   :  { %4698 = vperm.xlu1 %6171, %v6123_v21  }
0x20ee   :  { %4693 = vperm.xlu0 %6172, %v6122_v27  }
0x2146   :  { %v6620_v17 = vpop.permute.xlu1 %6619 }
0x2147   :  { %v6622_v40 = vunpack.i.h.bf16 %v6620_v17  ;;  %v6621_v16 = vunpack.i.l.bf16 %v6620_v17 }
0x2148   :  { %v6615_v58 = vpop.permute.xlu0 %6614 }
0x2149   :  { %v6617_v61 = vunpack.i.h.bf16 %v6615_v58  ;;  %v6616_v22 = vunpack.i.l.bf16 %v6615_v58 }
0x214b   :  { %v4642_v49 = vsel %vm1916_vm6, %v6622_v40, %v6617_v61  ;;  %v4641_v9 = vsel %vm1916_vm6, %v6621_v16, %v6616_v22  ;;  %v4637_v57 = vsel %vm1916_vm6, %v6616_v22, %v6621_v16  ;;  %v4638_v35 = vsel %vm1916_vm6, %v6617_v61, %v6622_v40 }
0x214c   :  { %v4669_v10 = vpack.c.bf16 %v4642_v49, %v4641_v9  ;;  %v4670_v31 = vpack.c.bf16 %v4638_v35, %v4637_v57 }
0x214e   :  { %4717 = vmatprep.subr.bf16.mxu1 %v4670_v31 }
0x214f   :  { %4718 = vmatpush1.bf16.msra.mxu1 %v4669_v10  ;;  %v6630_v59 = vpop.permute.xlu1 %6629 }
0x2150   :  { %v6632_v60 = vunpack.i.h.bf16 %v6630_v59  ;;  %v6631_v63 = vunpack.i.l.bf16 %v6630_v59  ;;  %v6625_v62 = vpop.permute.xlu0 %6624 }
0x2151   :  { %v6627_v18 = vunpack.i.h.bf16 %v6625_v62  ;;  %v6626_v48 = vunpack.i.l.bf16 %v6625_v62 }
0x2153   :  { %v4644_v54 = vsel %vm1916_vm6, %v6632_v60, %v6627_v18  ;;  %v4643_v41 = vsel %vm1916_vm6, %v6631_v63, %v6626_v48  ;;  %v6640_v5 = vpop.permute.xlu1 %6639  ;;  %v4639_v42 = vsel %vm1916_vm6, %v6626_v48, %v6631_v63  ;;  %v4640_v37 = vsel %vm1916_vm6, %v6627_v18, %v6632_v60 }
0x2154   :  { %v4671_v43 = vpack.c.bf16 %v4644_v54, %v4643_v41  ;;  %v6635_v51 = vpop.permute.xlu0 %6634  ;;  %v4672_v38 = vpack.c.bf16 %v4640_v37, %v4639_v42  ;;  %v6642_v30 = vunpack.i.h.bf16 %v6640_v5  ;;  %v6641_v14 = vunpack.i.l.bf16 %v6640_v5 }
0x2155   :  { %v6637_v11 = vunpack.i.h.bf16 %v6635_v51  ;;  %v6636_v7 = vunpack.i.l.bf16 %v6635_v51 }
0x2156   :  { %4719 = vmatprep.subr.bf16.mxu1 %v4672_v38 }
0x2157   :  { %4720 = vmatpush1.bf16.msra.mxu1 %v4671_v43  ;;  %v6650_v23 = vpop.permute.xlu1 %6649  ;;  %v4665_v36 = vsel %vm1941_vm7, %v6641_v14, %v6636_v7  ;;  %v4666_v26 = vsel %vm1941_vm7, %v6642_v30, %v6637_v11  ;;  %v4662_v17 = vsel %vm1941_vm7, %v6637_v11, %v6642_v30  ;;  %v4661_v33 = vsel %vm1941_vm7, %v6636_v7, %v6641_v14 }
0x2158   :  { %v6645_v2 = vpop.permute.xlu0 %6644  ;;  %4721 = vmatprep.subr.bf16.mxu1 %v4674_v47  ;;  %v6652_v45 = vunpack.i.h.bf16 %v6650_v23  ;;  %v6651_v29 = vunpack.i.l.bf16 %v6650_v23  ;;  %v4678_v44 = vpack.c.bf16 %v4666_v26, %v4665_v36  ;;  %v4677_v25 = vpack.c.bf16 %v4662_v17, %v4661_v33  ;;  %v5121_v17 = vld [vmem:[%s11387_s14 + $0x8] sm:$0xff]  ;;  %v5122_v33 = vld [vmem:[%s11387_s14 + $0x10] sm:$0xff] }
0x2159   :  { %v6647_v21 = vunpack.i.h.bf16 %v6645_v2  ;;  %v6646_v27 = vunpack.i.l.bf16 %v6645_v2 }
0x215b   :  { %4722 = vmatpush1.bf16.msra.mxu1 %v4673_v24  ;;  %v4667_v47 = vsel %vm1941_vm7, %v6651_v29, %v6646_v27  ;;  %v4668_v40 = vsel %vm1941_vm7, %v6652_v45, %v6647_v21  ;;  %v4664_v50 = vsel %vm1941_vm7, %v6647_v21, %v6652_v45  ;;  %v4663_v24 = vsel %vm1941_vm7, %v6646_v27, %v6651_v29  ;;  %v5123_v27 = vld [vmem:[%s11387_s14 + $0x18] sm:$0xff] }
0x215c   :  { %4723 = vmatprep.subr.bf16.mxu1 %v4676_v19  ;;  %v4680_v19 = vpack.c.bf16 %v4668_v40, %v4667_v47  ;;  %v4679_v16 = vpack.c.bf16 %v4664_v50, %v4663_v24 }
0x215f   :  { %4724 = vmatpush1.bf16.msra.mxu1 %v4675_v52 }
0x2160   :  { %4725 = vmatprep.subr.bf16.mxu1 %v4678_v44 }
0x2163   :  { %4726 = vmatpush1.bf16.msra.mxu1 %v4677_v25 }
0x2164   :  { %4727 = vmatprep.subr.bf16.mxu1 %v4680_v19 }
0x2167   :  { %4728 = vmatpush1.bf16.msra.mxu1 %v4679_v16 }
0x2168   :  { %v4689_v49 = vpop.permute.xlu1 %4688 }
0x2169   :  { %v4684_v52 = vpop.permute.xlu0 %4683 }
0x216a   :  { %6126 = vmatmul.mubr.msk.bf16.vlgmr.msra.gmra.mrb[40].mxu1 %vm435_vm3, %v6755_v20 }
0x216b   :  { %4759 = vmatprep.mubr.bf16.mxu1 %v7153_v32 }
0x216c   :  { %v4699_v51 = vpop.permute.xlu1 %4698 }
0x216d   :  { %v4694_v41 = vpop.permute.xlu0 %4693 }
0x2172   :  { %6127 = vmatmul.mubr.msk.bf16.gmra.mrb[44].mxu1 %vm435_vm3, %v6756_v34 }
0x2173   :  { %5400 = vmatprep.mubr.bf16.mxu1 %v7153_v32 }
0x223d   :  { %v4751_v58 = vpop.f32.mrb[40].mxu1 }
0x223e   :  { %v4752_v61 = vadd.f32 %v4751_v58, %v4684_v52  ;;  %v4753_v22 = vpop.f32.mrb[41].mxu1 }
0x223f   :  { %v4754_v9 = vadd.f32 %v4753_v22, %v4684_v52  ;;  %v4755_v57 = vpop.f32.mrb[42].mxu1 }
0x2240   :  { %v4770_v35 = vadd.f32 %v4752_v61, %v10080_v39  ;;  %v4756_v10 = vadd.f32 %v4755_v57, %v4689_v49  ;;  %v4757_v31 = vpop.f32.mrb[43].mxu1 }
0x2241   :  { %v4771_v59 = vadd.f32 %v4754_v9, %v10083_v53  ;;  %v4758_v60 = vadd.f32 %v4757_v31, %v4689_v49 }
0x2242   :  { %v4786_v63 = vmul.f32 %v4770_v35, %v7312_v12  ;;  %v4772_v62 = vadd.f32 %v4756_v10, %v10086_v15 }
0x2243   :  { %v4787_v18 = vmul.f32 %v4771_v59, %v7314_v13  ;;  %v4773_v48 = vadd.f32 %v4758_v60, %v10091_v8 }
0x2244   :  { %v4788_v54 = vmul.f32 %v4772_v62, %v7312_v12 }
0x2245   :  { %v4789_v5 = vmul.f32 %v4773_v48, %v7314_v13  ;;  %v4761_v42 = vpop.f32.mrb[44].mxu1  ;;  %v4794_v39 = vadd.f32 %v4787_v18, %v4786_v63 }
0x2246   :  { %v4762_v37 = vadd.f32 %v4761_v42, %v4694_v41  ;;  %v4763_v43 = vpop.f32.mrb[45].mxu1 }
0x2247   :  { %v4764_v53 = vadd.f32 %v4763_v43, %v4694_v41  ;;  %v4765_v38 = vpop.f32.mrb[46].mxu1  ;;  %4795 = vadd.xlane.f32.xlu0 %v4794_v39  ;;  %v4797_v30 = vadd.f32 %v4789_v5, %v4788_v54 }
0x2248   :  { %v4774_v15 = vadd.f32 %v4762_v37, %v10100_v56  ;;  %v4766_v14 = vadd.f32 %v4765_v38, %v4699_v51  ;;  %v4767_v11 = vpop.f32.mrb[47].mxu1 }
0x2249   :  { %v4775_v8 = vadd.f32 %v4764_v53, %v10103_v4  ;;  %v4768_v7 = vadd.f32 %v4767_v11, %v4699_v51  ;;  %4798 = vadd.xlane.f32.xlu1 %v4797_v30  ;;  %v5120_v4 = vld [vmem:[%s11387_s14] sm:$0xff]  ;;  %v5127_v30 = vld [vmem:[%s11388_s15 + $0x18] sm:$0xff] }
0x224a   :  { %v4790_v23 = vmul.f32 %v4774_v15, %v7312_v12  ;;  %v4776_v2 = vadd.f32 %v4766_v14, %v10106_v28  ;;  %v5124_v28 = vld [vmem:[%s11388_s15] sm:$0xff] }
0x224b   :  { %v4791_v36 = vmul.f32 %v4775_v8, %v7314_v13  ;;  %v4777_v26 = vadd.f32 %v4768_v7, %v10111_v55  ;;  %v5125_v55 = vld [vmem:[%s11388_s15 + $0x8] sm:$0xff] }
0x224c   :  { %v4792_v45 = vmul.f32 %v4776_v2, %v7312_v12 }
0x224d   :  { %v4793_v29 = vmul.f32 %v4777_v26, %v7314_v13  ;;  %v4800_v21 = vadd.f32 %v4791_v36, %v4790_v23 }
0x224f   :  { %4801 = vadd.xlane.f32.xlu0 %v4800_v21  ;;  %v4803_v56 = vadd.f32 %v4793_v29, %v4792_v45 }
0x2253   :  { %4804 = vadd.xlane.f32.xlu0 %v4803_v56 }
0x225a   :  { %5130 = vperm.xlu1 %6171, %v5120_v4  }
0x225e   :  { %5158 = vperm.xlu1 %6171, %v5124_v28  }
0x2262   :  { %5163 = vperm.xlu1 %6171, %v5125_v55  }
0x2266   :  { %5145 = vperm.xlu1 %6171, %v5123_v27  }
0x2269   :  { %5135 = vperm.xlu0 %6172, %v5121_v17  }
0x226d   :  { %5140 = vperm.xlu0 %6172, %v5122_v33  }
0x22d4   :  { %v4796_v44 = vpop.xlane.xlu0 %4795 }
0x22d5   :  { %v4806_v47 = vmul.f32 %v4796_v44, %v7343_v46 }
0x22d6   :  { %v4799_v40 = vpop.xlane.xlu1 %4798 }
0x22d7   :  { %v10664_v25 = vsub.f32 %v4770_v35, %v4806_v47  ;;  %v10666_v50 = vsub.f32 %v4771_v59, %v4806_v47  ;;  %v4807_v24 = vmul.f32 %v4799_v40, %v7343_v46 }
0x22d9   :  { %v4818_v19 = vmul.f32 %v10664_v25, %v10664_v25  ;;  %v4819_v16 = vmul.f32 %v10666_v50, %v10666_v50  ;;  %v10673_v20 = vsub.f32 %v4772_v62, %v4807_v24  ;;  %v10675_v34 = vsub.f32 %v4773_v48, %v4807_v24 }
0x22da   :  { %v5131_v14 = vpop.permute.xlu1 %5130 }
0x22db   :  { %v4820_v52 = vmul.f32 %v10673_v20, %v10673_v20  ;;  %v4821_v58 = vmul.f32 %v10675_v34, %v10675_v34  ;;  %v4826_v61 = vmul.f32 %v4818_v19, %v7312_v12  ;;  %v4827_v22 = vmul.f32 %v4819_v16, %v7314_v13 }
0x22dc   :  { %v4802_v49 = vpop.xlane.xlu0 %4801 }
0x22dd   :  { %v4808_v9 = vmul.f32 %v4802_v49, %v7343_v46  ;;  %v4834_v57 = vadd.f32 %v4827_v22, %v4826_v61  ;;  %v4828_v35 = vmul.f32 %v4820_v52, %v7312_v12  ;;  %v4829_v10 = vmul.f32 %v4821_v58, %v7314_v13 }
0x22de   :  { %v5159_v11 = vpop.permute.xlu1 %5158 }
0x22df   :  { %v10686_v31 = vsub.f32 %v4774_v15, %v4808_v9  ;;  %v10688_v59 = vsub.f32 %v4775_v8, %v4808_v9  ;;  %4835 = vadd.xlane.f32.xlu1 %v4834_v57  ;;  %v4837_v60 = vadd.f32 %v4829_v10, %v4828_v35  ;;  %v5126_v15 = vld [vmem:[%s11388_s15 + $0x10] sm:$0xff] }
0x22e0   :  { %v4805_v63 = vpop.xlane.xlu0 %4804 }
0x22e1   :  { %v4822_v62 = vmul.f32 %v10686_v31, %v10686_v31  ;;  %v4823_v18 = vmul.f32 %v10688_v59, %v10688_v59  ;;  %v4809_v48 = vmul.f32 %v4805_v63, %v7343_v46  ;;  %4838 = vadd.xlane.f32.xlu0 %v4837_v60 }
0x22e2   :  { %v5164_v8 = vpop.permute.xlu1 %5163 }
0x22e3   :  { %v10695_v54 = vsub.f32 %v4776_v2, %v4809_v48  ;;  %v10697_v41 = vsub.f32 %v4777_v26, %v4809_v48  ;;  %v4830_v5 = vmul.f32 %v4822_v62, %v7312_v12  ;;  %v4831_v42 = vmul.f32 %v4823_v18, %v7314_v13 }
0x22e5   :  { %v4824_v39 = vmul.f32 %v10695_v54, %v10695_v54  ;;  %v4825_v37 = vmul.f32 %v10697_v41, %v10697_v41  ;;  %v4840_v43 = vadd.f32 %v4831_v42, %v4830_v5 }
0x22e6   :  { %v5146_v23 = vpop.permute.xlu1 %5145 }
0x22e7   :  { %4841 = vadd.xlane.f32.xlu1 %v4840_v43  ;;  %v4832_v51 = vmul.f32 %v4824_v39, %v7312_v12  ;;  %v4833_v53 = vmul.f32 %v4825_v37, %v7314_v13 }
0x22e8   :  { %v5136_v7 = vpop.permute.xlu0 %5135 }
0x22e9   :  { %v4843_v38 = vadd.f32 %v4833_v53, %v4832_v51 }
0x22eb   :  { %4844 = vadd.xlane.f32.xlu0 %v4843_v38 }
0x22ec   :  { %v5141_v2 = vpop.permute.xlu0 %5140 }
0x22f8   :  { %5173 = vperm.xlu1 %6171, %v5127_v30  }
0x2301   :  { %5168 = vperm.xlu0 %6172, %v5126_v15  }
0x236c   :  { %v4836_v36 = vpop.xlane.xlu1 %4835 }
0x236d   :  { %v4846_v26 = vmul.f32 %v4836_v36, %v7343_v46 }
0x236e   :  { %v4839_v45 = vpop.xlane.xlu0 %4838 }
0x236f   :  { %v4850_v29 = vadd.f32 1e-05, %v4846_v26  ;;  %v4847_v21 = vmul.f32 %v4839_v45, %v7343_v46 }
0x2371   :  { %7053 = vrsqrt.f32 %v4850_v29  ;;  %v4851_v56 = vadd.f32 1e-05, %v4847_v21 }
0x2373   :  { %7055 = vrsqrt.f32 %v4851_v56 }
0x2374   :  { %v4842_v4 = vpop.xlane.xlu1 %4841 }
0x2375   :  { %v4848_v28 = vmul.f32 %v4842_v4, %v7343_v46 }
0x2377   :  { %v4852_v55 = vadd.f32 1e-05, %v4848_v28 }
0x2378   :  { %v4845_v27 = vpop.xlane.xlu0 %4844  ;;  %v5174_v36 = vpop.permute.xlu1 %5173 }
0x2379   :  { %7057 = vrsqrt.f32 %v4852_v55  ;;  %v4849_v17 = vmul.f32 %v4845_v27, %v7343_v46 }
0x237b   :  { %v7054_v33 = vpop.eup %7053  ;;  %v4853_v44 = vadd.f32 1e-05, %v4849_v17 }
0x237c   :  { %v10718_v47 = vmul.f32 %v7054_v33, %v10664_v25  ;;  %v10721_v40 = vmul.f32 %v7054_v33, %v10666_v50 }
0x237d   :  { %v7056_v24 = vpop.eup %7055  ;;  %7059 = vrsqrt.f32 %v4853_v44 }
0x237e   :  { %v5148_v19 = vmul.f32 %v5131_v14, %v10718_v47  ;;  %v5149_v16 = vmul.f32 %v5131_v14, %v10721_v40  ;;  %v10726_v52 = vmul.f32 %v7056_v24, %v10673_v20  ;;  %v10729_v58 = vmul.f32 %v7056_v24, %v10675_v34 }
0x2380   :  { %v10731_v61 = vadd.f32 %v5159_v11, %v5148_v19  ;;  %v10733_v22 = vadd.f32 %v5159_v11, %v5149_v16  ;;  %v5150_v25 = vmul.f32 %v5136_v7, %v10726_v52  ;;  %v5151_v50 = vmul.f32 %v5136_v7, %v10729_v58  ;;  %v5169_v43 = vpop.permute.xlu0 %5168 }
0x2382   :  { %v5184_v49 = vmul.f32 %v10731_v61, %v10731_v61  ;;  %v5185_v9 = vmul.f32 %v10733_v22, %v10733_v22  ;;  %v10741_v57 = vadd.f32 %v5164_v8, %v5150_v25  ;;  %v10743_v20 = vadd.f32 %v5164_v8, %v5151_v50 }
0x2383   :  { %v7058_v34 = vpop.eup %7057 }
0x2384   :  { %v5186_v35 = vmul.f32 %v10741_v57, %v10741_v57  ;;  %v5187_v10 = vmul.f32 %v10743_v20, %v10743_v20  ;;  %v10750_v60 = vmul.f32 %v7058_v34, %v10686_v31  ;;  %v10753_v63 = vmul.f32 %v7058_v34, %v10688_v59 }
0x2385   :  { %v5193_v62 = vmul.f32 %v5185_v9, %v10733_v22  ;;  %v5192_v18 = vmul.f32 %v5184_v49, %v10731_v61 }
0x2386   :  { %v5152_v48 = vmul.f32 %v5141_v2, %v10750_v60  ;;  %v5153_v5 = vmul.f32 %v5141_v2, %v10753_v63  ;;  %v5195_v42 = vmul.f32 %v5187_v10, %v10743_v20  ;;  %v5194_v39 = vmul.f32 %v5186_v35, %v10741_v57 }
0x2387   :  { %v7060_v37 = vpop.eup %7059  ;;  %v5201_v51 = vmul.f32 0.044715, %v5193_v62  ;;  %v5200_v31 = vmul.f32 0.044715, %v5192_v18 }
0x2388   :  { %v10762_v53 = vmul.f32 %v7060_v37, %v10695_v54  ;;  %v10765_v59 = vmul.f32 %v7060_v37, %v10697_v41  ;;  %v10767_v38 = vadd.f32 %v5169_v43, %v5152_v48  ;;  %v10769_v30 = vadd.f32 %v5169_v43, %v5153_v5 }
0x2389   :  { %v5203_v15 = vmul.f32 0.044715, %v5195_v42  ;;  %v5209_v14 = vadd.f32 %v5201_v51, %v10733_v22  ;;  %v5202_v11 = vmul.f32 0.044715, %v5194_v39  ;;  %v5208_v8 = vadd.f32 %v5200_v31, %v10731_v61 }
0x238a   :  { %v5154_v7 = vmul.f32 %v5146_v23, %v10762_v53  ;;  %v5155_v2 = vmul.f32 %v5146_v23, %v10765_v59  ;;  %v5188_v54 = vmul.f32 %v10767_v38, %v10767_v38  ;;  %v5189_v41 = vmul.f32 %v10769_v30, %v10769_v30 }
0x238b   :  { %v5211_v26 = vadd.f32 %v5203_v15, %v10743_v20  ;;  %v5217_v45 = vmul.f32 0.7978846, %v5209_v14  ;;  %v5210_v29 = vadd.f32 %v5202_v11, %v10741_v57  ;;  %v5216_v21 = vmul.f32 0.7978846, %v5208_v8 }
0x238c   :  { %v10781_v56 = vadd.f32 %v5174_v36, %v5154_v7  ;;  %v10783_v4 = vadd.f32 %v5174_v36, %v5155_v2  ;;  %v5196_v28 = vmul.f32 %v5188_v54, %v10767_v38  ;;  %v5197_v23 = vmul.f32 %v5189_v41, %v10769_v30 }
0x238d   :  { %v5219_v55 = vmul.f32 0.7978846, %v5211_v26  ;;  %7061 = vtanh.f32 %v5217_v45  ;;  %v5218_v27 = vmul.f32 0.7978846, %v5210_v29 }
0x238e   :  { %v5190_v17 = vmul.f32 %v10781_v56, %v10781_v56  ;;  %v5191_v33 = vmul.f32 %v10783_v4, %v10783_v4  ;;  %v5204_v44 = vmul.f32 0.044715, %v5196_v28  ;;  %v5205_v24 = vmul.f32 0.044715, %v5197_v23 }
0x238f   :  { %7063 = vtanh.f32 %v5219_v55 }
0x2390   :  { %v5212_v19 = vadd.f32 %v5204_v44, %v10767_v38  ;;  %v5213_v16 = vadd.f32 %v5205_v24, %v10769_v30  ;;  %7065 = vtanh.f32 %v5216_v21  ;;  %v5199_v25 = vmul.f32 %v5191_v33, %v10783_v4 }
0x2391   :  { %7067 = vtanh.f32 %v5218_v27  ;;  %v5198_v50 = vmul.f32 %v5190_v17, %v10781_v56 }
0x2392   :  { %v5220_v49 = vmul.f32 0.7978846, %v5212_v19  ;;  %v5221_v9 = vmul.f32 0.7978846, %v5213_v16  ;;  %v5207_v34 = vmul.f32 0.044715, %v5199_v25 }
0x2393   :  { %v5206_v35 = vmul.f32 0.044715, %v5198_v50 }
0x2394   :  { %7069 = vtanh.f32 %v5220_v49  ;;  %v5215_v10 = vadd.f32 %v5207_v34, %v10783_v4 }
0x2395   :  { %7071 = vtanh.f32 %v5221_v9  ;;  %v5214_v62 = vadd.f32 %v5206_v35, %v10781_v56 }
0x2396   :  { %v5223_v18 = vmul.f32 0.7978846, %v5215_v10 }
0x2397   :  { %v7062_v48 = vpop.eup %7061  ;;  %v5222_v5 = vmul.f32 0.7978846, %v5214_v62 }
0x2398   :  { %v5233_v42 = vadd.f32 1.0, %v7062_v48  ;;  %7073 = vtanh.f32 %v5223_v18 }
0x2399   :  { %v7064_v39 = vpop.eup %7063  ;;  %7075 = vtanh.f32 %v5222_v5  ;;  %v5269_v5 = vld [vmem:[%s11390_s17 + $0x8] sm:$0xff] }
0x239a   :  { %v7066_v37 = vpop.eup %7065  ;;  %v5235_v43 = vadd.f32 1.0, %v7064_v39  ;;  %v5241_v51 = vmul.f32 0.5, %v5233_v42  ;;  %v5268_v42 = vld [vmem:[%s11390_s17] sm:$0xff]  ;;  %v5271_v39 = vld [vmem:[%s11390_s17 + $0x18] sm:$0xff] }
0x239b   :  { %v7068_v31 = vpop.eup %7067  ;;  %v5232_v15 = vadd.f32 1.0, %v7066_v37  ;;  %v5270_v37 = vld [vmem:[%s11390_s17 + $0x10] sm:$0xff] }
0x239c   :  { %v5243_v14 = vmul.f32 0.5, %v5235_v43  ;;  %v5249_v11 = vmul.f32 %v5241_v51, %v10733_v22  ;;  %v5234_v8 = vadd.f32 1.0, %v7068_v31 }
0x239d   :  { %v5240_v7 = vmul.f32 0.5, %v5232_v15 }
0x239e   :  { %v7070_v2 = vpop.eup %7069  ;;  %v5251_v54 = vmul.f32 %v5243_v14, %v10743_v20  ;;  %v5242_v41 = vmul.f32 0.5, %v5234_v8  ;;  %v10801_v21 = vmul.f32 %v5249_v11, %v7314_v13 }
0x239f   :  { %v7072_v36 = vpop.eup %7071  ;;  %v5236_v26 = vadd.f32 1.0, %v7070_v2  ;;  %v5248_v45 = vmul.f32 %v5240_v7, %v10731_v61 }
0x23a0   :  { %v5237_v29 = vadd.f32 1.0, %v7072_v36  ;;  %v10804_v28 = vmul.f32 %v5251_v54, %v7314_v13  ;;  %v5250_v23 = vmul.f32 %v5242_v41, %v10741_v57 }
0x23a1   :  { %v5244_v22 = vmul.f32 0.5, %v5236_v26  ;;  %v10810_v17 = vmul.f32 %v5248_v45, %v7312_v12 }
0x23a2   :  { %v7074_v55 = vpop.eup %7073  ;;  %v5245_v27 = vmul.f32 0.5, %v5237_v29  ;;  %v6658_v20 = vpack.i.bf16 %v10804_v28, %v10801_v21  ;;  %v10813_v61 = vmul.f32 %v5250_v23, %v7312_v12  ;;  %v5325_v24 = vpack.c.bf16 %v10804_v28, %v10801_v21 }
0x23a3   :  { %v7076_v33 = vpop.eup %7075  ;;  %v5239_v44 = vadd.f32 1.0, %v7074_v55  ;;  %v5252_v49 = vmul.f32 %v5244_v22, %v10767_v38 }
0x23a4   :  { %6659 = vrot.lane.b32.xlu1 %v6658_v20, %s11435_s0  ;;  %v6653_v57 = vpack.i.bf16 %v10813_v61, %v10810_v17  ;;  %v5238_v19 = vadd.f32 1.0, %v7076_v33  ;;  %v5253_v16 = vmul.f32 %v5245_v27, %v10769_v30  ;;  %v5324_v50 = vpack.c.bf16 %v10813_v61, %v10810_v17 }
0x23a5   :  { %v5247_v25 = vmul.f32 0.5, %v5239_v44  ;;  %v10834_v30 = vmul.f32 %v5252_v49, %v7312_v12 }
0x23a6   :  { %6654 = vrot.lane.b32.xlu0 %v6653_v57, %s11435_s0  ;;  %v5246_v9 = vmul.f32 0.5, %v5238_v19  ;;  %v10828_v10 = vmul.f32 %v5253_v16, %v7314_v13 }
0x23a7   :  { %v5255_v34 = vmul.f32 %v5247_v25, %v10783_v4 }
0x23a8   :  { %v5254_v35 = vmul.f32 %v5246_v9, %v10781_v56 }
0x23a9   :  { %v10831_v62 = vmul.f32 %v5255_v34, %v7314_v13 }
0x23aa   :  { %v10837_v18 = vmul.f32 %v5254_v35, %v7312_v12 }
0x23ab   :  { %v6668_v38 = vpack.i.bf16 %v10831_v62, %v10828_v10  ;;  %v5327_v4 = vpack.c.bf16 %v10831_v62, %v10828_v10 }
0x23ac   :  { %v6663_v56 = vpack.i.bf16 %v10837_v18, %v10834_v30  ;;  %v5326_v48 = vpack.c.bf16 %v10837_v18, %v10834_v30  ;;  %v6757_v30 = vld [vmem:[%s11389_s16] sm:$0xff]   ;;  %v6758_v18 = vld [vmem:[%s11389_s16 + $0x8] sm:$0xff]  }
0x23ad   :  { %6669 = vrot.lane.b32.xlu1 %v6668_v38, %s11435_s0 }
0x23ae   :  { %6664 = vrot.lane.b32.xlu0 %v6663_v56, %s11435_s0 }
0x23b1   :  { %6679 = vrot.lane.b32.xlu1 %v6658_v20, %s11431_s23 }
0x23b2   :  { %6674 = vrot.lane.b32.xlu0 %v6653_v57, %s11431_s23 }
0x23b5   :  { %6689 = vrot.lane.b32.xlu1 %v6668_v38, %s11431_s23 }
0x23b6   :  { %6684 = vrot.lane.b32.xlu0 %v6663_v56, %s11431_s23 }
0x23b9   :  { %5339 = vperm.xlu1 %6171, %v5269_v5  }
0x23ba   :  { %5334 = vperm.xlu0 %6172, %v5268_v42  }
0x23bd   :  { %5349 = vperm.xlu1 %6171, %v5271_v39  }
0x23be   :  { %5344 = vperm.xlu0 %6172, %v5270_v37  }
0x2416   :  { %v6660_v43 = vpop.permute.xlu1 %6659 }
0x2417   :  { %v6662_v51 = vunpack.i.h.bf16 %v6660_v43  ;;  %v6661_v31 = vunpack.i.l.bf16 %v6660_v43 }
0x2418   :  { %v6655_v15 = vpop.permute.xlu0 %6654 }
0x2419   :  { %v6657_v14 = vunpack.i.h.bf16 %v6655_v15  ;;  %v6656_v11 = vunpack.i.l.bf16 %v6655_v15 }
0x241b   :  { %v5293_v8 = vsel %vm359_vm1, %v6662_v51, %v6657_v14  ;;  %v5292_v7 = vsel %vm359_vm1, %v6661_v31, %v6656_v11  ;;  %v5288_v2 = vsel %vm359_vm1, %v6656_v11, %v6661_v31  ;;  %v5289_v54 = vsel %vm359_vm1, %v6657_v14, %v6662_v51 }
0x241c   :  { %v5320_v41 = vpack.c.bf16 %v5293_v8, %v5292_v7  ;;  %v5321_v36 = vpack.c.bf16 %v5289_v54, %v5288_v2 }
0x241e   :  { %5368 = vmatprep.subr.bf16.mxu1 %v5321_v36 }
0x241f   :  { %5369 = vmatpush1.bf16.msra.mxu1 %v5320_v41  ;;  %v6670_v26 = vpop.permute.xlu1 %6669 }
0x2420   :  { %v6672_v45 = vunpack.i.h.bf16 %v6670_v26  ;;  %v6671_v29 = vunpack.i.l.bf16 %v6670_v26  ;;  %v6665_v23 = vpop.permute.xlu0 %6664 }
0x2421   :  { %v6667_v22 = vunpack.i.h.bf16 %v6665_v23  ;;  %v6666_v55 = vunpack.i.l.bf16 %v6665_v23 }
0x2423   :  { %v5295_v27 = vsel %vm359_vm1, %v6672_v45, %v6667_v22  ;;  %v5294_v20 = vsel %vm359_vm1, %v6671_v29, %v6666_v55  ;;  %v6680_v33 = vpop.permute.xlu1 %6679  ;;  %v5290_v44 = vsel %vm359_vm1, %v6666_v55, %v6671_v29  ;;  %v5291_v57 = vsel %vm359_vm1, %v6667_v22, %v6672_v45 }
0x2424   :  { %v5322_v19 = vpack.c.bf16 %v5295_v27, %v5294_v20  ;;  %v6675_v16 = vpop.permute.xlu0 %6674  ;;  %v5323_v25 = vpack.c.bf16 %v5291_v57, %v5290_v44  ;;  %v6682_v49 = vunpack.i.h.bf16 %v6680_v33  ;;  %v6681_v9 = vunpack.i.l.bf16 %v6680_v33 }
0x2425   :  { %v6677_v34 = vunpack.i.h.bf16 %v6675_v16  ;;  %v6676_v35 = vunpack.i.l.bf16 %v6675_v16 }
0x2426   :  { %5370 = vmatprep.subr.bf16.mxu1 %v5323_v25 }
0x2427   :  { %5371 = vmatpush1.bf16.msra.mxu1 %v5322_v19  ;;  %v6690_v10 = vpop.permute.xlu1 %6689  ;;  %v5316_v38 = vsel %vm384_vm2, %v6681_v9, %v6676_v35  ;;  %v5317_v56 = vsel %vm384_vm2, %v6682_v49, %v6677_v34  ;;  %v5313_v43 = vsel %vm384_vm2, %v6677_v34, %v6682_v49  ;;  %v5312_v21 = vsel %vm384_vm2, %v6676_v35, %v6681_v9 }
0x2428   :  { %v6685_v62 = vpop.permute.xlu0 %6684  ;;  %5372 = vmatprep.subr.bf16.mxu1 %v5325_v24  ;;  %v6692_v5 = vunpack.i.h.bf16 %v6690_v10  ;;  %v6691_v42 = vunpack.i.l.bf16 %v6690_v10  ;;  %v5329_v28 = vpack.c.bf16 %v5317_v56, %v5316_v38  ;;  %v5328_v17 = vpack.c.bf16 %v5313_v43, %v5312_v21  ;;  %v6137_v43 = vld [vmem:[%s11387_s14 + $0x28] sm:$0xff]  ;;  %v6138_v21 = vld [vmem:[%s11387_s14 + $0x30] sm:$0xff] }
0x2429   :  { %v6687_v39 = vunpack.i.h.bf16 %v6685_v62  ;;  %v6686_v37 = vunpack.i.l.bf16 %v6685_v62 }
0x242b   :  { %5373 = vmatpush1.bf16.msra.mxu1 %v5324_v50  ;;  %v5318_v24 = vsel %vm384_vm2, %v6691_v42, %v6686_v37  ;;  %v5319_v51 = vsel %vm384_vm2, %v6692_v5, %v6687_v39  ;;  %v5315_v61 = vsel %vm384_vm2, %v6687_v39, %v6692_v5  ;;  %v5314_v50 = vsel %vm384_vm2, %v6686_v37, %v6691_v42  ;;  %v6136_v5 = vld [vmem:[%s11387_s14 + $0x20] sm:$0xff]  ;;  %v6141_v39 = vld [vmem:[%s11388_s15 + $0x28] sm:$0xff]  ;;  %v6139_v37 = vld [vmem:[%s11387_s14 + $0x38] sm:$0xff] }
0x242c   :  { %5374 = vmatprep.subr.bf16.mxu1 %v5327_v4  ;;  %v5331_v4 = vpack.c.bf16 %v5319_v51, %v5318_v24  ;;  %v5330_v31 = vpack.c.bf16 %v5315_v61, %v5314_v50  ;;  %v6140_v42 = vld [vmem:[%s11388_s15 + $0x20] sm:$0xff] }
0x242f   :  { %5375 = vmatpush1.bf16.msra.mxu1 %v5326_v48 }
0x2430   :  { %5376 = vmatprep.subr.bf16.mxu1 %v5329_v28 }
0x2433   :  { %5377 = vmatpush1.bf16.msra.mxu1 %v5328_v17 }
0x2434   :  { %5378 = vmatprep.subr.bf16.mxu1 %v5331_v4 }
0x2437   :  { %5379 = vmatpush1.bf16.msra.mxu1 %v5330_v31 }
0x2438   :  { %v5340_v8 = vpop.permute.xlu1 %5339 }
0x2439   :  { %v5335_v48 = vpop.permute.xlu0 %5334 }
0x243a   :  { %6134 = vmatmul.mubr.msk.bf16.vlgmr.msra.gmra.mrb[48].mxu1 %vm435_vm3, %v6757_v30 }
0x243b   :  { %5410 = vmatprep.mubr.bf16.mxu1 %v7153_v32 }
0x243c   :  { %v5350_v57 = vpop.permute.xlu1 %5349 }
0x243d   :  { %v5345_v55 = vpop.permute.xlu0 %5344 }
0x2442   :  { %6135 = vmatmul.mubr.msk.bf16.gmra.mrb[52].mxu1 %vm435_vm3, %v6758_v18 }
0x2443   :  { %5864 = vmatprep.mubr.bf16.mxu1 %v7153_v32 }
0x250d   :  { %v5402_v15 = vpop.f32.mrb[48].mxu1 }
0x250e   :  { %v5403_v14 = vadd.f32 %v5402_v15, %v5335_v48  ;;  %v5404_v11 = vpop.f32.mrb[49].mxu1 }
0x250f   :  { %v5405_v7 = vadd.f32 %v5404_v11, %v5335_v48  ;;  %v5406_v2 = vpop.f32.mrb[50].mxu1 }
0x2510   :  { %v5431_v54 = vmul.f32 %v5403_v14, %v7312_v12  ;;  %v5407_v41 = vadd.f32 %v5406_v2, %v5340_v8  ;;  %v5408_v36 = vpop.f32.mrb[51].mxu1 }
0x2511   :  { %v5432_v26 = vmul.f32 %v5405_v7, %v7314_v13  ;;  %v5409_v45 = vadd.f32 %v5408_v36, %v5340_v8 }
0x2512   :  { %v5433_v29 = vmul.f32 %v5407_v41, %v7312_v12 }
0x2513   :  { %v5434_v23 = vmul.f32 %v5409_v45, %v7314_v13  ;;  %v5439_v22 = vadd.f32 %v5432_v26, %v5431_v54 }
0x2515   :  { %v5412_v27 = vpop.f32.mrb[52].mxu1  ;;  %5440 = vadd.xlane.f32.xlu0 %v5439_v22  ;;  %v5442_v20 = vadd.f32 %v5434_v23, %v5433_v29 }
0x2516   :  { %v5413_v33 = vadd.f32 %v5412_v27, %v5345_v55  ;;  %v5414_v44 = vpop.f32.mrb[53].mxu1 }
0x2517   :  { %v5415_v19 = vadd.f32 %v5414_v44, %v5345_v55  ;;  %v5416_v16 = vpop.f32.mrb[54].mxu1  ;;  %5443 = vadd.xlane.f32.xlu1 %v5442_v20 }
0x2518   :  { %v5435_v25 = vmul.f32 %v5413_v33, %v7312_v12  ;;  %v5417_v49 = vadd.f32 %v5416_v16, %v5350_v57  ;;  %v5418_v9 = vpop.f32.mrb[55].mxu1 }
0x2519   :  { %v5436_v34 = vmul.f32 %v5415_v19, %v7314_v13  ;;  %v5419_v35 = vadd.f32 %v5418_v9, %v5350_v57 }
0x251a   :  { %v5437_v10 = vmul.f32 %v5417_v49, %v7312_v12 }
0x251b   :  { %v5438_v62 = vmul.f32 %v5419_v35, %v7314_v13  ;;  %v5445_v38 = vadd.f32 %v5436_v34, %v5435_v25  ;;  %v6143_v34 = vld [vmem:[%s11388_s15 + $0x38] sm:$0xff] }
0x251d   :  { %5446 = vadd.xlane.f32.xlu0 %v5445_v38  ;;  %v5448_v56 = vadd.f32 %v5438_v62, %v5437_v10  ;;  %v4783_v10 = vld [vmem:[%s11384_s11 + $0x8] sm:$0xff]  ;;  %v6142_v62 = vld [vmem:[%s11388_s15 + $0x30] sm:$0xff]  ;;  %v4781_v38 = vld [vmem:[%s11383_s10 + $0x18] sm:$0xff]  ;;  %s11438_s15 = sld [smem:[#allocation14_spill]] }
0x2521   :  { %5449 = vadd.xlane.f32.xlu0 %v5448_v56  ;;  %v4778_v56 = vld [vmem:[%s11383_s10] sm:$0xff] }
0x2528   :  { %5513 = vperm.xlu1 %6171, %v6136_v5   ;;  %v4785_v5 = vld [vmem:[%s11384_s11 + $0x18] sm:$0xff] }
0x252c   :  { %5541 = vperm.xlu1 %6171, %v6140_v42   ;;  %v4782_v42 = vld [vmem:[%s11384_s11] sm:$0xff] }
0x2530   :  { %5546 = vperm.xlu1 %6171, %v6141_v39   ;;  %v4780_v39 = vld [vmem:[%s11383_s10 + $0x10] sm:$0xff] }
0x2534   :  { %5528 = vperm.xlu1 %6171, %v6139_v37   ;;  %v4784_v37 = vld [vmem:[%s11384_s11 + $0x10] sm:$0xff] }
0x2537   :  { %5518 = vperm.xlu0 %6172, %v6137_v43  }
0x253b   :  { %5523 = vperm.xlu0 %6172, %v6138_v21  }
0x25a2   :  { %v5441_v28 = vpop.xlane.xlu0 %5440 }
0x25a3   :  { %v5451_v24 = vmul.f32 %v5441_v28, %v7343_v46 }
0x25a4   :  { %v5444_v51 = vpop.xlane.xlu1 %5443 }
0x25a5   :  { %v10943_v17 = vsub.f32 %v5403_v14, %v5451_v24  ;;  %v10945_v61 = vsub.f32 %v5405_v7, %v5451_v24  ;;  %v5452_v50 = vmul.f32 %v5444_v51, %v7343_v46 }
0x25a7   :  { %v5463_v4 = vmul.f32 %v10943_v17, %v10943_v17  ;;  %v5464_v31 = vmul.f32 %v10945_v61, %v10945_v61  ;;  %v10952_v30 = vsub.f32 %v5407_v41, %v5452_v50  ;;  %v10954_v18 = vsub.f32 %v5409_v45, %v5452_v50 }
0x25a8   :  { %v5514_v43 = vpop.permute.xlu1 %5513 }
0x25a9   :  { %v5465_v48 = vmul.f32 %v10952_v30, %v10952_v30  ;;  %v5466_v15 = vmul.f32 %v10954_v18, %v10954_v18  ;;  %v5471_v14 = vmul.f32 %v5463_v4, %v7312_v12  ;;  %v5472_v11 = vmul.f32 %v5464_v31, %v7314_v13 }
0x25aa   :  { %v5447_v8 = vpop.xlane.xlu0 %5446 }
0x25ab   :  { %v5453_v7 = vmul.f32 %v5447_v8, %v7343_v46  ;;  %v5479_v2 = vadd.f32 %v5472_v11, %v5471_v14  ;;  %v5473_v54 = vmul.f32 %v5465_v48, %v7312_v12  ;;  %v5474_v41 = vmul.f32 %v5466_v15, %v7314_v13 }
0x25ac   :  { %v5542_v21 = vpop.permute.xlu1 %5541 }
0x25ad   :  { %v10965_v36 = vsub.f32 %v5413_v33, %v5453_v7  ;;  %v10967_v26 = vsub.f32 %v5415_v19, %v5453_v7  ;;  %5480 = vadd.xlane.f32.xlu1 %v5479_v2  ;;  %v5482_v45 = vadd.f32 %v5474_v41, %v5473_v54 }
0x25ae   :  { %v5450_v29 = vpop.xlane.xlu0 %5449 }
0x25af   :  { %v5467_v23 = vmul.f32 %v10965_v36, %v10965_v36  ;;  %v5468_v22 = vmul.f32 %v10967_v26, %v10967_v26  ;;  %v5454_v55 = vmul.f32 %v5450_v29, %v7343_v46  ;;  %5483 = vadd.xlane.f32.xlu0 %v5482_v45 }
0x25b0   :  { %v5547_v28 = vpop.permute.xlu1 %5546 }
0x25b1   :  { %v10974_v27 = vsub.f32 %v5417_v49, %v5454_v55  ;;  %v10976_v20 = vsub.f32 %v5419_v35, %v5454_v55  ;;  %v5475_v33 = vmul.f32 %v5467_v23, %v7312_v12  ;;  %v5476_v44 = vmul.f32 %v5468_v22, %v7314_v13  ;;  %v4779_v35 = vld [vmem:[%s11383_s10 + $0x8] sm:$0xff] }
0x25b3   :  { %v5469_v57 = vmul.f32 %v10974_v27, %v10974_v27  ;;  %v5470_v19 = vmul.f32 %v10976_v20, %v10976_v20  ;;  %v5485_v16 = vadd.f32 %v5476_v44, %v5475_v33 }
0x25b4   :  { %v11016_v51 = vpop.permute.xlu1 %5528 }
0x25b5   :  { %5486 = vadd.xlane.f32.xlu1 %v5485_v16  ;;  %v5477_v25 = vmul.f32 %v5469_v57, %v7312_v12  ;;  %v5478_v9 = vmul.f32 %v5470_v19, %v7314_v13 }
0x25b6   :  { %v5519_v24 = vpop.permute.xlu0 %5518 }
0x25b7   :  { %v5488_v49 = vadd.f32 %v5478_v9, %v5477_v25 }
0x25b9   :  { %5489 = vadd.xlane.f32.xlu0 %v5488_v49 }
0x25ba   :  { %v5524_v50 = vpop.permute.xlu0 %5523 }
0x25c6   :  { %5556 = vperm.xlu1 %6171, %v6143_v34  }
0x25ca   :  { %4873 = vperm.xlu1 %6171, %v4779_v35  }
0x25ce   :  { %4901 = vperm.xlu1 %6171, %v4783_v10  }
0x25cf   :  { %5551 = vperm.xlu0 %6172, %v6142_v62  }
0x25d2   :  { %4883 = vperm.xlu1 %6171, %v4781_v38  }
0x25d3   :  { %4868 = vperm.xlu0 %6172, %v4778_v56  }
0x25d6   :  { %4911 = vperm.xlu1 %6171, %v4785_v5  }
0x25d7   :  { %4896 = vperm.xlu0 %6172, %v4782_v42  }
0x25db   :  { %4878 = vperm.xlu0 %6172, %v4780_v39  }
0x25df   :  { %4906 = vperm.xlu0 %6172, %v4784_v37  }
0x263a   :  { %v5481_v4 = vpop.xlane.xlu1 %5480 }
0x263b   :  { %v5491_v31 = vmul.f32 %v5481_v4, %v7343_v46 }
0x263c   :  { %v5484_v48 = vpop.xlane.xlu0 %5483 }
0x263d   :  { %v5495_v15 = vadd.f32 1e-05, %v5491_v31  ;;  %v5492_v14 = vmul.f32 %v5484_v48, %v7343_v46 }
0x263f   :  { %7077 = vrsqrt.f32 %v5495_v15  ;;  %v5496_v11 = vadd.f32 1e-05, %v5492_v14 }
0x2641   :  { %7079 = vrsqrt.f32 %v5496_v11 }
0x2642   :  { %v5487_v8 = vpop.xlane.xlu1 %5486 }
0x2643   :  { %v5493_v7 = vmul.f32 %v5487_v8, %v7343_v46 }
0x2645   :  { %v5497_v2 = vadd.f32 1e-05, %v5493_v7 }
0x2646   :  { %v11021_v54 = vpop.permute.xlu1 %5556  ;;  %v5490_v41 = vpop.xlane.xlu0 %5489 }
0x2647   :  { %7081 = vrsqrt.f32 %v5497_v2  ;;  %v5494_v45 = vmul.f32 %v5490_v41, %v7343_v46 }
0x2649   :  { %v7078_v29 = vpop.eup %7077  ;;  %v5498_v23 = vadd.f32 1e-05, %v5494_v45 }
0x264a   :  { %v5503_v22 = vmul.f32 %v7078_v29, %v10943_v17  ;;  %v5504_v55 = vmul.f32 %v7078_v29, %v10945_v61  ;;  %v4874_v33 = vpop.permute.xlu1 %4873 }
0x264b   :  { %v7080_v44 = vpop.eup %7079  ;;  %7083 = vrsqrt.f32 %v5498_v23  ;;  %v4888_v9 = vmul.f32 %v4874_v33, %v10726_v52  ;;  %v4889_v49 = vmul.f32 %v4874_v33, %v10729_v58 }
0x264c   :  { %v5531_v57 = vmul.f32 %v5514_v43, %v5503_v22  ;;  %v5532_v19 = vmul.f32 %v5514_v43, %v5504_v55  ;;  %v5505_v16 = vmul.f32 %v7080_v44, %v10952_v30  ;;  %v5506_v25 = vmul.f32 %v7080_v44, %v10954_v18 }
0x264e   :  { %v11030_v46 = vadd.f32 %v5542_v21, %v5531_v57  ;;  %v11032_v34 = vadd.f32 %v5542_v21, %v5532_v19  ;;  %v5533_v17 = vmul.f32 %v5519_v24, %v5505_v16  ;;  %v5534_v35 = vmul.f32 %v5519_v24, %v5506_v25  ;;  %v4902_v61 = vpop.permute.xlu1 %4901  ;;  %v5552_v10 = vpop.permute.xlu0 %5551 }
0x264f   :  { %v11034_v62 = vadd.f32 %v4902_v61, %v4888_v9  ;;  %v11036_v38 = vadd.f32 %v4902_v61, %v4889_v49 }
0x2650   :  { %v11038_v56 = vadd.f32 %v5547_v28, %v5533_v17  ;;  %v11040_v30 = vadd.f32 %v5547_v28, %v5534_v35  ;;  %v5568_v52 = vmul.f32 %v11032_v34, %v11032_v34  ;;  %v11050_v42 = vmul.f32 %v11030_v46, %v11030_v46 }
0x2651   :  { %v7082_v18 = vpop.eup %7081  ;;  %v4924_v58 = vmul.f32 %v11034_v62, %v11034_v62  ;;  %v4925_v5 = vmul.f32 %v11036_v38, %v11036_v38 }
0x2652   :  { %v11054_v39 = vmul.f32 %v11038_v56, %v11038_v56  ;;  %v5507_v37 = vmul.f32 %v7082_v18, %v10965_v36  ;;  %v5508_v43 = vmul.f32 %v7082_v18, %v10967_v26  ;;  %v4884_v21 = vpop.permute.xlu1 %4883  ;;  %v4869_v28 = vpop.permute.xlu0 %4868  ;;  %v5570_v24 = vmul.f32 %v11040_v30, %v11040_v30 }
0x2653   :  { %v4932_v4 = vmul.f32 %v4924_v58, %v11034_v62  ;;  %v4933_v31 = vmul.f32 %v4925_v5, %v11036_v38  ;;  %v4892_v48 = vmul.f32 %v4884_v21, %v10762_v53  ;;  %v4893_v11 = vmul.f32 %v4884_v21, %v10765_v59 }
0x2654   :  { %v5535_v15 = vmul.f32 %v5524_v50, %v5507_v37  ;;  %v5536_v14 = vmul.f32 %v5524_v50, %v5508_v43  ;;  %v4886_v8 = vmul.f32 %v4869_v28, %v10718_v47  ;;  %v4887_v2 = vmul.f32 %v4869_v28, %v10721_v40 }
0x2655   :  { %v7084_v36 = vpop.eup %7083  ;;  %v4940_v7 = vmul.f32 0.044715, %v4932_v4  ;;  %v4941_v26 = vmul.f32 0.044715, %v4933_v31  ;;  %v5576_v41 = vmul.f32 %v5568_v52, %v11032_v34  ;;  %v5578_v35 = vmul.f32 %v5570_v24, %v11040_v30 }
0x2656   :  { %v5509_v45 = vmul.f32 %v7084_v36, %v10974_v27  ;;  %v5510_v29 = vmul.f32 %v7084_v36, %v10976_v20  ;;  %v11069_v23 = vadd.f32 %v5552_v10, %v5535_v15  ;;  %v11071_v53 = vadd.f32 %v5552_v10, %v5536_v14  ;;  %v4912_v50 = vpop.permute.xlu1 %4911  ;;  %v4897_v22 = vpop.permute.xlu0 %4896 }
0x2657   :  { %v4948_v59 = vadd.f32 %v4940_v7, %v11034_v62  ;;  %v4949_v47 = vadd.f32 %v4941_v26, %v11036_v38  ;;  %v11075_v55 = vadd.f32 %v4912_v50, %v4892_v48  ;;  %v11077_v33 = vadd.f32 %v4912_v50, %v4893_v11 }
0x2658   :  { %v5537_v40 = vmul.f32 %v11016_v51, %v5509_v45  ;;  %v5538_v27 = vmul.f32 %v11016_v51, %v5510_v29  ;;  %v5571_v20 = vmul.f32 %v11069_v23, %v11069_v23  ;;  %v5572_v44 = vmul.f32 %v11071_v53, %v11071_v53 }
0x2659   :  { %v4956_v57 = vmul.f32 0.7978846, %v4948_v59  ;;  %v4957_v19 = vmul.f32 0.7978846, %v4949_v47  ;;  %v4928_v16 = vmul.f32 %v11075_v55, %v11075_v55  ;;  %v4929_v25 = vmul.f32 %v11077_v33, %v11077_v33 }
0x265a   :  { %v11090_v9 = vadd.f32 %v11021_v54, %v5537_v40  ;;  %v5579_v49 = vmul.f32 %v5571_v20, %v11069_v23  ;;  %v5580_v51 = vmul.f32 %v5572_v44, %v11071_v53  ;;  %v4879_v17 = vpop.permute.xlu0 %4878  ;;  %v11097_v18 = vadd.f32 %v4897_v22, %v4886_v8 }
0x265b   :  { %7085 = vtanh.f32 %v4956_v57  ;;  %v4936_v61 = vmul.f32 %v4928_v16, %v11075_v55  ;;  %v4937_v10 = vmul.f32 %v4929_v25, %v11077_v33  ;;  %v11100_v52 = vadd.f32 %v11021_v54, %v5538_v27 }
0x265c   :  { %v11104_v58 = vmul.f32 %v11090_v9, %v11090_v9  ;;  %7087 = vtanh.f32 %v4957_v19  ;;  %v5587_v5 = vmul.f32 0.044715, %v5579_v49  ;;  %v5588_v37 = vmul.f32 0.044715, %v5580_v51 }
0x265d   :  { %v4944_v43 = vmul.f32 0.044715, %v4936_v61  ;;  %v4945_v21 = vmul.f32 0.044715, %v4937_v10  ;;  %v11106_v28 = vadd.f32 %v4897_v22, %v4887_v2  ;;  %v4922_v4 = vmul.f32 %v11097_v18, %v11097_v18 }
0x265e   :  { %v5595_v24 = vadd.f32 %v5587_v5, %v11069_v23  ;;  %v4890_v31 = vmul.f32 %v4879_v17, %v10750_v60  ;;  %v4891_v54 = vmul.f32 %v4879_v17, %v10753_v63  ;;  %v4907_v48 = vpop.permute.xlu0 %4906  ;;  %v5596_v15 = vadd.f32 %v5588_v37, %v11071_v53 }
0x265f   :  { %v4952_v14 = vadd.f32 %v4944_v43, %v11075_v55  ;;  %v4953_v11 = vadd.f32 %v4945_v21, %v11077_v33  ;;  %v4923_v8 = vmul.f32 %v11106_v28, %v11106_v28  ;;  %v4930_v7 = vmul.f32 %v4922_v4, %v11097_v18 }
0x2660   :  { %v5603_v36 = vmul.f32 0.7978846, %v5595_v24  ;;  %v11119_v26 = vadd.f32 %v4907_v48, %v4890_v31  ;;  %v11121_v2 = vadd.f32 %v4907_v48, %v4891_v54  ;;  %v5604_v60 = vmul.f32 0.7978846, %v5596_v15 }
0x2661   :  { %v4960_v45 = vmul.f32 0.7978846, %v4952_v14  ;;  %v4961_v63 = vmul.f32 0.7978846, %v4953_v11  ;;  %v4931_v29 = vmul.f32 %v4923_v8, %v11106_v28  ;;  %v4938_v50 = vmul.f32 0.044715, %v4930_v7 }
0x2662   :  { %7089 = vtanh.f32 %v5603_v36  ;;  %v4926_v22 = vmul.f32 %v11119_v26, %v11119_v26  ;;  %v4927_v59 = vmul.f32 %v11121_v2, %v11121_v2  ;;  %v5584_v40 = vmul.f32 0.044715, %v5576_v41 }
0x2663   :  { %7091 = vtanh.f32 %v5604_v60  ;;  %v4939_v47 = vmul.f32 0.044715, %v4931_v29  ;;  %v5586_v27 = vmul.f32 0.044715, %v5578_v35  ;;  %v4946_v20 = vadd.f32 %v4938_v50, %v11097_v18 }
0x2664   :  { %7093 = vtanh.f32 %v4960_v45  ;;  %v4934_v44 = vmul.f32 %v4926_v22, %v11119_v26  ;;  %v4935_v57 = vmul.f32 %v4927_v59, %v11121_v2  ;;  %v5592_v25 = vadd.f32 %v5584_v40, %v11032_v34 }
0x2665   :  { %v7086_v19 = vpop.eup %7085  ;;  %7095 = vtanh.f32 %v4961_v63  ;;  %v4947_v16 = vadd.f32 %v4939_v47, %v11106_v28  ;;  %v5594_v49 = vadd.f32 %v5586_v27, %v11040_v30  ;;  %v4954_v61 = vmul.f32 0.7978846, %v4946_v20 }
0x2666   :  { %v7088_v51 = vpop.eup %7087  ;;  %v4972_v17 = vadd.f32 1.0, %v7086_v19  ;;  %v4942_v41 = vmul.f32 0.044715, %v4934_v44  ;;  %v5575_v35 = vmul.f32 %v11050_v42, %v11030_v46  ;;  %v4943_v5 = vmul.f32 0.044715, %v4935_v57 }
0x2667   :  { %v4955_v10 = vmul.f32 0.7978846, %v4947_v16  ;;  %v5600_v37 = vmul.f32 0.7978846, %v5592_v25  ;;  %v5577_v43 = vmul.f32 %v11054_v39, %v11038_v56  ;;  %v5574_v21 = vmul.f32 %v11100_v52, %v11100_v52 }
0x2668   :  { %7097 = vtanh.f32 %v4954_v61  ;;  %v4950_v24 = vadd.f32 %v4942_v41, %v11119_v26  ;;  %v5602_v4 = vmul.f32 0.7978846, %v5594_v49  ;;  %v4951_v31 = vadd.f32 %v4943_v5, %v11121_v2 }
0x2669   :  { %7099 = vtanh.f32 %v4955_v10  ;;  %v5583_v54 = vmul.f32 0.044715, %v5575_v35  ;;  %v5585_v48 = vmul.f32 0.044715, %v5577_v43  ;;  %v4980_v15 = vmul.f32 0.5, %v4972_v17 }
0x266a   :  { %v4958_v42 = vmul.f32 0.7978846, %v4950_v24  ;;  %7101 = vtanh.f32 %v5600_v37  ;;  %v4973_v14 = vadd.f32 1.0, %v7088_v51  ;;  %v4959_v11 = vmul.f32 0.7978846, %v4951_v31 }
0x266b   :  { %7103 = vtanh.f32 %v5602_v4  ;;  %v5591_v39 = vadd.f32 %v5583_v54, %v11030_v46  ;;  %v5593_v8 = vadd.f32 %v5585_v48, %v11038_v56  ;;  %v5582_v7 = vmul.f32 %v5574_v21, %v11100_v52 }
0x266c   :  { %v7090_v36 = vpop.eup %7089  ;;  %7105 = vtanh.f32 %v4958_v42  ;;  %v4981_v50 = vmul.f32 0.5, %v4973_v14  ;;  %v5581_v59 = vmul.f32 %v11104_v58, %v11090_v9  ;;  %v4988_v40 = vmul.f32 %v4980_v15, %v11034_v62 }
0x266d   :  { %v7092_v60 = vpop.eup %7091  ;;  %7107 = vtanh.f32 %v4959_v11  ;;  %v5599_v45 = vmul.f32 0.7978846, %v5591_v39  ;;  %v5601_v63 = vmul.f32 0.7978846, %v5593_v8  ;;  %v5590_v22 = vmul.f32 0.044715, %v5582_v7 }
0x266e   :  { %v7094_v29 = vpop.eup %7093  ;;  %v5589_v44 = vmul.f32 0.044715, %v5581_v59  ;;  %v4989_v16 = vmul.f32 %v4981_v50, %v11036_v38  ;;  %v4996_v17 = vmul.f32 %v4988_v40, %v7312_v12  ;;  %v5619_v41 = vadd.f32 1.0, %v7090_v36 }
0x266f   :  { %v7096_v47 = vpop.eup %7095  ;;  %7109 = vtanh.f32 %v5599_v45  ;;  %v4976_v27 = vadd.f32 1.0, %v7094_v29  ;;  %v5598_v20 = vadd.f32 %v5590_v22, %v11100_v52  ;;  %v5620_v4 = vadd.f32 1.0, %v7092_v60 }
0x2670   :  { %7111 = vtanh.f32 %v5601_v63  ;;  %v4977_v57 = vadd.f32 1.0, %v7096_v47  ;;  %v5597_v58 = vadd.f32 %v5589_v44, %v11090_v9  ;;  %v4997_v54 = vmul.f32 %v4989_v16, %v7314_v13 }
0x2671   :  { %v5606_v25 = vmul.f32 0.7978846, %v5598_v20  ;;  %v4984_v62 = vmul.f32 0.5, %v4976_v27 }
0x2672   :  { %v7098_v19 = vpop.eup %7097  ;;  %v5605_v43 = vmul.f32 0.7978846, %v5597_v58  ;;  %v4985_v21 = vmul.f32 0.5, %v4977_v57  ;;  %v5628_v57 = vmul.f32 0.5, %v5620_v4 }
0x2673   :  { %v7100_v49 = vpop.eup %7099  ;;  %v4970_v51 = vadd.f32 1.0, %v7098_v19  ;;  %7113 = vtanh.f32 %v5606_v25  ;;  %v4992_v11 = vmul.f32 %v4984_v62, %v11075_v55 }
0x2674   :  { %v7102_v61 = vpop.eup %7101  ;;  %v4971_v35 = vadd.f32 1.0, %v7100_v49  ;;  %7115 = vtanh.f32 %v5605_v43  ;;  %v4993_v29 = vmul.f32 %v4985_v21, %v11077_v33 }
0x2675   :  { %v7104_v10 = vpop.eup %7103  ;;  %v4978_v5 = vmul.f32 0.5, %v4970_v51  ;;  %v5616_v37 = vadd.f32 1.0, %v7102_v61  ;;  %v5000_v16 = vmul.f32 %v4992_v11, %v7312_v12  ;;  %v6760_v11 = vld [vmem:[%s11385_s12 + $0x8] sm:$0xff]  }
0x2676   :  { %v7106_v24 = vpop.eup %7105  ;;  %v5618_v38 = vadd.f32 1.0, %v7104_v10  ;;  %v4979_v31 = vmul.f32 0.5, %v4971_v35  ;;  %v5627_v35 = vmul.f32 0.5, %v5619_v41 }
0x2677   :  { %v7108_v48 = vpop.eup %7107  ;;  %v4986_v15 = vmul.f32 %v4978_v5, %v11097_v18  ;;  %v4974_v42 = vadd.f32 1.0, %v7106_v24  ;;  %v5624_v14 = vmul.f32 0.5, %v5616_v37  ;;  %v6759_v24 = vld [vmem:[%s11385_s12] sm:$0xff]  }
0x2678   :  { %v5626_v39 = vmul.f32 0.5, %v5618_v38  ;;  %v4987_v8 = vmul.f32 %v4979_v31, %v11106_v28  ;;  %v4975_v36 = vadd.f32 1.0, %v7108_v48  ;;  %v5635_v38 = vmul.f32 %v5627_v35, %v11069_v23 }
0x2679   :  { %v7110_v7 = vpop.eup %7109  ;;  %v4982_v45 = vmul.f32 0.5, %v4974_v42  ;;  %v5632_v60 = vmul.f32 %v5624_v14, %v11032_v34  ;;  %v4994_v63 = vmul.f32 %v4986_v15, %v7312_v12 }
0x267a   :  { %v7112_v50 = vpop.eup %7111  ;;  %v5634_v18 = vmul.f32 %v5626_v39, %v11040_v30  ;;  %v5615_v22 = vadd.f32 1.0, %v7110_v7  ;;  %v4995_v59 = vmul.f32 %v4987_v8, %v7314_v13  ;;  %v4983_v47 = vmul.f32 0.5, %v4975_v36  ;;  %v6149_v8 = vld [vmem:[%s11390_s17 + $0x28] sm:$0xff]  ;;  %v6148_v36 = vld [vmem:[%s11390_s17 + $0x20] sm:$0xff]  ;;  %v6151_v7 = vld [vmem:[%s11390_s17 + $0x38] sm:$0xff] }
0x267b   :  { %v4990_v55 = vmul.f32 %v4982_v45, %v11119_v26  ;;  %v11163_v28 = vmul.f32 %v5632_v60, %v7314_v13  ;;  %v5617_v40 = vadd.f32 1.0, %v7112_v50  ;;  %v5006_v27 = vpack.c.bf16 %v4996_v17, %v4994_v63  ;;  %v6150_v45 = vld [vmem:[%s11390_s17 + $0x30] sm:$0xff]  ;;  %v5010_v60 = vld [vmem:[%s11437_s21] sm:$0xff]  ;;  %v5011_v50 = vld [vmem:[%s11437_s21 + $0x8] sm:$0xff] }
0x267c   :  { %v11166_v34 = vmul.f32 %v5634_v18, %v7314_v13  ;;  %v5623_v20 = vmul.f32 0.5, %v5615_v22  ;;  %v5007_v44 = vpack.c.bf16 %v4997_v54, %v4995_v59  ;;  %v4991_v33 = vmul.f32 %v4983_v47, %v11121_v2  ;;  %v5819_v63 = vld [vmem:[#allocation2] sm:$0x1]  ;;  %v5013_v18 = vld [vmem:[%s11437_s21 + $0x18] sm:$0xff] }
0x267d   :  { %v5625_v30 = vmul.f32 0.5, %v5617_v40  ;;  %v4998_v19 = vmul.f32 %v4990_v55, %v7312_v12  ;;  %v7114_v25 = vpop.eup %7113  ;;  %v5001_v17 = vmul.f32 %v4993_v29, %v7314_v13  ;;  %v11211_v42 = vmul.f32 %v5635_v38, %v7312_v12  ;;  %v5012_v29 = vld [vmem:[%s11437_s21 + $0x10] sm:$0xff]  ;;  %s7162_s21 = smov [#allocation3]  }
0x267e   :  { %v6698_v26 = vpack.i.bf16 %v11166_v34, %v11163_v28  ;;  %v5631_v49 = vmul.f32 %v5623_v20, %v11030_v46  ;;  %5051 = vmatprep.subr.bf16.mxu0 %v5007_v44  ;;  %v4999_v51 = vmul.f32 %v4991_v33, %v7314_v13  ;;  %v5622_v2 = vadd.f32 1.0, %v7114_v25  ;;  %v7116_v5 = vpop.eup %7115 }
0x267f   :  { %v5633_v58 = vmul.f32 %v5625_v30, %v11038_v56  ;;  %5052 = vmatpush1.bf16.msra.mxu0 %v5006_v27  ;;  %v5008_v61 = vpack.c.bf16 %v5000_v16, %v4998_v19  ;;  %v5710_v62 = vpack.c.bf16 %v11166_v34, %v11163_v28  ;;  %v5636_v46 = vmul.f32 %v5628_v57, %v11071_v53 }
0x2680   :  { %6699 = vrot.lane.b32.xlu1 %v6698_v26, %s11435_s0  ;;  %v5009_v10 = vpack.c.bf16 %v5001_v17, %v4999_v51  ;;  %v11182_v37 = vmul.f32 %v5631_v49, %v7312_v12  ;;  %v5630_v56 = vmul.f32 0.5, %v5622_v2  ;;  %v5621_v21 = vadd.f32 1.0, %v7116_v5 }
0x2681   :  { %v11185_v43 = vmul.f32 %v5633_v58, %v7312_v12  ;;  %v11197_v54 = vmul.f32 %v5636_v46, %v7314_v13 }
0x2682   :  { %5053 = vmatprep.subr.bf16.mxu0 %v5009_v10  ;;  %v5638_v4 = vmul.f32 %v5630_v56, %v11100_v52  ;;  %v5629_v31 = vmul.f32 0.5, %v5621_v21 }
0x2683   :  { %v6693_v41 = vpack.i.bf16 %v11185_v43, %v11182_v37  ;;  %5054 = vmatpush1.bf16.msra.mxu0 %v5008_v61  ;;  %v5709_v53 = vpack.c.bf16 %v11185_v43, %v11182_v37 }
0x2684   :  { %v11201_v48 = vmul.f32 %v5638_v4, %v7314_v13  ;;  %v5637_v15 = vmul.f32 %v5629_v31, %v11090_v9 }
0x2685   :  { %6694 = vrot.lane.b32.xlu0 %v6693_v41, %s11435_s0 }
0x2686   :  { %6130 = vmatmul.mubr.msk.bf16.vlgmr.msra.gmra.mrb[48].mxu0 %vm5044_vm8, %v6759_v24  ;;  %v6708_v52 = vpack.i.bf16 %v11201_v48, %v11197_v54  ;;  %v5712_v23 = vpack.c.bf16 %v11201_v48, %v11197_v54  ;;  %v11214_v14 = vmul.f32 %v5637_v15, %v7312_v12 }
0x2687   :  { %5093 = vmatprep.mubr.bf16.mxu0 %v7153_v32 }
0x2688   :  { %6709 = vrot.lane.b32.xlu1 %v6708_v52, %s11435_s0  ;;  %v6703_v9 = vpack.i.bf16 %v11214_v14, %v11211_v42  ;;  %v5711_v39 = vpack.c.bf16 %v11214_v14, %v11211_v42  ;;  %v6761_v42 = vld [vmem:[%s11389_s16 + $0x10] sm:$0xff]   ;;  %v6762_v14 = vld [vmem:[%s11389_s16 + $0x18] sm:$0xff]  }
0x268a   :  { %6704 = vrot.lane.b32.xlu0 %v6703_v9, %s11435_s0 }
0x268c   :  { %6719 = vrot.lane.b32.xlu1 %v6698_v26, %s11431_s23 }
0x268e   :  { %6131 = vmatmul.mubr.msk.bf16.gmra.mrb[52].mxu0 %vm5044_vm8, %v6760_v11  ;;  %6714 = vrot.lane.b32.xlu0 %v6693_v41, %s11431_s23 }
0x268f   :  { %5785 = vmatprep.mubr.bf16.mxu0 %v7153_v32 }
0x2690   :  { %6729 = vrot.lane.b32.xlu1 %v6708_v52, %s11431_s23 }
0x2692   :  { %6724 = vrot.lane.b32.xlu0 %v6703_v9, %s11431_s23  ;;  %s5910_s23 = sshll.u32 %s7162_s21, 4  ;;  %s5911_s23 = int_to_ptr.vmem [resolvable:$true] %s5910_s23 }
0x2693   :  { %s7129_s24 = scalar_lea.vmem %s5911_s23, 32  ;;  %p7134_p1 = scmp.lt.s32.totalorder %s5911_s23, %s5911_s23 }
0x2694   :  { %5724 = vperm.xlu1 %6171, %v6149_v8   ;;  %p7130_p0 = scmp.ne.s32.totalorder %s5911_s23, %s7129_s24  ;;  %p7135_p2 = scmp.lt.s32.totalorder %s7129_s24, %s7129_s24 }
0x2696   :  { %5719 = vperm.xlu0 %6172, %v6148_v36   ;;  %p7136_p3 = por %p7135_p2, %p7134_p1 }
0x2698   :  { %5734 = vperm.xlu1 %6171, %v6151_v7   ;;  %p7137_p4 = pnand %p7136_p3, %p7130_p0 }
0x269a   :  { %5729 = vperm.xlu0 %6172, %v6150_v45  }
0x269c   :  { %5016 = vperm.xlu1 %6171, %v5010_v60  }
0x269e   :  { %5822 = vperm.xlu0 %6172, %v5819_v63  }
0x26a0   :  { %5026 = vperm.xlu1 %6171, %v5012_v29  }
0x26a2   :  { %5021 = vperm.xlu0 %6172, %v5011_v50  }
0x26a6   :  { %5031 = vperm.xlu0 %6172, %v5013_v18  }
0x26f2   :  { %v6700_v22 = vpop.permute.xlu1 %6699 }
0x26f3   :  { %v6702_v59 = vunpack.i.h.bf16 %v6700_v22  ;;  %v6701_v47 = vunpack.i.l.bf16 %v6700_v22 }
0x26f7   :  { %v6695_v55 = vpop.permute.xlu0 %6694 }
0x26f8   :  { %v6697_v40 = vunpack.i.h.bf16 %v6695_v55  ;;  %v6696_v27 = vunpack.i.l.bf16 %v6695_v55 }
0x26fa   :  { %v5678_v20 = vsel %vm359_vm1, %v6702_v59, %v6697_v40  ;;  %v5677_v44 = vsel %vm359_vm1, %v6701_v47, %v6696_v27  ;;  %v5673_v33 = vsel %vm359_vm1, %v6696_v27, %v6701_v47  ;;  %v5674_v57 = vsel %vm359_vm1, %v6697_v40, %v6702_v59  ;;  %v6710_v16 = vpop.permute.xlu1 %6709 }
0x26fb   :  { %v5705_v30 = vpack.c.bf16 %v5678_v20, %v5677_v44  ;;  %v5706_v19 = vpack.c.bf16 %v5674_v57, %v5673_v33  ;;  %v6712_v25 = vunpack.i.h.bf16 %v6710_v16  ;;  %v6711_v26 = vunpack.i.l.bf16 %v6710_v16 }
0x26fc   :  { %v6705_v49 = vpop.permute.xlu0 %6704 }
0x26fd   :  { %5753 = vmatprep.subr.bf16.mxu0 %v5706_v19  ;;  %v6707_v51 = vunpack.i.h.bf16 %v6705_v49  ;;  %v6706_v17 = vunpack.i.l.bf16 %v6705_v49 }
0x26fe   :  { %5754 = vmatpush1.bf16.msra.mxu0 %v5705_v30  ;;  %v6720_v58 = vpop.permute.xlu1 %6719 }
0x26ff   :  { %v5680_v2 = vsel %vm359_vm1, %v6712_v25, %v6707_v51  ;;  %v5679_v61 = vsel %vm359_vm1, %v6711_v26, %v6706_v17  ;;  %v5675_v35 = vsel %vm359_vm1, %v6706_v17, %v6711_v26  ;;  %v5676_v10 = vsel %vm359_vm1, %v6707_v51, %v6712_v25 }
0x2700   :  { %v5707_v5 = vpack.c.bf16 %v5680_v2, %v5679_v61  ;;  %v6715_v46 = vpop.permute.xlu0 %6714  ;;  %v5708_v56 = vpack.c.bf16 %v5676_v10, %v5675_v35  ;;  %v6722_v21 = vunpack.i.h.bf16 %v6720_v58  ;;  %v6721_v24 = vunpack.i.l.bf16 %v6720_v58 }
0x2701   :  { %v6717_v41 = vunpack.i.h.bf16 %v6715_v46  ;;  %v6716_v4 = vunpack.i.l.bf16 %v6715_v46 }
0x2702   :  { %5755 = vmatprep.subr.bf16.mxu0 %v5708_v56  ;;  %v6730_v38 = vpop.permute.xlu1 %6729 }
0x2703   :  { %5756 = vmatpush1.bf16.msra.mxu0 %v5707_v5  ;;  %v6732_v15 = vunpack.i.h.bf16 %v6730_v38  ;;  %v6731_v52 = vunpack.i.l.bf16 %v6730_v38  ;;  %v5701_v8 = vsel %vm384_vm2, %v6721_v24, %v6716_v4  ;;  %v5702_v36 = vsel %vm384_vm2, %v6722_v21, %v6717_v41 }
0x2704   :  { %v6725_v31 = vpop.permute.xlu0 %6724  ;;  %5757 = vmatprep.subr.bf16.mxu0 %v5710_v62  ;;  %v5698_v28 = vsel %vm384_vm2, %v6717_v41, %v6722_v21  ;;  %v5697_v34 = vsel %vm384_vm2, %v6716_v4, %v6721_v24  ;;  %v5714_v62 = vpack.c.bf16 %v5702_v36, %v5701_v8 }
0x2705   :  { %v6727_v9 = vunpack.i.h.bf16 %v6725_v31  ;;  %v6726_v11 = vunpack.i.l.bf16 %v6725_v31 }
0x2707   :  { %5758 = vmatpush1.bf16.msra.mxu0 %v5709_v53  ;;  %v5703_v37 = vsel %vm384_vm2, %v6731_v52, %v6726_v11  ;;  %v5704_v43 = vsel %vm384_vm2, %v6732_v15, %v6727_v9  ;;  %v5713_v53 = vpack.c.bf16 %v5698_v28, %v5697_v34  ;;  %v5700_v54 = vsel %vm384_vm2, %v6727_v9, %v6732_v15 }
0x2708   :  { %5759 = vmatprep.subr.bf16.mxu0 %v5712_v23  ;;  %v5699_v48 = vsel %vm384_vm2, %v6726_v11, %v6731_v52  ;;  %v5716_v23 = vpack.c.bf16 %v5704_v43, %v5703_v37 }
0x2709   :  { %v5715_v7 = vpack.c.bf16 %v5700_v54, %v5699_v48 }
0x270b   :  { %5760 = vmatpush1.bf16.msra.mxu0 %v5711_v39 }
0x270c   :  { %5761 = vmatprep.subr.bf16.mxu0 %v5714_v62 }
0x270f   :  { %5762 = vmatpush1.bf16.msra.mxu0 %v5713_v53 }
0x2710   :  { %5763 = vmatprep.subr.bf16.mxu0 %v5716_v23 }
0x2713   :  { %5764 = vmatpush1.bf16.msra.mxu0 %v5715_v7  ;;  %v5725_v39 = vpop.permute.xlu1 %5724 }
0x2715   :  { %v5720_v0 = vpop.permute.xlu0 %5719 }
0x2716   :  { %6154 = vmatmul.mubr.msk.bf16.vlgmr.msra.gmra.mrb[56].mxu0 %vm435_vm3, %v6761_v42 }
0x2717   :  { %5795 = vmatprep.mubr.bf16.mxu0 %v7153_v32  ;;  %v5735_v60 = vpop.permute.xlu1 %5734 }
0x2719   :  { %v5730_v45 = vpop.permute.xlu0 %5729 }
0x271b   :  { %v5017_v29 = vpop.permute.xlu1 %5016 }
0x271d   :  { %v11308_v63 = vpop.permute.xlu0 %5822 }
0x271e   :  { %6155 = vmatmul.mubr.msk.bf16.gmra.mrb[60].mxu0 %vm435_vm3, %v6762_v14 }
0x271f   :  { %v5027_v30 = vpop.permute.xlu1 %5026 }
0x2721   :  { %v5022_v59 = vpop.permute.xlu0 %5021 }
0x2725   :  { %v5032_v26 = vpop.permute.xlu0 %5031 }
0x2759   :  { %v5085_v50 = vpop.f32.mrb[48].mxu0 }
0x275a   :  { %v5086_v18 = vadd.f32 %v5085_v50, %v5017_v29  ;;  %v5087_v22 = vpop.f32.mrb[49].mxu0 }
0x275b   :  { %v5088_v47 = vadd.f32 %v5087_v22, %v5017_v29  ;;  %v5089_v55 = vpop.f32.mrb[50].mxu0 }
0x275c   :  { %v5104_v32 = vmul.f32 %v5086_v18, %v7312_v12  ;;  %v5090_v40 = vadd.f32 %v5089_v55, %v5022_v59  ;;  %v5091_v27 = vpop.f32.mrb[51].mxu0 }
0x275d   :  { %v5105_v20 = vmul.f32 %v5088_v47, %v7314_v13  ;;  %v5092_v44 = vadd.f32 %v5091_v27, %v5022_v59 }
0x275e   :  { %5112 = vst [vmem:[%s11438_s15] sm:$0xff] %v5104_v32  ;;  %v5106_v33 = vmul.f32 %v5090_v40, %v7312_v12  ;;  %v7161_v40 = vmov 1966171168  }
0x275f   :  { %5113 = vst [vmem:[%s11438_s15 + $0x8] sm:$0xff] %v5105_v20  ;;  %v5107_v57 = vmul.f32 %v5092_v44, %v7314_v13  ;;  %v5883_v27 = vunpack.c.l.s4 %v7161_v40 }
0x2760   :  { %5114 = vst [vmem:[%s11438_s15 + $0x10] sm:$0xff] %v5106_v33 }
0x2761   :  { %5115 = vst [vmem:[%s11438_s15 + $0x18] sm:$0xff] %v5107_v57  ;;  %v5095_v19 = vpop.f32.mrb[52].mxu0  ;;  %v5884_v20 = vunpack.c.0.s8 %v5883_v27 }
0x2762   :  { %v5096_v16 = vadd.f32 %v5095_v19, %v5027_v30  ;;  %v5097_v25 = vpop.f32.mrb[53].mxu0 }
0x2763   :  { %v5098_v49 = vadd.f32 %v5097_v25, %v5027_v30  ;;  %v5099_v51 = vpop.f32.mrb[54].mxu0 }
0x2764   :  { %v5108_v17 = vmul.f32 %v5096_v16, %v7312_v12  ;;  %v5100_v58 = vadd.f32 %v5099_v51, %v5032_v26  ;;  %v5101_v2 = vpop.f32.mrb[55].mxu0 }
0x2765   :  { %v5109_v61 = vmul.f32 %v5098_v49, %v7314_v13  ;;  %v5102_v35 = vadd.f32 %v5101_v2, %v5032_v26 }
0x2766   :  { %5116 = vst [vmem:[%s11438_s15 + $0x20] sm:$0xff] %v5108_v17  ;;  %v5110_v10 = vmul.f32 %v5100_v58, %v7312_v12 }
0x2767   :  { %5117 = vst [vmem:[%s11438_s15 + $0x28] sm:$0xff] %v5109_v61  ;;  %v5111_v5 = vmul.f32 %v5102_v35, %v7314_v13 }
0x2768   :  { %5118 = vst [vmem:[%s11438_s15 + $0x30] sm:$0xff] %v5110_v10 }
0x2769   :  { %5119 = vst [vmem:[%s11438_s15 + $0x38] sm:$0xff] %v5111_v5 }
0x27e9   :  { %v5787_v46 = vpop.f32.mrb[56].mxu0 }
0x27ea   :  { %v5788_v56 = vadd.f32 %v5787_v46, %v5720_v0  ;;  %v5789_v21 = vpop.f32.mrb[57].mxu0 }
0x27eb   :  { %v5790_v24 = vadd.f32 %v5789_v21, %v5720_v0  ;;  %v5791_v41 = vpop.f32.mrb[58].mxu0 }
0x27ec   :  { %v5792_v4 = vadd.f32 %v5791_v41, %v5725_v39  ;;  %v5793_v38 = vpop.f32.mrb[59].mxu0  ;;  %v5806_v15 = vmul.f32 %v5788_v56, %v7312_v12 }
0x27ed   :  { %v5794_v31 = vadd.f32 %v5793_v38, %v5725_v39  ;;  %v5807_v9 = vmul.f32 %v5790_v24, %v7314_v13 }
0x27ee   :  { %v5808_v52 = vmul.f32 %v5792_v4, %v7312_v12 }
0x27ef   :  { %v5809_v11 = vmul.f32 %v5794_v31, %v7314_v13 }
0x27f0   :  { %v5815_v8 = vpack.c.bf16 %v5808_v52, %v5806_v15 }
0x27f1   :  { %v5797_v36 = vpop.f32.mrb[60].mxu0  ;;  %v5816_v28 = vpack.c.bf16 %v5809_v11, %v5807_v9 }
0x27f2   :  { %v5798_v34 = vadd.f32 %v5797_v36, %v5730_v45  ;;  %v5799_v62 = vpop.f32.mrb[61].mxu0 }
0x27f3   :  { %v5800_v37 = vadd.f32 %v5799_v62, %v5730_v45  ;;  %v5801_v43 = vpop.f32.mrb[62].mxu0  ;;  %5832 = vmatprep.subr.bf16.mxu1 %v5816_v28  ;;  %v5814_v45 = vld [vmem:[%s11439_s8] sm:$0x1] }
0x27f4   :  { %v5802_v53 = vadd.f32 %v5801_v43, %v5735_v60  ;;  %v5803_v54 = vpop.f32.mrb[63].mxu0  ;;  %5833 = vmatpush1.bf16.msra.mxu1 %v5815_v8  ;;  %v5810_v23 = vmul.f32 %v5798_v34, %v7312_v12 }
0x27f5   :  { %v5804_v48 = vadd.f32 %v5803_v54, %v5735_v60  ;;  %v5811_v42 = vmul.f32 %v5800_v37, %v7314_v13  ;;  %v5828_v60 = vrot.slane %v11308_v63, %v83_v6  ;;  %v5887_v6 = vsub.s32 %v5884_v20, %v7280_v3 }
0x27f6   :  { %v5812_v7 = vmul.f32 %v5802_v53, %v7312_v12 }
0x27f7   :  { %v5813_v14 = vmul.f32 %v5804_v48, %v7314_v13 }
0x27f8   :  { %v5817_v0 = vpack.c.bf16 %v5812_v7, %v5810_v23 }
0x27f9   :  { %v5818_v39 = vpack.c.bf16 %v5813_v14, %v5811_v42 }
0x27fb   :  { %5834 = vmatprep.subr.bf16.mxu1 %v5818_v39 }
0x27fc   :  { %5835 = vmatpush1.bf16.msra.mxu1 %v5817_v0 }
0x27ff   :  { %6156 = vmatmul.mubr.msk.bf16.vlgmr.msra.gmra.mrb[56].mxu1 %vm5044_vm8, %v5814_v45 }
0x28d2   :  { %v5866_v29 = vpop.f32.mrb[56].mxu1 }
0x28d3   :  { %v5867_v50 = vadd.f32 %v5866_v29, %v5828_v60  ;;  %v5868_v18 = vpop.f32.mrb[57].mxu1 }
0x28d4   :  { %v5869_v22 = vadd.f32 %v5868_v18, %v5828_v60  ;;  %v5870_v59 = vpop.f32.mrb[58].mxu1 }
0x28d5   :  { %v5873_v47 = vmul.f32 1.442695, %v5867_v50  ;;  %v5871_v55 = vpop.f32.mrb[59].mxu1 }
0x28d6   :  { %v5875_v32 = vmul.f32 1.442695, %v5869_v22 }
0x28d7   :  { %7117 = vpow2.f32 %v5873_v47 }
0x28d8   :  { %7119 = vpow2.f32 %v5875_v32 }
0x28e1   :  { %v7118_v44 = vpop.eup %7117 }
0x28e2   :  { %v7120_v33 = vpop.eup %7119  ;;  %v5877_v57 = vmul.f32 %v7118_v44, %v7312_v12 }
0x28e3   :  { %v5878_v30 = vmul.f32 %v7120_v33, %v7314_v13 }
0x28e5   :  { %v5881_v63 = vcombine.low %v5877_v57, %v5878_v30 }
0x28e7   :  { %v5888_v19 = vrot.slane %v5881_v63, %v5887_v6 }
0x28e9   :  { %v5895_v16 = vrot.slane %v5888_v19, %v5887_v6 }
0x28eb   :  { %5901 = vst.msk [vmem:[#allocation3] sm:$0x3] %vm5899_vm9, %v5895_v16 }
0x28ec   :  { %7140 = shalt.err (!%p7137_p4)
}
0x28ed   :  { %s11440_s25 = sld [smem:[#allocation15_spill]] }
0x28f3   :  { %s7141_s17 = scalar_lea.hbm %s11440_s25, 32 }
0x28f4   :  { %p7142_p5 = scmp.ne.s32.totalorder %s11440_s25, %s7141_s17  ;;  %p7145_p6 = scmp.lt.u32.totalorder %s7141_s17, %s11440_s25 }
0x28f6   :  { %p7147_p7 = pnand %p7145_p6, %p7142_p5 }
0x28f8   :  { %7150 = shalt.err (!%p7147_p7)
}
0x28f9   :  { %5913 = dma.vmem_to_hbm [thread:$0]  %s5911_s23, 32, %s11440_s25, [#allocation4]  }
0x28fa   :  { %7151 = dma.done.wait [#allocation4], 32  }
0x28fb   :  { %7152 = vsyncadd [#allocation4], 4294967264 }
0x28fc   :  { %5919 = vsyncpa [#allocation4], 1 }

</bundles_post_ra>
